<compile_context>
chip_gen: v5e
topology: v5e:2x2
jax: 0.10.0
libtpu: 0.0.40
codegen_flags: <defaults>
</compile_context>

<pallas_src>
import functools

import jax
import jax.numpy as jnp
from jax import lax
from jax.experimental import pallas as pl
from jax.experimental.pallas import tpu as pltpu


def _disattn_kernel(x_ref, wqkv_ref, wmu_ref, wls_ref, bmu_ref, bls_ref,
                    mu_ref, ls_ref, attn_ref, *, num_heads, head_dim, scale,
                    compute_dtype):
    H, d = num_heads, head_dim
    cdt = compute_dtype

    x = x_ref[0]                                   # (N, C)  bf16
    N, C = x.shape

    # Single dense qkv projection: full K = C contraction, 3C-wide output.
    # Column layout is [q heads 0..H-1 | k heads 0..H-1 | v heads 0..H-1].
    qkv = jnp.dot(x, wqkv_ref[...],
                  preferred_element_type=jnp.float32).astype(cdt)   # (N, 3C)

    outs = []
    # Per-head attention (static unroll; H is small and all slices are static).
    for h in range(H):
        lo = h * d
        q = qkv[:, lo:lo + d]                       # (N, d)
        k = qkv[:, C + lo:C + lo + d]               # (N, d)
        v = qkv[:, 2 * C + lo:2 * C + lo + d]       # (N, d)

        # scores = q @ k^T * scale  (contract on d directly; no k transpose)
        s = lax.dot_general(q, k, dimension_numbers=(((1,), (1,)), ((), ())),
                            preferred_element_type=jnp.float32) * scale
        # Numerically stable softmax; single exp feeds both the sum and store.
        s = s - jnp.max(s, axis=-1, keepdims=True)
        e = jnp.exp(s)
        a = e * pl.reciprocal(jnp.sum(e, axis=-1, keepdims=True), approx=True)

        attn_ref[0, h] = a.astype(attn_ref.dtype)

        # Attention-weighted values (a cast to bf16 before the MXU matmul).
        outs.append(jnp.dot(a.astype(cdt), v,
                            preferred_element_type=jnp.float32))     # (N, d) f32

    # Heads [0, H/2) form the "mu" half of the concatenated head output,
    # heads [H/2, H) the "logsigma" half (requires H even).
    mu_in = jnp.concatenate(outs[:H // 2], axis=-1).astype(cdt)      # (N, C/2)
    ls_in = jnp.concatenate(outs[H // 2:], axis=-1).astype(cdt)      # (N, C/2)

    # Dense output projections with the bias folded in (no zero/finalize RMW).
    mu_ref[0] = (jnp.dot(mu_in, wmu_ref[...],
                         preferred_element_type=jnp.float32)
                 + bmu_ref[...]).astype(mu_ref.dtype)
    ls_ref[0] = (jnp.dot(ls_in, wls_ref[...],
                         preferred_element_type=jnp.float32)
                 + bls_ref[...]).astype(ls_ref.dtype)


def dis_attention(x, w_qkv, w_mu, b_mu, w_ls, b_ls, *, num_heads,
                  qk_scale=None, compute_dtype=jnp.bfloat16,
                  attn_dtype=jnp.bfloat16):
    """Pallas implementation of DisAttention.forward (mask=None, dropout p=0).

    Weight layout: w_qkv is (C, 3C), w_mu / w_ls are (C//2, C), i.e. stored as
    (in_features, out_features) so y = x @ W + b  (== PyTorch x @ W.T + b).
    """
    B, N, C = x.shape
    H = num_heads
    assert C % H == 0 and C % 2 == 0
    # TODO(synk): odd num_heads puts the C/2 mu/logsigma split inside one head;
    # that would need a masked split and is not supported here (default H=8).
    assert H % 2 == 0, "num_heads must be even so the C/2 split is head-aligned"
    d = C // H
    scale = float(qk_scale) if qk_scale is not None else float(d) ** -0.5
    cdt = compute_dtype

    # Free XLA-side casts / reshapes (keeps the kernel lane-dense).
    x_c = x.astype(cdt)
    w_qkv_c = w_qkv.astype(cdt)                     # (C, 3C)
    w_mu_c = w_mu.astype(cdt)                       # (C/2, C)
    w_ls_c = w_ls.astype(cdt)                       # (C/2, C)
    b_mu2 = b_mu.reshape(1, C).astype(jnp.float32)
    b_ls2 = b_ls.reshape(1, C).astype(jnp.float32)

    kernel = functools.partial(_disattn_kernel, num_heads=H, head_dim=d,
                               scale=scale, compute_dtype=cdt)

    grid_spec = pltpu.PrefetchScalarGridSpec(
        num_scalar_prefetch=0,
        grid=(B,),
        in_specs=[
            pl.BlockSpec((1, N, C), lambda b: (b, 0, 0)),        # x
            pl.BlockSpec((C, 3 * C), lambda b: (0, 0)),          # w_qkv (dense)
            pl.BlockSpec((C // 2, C), lambda b: (0, 0)),         # w_mu
            pl.BlockSpec((C // 2, C), lambda b: (0, 0)),         # w_ls
            pl.BlockSpec((1, C), lambda b: (0, 0)),              # b_mu
            pl.BlockSpec((1, C), lambda b: (0, 0)),              # b_ls
        ],
        out_specs=[
            pl.BlockSpec((1, N, C), lambda b: (b, 0, 0)),        # mu
            pl.BlockSpec((1, N, C), lambda b: (b, 0, 0)),        # logsigma
            pl.BlockSpec((1, H, N, N), lambda b: (b, 0, 0, 0)),  # attn (all heads)
        ],
    )

    out_shapes = (
        jax.ShapeDtypeStruct((B, N, C), jnp.float32),
        jax.ShapeDtypeStruct((B, N, C), jnp.float32),
        jax.ShapeDtypeStruct((B, H, N, N), attn_dtype),
    )

    flops = B * (8 * N * C * C + 4 * N * N * C)
    attn_bytes = jnp.dtype(attn_dtype).itemsize
    bytes_accessed = (B * N * C * 2 + 4 * C * C * 2 + 2 * C * 4
                      + 2 * B * N * C * 4 + B * H * N * N * attn_bytes)
    cost = pl.CostEstimate(flops=flops, transcendentals=B * H * N * N,
                           bytes_accessed=bytes_accessed)

    return pl.pallas_call(
        kernel,
        out_shape=out_shapes,
        grid_spec=grid_spec,
        compiler_params=pltpu.CompilerParams(
            dimension_semantics=("parallel",)),
        cost_estimate=cost,
    )(x_c, w_qkv_c, w_mu_c, w_ls_c, b_mu2, b_ls2)


def dis_attention_reference(x, w_qkv, w_mu, b_mu, w_ls, b_ls, *, num_heads):
    """Pure-JAX (f32) reference mirroring the PyTorch forward."""
    B, N, C = x.shape
    H = num_heads
    d = C // H
    scale = d ** -0.5
    qkv = (x @ w_qkv).reshape(B, N, 3, H, d).transpose(2, 0, 3, 1, 4)
    q, k, v = qkv[0], qkv[1], qkv[2]
    attn = (q @ jnp.swapaxes(k, -2, -1)) * scale
    attn = jax.nn.softmax(attn, axis=-1)
    out = (attn @ v).transpose(0, 2, 1, 3).reshape(B, N, C)
    mu = out[:, :, :C // 2] @ w_mu + b_mu
    ls = out[:, :, C // 2:] @ w_ls + b_ls
    return mu, ls, attn


if __name__ == "__main__":
    # Small but lane-dense shapes (N and C multiples of 128, d multiple of 8).
    B, N, C, H = 2, 128, 128, 8

    key = jax.random.PRNGKey(0)
    kx, k1, k2, k3, k4, k5 = jax.random.split(key, 6)

    x = jax.random.normal(kx, (B, N, C), dtype=jnp.float32)
    w_qkv = jax.random.normal(k1, (C, 3 * C), dtype=jnp.float32) * 0.05  # qkv_bias=False
    w_mu = jax.random.normal(k2, (C // 2, C), dtype=jnp.float32) * 0.05
    b_mu = jax.random.normal(k3, (C,), dtype=jnp.float32) * 0.05
    w_ls = jax.random.normal(k4, (C // 2, C), dtype=jnp.float32) * 0.05
    b_ls = jax.random.normal(k5, (C,), dtype=jnp.float32) * 0.05

    mu, logsigma, attn = dis_attention(x, w_qkv, w_mu, b_mu, w_ls, b_ls,
                                       num_heads=H)
    jax.block_until_ready((mu, logsigma, attn))

    mu_r, ls_r, attn_r = dis_attention_reference(x, w_qkv, w_mu, b_mu, w_ls,
                                                 b_ls, num_heads=H)

    assert mu.shape == (B, N, C) and logsigma.shape == (B, N, C)
    assert attn.shape == (B, H, N, N)
    # bf16 compute in the kernel (and bf16 attn output) vs f32 reference ->
    # loosened tolerances.
    assert jnp.allclose(attn, attn_r, rtol=2e-2, atol=2e-2), \
        float(jnp.max(jnp.abs(attn - attn_r)))
    assert jnp.allclose(mu, mu_r, rtol=1e-2, atol=1e-2), \
        float(jnp.max(jnp.abs(mu - mu_r)))
    assert jnp.allclose(logsigma, ls_r, rtol=1e-2, atol=1e-2), \
        float(jnp.max(jnp.abs(logsigma - ls_r)))

    print("KERNEL_OK")
</pallas_src>

<mosaic_0001>
module attributes {stable_mosaic.version = 11 : i64} {
  func.func @_disattn_kernel(%arg0: i32, %arg1: memref<1x128x128xbf16, #tpu.memory_space<vmem>>, %arg2: memref<128x384xbf16, #tpu.memory_space<vmem>>, %arg3: memref<64x128xbf16, #tpu.memory_space<vmem>>, %arg4: memref<64x128xbf16, #tpu.memory_space<vmem>>, %arg5: memref<1x128xf32, #tpu.memory_space<vmem>>, %arg6: memref<1x128xf32, #tpu.memory_space<vmem>>, %arg7: memref<1x128x128xf32, #tpu.memory_space<vmem>>, %arg8: memref<1x128x128xf32, #tpu.memory_space<vmem>>, %arg9: memref<1x8x128x128xbf16, #tpu.memory_space<vmem>>) attributes {dimension_semantics = [#tpu.dimension_semantics<parallel>], iteration_bounds = array<i64: 2>, scalar_prefetch = 0 : i64, scratch_operands = 0 : i64, tpu.core_type = #tpu.core_type<tc>, window_params = [{transform_indices = @transform_0, window_bounds = array<i64: 1, 128, 128>}, {pipeline_mode = #tpu.pipeline_mode<synchronous>, transform_indices = @transform_1, window_bounds = array<i64: 128, 384>}, {pipeline_mode = #tpu.pipeline_mode<synchronous>, transform_indices = @transform_2, window_bounds = array<i64: 64, 128>}, {pipeline_mode = #tpu.pipeline_mode<synchronous>, transform_indices = @transform_3, window_bounds = array<i64: 64, 128>}, {pipeline_mode = #tpu.pipeline_mode<synchronous>, transform_indices = @transform_4, window_bounds = array<i64: 1, 128>}, {pipeline_mode = #tpu.pipeline_mode<synchronous>, transform_indices = @transform_5, window_bounds = array<i64: 1, 128>}, {transform_indices = @transform_6, window_bounds = array<i64: 1, 128, 128>}, {transform_indices = @transform_7, window_bounds = array<i64: 1, 128, 128>}, {transform_indices = @transform_8, window_bounds = array<i64: 1, 8, 128, 128>}]} {
    %c0 = arith.constant 0 : index
    %c0_0 = arith.constant 0 : index
    %c0_1 = arith.constant 0 : index
    %0 = vector.load %arg1[%c0, %c0_0, %c0_1] : memref<1x128x128xbf16, #tpu.memory_space<vmem>>, vector<1x128x128xbf16>
    %1 = vector.shape_cast %0 : vector<1x128x128xbf16> to vector<128x128xbf16>
    %c0_2 = arith.constant 0 : index
    %c0_3 = arith.constant 0 : index
    %2 = vector.load %arg2[%c0_2, %c0_3] : memref<128x384xbf16, #tpu.memory_space<vmem>>, vector<128x384xbf16>
    %cst = arith.constant dense<0.000000e+00> : vector<128x384xf32>
    %3 = tpu.matmul %1, %2, %cst {dimension_numbers = #tpu.dot_dimension_numbers<[1], [0], [0], [1], [0, 0, 1, 1], [], []>} : vector<128x128xbf16>, vector<128x384xbf16>, vector<128x384xf32> -> vector<128x384xf32>
    %4 = arith.truncf %3 : vector<128x384xf32> to vector<128x384xbf16>
    %5 = vector.extract_strided_slice %4 {offsets = [0, 0], sizes = [128, 16], strides = [1, 1]} : vector<128x384xbf16> to vector<128x16xbf16>
    %6 = vector.extract_strided_slice %4 {offsets = [0, 128], sizes = [128, 16], strides = [1, 1]} : vector<128x384xbf16> to vector<128x16xbf16>
    %7 = vector.extract_strided_slice %4 {offsets = [0, 256], sizes = [128, 16], strides = [1, 1]} : vector<128x384xbf16> to vector<128x16xbf16>
    %cst_4 = arith.constant dense<0.000000e+00> : vector<128x128xf32>
    %8 = tpu.matmul %5, %6, %cst_4 {dimension_numbers = #tpu.dot_dimension_numbers<[1], [1], [0], [0], [0, 0, 1, 0], [], []>} : vector<128x16xbf16>, vector<128x16xbf16>, vector<128x128xf32> -> vector<128x128xf32>
    %cst_5 = arith.constant 2.500000e-01 : f32
    %9 = vector.broadcast %cst_5 : f32 to vector<128x128xf32>
    %10 = arith.mulf %8, %9 : vector<128x128xf32>
    %cst_6 = arith.constant dense<0xFF800000> : vector<128xf32>
    %11 = vector.multi_reduction <maximumf>, %10, %cst_6 [1] : vector<128x128xf32> to vector<128xf32>
    %12 = vector.shape_cast %11 : vector<128xf32> to vector<128x1xf32>
    %13 = vector.broadcast %12 : vector<128x1xf32> to vector<128x128xf32>
    %14 = arith.subf %10, %13 : vector<128x128xf32>
    %15 = math.exp %14 : vector<128x128xf32>
    %cst_7 = arith.constant dense<0.000000e+00> : vector<128xf32>
    %16 = vector.multi_reduction <add>, %15, %cst_7 [1] : vector<128x128xf32> to vector<128xf32>
    %17 = vector.shape_cast %16 : vector<128xf32> to vector<128x1xf32>
    %18 = tpu.reciprocal %17 {approx = true} : vector<128x1xf32> -> vector<128x1xf32>
    %19 = vector.broadcast %18 : vector<128x1xf32> to vector<128x128xf32>
    %20 = arith.mulf %15, %19 : vector<128x128xf32>
    %21 = arith.truncf %20 : vector<128x128xf32> to vector<128x128xbf16>
    %c0_8 = arith.constant 0 : index
    %c0_9 = arith.constant 0 : index
    %c0_10 = arith.constant 0 : index
    %c0_11 = arith.constant 0 : index
    %22 = vector.load %arg9[%c0_8, %c0_9, %c0_10, %c0_11] : memref<1x8x128x128xbf16, #tpu.memory_space<vmem>>, vector<1x1x128x128xbf16>
    %23 = vector.shape_cast %22 : vector<1x1x128x128xbf16> to vector<128x128xbf16>
    %24 = vector.shape_cast %21 : vector<128x128xbf16> to vector<1x1x128x128xbf16>
    tpu.vector_store %arg9[%c0_8, %c0_9, %c0_10, %c0_11], %24 {strides = array<i32>} : memref<1x8x128x128xbf16, #tpu.memory_space<vmem>>, vector<1x1x128x128xbf16>,
    %25 = arith.truncf %20 : vector<128x128xf32> to vector<128x128xbf16>
    %cst_12 = arith.constant dense<0.000000e+00> : vector<128x16xf32>
    %26 = tpu.matmul %25, %7, %cst_12 {dimension_numbers = #tpu.dot_dimension_numbers<[1], [0], [0], [1], [0, 0, 1, 1], [], []>} : vector<128x128xbf16>, vector<128x16xbf16>, vector<128x16xf32> -> vector<128x16xf32>
    %27 = vector.extract_strided_slice %4 {offsets = [0, 16], sizes = [128, 16], strides = [1, 1]} : vector<128x384xbf16> to vector<128x16xbf16>
    %28 = vector.extract_strided_slice %4 {offsets = [0, 144], sizes = [128, 16], strides = [1, 1]} : vector<128x384xbf16> to vector<128x16xbf16>
    %29 = vector.extract_strided_slice %4 {offsets = [0, 272], sizes = [128, 16], strides = [1, 1]} : vector<128x384xbf16> to vector<128x16xbf16>
    %cst_13 = arith.constant dense<0.000000e+00> : vector<128x128xf32>
    %30 = tpu.matmul %27, %28, %cst_13 {dimension_numbers = #tpu.dot_dimension_numbers<[1], [1], [0], [0], [0, 0, 1, 0], [], []>} : vector<128x16xbf16>, vector<128x16xbf16>, vector<128x128xf32> -> vector<128x128xf32>
    %cst_14 = arith.constant 2.500000e-01 : f32
    %31 = vector.broadcast %cst_14 : f32 to vector<128x128xf32>
    %32 = arith.mulf %30, %31 : vector<128x128xf32>
    %cst_15 = arith.constant dense<0xFF800000> : vector<128xf32>
    %33 = vector.multi_reduction <maximumf>, %32, %cst_15 [1] : vector<128x128xf32> to vector<128xf32>
    %34 = vector.shape_cast %33 : vector<128xf32> to vector<128x1xf32>
    %35 = vector.broadcast %34 : vector<128x1xf32> to vector<128x128xf32>
    %36 = arith.subf %32, %35 : vector<128x128xf32>
    %37 = math.exp %36 : vector<128x128xf32>
    %cst_16 = arith.constant dense<0.000000e+00> : vector<128xf32>
    %38 = vector.multi_reduction <add>, %37, %cst_16 [1] : vector<128x128xf32> to vector<128xf32>
    %39 = vector.shape_cast %38 : vector<128xf32> to vector<128x1xf32>
    %40 = tpu.reciprocal %39 {approx = true} : vector<128x1xf32> -> vector<128x1xf32>
    %41 = vector.broadcast %40 : vector<128x1xf32> to vector<128x128xf32>
    %42 = arith.mulf %37, %41 : vector<128x128xf32>
    %43 = arith.truncf %42 : vector<128x128xf32> to vector<128x128xbf16>
    %c0_17 = arith.constant 0 : index
    %c1 = arith.constant 1 : index
    %c0_18 = arith.constant 0 : index
    %c0_19 = arith.constant 0 : index
    %44 = vector.load %arg9[%c0_17, %c1, %c0_18, %c0_19] : memref<1x8x128x128xbf16, #tpu.memory_space<vmem>>, vector<1x1x128x128xbf16>
    %45 = vector.shape_cast %44 : vector<1x1x128x128xbf16> to vector<128x128xbf16>
    %46 = vector.shape_cast %43 : vector<128x128xbf16> to vector<1x1x128x128xbf16>
    tpu.vector_store %arg9[%c0_17, %c1, %c0_18, %c0_19], %46 {strides = array<i32>} : memref<1x8x128x128xbf16, #tpu.memory_space<vmem>>, vector<1x1x128x128xbf16>,
    %47 = arith.truncf %42 : vector<128x128xf32> to vector<128x128xbf16>
    %cst_20 = arith.constant dense<0.000000e+00> : vector<128x16xf32>
    %48 = tpu.matmul %47, %29, %cst_20 {dimension_numbers = #tpu.dot_dimension_numbers<[1], [0], [0], [1], [0, 0, 1, 1], [], []>} : vector<128x128xbf16>, vector<128x16xbf16>, vector<128x16xf32> -> vector<128x16xf32>
    %49 = vector.extract_strided_slice %4 {offsets = [0, 32], sizes = [128, 16], strides = [1, 1]} : vector<128x384xbf16> to vector<128x16xbf16>
    %50 = vector.extract_strided_slice %4 {offsets = [0, 160], sizes = [128, 16], strides = [1, 1]} : vector<128x384xbf16> to vector<128x16xbf16>
    %51 = vector.extract_strided_slice %4 {offsets = [0, 288], sizes = [128, 16], strides = [1, 1]} : vector<128x384xbf16> to vector<128x16xbf16>
    %cst_21 = arith.constant dense<0.000000e+00> : vector<128x128xf32>
    %52 = tpu.matmul %49, %50, %cst_21 {dimension_numbers = #tpu.dot_dimension_numbers<[1], [1], [0], [0], [0, 0, 1, 0], [], []>} : vector<128x16xbf16>, vector<128x16xbf16>, vector<128x128xf32> -> vector<128x128xf32>
    %cst_22 = arith.constant 2.500000e-01 : f32
    %53 = vector.broadcast %cst_22 : f32 to vector<128x128xf32>
    %54 = arith.mulf %52, %53 : vector<128x128xf32>
    %cst_23 = arith.constant dense<0xFF800000> : vector<128xf32>
    %55 = vector.multi_reduction <maximumf>, %54, %cst_23 [1] : vector<128x128xf32> to vector<128xf32>
    %56 = vector.shape_cast %55 : vector<128xf32> to vector<128x1xf32>
    %57 = vector.broadcast %56 : vector<128x1xf32> to vector<128x128xf32>
    %58 = arith.subf %54, %57 : vector<128x128xf32>
    %59 = math.exp %58 : vector<128x128xf32>
    %cst_24 = arith.constant dense<0.000000e+00> : vector<128xf32>
    %60 = vector.multi_reduction <add>, %59, %cst_24 [1] : vector<128x128xf32> to vector<128xf32>
    %61 = vector.shape_cast %60 : vector<128xf32> to vector<128x1xf32>
    %62 = tpu.reciprocal %61 {approx = true} : vector<128x1xf32> -> vector<128x1xf32>
    %63 = vector.broadcast %62 : vector<128x1xf32> to vector<128x128xf32>
    %64 = arith.mulf %59, %63 : vector<128x128xf32>
    %65 = arith.truncf %64 : vector<128x128xf32> to vector<128x128xbf16>
    %c0_25 = arith.constant 0 : index
    %c2 = arith.constant 2 : index
    %c0_26 = arith.constant 0 : index
    %c0_27 = arith.constant 0 : index
    %66 = vector.load %arg9[%c0_25, %c2, %c0_26, %c0_27] : memref<1x8x128x128xbf16, #tpu.memory_space<vmem>>, vector<1x1x128x128xbf16>
    %67 = vector.shape_cast %66 : vector<1x1x128x128xbf16> to vector<128x128xbf16>
    %68 = vector.shape_cast %65 : vector<128x128xbf16> to vector<1x1x128x128xbf16>
    tpu.vector_store %arg9[%c0_25, %c2, %c0_26, %c0_27], %68 {strides = array<i32>} : memref<1x8x128x128xbf16, #tpu.memory_space<vmem>>, vector<1x1x128x128xbf16>,
    %69 = arith.truncf %64 : vector<128x128xf32> to vector<128x128xbf16>
    %cst_28 = arith.constant dense<0.000000e+00> : vector<128x16xf32>
    %70 = tpu.matmul %69, %51, %cst_28 {dimension_numbers = #tpu.dot_dimension_numbers<[1], [0], [0], [1], [0, 0, 1, 1], [], []>} : vector<128x128xbf16>, vector<128x16xbf16>, vector<128x16xf32> -> vector<128x16xf32>
    %71 = vector.extract_strided_slice %4 {offsets = [0, 48], sizes = [128, 16], strides = [1, 1]} : vector<128x384xbf16> to vector<128x16xbf16>
    %72 = vector.extract_strided_slice %4 {offsets = [0, 176], sizes = [128, 16], strides = [1, 1]} : vector<128x384xbf16> to vector<128x16xbf16>
    %73 = vector.extract_strided_slice %4 {offsets = [0, 304], sizes = [128, 16], strides = [1, 1]} : vector<128x384xbf16> to vector<128x16xbf16>
    %cst_29 = arith.constant dense<0.000000e+00> : vector<128x128xf32>
    %74 = tpu.matmul %71, %72, %cst_29 {dimension_numbers = #tpu.dot_dimension_numbers<[1], [1], [0], [0], [0, 0, 1, 0], [], []>} : vector<128x16xbf16>, vector<128x16xbf16>, vector<128x128xf32> -> vector<128x128xf32>
    %cst_30 = arith.constant 2.500000e-01 : f32
    %75 = vector.broadcast %cst_30 : f32 to vector<128x128xf32>
    %76 = arith.mulf %74, %75 : vector<128x128xf32>
    %cst_31 = arith.constant dense<0xFF800000> : vector<128xf32>
    %77 = vector.multi_reduction <maximumf>, %76, %cst_31 [1] : vector<128x128xf32> to vector<128xf32>
    %78 = vector.shape_cast %77 : vector<128xf32> to vector<128x1xf32>
    %79 = vector.broadcast %78 : vector<128x1xf32> to vector<128x128xf32>
    %80 = arith.subf %76, %79 : vector<128x128xf32>
    %81 = math.exp %80 : vector<128x128xf32>
    %cst_32 = arith.constant dense<0.000000e+00> : vector<128xf32>
    %82 = vector.multi_reduction <add>, %81, %cst_32 [1] : vector<128x128xf32> to vector<128xf32>
    %83 = vector.shape_cast %82 : vector<128xf32> to vector<128x1xf32>
    %84 = tpu.reciprocal %83 {approx = true} : vector<128x1xf32> -> vector<128x1xf32>
    %85 = vector.broadcast %84 : vector<128x1xf32> to vector<128x128xf32>
    %86 = arith.mulf %81, %85 : vector<128x128xf32>
    %87 = arith.truncf %86 : vector<128x128xf32> to vector<128x128xbf16>
    %c0_33 = arith.constant 0 : index
    %c3 = arith.constant 3 : index
    %c0_34 = arith.constant 0 : index
    %c0_35 = arith.constant 0 : index
    %88 = vector.load %arg9[%c0_33, %c3, %c0_34, %c0_35] : memref<1x8x128x128xbf16, #tpu.memory_space<vmem>>, vector<1x1x128x128xbf16>
    %89 = vector.shape_cast %88 : vector<1x1x128x128xbf16> to vector<128x128xbf16>
    %90 = vector.shape_cast %87 : vector<128x128xbf16> to vector<1x1x128x128xbf16>
    tpu.vector_store %arg9[%c0_33, %c3, %c0_34, %c0_35], %90 {strides = array<i32>} : memref<1x8x128x128xbf16, #tpu.memory_space<vmem>>, vector<1x1x128x128xbf16>,
    %91 = arith.truncf %86 : vector<128x128xf32> to vector<128x128xbf16>
    %cst_36 = arith.constant dense<0.000000e+00> : vector<128x16xf32>
    %92 = tpu.matmul %91, %73, %cst_36 {dimension_numbers = #tpu.dot_dimension_numbers<[1], [0], [0], [1], [0, 0, 1, 1], [], []>} : vector<128x128xbf16>, vector<128x16xbf16>, vector<128x16xf32> -> vector<128x16xf32>
    %93 = vector.extract_strided_slice %4 {offsets = [0, 64], sizes = [128, 16], strides = [1, 1]} : vector<128x384xbf16> to vector<128x16xbf16>
    %94 = vector.extract_strided_slice %4 {offsets = [0, 192], sizes = [128, 16], strides = [1, 1]} : vector<128x384xbf16> to vector<128x16xbf16>
    %95 = vector.extract_strided_slice %4 {offsets = [0, 320], sizes = [128, 16], strides = [1, 1]} : vector<128x384xbf16> to vector<128x16xbf16>
    %cst_37 = arith.constant dense<0.000000e+00> : vector<128x128xf32>
    %96 = tpu.matmul %93, %94, %cst_37 {dimension_numbers = #tpu.dot_dimension_numbers<[1], [1], [0], [0], [0, 0, 1, 0], [], []>} : vector<128x16xbf16>, vector<128x16xbf16>, vector<128x128xf32> -> vector<128x128xf32>
    %cst_38 = arith.constant 2.500000e-01 : f32
    %97 = vector.broadcast %cst_38 : f32 to vector<128x128xf32>
    %98 = arith.mulf %96, %97 : vector<128x128xf32>
    %cst_39 = arith.constant dense<0xFF800000> : vector<128xf32>
    %99 = vector.multi_reduction <maximumf>, %98, %cst_39 [1] : vector<128x128xf32> to vector<128xf32>
    %100 = vector.shape_cast %99 : vector<128xf32> to vector<128x1xf32>
    %101 = vector.broadcast %100 : vector<128x1xf32> to vector<128x128xf32>
    %102 = arith.subf %98, %101 : vector<128x128xf32>
    %103 = math.exp %102 : vector<128x128xf32>
    %cst_40 = arith.constant dense<0.000000e+00> : vector<128xf32>
    %104 = vector.multi_reduction <add>, %103, %cst_40 [1] : vector<128x128xf32> to vector<128xf32>
    %105 = vector.shape_cast %104 : vector<128xf32> to vector<128x1xf32>
    %106 = tpu.reciprocal %105 {approx = true} : vector<128x1xf32> -> vector<128x1xf32>
    %107 = vector.broadcast %106 : vector<128x1xf32> to vector<128x128xf32>
    %108 = arith.mulf %103, %107 : vector<128x128xf32>
    %109 = arith.truncf %108 : vector<128x128xf32> to vector<128x128xbf16>
    %c0_41 = arith.constant 0 : index
    %c4 = arith.constant 4 : index
    %c0_42 = arith.constant 0 : index
    %c0_43 = arith.constant 0 : index
    %110 = vector.load %arg9[%c0_41, %c4, %c0_42, %c0_43] : memref<1x8x128x128xbf16, #tpu.memory_space<vmem>>, vector<1x1x128x128xbf16>
    %111 = vector.shape_cast %110 : vector<1x1x128x128xbf16> to vector<128x128xbf16>
    %112 = vector.shape_cast %109 : vector<128x128xbf16> to vector<1x1x128x128xbf16>
    tpu.vector_store %arg9[%c0_41, %c4, %c0_42, %c0_43], %112 {strides = array<i32>} : memref<1x8x128x128xbf16, #tpu.memory_space<vmem>>, vector<1x1x128x128xbf16>,
    %113 = arith.truncf %108 : vector<128x128xf32> to vector<128x128xbf16>
    %cst_44 = arith.constant dense<0.000000e+00> : vector<128x16xf32>
    %114 = tpu.matmul %113, %95, %cst_44 {dimension_numbers = #tpu.dot_dimension_numbers<[1], [0], [0], [1], [0, 0, 1, 1], [], []>} : vector<128x128xbf16>, vector<128x16xbf16>, vector<128x16xf32> -> vector<128x16xf32>
    %115 = vector.extract_strided_slice %4 {offsets = [0, 80], sizes = [128, 16], strides = [1, 1]} : vector<128x384xbf16> to vector<128x16xbf16>
    %116 = vector.extract_strided_slice %4 {offsets = [0, 208], sizes = [128, 16], strides = [1, 1]} : vector<128x384xbf16> to vector<128x16xbf16>
    %117 = vector.extract_strided_slice %4 {offsets = [0, 336], sizes = [128, 16], strides = [1, 1]} : vector<128x384xbf16> to vector<128x16xbf16>
    %cst_45 = arith.constant dense<0.000000e+00> : vector<128x128xf32>
    %118 = tpu.matmul %115, %116, %cst_45 {dimension_numbers = #tpu.dot_dimension_numbers<[1], [1], [0], [0], [0, 0, 1, 0], [], []>} : vector<128x16xbf16>, vector<128x16xbf16>, vector<128x128xf32> -> vector<128x128xf32>
    %cst_46 = arith.constant 2.500000e-01 : f32
    %119 = vector.broadcast %cst_46 : f32 to vector<128x128xf32>
    %120 = arith.mulf %118, %119 : vector<128x128xf32>
    %cst_47 = arith.constant dense<0xFF800000> : vector<128xf32>
    %121 = vector.multi_reduction <maximumf>, %120, %cst_47 [1] : vector<128x128xf32> to vector<128xf32>
    %122 = vector.shape_cast %121 : vector<128xf32> to vector<128x1xf32>
    %123 = vector.broadcast %122 : vector<128x1xf32> to vector<128x128xf32>
    %124 = arith.subf %120, %123 : vector<128x128xf32>
    %125 = math.exp %124 : vector<128x128xf32>
    %cst_48 = arith.constant dense<0.000000e+00> : vector<128xf32>
    %126 = vector.multi_reduction <add>, %125, %cst_48 [1] : vector<128x128xf32> to vector<128xf32>
    %127 = vector.shape_cast %126 : vector<128xf32> to vector<128x1xf32>
    %128 = tpu.reciprocal %127 {approx = true} : vector<128x1xf32> -> vector<128x1xf32>
    %129 = vector.broadcast %128 : vector<128x1xf32> to vector<128x128xf32>
    %130 = arith.mulf %125, %129 : vector<128x128xf32>
    %131 = arith.truncf %130 : vector<128x128xf32> to vector<128x128xbf16>
    %c0_49 = arith.constant 0 : index
    %c5 = arith.constant 5 : index
    %c0_50 = arith.constant 0 : index
    %c0_51 = arith.constant 0 : index
    %132 = vector.load %arg9[%c0_49, %c5, %c0_50, %c0_51] : memref<1x8x128x128xbf16, #tpu.memory_space<vmem>>, vector<1x1x128x128xbf16>
    %133 = vector.shape_cast %132 : vector<1x1x128x128xbf16> to vector<128x128xbf16>
    %134 = vector.shape_cast %131 : vector<128x128xbf16> to vector<1x1x128x128xbf16>
    tpu.vector_store %arg9[%c0_49, %c5, %c0_50, %c0_51], %134 {strides = array<i32>} : memref<1x8x128x128xbf16, #tpu.memory_space<vmem>>, vector<1x1x128x128xbf16>,
    %135 = arith.truncf %130 : vector<128x128xf32> to vector<128x128xbf16>
    %cst_52 = arith.constant dense<0.000000e+00> : vector<128x16xf32>
    %136 = tpu.matmul %135, %117, %cst_52 {dimension_numbers = #tpu.dot_dimension_numbers<[1], [0], [0], [1], [0, 0, 1, 1], [], []>} : vector<128x128xbf16>, vector<128x16xbf16>, vector<128x16xf32> -> vector<128x16xf32>
    %137 = vector.extract_strided_slice %4 {offsets = [0, 96], sizes = [128, 16], strides = [1, 1]} : vector<128x384xbf16> to vector<128x16xbf16>
    %138 = vector.extract_strided_slice %4 {offsets = [0, 224], sizes = [128, 16], strides = [1, 1]} : vector<128x384xbf16> to vector<128x16xbf16>
    %139 = vector.extract_strided_slice %4 {offsets = [0, 352], sizes = [128, 16], strides = [1, 1]} : vector<128x384xbf16> to vector<128x16xbf16>
    %cst_53 = arith.constant dense<0.000000e+00> : vector<128x128xf32>
    %140 = tpu.matmul %137, %138, %cst_53 {dimension_numbers = #tpu.dot_dimension_numbers<[1], [1], [0], [0], [0, 0, 1, 0], [], []>} : vector<128x16xbf16>, vector<128x16xbf16>, vector<128x128xf32> -> vector<128x128xf32>
    %cst_54 = arith.constant 2.500000e-01 : f32
    %141 = vector.broadcast %cst_54 : f32 to vector<128x128xf32>
    %142 = arith.mulf %140, %141 : vector<128x128xf32>
    %cst_55 = arith.constant dense<0xFF800000> : vector<128xf32>
    %143 = vector.multi_reduction <maximumf>, %142, %cst_55 [1] : vector<128x128xf32> to vector<128xf32>
    %144 = vector.shape_cast %143 : vector<128xf32> to vector<128x1xf32>
    %145 = vector.broadcast %144 : vector<128x1xf32> to vector<128x128xf32>
    %146 = arith.subf %142, %145 : vector<128x128xf32>
    %147 = math.exp %146 : vector<128x128xf32>
    %cst_56 = arith.constant dense<0.000000e+00> : vector<128xf32>
    %148 = vector.multi_reduction <add>, %147, %cst_56 [1] : vector<128x128xf32> to vector<128xf32>
    %149 = vector.shape_cast %148 : vector<128xf32> to vector<128x1xf32>
    %150 = tpu.reciprocal %149 {approx = true} : vector<128x1xf32> -> vector<128x1xf32>
    %151 = vector.broadcast %150 : vector<128x1xf32> to vector<128x128xf32>
    %152 = arith.mulf %147, %151 : vector<128x128xf32>
    %153 = arith.truncf %152 : vector<128x128xf32> to vector<128x128xbf16>
    %c0_57 = arith.constant 0 : index
    %c6 = arith.constant 6 : index
    %c0_58 = arith.constant 0 : index
    %c0_59 = arith.constant 0 : index
    %154 = vector.load %arg9[%c0_57, %c6, %c0_58, %c0_59] : memref<1x8x128x128xbf16, #tpu.memory_space<vmem>>, vector<1x1x128x128xbf16>
    %155 = vector.shape_cast %154 : vector<1x1x128x128xbf16> to vector<128x128xbf16>
    %156 = vector.shape_cast %153 : vector<128x128xbf16> to vector<1x1x128x128xbf16>
    tpu.vector_store %arg9[%c0_57, %c6, %c0_58, %c0_59], %156 {strides = array<i32>} : memref<1x8x128x128xbf16, #tpu.memory_space<vmem>>, vector<1x1x128x128xbf16>,
    %157 = arith.truncf %152 : vector<128x128xf32> to vector<128x128xbf16>
    %cst_60 = arith.constant dense<0.000000e+00> : vector<128x16xf32>
    %158 = tpu.matmul %157, %139, %cst_60 {dimension_numbers = #tpu.dot_dimension_numbers<[1], [0], [0], [1], [0, 0, 1, 1], [], []>} : vector<128x128xbf16>, vector<128x16xbf16>, vector<128x16xf32> -> vector<128x16xf32>
    %159 = vector.extract_strided_slice %4 {offsets = [0, 112], sizes = [128, 16], strides = [1, 1]} : vector<128x384xbf16> to vector<128x16xbf16>
    %160 = vector.extract_strided_slice %4 {offsets = [0, 240], sizes = [128, 16], strides = [1, 1]} : vector<128x384xbf16> to vector<128x16xbf16>
    %161 = vector.extract_strided_slice %4 {offsets = [0, 368], sizes = [128, 16], strides = [1, 1]} : vector<128x384xbf16> to vector<128x16xbf16>
    %cst_61 = arith.constant dense<0.000000e+00> : vector<128x128xf32>
    %162 = tpu.matmul %159, %160, %cst_61 {dimension_numbers = #tpu.dot_dimension_numbers<[1], [1], [0], [0], [0, 0, 1, 0], [], []>} : vector<128x16xbf16>, vector<128x16xbf16>, vector<128x128xf32> -> vector<128x128xf32>
    %cst_62 = arith.constant 2.500000e-01 : f32
    %163 = vector.broadcast %cst_62 : f32 to vector<128x128xf32>
    %164 = arith.mulf %162, %163 : vector<128x128xf32>
    %cst_63 = arith.constant dense<0xFF800000> : vector<128xf32>
    %165 = vector.multi_reduction <maximumf>, %164, %cst_63 [1] : vector<128x128xf32> to vector<128xf32>
    %166 = vector.shape_cast %165 : vector<128xf32> to vector<128x1xf32>
    %167 = vector.broadcast %166 : vector<128x1xf32> to vector<128x128xf32>
    %168 = arith.subf %164, %167 : vector<128x128xf32>
    %169 = math.exp %168 : vector<128x128xf32>
    %cst_64 = arith.constant dense<0.000000e+00> : vector<128xf32>
    %170 = vector.multi_reduction <add>, %169, %cst_64 [1] : vector<128x128xf32> to vector<128xf32>
    %171 = vector.shape_cast %170 : vector<128xf32> to vector<128x1xf32>
    %172 = tpu.reciprocal %171 {approx = true} : vector<128x1xf32> -> vector<128x1xf32>
    %173 = vector.broadcast %172 : vector<128x1xf32> to vector<128x128xf32>
    %174 = arith.mulf %169, %173 : vector<128x128xf32>
    %175 = arith.truncf %174 : vector<128x128xf32> to vector<128x128xbf16>
    %c0_65 = arith.constant 0 : index
    %c7 = arith.constant 7 : index
    %c0_66 = arith.constant 0 : index
    %c0_67 = arith.constant 0 : index
    %176 = vector.load %arg9[%c0_65, %c7, %c0_66, %c0_67] : memref<1x8x128x128xbf16, #tpu.memory_space<vmem>>, vector<1x1x128x128xbf16>
    %177 = vector.shape_cast %176 : vector<1x1x128x128xbf16> to vector<128x128xbf16>
    %178 = vector.shape_cast %175 : vector<128x128xbf16> to vector<1x1x128x128xbf16>
    tpu.vector_store %arg9[%c0_65, %c7, %c0_66, %c0_67], %178 {strides = array<i32>} : memref<1x8x128x128xbf16, #tpu.memory_space<vmem>>, vector<1x1x128x128xbf16>,
    %179 = arith.truncf %174 : vector<128x128xf32> to vector<128x128xbf16>
    %cst_68 = arith.constant dense<0.000000e+00> : vector<128x16xf32>
    %180 = tpu.matmul %179, %161, %cst_68 {dimension_numbers = #tpu.dot_dimension_numbers<[1], [0], [0], [1], [0, 0, 1, 1], [], []>} : vector<128x128xbf16>, vector<128x16xbf16>, vector<128x16xf32> -> vector<128x16xf32>
    %181 = tpu.concatenate %26, %48, %70, %92 in 1 : vector<128x16xf32>, vector<128x16xf32>, vector<128x16xf32>, vector<128x16xf32> -> vector<128x64xf32>
    %182 = arith.truncf %181 : vector<128x64xf32> to vector<128x64xbf16>
    %183 = tpu.concatenate %114, %136, %158, %180 in 1 : vector<128x16xf32>, vector<128x16xf32>, vector<128x16xf32>, vector<128x16xf32> -> vector<128x64xf32>
    %184 = arith.truncf %183 : vector<128x64xf32> to vector<128x64xbf16>
    %c0_69 = arith.constant 0 : index
    %c0_70 = arith.constant 0 : index
    %185 = vector.load %arg3[%c0_69, %c0_70] : memref<64x128xbf16, #tpu.memory_space<vmem>>, vector<64x128xbf16>
    %cst_71 = arith.constant dense<0.000000e+00> : vector<128x128xf32>
    %186 = tpu.matmul %182, %185, %cst_71 {dimension_numbers = #tpu.dot_dimension_numbers<[1], [0], [0], [1], [0, 0, 1, 1], [], []>} : vector<128x64xbf16>, vector<64x128xbf16>, vector<128x128xf32> -> vector<128x128xf32>
    %c0_72 = arith.constant 0 : index
    %c0_73 = arith.constant 0 : index
    %187 = vector.load %arg5[%c0_72, %c0_73] : memref<1x128xf32, #tpu.memory_space<vmem>>, vector<1x128xf32>
    %188 = vector.broadcast %187 : vector<1x128xf32> to vector<128x128xf32>
    %189 = arith.addf %186, %188 : vector<128x128xf32>
    %c0_74 = arith.constant 0 : index
    %c0_75 = arith.constant 0 : index
    %c0_76 = arith.constant 0 : index
    %190 = vector.load %arg7[%c0_74, %c0_75, %c0_76] : memref<1x128x128xf32, #tpu.memory_space<vmem>>, vector<1x128x128xf32>
    %191 = vector.shape_cast %190 : vector<1x128x128xf32> to vector<128x128xf32>
    %192 = vector.shape_cast %189 : vector<128x128xf32> to vector<1x128x128xf32>
    tpu.vector_store %arg7[%c0_74, %c0_75, %c0_76], %192 {strides = array<i32>} : memref<1x128x128xf32, #tpu.memory_space<vmem>>, vector<1x128x128xf32>,
    %c0_77 = arith.constant 0 : index
    %c0_78 = arith.constant 0 : index
    %193 = vector.load %arg4[%c0_77, %c0_78] : memref<64x128xbf16, #tpu.memory_space<vmem>>, vector<64x128xbf16>
    %cst_79 = arith.constant dense<0.000000e+00> : vector<128x128xf32>
    %194 = tpu.matmul %184, %193, %cst_79 {dimension_numbers = #tpu.dot_dimension_numbers<[1], [0], [0], [1], [0, 0, 1, 1], [], []>} : vector<128x64xbf16>, vector<64x128xbf16>, vector<128x128xf32> -> vector<128x128xf32>
    %c0_80 = arith.constant 0 : index
    %c0_81 = arith.constant 0 : index
    %195 = vector.load %arg6[%c0_80, %c0_81] : memref<1x128xf32, #tpu.memory_space<vmem>>, vector<1x128xf32>
    %196 = vector.broadcast %195 : vector<1x128xf32> to vector<128x128xf32>
    %197 = arith.addf %194, %196 : vector<128x128xf32>
    %c0_82 = arith.constant 0 : index
    %c0_83 = arith.constant 0 : index
    %c0_84 = arith.constant 0 : index
    %198 = vector.load %arg8[%c0_82, %c0_83, %c0_84] : memref<1x128x128xf32, #tpu.memory_space<vmem>>, vector<1x128x128xf32>
    %199 = vector.shape_cast %198 : vector<1x128x128xf32> to vector<128x128xf32>
    %200 = vector.shape_cast %197 : vector<128x128xf32> to vector<1x128x128xf32>
    tpu.vector_store %arg8[%c0_82, %c0_83, %c0_84], %200 {strides = array<i32>} : memref<1x128x128xf32, #tpu.memory_space<vmem>>, vector<1x128x128xf32>,
    return
  }
  func.func @transform_0(%arg0: i32) -> (i32, i32, i32) {
    %c0_i32 = arith.constant 0 : i32
    %c0_i32_0 = arith.constant 0 : i32
    %c0_i32_1 = arith.constant 0 : i32
    return %arg0, %c0_i32, %c0_i32_0 : i32, i32, i32
  }
  func.func @transform_1(%arg0: i32) -> (i32, i32) {
    %c0_i32 = arith.constant 0 : i32
    %c0_i32_0 = arith.constant 0 : i32
    %c0_i32_1 = arith.constant 0 : i32
    return %c0_i32, %c0_i32_0 : i32, i32
  }
  func.func @transform_2(%arg0: i32) -> (i32, i32) {
    %c0_i32 = arith.constant 0 : i32
    %c0_i32_0 = arith.constant 0 : i32
    %c0_i32_1 = arith.constant 0 : i32
    return %c0_i32, %c0_i32_0 : i32, i32
  }
  func.func @transform_3(%arg0: i32) -> (i32, i32) {
    %c0_i32 = arith.constant 0 : i32
    %c0_i32_0 = arith.constant 0 : i32
    %c0_i32_1 = arith.constant 0 : i32
    return %c0_i32, %c0_i32_0 : i32, i32
  }
  func.func @transform_4(%arg0: i32) -> (i32, i32) {
    %c0_i32 = arith.constant 0 : i32
    %c0_i32_0 = arith.constant 0 : i32
    %c0_i32_1 = arith.constant 0 : i32
    return %c0_i32, %c0_i32_0 : i32, i32
  }
  func.func @transform_5(%arg0: i32) -> (i32, i32) {
    %c0_i32 = arith.constant 0 : i32
    %c0_i32_0 = arith.constant 0 : i32
    %c0_i32_1 = arith.constant 0 : i32
    return %c0_i32, %c0_i32_0 : i32, i32
  }
  func.func @transform_6(%arg0: i32) -> (i32, i32, i32) {
    %c0_i32 = arith.constant 0 : i32
    %c0_i32_0 = arith.constant 0 : i32
    %c0_i32_1 = arith.constant 0 : i32
    return %arg0, %c0_i32, %c0_i32_0 : i32, i32, i32
  }
  func.func @transform_7(%arg0: i32) -> (i32, i32, i32) {
    %c0_i32 = arith.constant 0 : i32
    %c0_i32_0 = arith.constant 0 : i32
    %c0_i32_1 = arith.constant 0 : i32
    return %arg0, %c0_i32, %c0_i32_0 : i32, i32, i32
  }
  func.func @transform_8(%arg0: i32) -> (i32, i32, i32, i32) {
    %c0_i32 = arith.constant 0 : i32
    %c0_i32_0 = arith.constant 0 : i32
    %c0_i32_1 = arith.constant 0 : i32
    %c0_i32_2 = arith.constant 0 : i32
    return %arg0, %c0_i32, %c0_i32_0, %c0_i32_1 : i32, i32, i32, i32
  }
}

</mosaic_0001>

<bundles_post_ra>
// kernel: tpu_custom_call.1
= control target key start
LH: loop header
LB: loop body
LE: loop exit
PB: predicated region body
PF: predicated region fallthrough
CT: control target
= control target key end

     0   :  { %s10414_s0 = inlined_call_operand.hbm [shape: bf16[2,128,128], index: 0, kind: input, shape index: {}]   ;;  %s10415_s1 = inlined_call_operand.hbm [shape: bf16[128,384], index: 1, kind: input, shape index: {}]   ;;  %s10416_s2 = inlined_call_operand.hbm [shape: bf16[64,128], index: 2, kind: input, shape index: {}]   ;;  %s10417_s3 = inlined_call_operand.hbm [shape: bf16[64,128], index: 3, kind: input, shape index: {}]   ;;  %s10418_s4 = inlined_call_operand.vmem [shape: f32[1,128], index: 4, kind: input, shape index: {}]   ;;  %s10419_s5 = inlined_call_operand.vmem [shape: f32[1,128], index: 5, kind: input, shape index: {}]   ;;  %s10420_s6 = inlined_call_operand.hbm [shape: f32[2,128,128], index: 6, kind: output, shape index: {0}]   ;;  %s10421_s7 = inlined_call_operand.hbm [shape: f32[2,128,128], index: 7, kind: output, shape index: {1}]   ;;  %s10422_s8 = inlined_call_operand.hbm [shape: bf16[2,8,128,128], index: 8, kind: output, shape index: {2}]  }
   0x1   :  { %10487 = sst [smem:[#allocation81_spill]] %s10414_s0 }
   0x2   :  { %10488 = sst [smem:[#allocation82_spill]] %s10415_s1 }
   0x3   :  { %10489 = sst [smem:[#allocation83_spill]] %s10416_s2 }
   0x4   :  { %10490 = sst [smem:[#allocation84_spill]] %s10417_s3 }
   0x5   :  { %10491 = sst [smem:[#allocation85_spill]] %s10418_s4 }
   0x6   :  { %14 = vsyncpa [#allocation3], 0 }
   0x7   :  { %16 = vsyncpa [#allocation3 + $0x1], 0 }
   0x8   :  { %17 = vsyncpa [#allocation6], 0 }
   0x9   :  { %18 = vsyncpa [#allocation9], 0 }
   0xa   :  { %19 = vsyncpa [#allocation4], 0 }
   0xb   :  { %21 = vsyncpa [#allocation4 + $0x1], 0 }
   0xc   :  { %22 = vsyncpa [#allocation12], 0 }
   0xd   :  { %24 = vsyncpa [#allocation12 + $0x1], 0  ;;  %s7368_s27 = smov 0   ;;  %s7370_s28 = smov 0  }
   0xe   :  { %s7372_s29 = smov 0   ;;  %s7374_s30 = smov 0  }
   0xf LB: > { %s7389_s9 = sadd.s32 4294967295, %s7304_s30   ;;  %s10423_s10 = sadd.s32 4294967294, %s7304_s30   ;;  %s7304_s30 = sphi %s7374_s30, %s10779_s30   ;;  %s7300_s29 = sphi %s7372_s29, %s10778_s29   ;;  %s7296_s28 = sphi %s7370_s28, %s10777_s28   ;;  %s7292_s27 = sphi %s7368_s27, %s10776_s27  }
  0x10   : > { %p50_p0 = scmp.ne.s32.totalorder %s7296_s28, %s7292_s27  ;;  %p51_p1 = scmp.eq.s32.totalorder %s7389_s9, 0 }
  0x11   : > { %p179_p2 = scmp.eq.s32.totalorder %s7389_s9, 1  ;;  %p185_p3 = scmp.eq.s32.totalorder %s10423_s10, 1 }
  0x12   : > { %p7400_p4 = por %p51_p1, %p50_p0  ;;  %p5373_p5 = scmp.ge.s32.totalorder %s7304_s30, 1 }
  0x13   : > { %p7405_p6 = por %p185_p3, %p50_p0  ;;  %p244_p7 = scmp.lt.s32.totalorder %s7304_s30, 3 }
  0x14   : > { %s10494_s1 = sld [smem:[#allocation82_spill]]  ;;  %s7306_s17 = smov [#allocation5]  }
  0x15   : > { %p7413_p8 = pnand %p5373_p5, %p244_p7  ;;  %s257_s18 = sshll.u32 %s7306_s17, 4  ;;  %s258_s18 = int_to_ptr.vmem [resolvable:$true] %s257_s18 }
  0x16   : > { %s10497_s2 = sld [smem:[#allocation83_spill]]  ;;  %s7307_s23 = smov 192  }
  0x17   : > { %p6215_p9 = pneg %p7413_p8  ;;  %s7308_s24 = smov 12  }
  0x18   : > { %s7309_s25 = smov [#allocation7]   ;;  %s10424_s13 = smov 64  }
  0x19   : > { %p7421_p10 = pnand %p6215_p9, %p51_p1  ;;  %s271_s26 = sshll.u32 %s7309_s25, 4  ;;  %s272_s26 = int_to_ptr.vmem [resolvable:$true] %s271_s26 }
  0x1a   : > { %s255_s15 = sshll.u32 %s10494_s1, 4  ;;  %s10425_s14 = smov 4   ;;  %s256_s15 = int_to_ptr.hbm [resolvable:$true] %s255_s15 }
  0x1b   : > { %6218 = dma.hbm_to_vmem [thread:$0]  (!%p7421_p10), %s256_s15, 3072, %s258_s18, [#allocation6], %s7307_s23, %s7307_s23, %s7308_s24  }
  0x1c   : > { %s269_s22 = sshll.u32 %s10497_s2, 4  ;;  %s10498_s3 = sld [smem:[#allocation84_spill]]  ;;  %s270_s22 = int_to_ptr.hbm [resolvable:$true] %s269_s22 }
  0x1d   : > { %6221 = dma.hbm_to_vmem [thread:$0]  (!%p7421_p10), %s270_s22, 512, %s272_s26, [#allocation6], %s10424_s13, %s10424_s13, %s10425_s14  }
  0x1e   : > { %s7312_s18 = smov [#allocation8]   ;;  %s7445_s23 = sadd.s32 1, %s7304_s30  }
  0x1f   : > { %s285_s21 = sshll.u32 %s7312_s18, 4  ;;  %s34_s24 = ssub.s32 %s7304_s30, %s7445_s23  ;;  %s286_s21 = int_to_ptr.vmem [resolvable:$true] %s285_s21 }
  0x20   : > { %s37_s22 = sadd.s32 1, %s7300_s29  ;;  %p35_p12 = scmp.eq.s32.totalorder %s34_s24, 0 }
  0x21   : > { %p44_p13 = scmp.ne.s32.totalorder %s7300_s29, %s7296_s28  ;;  %p45_p0 = scmp.eq.s32.totalorder %s7304_s30, 0 }
  0x22   : > { %s283_s15 = sshll.u32 %s10498_s3, 4  ;;  %p6242_p5 = scmp.lt.s32.totalorder %s7304_s30, 2  ;;  %s284_s15 = int_to_ptr.hbm [resolvable:$true] %s283_s15 }
  0x23   : > { %6224 = dma.hbm_to_vmem [thread:$0]  (!%p7421_p10), %s284_s15, 512, %s286_s21, [#allocation9], %s10424_s13, %s10424_s13, %s10425_s14  }
  0x24   : > { %s7454_s25 = scalar_select %p35_p12, %s7300_s29, %s37_s22  }
  0x25   : > { %p7458_p3 = por %p179_p2, %p44_p13  ;;  %s305_s19 = sand.u32 1, %s7300_s29  }
  0x26   : > { %s5752_s17 = sshll.u32 %s7304_s30, 6  ;;  %p46_p7 = por %p45_p0, %p44_p13 }
  0x27   : > { %s5378_s20 = sshll.u32 %s305_s19, 6  ;;  %s10500_s0 = sld [smem:[#allocation81_spill]] }
  0x28   : > { %s309_s24 = scalar_lea.vmem [#allocation2], %s5378_s20  ;;  %p7468_p9 = pnand %p6242_p5, %p46_p7 }
  0x29   : > { %s317_s13 = sshll.u32 %s309_s24, 4  ;;  %s306_s14 = scalar_lea.sflag [#allocation3], %s305_s19  ;;  %s318_s13 = int_to_ptr.vmem [resolvable:$true] %s317_s13 }
  0x2a   : > { %p7144_p10 = pneg %p7468_p9 }
  0x2d   : > { %s314_s21 = scalar_lea.hbm %s10500_s0, %s5752_s17  ;;  %s7147_s20 = scalar_lea.hbm %s10500_s0, 128 }
  0x2e   : > { %s315_s10 = sshll.u32 %s314_s21, 4  ;;  %s316_s10 = int_to_ptr.hbm [resolvable:$true] %s315_s10 }
  0x2f   : > { %s7140_s1 = sshra.s32 %s316_s10, 4  ;;  %s7141_s1 = int_to_ptr.hbm [resolvable:$true] %s7140_s1 }
  0x30   : > { %s7142_s2 = scalar_lea.hbm %s7141_s1, 64  ;;  %p7148_p0 = scmp.lt.s32.totalorder %s7141_s1, %s10500_s0 }
  0x31   : > { %p7143_p2 = scmp.ne.s32.totalorder %s7141_s1, %s7142_s2  ;;  %p7149_p5 = scmp.lt.s32.totalorder %s7147_s20, %s7142_s2 }
  0x33   : > { %p7145_p12 = pnand %p7144_p10, %p7143_p2  ;;  %p7150_p7 = por %p7149_p5, %p7148_p0 }
  0x35   : > { %p7146_p13 = pneg %p7145_p12 }
  0x37   : > { %p7151_p11 = pnand %p7150_p7, %p7146_p13 }
  0x39   : > { %7154 = shalt.err (!%p7151_p11)
}
  0x3a   : > { %s10502_s19 = smov 4   ;;  %s10503_s24 = smov 64  }
  0x3b   : > { %6228 = dma.hbm_to_vmem [thread:$0]  (!%p7468_p9), %s316_s10, 1024, %s318_s13, %s306_s14, %s10503_s24, %s10503_s24, %s10502_s19  }
  0x3c   : > { %329 = sbr.rel (%p7413_p8) target bundleno = 2679 (0xa77), region = 44 }
  0x41   : > { %s7488_s17 = sand.u32 1, %s7296_s28  }
  0x42   : > { %s5382_s1 = sshll.u32 %s7488_s17, 6  ;;  %s332_s2 = scalar_lea.sflag [#allocation3], %s7488_s17 }
  0x43   : > { %s7492_s15 = scalar_lea.vmem [#allocation2], %s5382_s1 }
  0x44   : > { %7271 = dma.done.wait (%p7400_p4), %s332_s2, 1024  }
  0x45   : > { %7273 = vsyncadd (%p7400_p4), %s332_s2, 4294966272 }
  0x46   : > { %7275 = dma.done.wait (%p51_p1), [#allocation6], 3584  }
  0x47   : > { %7277 = vsyncadd (%p51_p1), [#allocation6], 4294963712 }
  0x48   : > { %7279 = dma.done.wait (%p51_p1), [#allocation9], 512  }
  0x49   : > { %7281 = vsyncadd (%p51_p1), [#allocation9], 4294966784  ;;  %v5507_v0 = vld [vmem:[#allocation5 + $0xa8] sm:$0xf]  ;;  %v5783_v1 = vld [vmem:[#allocation5 + $0xb0] sm:$0xf0] }
  0x4a   : > { %v5495_v2 = vld [vmem:[#allocation5 + $0x90] sm:$0xf]  ;;  %v5508_v3 = vor.u32 %v5783_v1, %v5507_v0  ;;  %v5780_v4 = vld [vmem:[#allocation5 + $0x98] sm:$0xf0]  ;;  %v5483_v6 = vld [vmem:[#allocation5 + $0x78] sm:$0xf] }
  0x4b   : > { %v5496_v5 = vor.u32 %v5780_v4, %v5495_v2  ;;  %v5777_v7 = vld [vmem:[#allocation5 + $0x80] sm:$0xf0]  ;;  %v5471_v9 = vld [vmem:[#allocation5 + $0x60] sm:$0xf]  ;;  %v5774_v10 = vld [vmem:[#allocation5 + $0x68] sm:$0xf0] }
  0x4c   : > { %6179 = vmatpush.bf16.msra.mxu1 %v5508_v3  ;;  %6180 = vmatpush.bf16.msra.mxu2 %v5508_v3  ;;  %v5484_v8 = vor.u32 %v5777_v7, %v5483_v6  ;;  %v5472_v11 = vor.u32 %v5774_v10, %v5471_v9  ;;  %v5459_v12 = vld [vmem:[#allocation5 + $0x48] sm:$0xf]  ;;  %v5771_v13 = vld [vmem:[#allocation5 + $0x50] sm:$0xf0]  ;;  %v5447_v15 = vld [vmem:[#allocation5 + $0x30] sm:$0xf] }
  0x4d   : > { %619 = vmatpush.bf16.msra.mxu0 %v5508_v3  ;;  %v5460_v14 = vor.u32 %v5771_v13, %v5459_v12  ;;  %v5768_v16 = vld [vmem:[#allocation5 + $0x38] sm:$0xf0]  ;;  %v5435_v18 = vld [vmem:[#allocation5 + $0x18] sm:$0xf]  ;;  %v5765_v19 = vld [vmem:[#allocation5 + $0x20] sm:$0xf0] }
  0x4e   : > { %v5448_v17 = vor.u32 %v5768_v16, %v5447_v15  ;;  %v5436_v20 = vor.u32 %v5765_v19, %v5435_v18  ;;  %v5423_v21 = vld [vmem:[#allocation5] sm:$0xf]  ;;  %v5762_v22 = vld [vmem:[#allocation5 + $0x8] sm:$0xf0]  ;;  %v5509_v24 = vld [vmem:[#allocation5 + $0xb4] sm:$0xf0] }
  0x4f   : > { %v5782_v23 = vld [vmem:[#allocation5 + $0xac] sm:$0xf]  ;;  %v5515_v25 = vld [vmem:[#allocation5 + $0xb0] sm:$0xf]  ;;  %v5784_v26 = vld [vmem:[#allocation5 + $0xb8] sm:$0xf0]  ;;  %v5424_v27 = vor.u32 %v5762_v22, %v5423_v21 }
  0x50   : > { %6181 = vmatpush.bf16.msra.mxu1 %v5496_v5  ;;  %6182 = vmatpush.bf16.msra.mxu2 %v5496_v5  ;;  %v5512_v28 = vor.u32 %v5782_v23, %v5509_v24  ;;  %v5779_v29 = vld [vmem:[#allocation5 + $0x94] sm:$0xf]  ;;  %v5516_v30 = vor.u32 %v5784_v26, %v5515_v25  ;;  %v5497_v31 = vld [vmem:[#allocation5 + $0x9c] sm:$0xf0]  ;;  %v5503_v32 = vld [vmem:[#allocation5 + $0x98] sm:$0xf] }
  0x51   : > { %620 = vmatpush.bf16.msra.mxu0 %v5496_v5  ;;  %v5781_v33 = vld [vmem:[#allocation5 + $0xa0] sm:$0xf0]  ;;  %v7507_v34 = vld [vmem:[%s7492_s15 + $0x18] sm:$0xff]  ;;  %v7510_v35 = vld [vmem:[%s7492_s15 + $0x28] sm:$0xff]  ;;  %v5500_v36 = vor.u32 %v5779_v29, %v5497_v31  ;;  %s7313_s10 = smov 96   ;;  %s7314_s11 = smov 112  }
  0x52   : > { %v5776_v37 = vld [vmem:[#allocation5 + $0x7c] sm:$0xf]  ;;  %v5485_v38 = vld [vmem:[#allocation5 + $0x84] sm:$0xf0]  ;;  %v5504_v39 = vor.u32 %v5781_v33, %v5503_v32  ;;  %v7513_v40 = vld [vmem:[%s7492_s15] sm:$0xff]  ;;  %s7315_s16 = smov 80  }
  0x53   : > { %v5491_v41 = vld [vmem:[#allocation5 + $0x80] sm:$0xf]  ;;  %v5778_v42 = vld [vmem:[#allocation5 + $0x88] sm:$0xf0]  ;;  %v5488_v43 = vor.u32 %v5776_v37, %v5485_v38  ;;  %v5773_v44 = vld [vmem:[#allocation5 + $0x64] sm:$0xf] }
  0x54   : > { %6183 = vmatpush.bf16.msra.mxu1 %v5484_v8  ;;  %6184 = vmatpush.bf16.msra.mxu2 %v5484_v8  ;;  %v5492_v45 = vor.u32 %v5778_v42, %v5491_v41  ;;  %v5473_v46 = vld [vmem:[#allocation5 + $0x6c] sm:$0xf0]  ;;  %v5479_v47 = vld [vmem:[#allocation5 + $0x68] sm:$0xf]  ;;  %v5775_v48 = vld [vmem:[#allocation5 + $0x70] sm:$0xf0] }
  0x55   : > { %621 = vmatpush.bf16.msra.mxu0 %v5484_v8  ;;  %v5476_v49 = vor.u32 %v5773_v44, %v5473_v46  ;;  %v5770_v50 = vld [vmem:[#allocation5 + $0x4c] sm:$0xf]  ;;  %v5480_v51 = vor.u32 %v5775_v48, %v5479_v47  ;;  %v5461_v52 = vld [vmem:[#allocation5 + $0x54] sm:$0xf0]  ;;  %v5467_v53 = vld [vmem:[#allocation5 + $0x50] sm:$0xf] }
  0x56   : > { %v5772_v54 = vld [vmem:[#allocation5 + $0x58] sm:$0xf0]  ;;  %v5464_v55 = vor.u32 %v5770_v50, %v5461_v52  ;;  %v5767_v56 = vld [vmem:[#allocation5 + $0x34] sm:$0xf]  ;;  %v5449_v58 = vld [vmem:[#allocation5 + $0x3c] sm:$0xf0] }
  0x57   : > { %v5468_v57 = vor.u32 %v5772_v54, %v5467_v53  ;;  %v5455_v59 = vld [vmem:[#allocation5 + $0x38] sm:$0xf]  ;;  %v5769_v60 = vld [vmem:[#allocation5 + $0x40] sm:$0xf0]  ;;  %v5759_v62 = vld [vmem:[%s7492_s15 + $0x30] sm:$0xff]  ;;  %v5452_v63 = vor.u32 %v5767_v56, %v5449_v58  ;;  %s10486_s13 = smov 64  }
  0x58   : > { %6185 = vmatpush.bf16.msra.mxu1 %v5472_v11  ;;  %6186 = vmatpush.bf16.msra.mxu2 %v5472_v11  ;;  %v5757_v61 = vld [vmem:[%s7492_s15 + $0x20] sm:$0xff]  ;;  %v5764_v0 = vld [vmem:[#allocation5 + $0x1c] sm:$0xf]  ;;  %v5437_v1 = vld [vmem:[#allocation5 + $0x24] sm:$0xf0]  ;;  %v5456_v2 = vor.u32 %v5769_v60, %v5455_v59  ;;  %vm862_vm0 = vcmask 130048  }
  0x59   : > { %622 = vmatpush.bf16.msra.mxu0 %v5472_v11  ;;  %v5443_v3 = vld [vmem:[#allocation5 + $0x20] sm:$0xf]  ;;  %v5766_v4 = vld [vmem:[#allocation5 + $0x28] sm:$0xf0]  ;;  %v5440_v6 = vor.u32 %v5764_v0, %v5437_v1  ;;  %v5761_v7 = vld [vmem:[#allocation5 + $0x4] sm:$0xf] }
  0x5a   : > { %v5754_v5 = vld [vmem:[%s7492_s15 + $0x8] sm:$0xff]  ;;  %v5444_v8 = vor.u32 %v5766_v4, %v5443_v3  ;;  %v5425_v9 = vld [vmem:[#allocation5 + $0xc] sm:$0xf0]  ;;  %v5763_v11 = vld [vmem:[#allocation5 + $0x10] sm:$0xf0]  ;;  %s7317_s14 = smov 48  }
  0x5b   : > { %v5431_v10 = vld [vmem:[#allocation5 + $0x8] sm:$0xf]  ;;  %v5428_v12 = vor.u32 %v5761_v7, %v5425_v9  ;;  %v5755_v15 = vld [vmem:[%s7492_s15 + $0x10] sm:$0xff]  ;;  %s7318_s22 = smov 32   ;;  %s7319_s20 = smov 16   ;;  %vm4606_vm1 = vcmask 261120  }
  0x5c   : > { %6187 = vmatpush.bf16.msra.mxu1 %v5460_v14  ;;  %6188 = vmatpush.bf16.msra.mxu2 %v5460_v14  ;;  %v5432_v13 = vor.u32 %v5763_v11, %v5431_v10  ;;  %s5388_s18 = sshll.u32 %s7488_s17, 9  ;;  %vm4623_vm2 = vcmask 392192   ;;  %vm4932_vm3 = vcmask 523264   ;;  %s5386_s19 = sshll.u32 %s7488_s17, 7 }
  0x5d   : > { %623 = vmatpush.bf16.msra.mxu0 %v5460_v14  ;;  %v5760_v14 = vld [vmem:[%s7492_s15 + $0x38] sm:$0xff]  ;;  %s8514_s21 = scalar_lea.vmem [#allocation13], %s5388_s18  ;;  %s10766_s4 = sld [smem:[#allocation85_spill]] }
  0x5e   : > { %s10190_s2 = scalar_lea.vmem [#allocation10], %s5386_s19  ;;  %s5148_s24 = scalar_lea.sflag [#allocation4], %s7488_s17 }
  0x5f   : > { %s5170_s18 = sshll.u32 %s10190_s2, 4  ;;  %s5171_s18 = int_to_ptr.vmem [resolvable:$true] %s5170_s18 }
  0x60   : > { %6189 = vmatpush.bf16.msra.mxu1 %v5448_v17  ;;  %6190 = vmatpush.bf16.msra.mxu2 %v5448_v17 }
  0x61   : > { %624 = vmatpush.bf16.msra.mxu0 %v5448_v17 }
  0x64   : > { %6191 = vmatpush.bf16.msra.mxu1 %v5436_v20  ;;  %6192 = vmatpush.bf16.msra.mxu2 %v5436_v20 }
  0x65   : > { %625 = vmatpush.bf16.msra.mxu0 %v5436_v20 }
  0x68   : > { %6193 = vmatpush.bf16.msra.mxu1 %v5424_v27  ;;  %6194 = vmatpush.bf16.msra.mxu2 %v5424_v27 }
  0x69   : > { %626 = vmatpush.bf16.msra.mxu0 %v5424_v27 }
  0x6b   : > { %642 = vmatmul.bf16.vlgmr.msra.gmra.mxu1 %v7507_v34  ;;  %652 = vmatmul.bf16.vlgmr.msra.gmra.mxu2 %v7510_v35 }
  0x6c   : > { %668 = vmatpush.bf16.msrb.mxu1 %v5512_v28  ;;  %717 = vmatpush.bf16.msrb.mxu2 %v5516_v30 }
  0x6d   : > { %627 = vmatmul.bf16.vlgmr.msra.gmra.mxu0 %v7513_v40 }
  0x70   : > { %669 = vmatpush.bf16.msrb.mxu1 %v5500_v36  ;;  %718 = vmatpush.bf16.msrb.mxu2 %v5504_v39 }
  0x74   : > { %670 = vmatpush.bf16.msrb.mxu1 %v5488_v43  ;;  %719 = vmatpush.bf16.msrb.mxu2 %v5492_v45 }
  0x78   : > { %671 = vmatpush.bf16.msrb.mxu1 %v5476_v49  ;;  %720 = vmatpush.bf16.msrb.mxu2 %v5480_v51 }
  0x7b   : > { %647 = vmatmul.bf16.gmra.mxu1 %v5757_v61  ;;  %657 = vmatmul.bf16.gmra.mxu2 %v5759_v62 }
  0x7c   : > { %672 = vmatpush.bf16.msrb.mxu1 %v5464_v55  ;;  %721 = vmatpush.bf16.msrb.mxu2 %v5468_v57 }
  0x7d   : > { %632 = vmatmul.bf16.gmra.mxu0 %v5754_v5 }
  0x80   : > { %673 = vmatpush.bf16.msrb.mxu1 %v5452_v63  ;;  %722 = vmatpush.bf16.msrb.mxu2 %v5456_v2 }
  0x84   : > { %674 = vmatpush.bf16.msrb.mxu1 %v5440_v6  ;;  %723 = vmatpush.bf16.msrb.mxu2 %v5444_v8 }
  0x88   : > { %675 = vmatpush.bf16.msrb.mxu1 %v5428_v12  ;;  %724 = vmatpush.bf16.msrb.mxu2 %v5432_v13 }
  0x8b   : > { %662 = vmatmul.bf16.gmra.mxu2 %v5760_v14  ;;  %676 = vmatmul.bf16.vlgmr.msrb.gmra.mxu1 %v7513_v40 }
  0x8d   : > { %637 = vmatmul.bf16.gmra.mxu0 %v5755_v15 }
  0x9b   : > { %681 = vmatmul.bf16.gmra.mxu1 %v5754_v5  ;;  %725 = vmatmul.bf16.vlgmr.msrb.gmra.mxu2 %v7513_v40 }
  0xab   : > { %686 = vmatmul.bf16.gmra.mxu1 %v5755_v15  ;;  %730 = vmatmul.bf16.gmra.mxu2 %v5754_v5 }
  0xbb   : > { %691 = vmatmul.bf16.gmra.mxu1 %v7507_v34  ;;  %735 = vmatmul.bf16.gmra.mxu2 %v5755_v15 }
  0xcb   : > { %696 = vmatmul.bf16.gmra.mxu1 %v5757_v61  ;;  %740 = vmatmul.bf16.gmra.mxu2 %v7507_v34 }
  0xdb   : > { %701 = vmatmul.bf16.gmra.mxu1 %v7510_v35  ;;  %745 = vmatmul.bf16.gmra.mxu2 %v5757_v61 }
  0xe8   : > { %v7528_v16 = vpop.f32.mrf.mxu1 }
  0xea   : > { %v628_v23 = vpop.f32.mrf.mxu0 }
  0xeb   : > { %706 = vmatmul.bf16.gmra.mxu1 %v5759_v62  ;;  %750 = vmatmul.bf16.gmra.mxu2 %v7510_v35 }
  0xee   : > { %v7531_v17 = vpop.f32.mrf.mxu2 }
  0xf0   : > { %v7533_v18 = vpop.f32.mrf.mxu1 }
  0xf2   : > { %v630_v26 = vpop.f32.mrf.mxu0 }
  0xf6   : > { %v7535_v19 = vpop.f32.mrf.mxu2 }
  0xf8   : > { %v7537_v20 = vpop.f32.mrf.mxu1 }
  0xfa   : > { %v633_v35 = vpop.f32.mrf.mxu0 }
  0xfb   : > { %711 = vmatmul.bf16.gmra.mxu1 %v5760_v14  ;;  %755 = vmatmul.bf16.gmra.mxu2 %v5759_v62 }
  0xfe   : > { %v7539_v21 = vpop.f32.mrf.mxu2 }
 0x100   : > { %v7541_v22 = vpop.f32.mrf.mxu1 }
 0x102   : > { %v635_v42 = vpop.f32.mrf.mxu0 }
 0x106   : > { %v7543_v24 = vpop.f32.mrf.mxu2 }
 0x108   : > { %v677_v25 = vpop.f32.mrf.mxu1 }
 0x109   : > { %v766_v28 = vpack.c.bf16 %v677_v25, %v628_v23 }
 0x10a   : > { %v638_v54 = vpop.f32.mrf.mxu0 }
 0x10b   : > { %760 = vmatmul.bf16.gmra.mxu2 %v5760_v14  ;;  %v814_v31 = vunpack.c.l.b16 %v766_v28  ;;  %v838_v32 = vunpack.c.h.b16 %v766_v28 }
 0x10e   : > { %v7545_v27 = vpop.f32.mrf.mxu2 }
 0x110   : > { %v679_v29 = vpop.f32.mrf.mxu1 }
 0x111   : > { %v768_v30 = vpack.c.bf16 %v679_v29, %v630_v26 }
 0x112   : > { %v640_v62 = vpop.f32.mrf.mxu0 }
 0x113   : > { %v815_v33 = vunpack.c.l.b16 %v768_v30  ;;  %v839_v34 = vunpack.c.h.b16 %v768_v30 }
 0x115   : > { %v7547_v36 = vpack.c.b16 %v815_v33, %v814_v31  ;;  %v7549_v37 = vpack.c.b16 %v839_v34, %v838_v32 }
 0x116   : > { %v7551_v38 = vpop.f32.mrf.mxu2 }
 0x117   : > { %10504 = vst [vmem:[#allocation19_spill] sm:$0xff] %v7547_v36  ;;  %1756 = vrot.lane.b32.xlu1 %v7549_v37, %s7313_s10  ;;  %1297 = vrot.lane.b32.xlu2 %v7547_v36, %s7314_s11 }
 0x118   : > { %10505 = vst [vmem:[#allocation20_spill] sm:$0xff] %v7549_v37  ;;  %v682_v39 = vpop.f32.mrf.mxu1 }
 0x119   : > { %v770_v40 = vpack.c.bf16 %v682_v39, %v633_v35 }
 0x11b   : > { %v816_v44 = vunpack.c.l.b16 %v770_v40  ;;  %v840_v50 = vunpack.c.h.b16 %v770_v40 }
 0x11e   : > { %v726_v41 = vpop.f32.mrf.mxu2 }
 0x11f   : > { %2183 = vrot.lane.b32.xlu1 %v7547_v36, %s7315_s16  ;;  %1313 = vrot.lane.b32.xlu2 %v7549_v37, %s7314_s11  ;;  %v767_v56 = vpack.c.bf16 %v726_v41, %v726_v41 }
 0x120   : > { %v684_v43 = vpop.f32.mrf.mxu1 }
 0x121   : > { %v772_v45 = vpack.c.bf16 %v684_v43, %v635_v42  ;;  %v1216_v60 = vunpack.c.l.b16 %v767_v56 }
 0x123   : > { %v817_v46 = vunpack.c.l.b16 %v772_v45  ;;  %v841_v51 = vunpack.c.h.b16 %v772_v45 }
 0x125   : > { %v7561_v47 = vpack.c.b16 %v817_v46, %v816_v44  ;;  %v7569_v52 = vpack.c.b16 %v841_v51, %v840_v50 }
 0x126   : > { %v728_v48 = vpop.f32.mrf.mxu2 }
 0x127   : > { %10506 = vst [vmem:[#allocation21_spill] sm:$0xff] %v7561_v47  ;;  %2642 = vrot.lane.b32.xlu1 %v7549_v37, %s10486_s13  ;;  %1740 = vrot.lane.b32.xlu2 %v7547_v36, %s7313_s10  ;;  %v769_v57 = vpack.c.bf16 %v728_v48, %v728_v48 }
 0x128   : > { %1299 = vrot.lane.b32.xlu0 %v7561_v47, %s7314_s11  ;;  %v687_v49 = vpop.f32.mrf.mxu1  ;;  %10507 = vst [vmem:[#allocation22_spill] sm:$0xff] %v7569_v52 }
 0x129   : > { %v1217_v61 = vunpack.c.l.b16 %v769_v57  ;;  %v774_v63 = vpack.c.bf16 %v687_v49, %v638_v54 }
 0x12b   : > { %v7583_v1 = vpack.c.b16 %v1217_v61, %v1216_v60  ;;  %v842_v3 = vunpack.c.h.b16 %v774_v63  ;;  %v818_v9 = vunpack.c.l.b16 %v774_v63 }
 0x12d   : > { %10508 = vst [vmem:[#allocation23_spill] sm:$0xff] %v7583_v1 }
 0x12e   : > { %v731_v53 = vpop.f32.mrf.mxu2 }
 0x12f   : > { %2199 = vrot.lane.b32.xlu2 %v7549_v37, %s7315_s16  ;;  %1315 = vrot.lane.b32.xlu1 %v7569_v52, %s7314_s11  ;;  %v771_v29 = vpack.c.bf16 %v731_v53, %v731_v53 }
 0x130   : > { %1742 = vrot.lane.b32.xlu0 %v7561_v47, %s7313_s10  ;;  %v689_v55 = vpop.f32.mrf.mxu1 }
 0x131   : > { %v776_v0 = vpack.c.bf16 %v689_v55, %v640_v62 }
 0x133   : > { %v843_v4 = vunpack.c.h.b16 %v776_v0  ;;  %v819_v10 = vunpack.c.l.b16 %v776_v0 }
 0x135   : > { %v7593_v6 = vpack.c.b16 %v843_v4, %v842_v3  ;;  %v7601_v11 = vpack.c.b16 %v819_v10, %v818_v9 }
 0x136   : > { %v733_v58 = vpop.f32.mrf.mxu2 }
 0x137   : > { %2626 = vrot.lane.b32.xlu2 %v7547_v36, %s10486_s13  ;;  %2201 = vrot.lane.b32.xlu1 %v7569_v52, %s7315_s16  ;;  %10509 = vst [vmem:[#allocation24_spill] sm:$0xff] %v7601_v11  ;;  %v773_v30 = vpack.c.bf16 %v733_v58, %v733_v58 }
 0x138   : > { %2185 = vrot.lane.b32.xlu0 %v7561_v47, %s7315_s16  ;;  %v692_v59 = vpop.f32.mrf.mxu1 }
 0x139   : > { %v778_v23 = vpack.c.bf16 %v692_v59, %v7528_v16  ;;  %v1218_v16 = vunpack.c.l.b16 %v771_v29  ;;  %v1219_v32 = vunpack.c.l.b16 %v773_v30 }
 0x13b   : > { %v820_v28 = vunpack.c.l.b16 %v778_v23  ;;  %v844_v35 = vunpack.c.h.b16 %v778_v23  ;;  %v7633_v39 = vpack.c.b16 %v1219_v32, %v1218_v16 }
 0x13d   : > { %10511 = vst [vmem:[#allocation26_spill] sm:$0xff] %v7633_v39 }
 0x13e   : > { %v7585_v2 = vpop.f32.mrf.mxu2 }
 0x13f   : > { %1758 = vrot.lane.b32.xlu2 %v7569_v52, %s7313_s10  ;;  %1667 = vrot.lane.b32.xlu1 %v7583_v1, %s7314_s11  ;;  %v775_v46 = vpack.c.bf16 %v7585_v2, %v7585_v2 }
 0x140   : > { %2628 = vrot.lane.b32.xlu0 %v7561_v47, %s10486_s13  ;;  %v694_v5 = vpop.f32.mrf.mxu1 }
 0x141   : > { %v780_v14 = vpack.c.bf16 %v694_v5, %v7533_v18  ;;  %v1220_v54 = vunpack.c.l.b16 %v775_v46 }
 0x143   : > { %v821_v26 = vunpack.c.l.b16 %v780_v14  ;;  %v845_v34 = vunpack.c.h.b16 %v780_v14 }
 0x145   : > { %v7623_v18 = vpack.c.b16 %v821_v26, %v820_v28  ;;  %v7635_v40 = vpack.c.b16 %v845_v34, %v844_v35 }
 0x146   : > { %v738_v7 = vpop.f32.mrf.mxu2 }
 0x147   : > { %2644 = vrot.lane.b32.xlu2 %v7569_v52, %s10486_s13  ;;  %2553 = vrot.lane.b32.xlu1 %v7583_v1, %s7315_s16  ;;  %10510 = vst [vmem:[#allocation25_spill] sm:$0xff] %v7623_v18  ;;  %v777_v48 = vpack.c.bf16 %v738_v7, %v738_v7 }
 0x148   : > { %1317 = vrot.lane.b32.xlu0 %v7593_v6, %s7314_s11  ;;  %v697_v8 = vpop.f32.mrf.mxu1 }
 0x149   : > { %v782_v51 = vpack.c.bf16 %v697_v8, %v7537_v20  ;;  %v1221_v55 = vunpack.c.l.b16 %v777_v48 }
 0x14b   : > { %v7669_v58 = vpack.c.b16 %v1221_v55, %v1220_v54  ;;  %v846_v2 = vunpack.c.h.b16 %v782_v51 }
 0x14d   : > { %10512 = vst [vmem:[#allocation27_spill] sm:$0xff] %v7669_v58 }
 0x14e   : > { %v7603_v12 = vpop.f32.mrf.mxu2 }
 0x14f   : > { %2110 = vrot.lane.b32.xlu2 %v7583_v1, %s7313_s10  ;;  %1301 = vrot.lane.b32.xlu1 %v7601_v11, %s7314_s11 }
 0x150   : > { %1760 = vrot.lane.b32.xlu0 %v7593_v6, %s7313_s10  ;;  %v699_v13 = vpop.f32.mrf.mxu1 }
 0x151   : > { %v784_v49 = vpack.c.bf16 %v699_v13, %v7541_v22  ;;  %v822_v22 = vunpack.c.l.b16 %v782_v51  ;;  %v779_v51 = vpack.c.bf16 %v7603_v12, %v7603_v12 }
 0x153   : > { %v823_v57 = vunpack.c.l.b16 %v784_v49  ;;  %v847_v62 = vunpack.c.h.b16 %v784_v49 }
 0x155   : > { %v7671_v59 = vpack.c.b16 %v823_v57, %v822_v22  ;;  %v7686_v8 = vpack.c.b16 %v847_v62, %v846_v2  ;;  %v1222_v2 = vunpack.c.l.b16 %v779_v51 }
 0x156   : > { %v7612_v15 = vpop.f32.mrf.mxu2 }
 0x157   : > { %2187 = vrot.lane.b32.xlu2 %v7601_v11, %s7315_s16  ;;  %1744 = vrot.lane.b32.xlu1 %v7601_v11, %s7313_s10  ;;  %10513 = vst [vmem:[#allocation28_spill] sm:$0xff] %v7671_v59 }
 0x158   : > { %2203 = vrot.lane.b32.xlu0 %v7593_v6, %s7315_s16  ;;  %v7621_v25 = vpop.f32.mrf.mxu1 }
 0x159   : > { %v786_v30 = vpack.c.bf16 %v7621_v25, %v7531_v17 }
 0x15b   : > { %v824_v25 = vunpack.c.l.b16 %v786_v30 }
 0x15e   : > { %v7625_v31 = vpop.f32.mrf.mxu2 }
 0x15f   : > { %1303 = vrot.lane.b32.xlu2 %v7623_v18, %s7314_s11  ;;  %2630 = vrot.lane.b32.xlu1 %v7601_v11, %s10486_s13 }
 0x160   : > { %2646 = vrot.lane.b32.xlu0 %v7593_v6, %s10486_s13  ;;  %v704_v33 = vpop.f32.mrf.mxu1 }
 0x161   : > { %v788_v28 = vpack.c.bf16 %v704_v33, %v7535_v19  ;;  %v848_v19 = vunpack.c.h.b16 %v786_v30 }
 0x163   : > { %v849_v32 = vunpack.c.h.b16 %v788_v28  ;;  %v825_v33 = vunpack.c.l.b16 %v788_v28 }
 0x165   : > { %v7728_v46 = vpack.c.b16 %v825_v33, %v824_v25 }
 0x166   : > { %v7637_v41 = vpop.f32.mrf.mxu2 }
 0x167   : > { %1319 = vrot.lane.b32.xlu2 %v7635_v40, %s7314_s11  ;;  %1762 = vrot.lane.b32.xlu1 %v7635_v40, %s7313_s10  ;;  %10518 = vst [vmem:[#allocation33_spill] sm:$0xff] %v7728_v46 }
 0x168   : > { %1669 = vrot.lane.b32.xlu0 %v7633_v39, %s7314_s11  ;;  %v707_v42 = vpop.f32.mrf.mxu1 }
 0x169   : > { %v7689_v9 = vpack.c.bf16 %v707_v42, %v7539_v21  ;;  %v7726_v42 = vpack.c.b16 %v849_v32, %v848_v19  ;;  %v897_v19 = vsel %vm862_vm0, %v7635_v40, 0 }
 0x16b   : > { %v850_v21 = vunpack.c.h.b16 %v7689_v9  ;;  %v903_v22 = vsel %vm862_vm0, %v7726_v42, 0 }
 0x16e   : > { %v7645_v43 = vpop.f32.mrf.mxu2 }
 0x16f   : > { %1746 = vrot.lane.b32.xlu2 %v7623_v18, %s7313_s10  ;;  %2189 = vrot.lane.b32.xlu1 %v7623_v18, %s7315_s16 }
 0x170   : > { %2112 = vrot.lane.b32.xlu0 %v7633_v39, %s7313_s10  ;;  %v709_v44 = vpop.f32.mrf.mxu1 }
 0x171   : > { %v7653_v45 = vpop.permute.xlu2 %1297  ;;  %v7684_v3 = vpack.c.bf16 %v709_v44, %v7543_v24 }
 0x173   : > { %v851_v14 = vunpack.c.h.b16 %v7684_v3 }
 0x175   : > { %v7710_v29 = vpack.c.b16 %v851_v14, %v850_v21 }
 0x176   : > { %v7658_v50 = vpop.f32.mrf.mxu2 }
 0x177   : > { %2205 = vrot.lane.b32.xlu2 %v7635_v40, %s7315_s16  ;;  %2648 = vrot.lane.b32.xlu1 %v7635_v40, %s10486_s13  ;;  %v906_v34 = vsel %vm862_vm0, %v7710_v29, 0  ;;  %v789_v12 = vpack.c.bf16 %v7658_v50, %v7658_v50 }
 0x178   : > { %2555 = vrot.lane.b32.xlu0 %v7633_v39, %s7315_s16  ;;  %v712_v53 = vpop.f32.mrf.mxu1 }
 0x179   : > { %v7667_v56 = vpop.permute.xlu2 %1313  ;;  %v794_v61 = vpack.c.bf16 %v712_v53, %v7545_v27  ;;  %v781_v53 = vpack.c.bf16 %v7612_v15, %v7612_v15 }
 0x17b   : > { %v828_v27 = vunpack.c.l.b16 %v794_v61  ;;  %v852_v4 = vunpack.c.h.b16 %v794_v61 }
 0x17e   : > { %v756_v60 = vpop.f32.mrf.mxu2 }
 0x17f   : > { %2632 = vrot.lane.b32.xlu2 %v7623_v18, %s10486_s13  ;;  %2114 = vrot.lane.b32.xlu1 %v7669_v58, %s7313_s10  ;;  %v791_v48 = vpack.c.bf16 %v756_v60, %v756_v60  ;;  %v787_v60 = vpack.c.bf16 %v7645_v43, %v7645_v43  ;;  %v783_v43 = vpack.c.bf16 %v7625_v31, %v7625_v31  ;;  %v900_v31 = vsel %vm862_vm0, %v7686_v8, 0 }
 0x180   : > { %1305 = vrot.lane.b32.xlu0 %v7671_v59, %s7314_s11  ;;  %v714_v20 = vpop.f32.mrf.mxu1 }
 0x181   : > { %v796_v63 = vpack.c.bf16 %v714_v20, %v7551_v38  ;;  %v7681_v0 = vpop.permute.xlu2 %1740  ;;  %v1228_v15 = vunpack.c.l.b16 %v791_v48  ;;  %v1226_v50 = vunpack.c.l.b16 %v787_v60  ;;  %v894_v48 = vsel %vm862_vm0, %v7593_v6, 0 }
 0x183   : > { %v829_v5 = vunpack.c.l.b16 %v796_v63  ;;  %v853_v7 = vunpack.c.h.b16 %v796_v63 }
 0x185   : > { %v7691_v10 = vpack.c.b16 %v829_v5, %v828_v27  ;;  %v7693_v13 = vpack.c.b16 %v853_v7, %v852_v4  ;;  %v1223_v27 = vunpack.c.l.b16 %v781_v53  ;;  %v785_v7 = vpack.c.bf16 %v7637_v41, %v7637_v41 }
 0x186   : > { %v758_v38 = vpop.f32.mrf.mxu2  ;;  %v1224_v41 = vunpack.c.l.b16 %v783_v43 }
 0x187   : > { %10514 = vst [vmem:[#allocation29_spill] sm:$0xff] %v7691_v10  ;;  %1671 = vrot.lane.b32.xlu2 %v7669_v58, %s7314_s11  ;;  %1321 = vrot.lane.b32.xlu1 %v7686_v8, %s7314_s11  ;;  %v909_v24 = vsel %vm862_vm0, %v7693_v13, 0  ;;  %v793_v49 = vpack.c.bf16 %v758_v38, %v758_v38  ;;  %v1227_v38 = vunpack.c.l.b16 %v789_v12  ;;  %v1225_v21 = vunpack.c.l.b16 %v785_v7 }
 0x188   : > { %1748 = vrot.lane.b32.xlu0 %v7671_v59, %s7313_s10  ;;  %911 = vmatpush.bf16.xpose.msra.mxu3 %v909_v24  ;;  %v7761_v24 = vpack.c.b16 %v1223_v27, %v1222_v2  ;;  %v888_v12 = vsel %vm862_vm0, %v7549_v37, 0 }
 0x189   : > { %v7705_v23 = vpop.permute.xlu1 %1756  ;;  %v7707_v26 = vpop.permute.xlu2 %2199  ;;  %v1229_v61 = vunpack.c.l.b16 %v793_v49  ;;  %v7771_v28 = vpack.c.b16 %v1227_v38, %v1226_v50  ;;  %v827_v49 = vunpack.c.l.b16 %v7684_v3  ;;  %v891_v3 = vsel %vm862_vm0, %v7569_v52, 0 }
 0x18a   : > { %10515 = vst [vmem:[#allocation30_spill] sm:$0xff] %v7707_v26 }
 0x18b   : > { %v7758_v14 = vpack.c.b16 %v1229_v61, %v1228_v15  ;;  %10522 = vst [vmem:[#allocation37_spill] sm:$0xff] %v7761_v24 }
 0x18c   : > { %10523 = vst [vmem:[#allocation38_spill] sm:$0xff] %v7771_v28 }
 0x18d   : > { %10521 = vst [vmem:[#allocation36_spill] sm:$0xff] %v7758_v14 }
 0x18e   : > { %v761_v16 = vpop.f32.mrf.mxu2 }
 0x18f   : > { %2557 = vrot.lane.b32.xlu2 %v7669_v58, %s7315_s16  ;;  %2207 = vrot.lane.b32.xlu1 %v7686_v8, %s7315_s16  ;;  %v795_v44 = vpack.c.bf16 %v761_v16, %v761_v16 }
 0x190   : > { %2191 = vrot.lane.b32.xlu0 %v7671_v59, %s7315_s16  ;;  %912 = vmatpush.bf16.xpose.msra.mxu3 %v906_v34  ;;  %v7780_v34 = vpack.c.b16 %v1225_v21, %v1224_v41 }
 0x191   : > { %v7722_v35 = vpop.permute.xlu1 %2183  ;;  %v7724_v17 = vpop.permute.xlu2 %2626  ;;  %v1230_v55 = vunpack.c.l.b16 %v795_v44 }
 0x192   : > { %10516 = vst [vmem:[#allocation31_spill] sm:$0xff] %v7722_v35 }
 0x193   : > { %10517 = vst [vmem:[#allocation32_spill] sm:$0xff] %v7724_v17 }
 0x194   : > { %10524 = vst [vmem:[#allocation39_spill] sm:$0xff] %v7780_v34 }
 0x196   : > { %v763_v54 = vpop.f32.mrf.mxu2 }
 0x197   : > { %v797_v57 = vpack.c.bf16 %v763_v54, %v763_v54  ;;  %1764 = vrot.lane.b32.xlu2 %v7686_v8, %s7313_s10  ;;  %1750 = vrot.lane.b32.xlu1 %v7728_v46, %s7313_s10 }
 0x198   : > { %2634 = vrot.lane.b32.xlu0 %v7671_v59, %s10486_s13  ;;  %913 = vmatpush.bf16.xpose.msra.mxu3 %v903_v22 }
 0x199   : > { %v1231_v20 = vunpack.c.l.b16 %v797_v57  ;;  %v7746_v62 = vpop.permute.xlu1 %2642  ;;  %v7748_v63 = vpop.permute.xlu2 %1758 }
 0x19a   : > { %10519 = vst [vmem:[#allocation34_spill] sm:$0xff] %v7746_v62  ;;  %v7750_v4 = vpop.permute.xlu0 %1299 }
 0x19b   : > { %v7752_v5 = vpack.c.b16 %v1231_v20, %v1230_v55  ;;  %v826_v55 = vunpack.c.l.b16 %v7689_v9 }
 0x19d   : > { %10520 = vst [vmem:[#allocation35_spill] sm:$0xff] %v7752_v5  ;;  %1248 = vmatpush.bf16.msrb.mxu0 %v7752_v5  ;;  %v7816_v57 = vpack.c.b16 %v827_v49, %v826_v55 }
 0x19f   : > { %2650 = vrot.lane.b32.xlu2 %v7686_v8, %s10486_s13  ;;  %2636 = vrot.lane.b32.xlu1 %v7728_v46, %s10486_s13  ;;  %10528 = vst [vmem:[#allocation43_spill] sm:$0xff] %v7816_v57 }
 0x1a0   : > { %1673 = vrot.lane.b32.xlu0 %v7761_v24, %s7314_s11  ;;  %914 = vmatpush.bf16.xpose.msra.mxu3 %v900_v31 }
 0x1a1   : > { %1249 = vmatpush.bf16.msrb.mxu0 %v7758_v14  ;;  %v7774_v30 = vpop.permute.xlu2 %2644  ;;  %v7776_v16 = vpop.permute.xlu1 %1315 }
 0x1a2   : > { %v7778_v32 = vpop.permute.xlu0 %1742 }
 0x1a5   : > { %1250 = vmatpush.bf16.msrb.mxu0 %v7771_v28 }
 0x1a7   : > { %1307 = vrot.lane.b32.xlu2 %v7728_v46, %s7314_s11  ;;  %1675 = vrot.lane.b32.xlu1 %v7780_v34, %s7314_s11 }
 0x1a8   : > { %2116 = vrot.lane.b32.xlu0 %v7761_v24, %s7313_s10  ;;  %915 = vmatpush.bf16.xpose.msra.mxu3 %v897_v19 }
 0x1a9   : > { %1251 = vmatpush.bf16.msrb.mxu0 %v7780_v34  ;;  %v7792_v33 = vpop.permute.xlu2 %2110  ;;  %v7794_v25 = vpop.permute.xlu1 %2201 }
 0x1aa   : > { %v7796_v44 = vpop.permute.xlu0 %2185 }
 0x1ab   : > { %10525 = vst [vmem:[#allocation40_spill] sm:$0xff] %v7796_v44 }
 0x1ad   : > { %1252 = vmatpush.bf16.msrb.mxu0 %v7761_v24 }
 0x1af   : > { %2193 = vrot.lane.b32.xlu2 %v7728_v46, %s7315_s16  ;;  %2561 = vrot.lane.b32.xlu1 %v7780_v34, %s7315_s16 }
 0x1b0   : > { %2559 = vrot.lane.b32.xlu0 %v7761_v24, %s7315_s16  ;;  %916 = vmatpush.bf16.xpose.msra.mxu3 %v894_v48 }
 0x1b1   : > { %1253 = vmatpush.bf16.msrb.mxu0 %v7669_v58  ;;  %v7809_v51 = vpop.permute.xlu1 %1667  ;;  %v7811_v53 = vpop.permute.xlu2 %2187 }
 0x1b2   : > { %10526 = vst [vmem:[#allocation41_spill] sm:$0xff] %v7811_v53  ;;  %v7813_v54 = vpop.permute.xlu0 %2628 }
 0x1b3   : > { %10527 = vst [vmem:[#allocation42_spill] sm:$0xff] %v7813_v54 }
 0x1b5   : > { %1254 = vmatpush.bf16.msrb.mxu0 %v7633_v39 }
 0x1b7   : > { %2118 = vrot.lane.b32.xlu2 %v7780_v34, %s7313_s10  ;;  %1309 = vrot.lane.b32.xlu1 %v7816_v57, %s7314_s11 }
 0x1b8   : > { %1323 = vrot.lane.b32.xlu0 %v7726_v42, %s7314_s11  ;;  %917 = vmatpush.bf16.xpose.msra.mxu3 %v891_v3 }
 0x1b9   : > { %1255 = vmatpush.bf16.msrb.mxu0 %v7583_v1  ;;  %v7828_v9 = vpop.permute.xlu1 %2553  ;;  %v7830_v22 = vpop.permute.xlu2 %1303 }
 0x1ba   : > { %10529 = vst [vmem:[#allocation44_spill] sm:$0xff] %v7830_v22  ;;  %v7832_v60 = vpop.permute.xlu0 %1317 }
 0x1bf   : > { %1325 = vrot.lane.b32.xlu2 %v7710_v29, %s7314_s11  ;;  %1768 = vrot.lane.b32.xlu1 %v7710_v29, %s7313_s10 }
 0x1c0   : > { %1766 = vrot.lane.b32.xlu0 %v7726_v42, %s7313_s10  ;;  %918 = vmatpush.bf16.xpose.msra.mxu3 %v888_v12 }
 0x1c1   : > { %v7842_v15 = vpop.permute.xlu2 %1319  ;;  %v7844_v61 = vpop.permute.xlu1 %1301 }
 0x1c2   : > { %v7846_v20 = vpop.permute.xlu0 %1760 }
 0x1c7   : > { %5517 = vmatmul.msk.bf16.vlgmr.msra.gmra.mxu3 %vm862_vm0, %v7547_v36  ;;  %1752 = vrot.lane.b32.xlu2 %v7816_v57, %s7313_s10 }
 0x1c8   : > { %2209 = vrot.lane.b32.xlu0 %v7726_v42, %s7315_s16  ;;  %2195 = vrot.lane.b32.xlu1 %v7816_v57, %s7315_s16 }
 0x1c9   : > { %v7856_v2 = vpop.permute.xlu2 %1746  ;;  %v7858_v27 = vpop.permute.xlu1 %1744 }
 0x1ca   : > { %10530 = vst [vmem:[#allocation45_spill] sm:$0xff] %v7856_v2  ;;  %v7860_v43 = vpop.permute.xlu0 %2203 }
 0x1cf   : > { %2211 = vrot.lane.b32.xlu2 %v7710_v29, %s7315_s16 }
 0x1d0   : > { %2652 = vrot.lane.b32.xlu0 %v7726_v42, %s10486_s13  ;;  %2654 = vrot.lane.b32.xlu1 %v7710_v29, %s10486_s13 }
 0x1d1   : > { %v7868_v7 = vpop.permute.xlu2 %2205  ;;  %v7870_v50 = vpop.permute.xlu1 %2630 }
 0x1d2   : > { %10531 = vst [vmem:[#allocation46_spill] sm:$0xff] %v7870_v50  ;;  %v7872_v38 = vpop.permute.xlu0 %2646 }
 0x1d7   : > { %5518 = vmatmul.msk.bf16.gmra.mxu3 %vm862_vm0, %v7561_v47  ;;  %2638 = vrot.lane.b32.xlu2 %v7816_v57, %s10486_s13 }
 0x1d8   : > { %3095 = vrot.lane.b32.xlu0 %v7726_v42, %s7317_s14  ;;  %2120 = vrot.lane.b32.xlu1 %v7771_v28, %s7313_s10 }
 0x1d9   : > { %v7882_v31 = vpop.permute.xlu2 %2632  ;;  %v7884_v41 = vpop.permute.xlu1 %1762 }
 0x1da   : > { %10532 = vst [vmem:[#allocation47_spill] sm:$0xff] %v7882_v31  ;;  %v7886_v21 = vpop.permute.xlu0 %1669 }
 0x1df   : > { %3097 = vrot.lane.b32.xlu2 %v7710_v29, %s7317_s14 }
 0x1e0   : > { %1311 = vrot.lane.b32.xlu0 %v7691_v10, %s7314_s11  ;;  %1327 = vrot.lane.b32.xlu1 %v7693_v13, %s7314_s11 }
 0x1e1   : > { %v7894_v19 = vpop.permute.xlu2 %1671  ;;  %v7896_v48 = vpop.permute.xlu1 %2189 }
 0x1e2   : > { %10533 = vst [vmem:[#allocation48_spill] sm:$0xff] %v7896_v48  ;;  %v7898_v49 = vpop.permute.xlu0 %2112 }
 0x1e7   : > { %1677 = vrot.lane.b32.xlu2 %v7771_v28, %s7314_s11  ;;  %5519 = vmatmul.msk.bf16.gmra.mxu3 %vm862_vm0, %v7601_v11 }
 0x1e8   : > { %1754 = vrot.lane.b32.xlu0 %v7691_v10, %s7313_s10  ;;  %2213 = vrot.lane.b32.xlu1 %v7693_v13, %s7315_s16 }
 0x1e9   : > { %v7908_v55 = vpop.permute.xlu2 %2557  ;;  %v7910_v3 = vpop.permute.xlu1 %2648 }
 0x1ea   : > { %v7912_v12 = vpop.permute.xlu0 %2555 }
 0x1ef   : > { %2563 = vrot.lane.b32.xlu2 %v7771_v28, %s7315_s16 }
 0x1f0   : > { %2197 = vrot.lane.b32.xlu0 %v7691_v10, %s7315_s16  ;;  %3091 = vrot.lane.b32.xlu1 %v7635_v40, %s7317_s14 }
 0x1f1   : > { %v7920_v1 = vpop.permute.xlu2 %1764  ;;  %v7922_v39 = vpop.permute.xlu1 %2114 }
 0x1f2   : > { %v7924_v58 = vpop.permute.xlu0 %1305 }
 0x1f3   : > { %10534 = vst [vmem:[#allocation49_spill] sm:$0xff] %v7924_v58 }
 0x1f7   : > { %1770 = vrot.lane.b32.xlu2 %v7693_v13, %s7313_s10  ;;  %5520 = vmatmul.msk.bf16.gmra.mxu3 %vm862_vm0, %v7623_v18 }
 0x1f8   : > { %2640 = vrot.lane.b32.xlu0 %v7691_v10, %s10486_s13  ;;  %3087 = vrot.lane.b32.xlu1 %v7569_v52, %s7317_s14 }
 0x1f9   : > { %v7934_v24 = vpop.permute.xlu2 %2650  ;;  %v7936_v34 = vpop.permute.xlu1 %1321 }
 0x1fa   : > { %v7938_v28 = vpop.permute.xlu0 %1748 }
 0x1fb   : > { %10535 = vst [vmem:[#allocation50_spill] sm:$0xff] %v7938_v28 }
 0x1ff   : > { %2656 = vrot.lane.b32.xlu2 %v7693_v13, %s10486_s13 }
 0x200   : > { %1679 = vrot.lane.b32.xlu0 %v7758_v14, %s7314_s11  ;;  %3099 = vrot.lane.b32.xlu1 %v7693_v13, %s7317_s14 }
 0x201   : > { %v7946_v31 = vpop.permute.xlu2 %1307  ;;  %v7948_v48 = vpop.permute.xlu1 %2207 }
 0x202   : > { %10536 = vst [vmem:[#allocation51_spill] sm:$0xff] %v7946_v31  ;;  %v7950_v50 = vpop.permute.xlu0 %2191 }
 0x203   : > { %10537 = vst [vmem:[#allocation52_spill] sm:$0xff] %v7950_v50 }
 0x207   : > { %3093 = vrot.lane.b32.xlu2 %v7686_v8, %s7317_s14  ;;  %5521 = vmatmul.msk.bf16.gmra.mxu3 %vm862_vm0, %v7671_v59 }
 0x208   : > { %2122 = vrot.lane.b32.xlu0 %v7758_v14, %s7313_s10  ;;  %1681 = vrot.lane.b32.xlu1 %v7752_v5, %s7314_s11  ;;  %s10207_s11 = scalar_lea.vmem [#allocation11], %s5386_s19 }
 0x209   : > { %v7960_v53 = vpop.permute.xlu2 %2193  ;;  %v7962_v54 = vpop.permute.xlu1 %1750 }
 0x20a   : > { %10538 = vst [vmem:[#allocation53_spill] sm:$0xff] %v7960_v53  ;;  %v7964_v44 = vpop.permute.xlu0 %2634 }
 0x20b   : > { %10539 = vst [vmem:[#allocation54_spill] sm:$0xff] %v7962_v54 }
 0x20c   : > { %10540 = vst [vmem:[#allocation55_spill] sm:$0xff] %v7964_v44 }
 0x20f   : > { %3089 = vrot.lane.b32.xlu2 %v7593_v6, %s7317_s14 }
 0x210   : > { %2565 = vrot.lane.b32.xlu0 %v7758_v14, %s7315_s16  ;;  %2567 = vrot.lane.b32.xlu1 %v7752_v5, %s7315_s16  ;;  %s5793_s16 = sshll.u32 %s7389_s9, 7 }
 0x211   : > { %v7972_v50 = vpop.permute.xlu2 %2118  ;;  %v7974_v17 = vpop.permute.xlu1 %2636 }
 0x212   : > { %10541 = vst [vmem:[#allocation56_spill] sm:$0xff] %v7974_v17  ;;  %v7976_v35 = vpop.permute.xlu0 %1673 }
 0x217   : > { %2124 = vrot.lane.b32.xlu2 %v7752_v5, %s7313_s10  ;;  %5522 = vmatmul.msk.bf16.gmra.mxu3 %vm862_vm0, %v7728_v46 }
 0x218   : > { %3073 = vrot.lane.b32.xlu0 %v7601_v11, %s7317_s14  ;;  %3069 = vrot.lane.b32.xlu1 %v7547_v36, %s7317_s14 }
 0x219   : > { %v1326_v14 = vpop.permute.xlu2 %1325  ;;  %v7986_v53 = vpop.permute.xlu1 %1675 }
 0x21a   : > { %v7988_v44 = vpop.permute.xlu0 %2116  ;;  %v1372_v2 = vsel %vm862_vm0, %v1326_v14, 0 }
 0x21f   : > { %3085 = vrot.lane.b32.xlu2 %v7549_v37, %s7317_s14 }
 0x220   : > { %3075 = vrot.lane.b32.xlu0 %v7623_v18, %s7317_s14  ;;  %3071 = vrot.lane.b32.xlu1 %v7561_v47, %s7317_s14 }
 0x221   : > { %v7996_v5 = vpop.permute.xlu2 %1752  ;;  %v7998_v11 = vpop.permute.xlu1 %2561 }
 0x222   : > { %10542 = vst [vmem:[#allocation57_spill] sm:$0xff] %v7996_v5  ;;  %v8000_v17 = vpop.permute.xlu0 %2559 }
 0x227   : > { %3542 = vrot.lane.b32.xlu2 %v7693_v13, %s7318_s22  ;;  %5523 = vmatmul.msk.bf16.gmra.mxu3 %vm862_vm0, %v7816_v57 }
 0x228   : > { %3985 = vrot.lane.b32.xlu0 %v7693_v13, %s7319_s20  ;;  %3077 = vrot.lane.b32.xlu1 %v7671_v59, %s7317_s14 }
 0x229   : > { %v8010_v18 = vpop.permute.xlu2 %2211  ;;  %v8012_v47 = vpop.permute.xlu1 %1309 }
 0x22a   : > { %10543 = vst [vmem:[#allocation58_spill] sm:$0xff] %v8012_v47  ;;  %v1324_v36 = vpop.permute.xlu0 %1323 }
 0x22f   : > { %3538 = vrot.lane.b32.xlu2 %v7726_v42, %s7318_s22 }
 0x230   : > { %3540 = vrot.lane.b32.xlu0 %v7710_v29, %s7318_s22  ;;  %3079 = vrot.lane.b32.xlu1 %v7728_v46, %s7317_s14 }
 0x231   : > { %v8020_v37 = vpop.permute.xlu2 %2638  ;;  %v1769_v13 = vpop.permute.xlu1 %1768 }
 0x232   : > { %10544 = vst [vmem:[#allocation59_spill] sm:$0xff] %v8020_v37  ;;  %v1767_v5 = vpop.permute.xlu0 %1766  ;;  %v1815_v26 = vsel %vm862_vm0, %v1769_v13, 0 }
 0x237   : > { %3536 = vrot.lane.b32.xlu2 %v7686_v8, %s7318_s22  ;;  %5524 = vmatmul.msk.bf16.gmra.mxu3 %vm862_vm0, %v7691_v10 }
 0x238   : > { %3983 = vrot.lane.b32.xlu0 %v7710_v29, %s7319_s20  ;;  %3979 = vrot.lane.b32.xlu1 %v7686_v8, %s7319_s20 }
 0x239   : > { %v8030_v59 = vpop.permute.xlu2 %3097 }
 0x23a   : > { %10545 = vst [vmem:[#allocation60_spill] sm:$0xff] %v8030_v59  ;;  %v8032_v47 = vpop.permute.xlu0 %2209  ;;  %v8034_v46 = vpop.permute.xlu1 %2195 }
 0x23b   : > { %10546 = vst [vmem:[#allocation61_spill] sm:$0xff] %v8034_v46 }
 0x23f   : > { %3081 = vrot.lane.b32.xlu2 %v7816_v57, %s7317_s14 }
 0x240   : > { %3981 = vrot.lane.b32.xlu0 %v7726_v42, %s7319_s20  ;;  %3977 = vrot.lane.b32.xlu1 %v7635_v40, %s7319_s20 }
 0x241   : > { %v8042_v10 = vpop.permute.xlu2 %1677 }
 0x242   : > { %v8044_v29 = vpop.permute.xlu0 %2652  ;;  %v8046_v8 = vpop.permute.xlu1 %2654 }
 0x247   : > { %3975 = vrot.lane.b32.xlu2 %v7593_v6, %s7319_s20 }
 0x248   : > { %3534 = vrot.lane.b32.xlu0 %v7635_v40, %s7318_s22  ;;  %3530 = vrot.lane.b32.xlu1 %v7569_v52, %s7318_s22 }
 0x249   : > { %v8054_v57 = vpop.permute.xlu2 %2563 }
 0x24a   : > { %v8056_v42 = vpop.permute.xlu0 %3095  ;;  %v8058_v37 = vpop.permute.xlu1 %2120 }
 0x24b   : > { %10547 = vst [vmem:[#allocation62_spill] sm:$0xff] %v8056_v42  ;;  %v920_v46 = vpop.f32.mrf.mxu3 }
 0x250   : > { %3532 = vrot.lane.b32.xlu0 %v7593_v6, %s7318_s22 }
 0x251   : > { %v1771_v54 = vpop.permute.xlu2 %1770 }
 0x252   : > { %v8062_v31 = vpop.permute.xlu0 %1311  ;;  %v1328_v28 = vpop.permute.xlu1 %1327  ;;  %v1818_v58 = vsel %vm862_vm0, %v1771_v54, 0 }
 0x253   : > { %10548 = vst [vmem:[#allocation63_spill] sm:$0xff] %v8062_v31  ;;  %v1375_v40 = vsel %vm862_vm0, %v1328_v28, 0  ;;  %v922_v59 = vpop.f32.mrf.mxu3  ;;  %1820 = vmatpush.bf16.xpose.msrb.mxu3 %v1818_v58  ;;  %v1812_v58 = vsel %vm862_vm0, %v1767_v5, 0 }
 0x254   : > { %1377 = vmatpush.bf16.xpose.msra.mxu1 %v1375_v40 }
 0x259   : > { %v8066_v52 = vpop.permute.xlu2 %2656 }
 0x25a   : > { %v8068_v42 = vpop.permute.xlu0 %1754  ;;  %v8070_v62 = vpop.permute.xlu1 %2213 }
 0x25b   : > { %10549 = vst [vmem:[#allocation64_spill] sm:$0xff] %v8068_v42  ;;  %v925_v6 = vpop.f32.mrf.mxu3  ;;  %1821 = vmatpush.bf16.xpose.msrb.mxu3 %v1815_v26  ;;  %v1369_v42 = vsel %vm862_vm0, %v1324_v36, 0  ;;  %v1809_v26 = vsel %vm862_vm0, %v7920_v1, 0  ;;  %v1806_v1 = vsel %vm862_vm0, %v7884_v41, 0 }
 0x25c   : > { %1378 = vmatpush.bf16.xpose.msra.mxu1 %v1372_v2  ;;  %v8094_v36 = vmul.f32 0.25, %v925_v6 }
 0x261   : > { %v8074_v31 = vpop.permute.xlu2 %3093 }
 0x262   : > { %v8076_v54 = vpop.permute.xlu0 %2197  ;;  %v8078_v28 = vpop.permute.xlu1 %3091 }
 0x263   : > { %10550 = vst [vmem:[#allocation65_spill] sm:$0xff] %v8076_v54  ;;  %v927_v40 = vpop.f32.mrf.mxu3  ;;  %1822 = vmatpush.bf16.xpose.msrb.mxu3 %v1812_v58  ;;  %v1366_v54 = vsel %vm862_vm0, %v7936_v34, 0  ;;  %v1363_v34 = vsel %vm862_vm0, %v7842_v15, 0  ;;  %v1360_v15 = vsel %vm862_vm0, %v7832_v60, 0  ;;  %v1357_v60 = vsel %vm862_vm0, %v7776_v16, 0 }
 0x264   : > { %1379 = vmatpush.bf16.xpose.msra.mxu1 %v1369_v42  ;;  %v2704_v16 = vsel %vm862_vm0, %v8066_v52, 0  ;;  %v2258_v52 = vsel %vm862_vm0, %v8010_v18, 0  ;;  %v2255_v18 = vsel %vm862_vm0, %v8032_v47, 0  ;;  %v2252_v47 = vsel %vm862_vm0, %v7948_v48, 0 }
 0x265   : > { %v2689_v48 = vsel %vm862_vm0, %v7872_v38, 0  ;;  %v2686_v38 = vsel %vm862_vm0, %v7774_v30, 0 }
 0x269   : > { %v8082_v22 = vpop.permute.xlu2 %3089 }
 0x26a   : > { %v8084_v13 = vpop.permute.xlu0 %2640  ;;  %v8086_v14 = vpop.permute.xlu1 %3087 }
 0x26b   : > { %10551 = vst [vmem:[#allocation66_spill] sm:$0xff] %v8084_v13  ;;  %v930_v2 = vpop.f32.mrf.mxu3  ;;  %1823 = vmatpush.bf16.xpose.msrb.mxu3 %v1809_v26  ;;  %v8109_v26 = vmul.f32 0.25, %v927_v40  ;;  %v8118_v40 = vmul.f32 0.25, %v922_v59 }
 0x26c   : > { %10552 = vst [vmem:[#allocation67_spill] sm:$0xff] %v8086_v14  ;;  %1380 = vmatpush.bf16.xpose.msra.mxu1 %v1366_v54  ;;  %v8092_v5 = vmul.f32 0.25, %v930_v2  ;;  %v8106_v54 = vmul.f32 0.25, %v920_v46  ;;  %v1803_v46 = vsel %vm862_vm0, %v7846_v20, 0  ;;  %v1800_v20 = vsel %vm862_vm0, %v7748_v63, 0 }
 0x26d   : > { %v1797_v63 = vsel %vm862_vm0, %v7705_v23, 0 }
 0x270   : > { %984 = vmax.xlane.f32.xlu2 %v8092_v5 }
 0x271   : > { %v2125_v42 = vpop.permute.xlu2 %2124 }
 0x272   : > { %v1680_v58 = vpop.permute.xlu0 %1679  ;;  %980 = vmax.xlane.f32.xlu1 %v8094_v36  ;;  %v8098_v13 = vpop.permute.xlu1 %3099  ;;  %2134 = vmatpush.bf16.msra.mxu0 %v2125_v42 }
 0x273   : > { %v932_v14 = vpop.f32.mrf.mxu3  ;;  %1824 = vmatpush.bf16.xpose.msrb.mxu3 %v1806_v1  ;;  %v10553_v1 = vld [vmem:[#allocation44_spill] sm:$0xff] }
 0x274   : > { %1381 = vmatpush.bf16.xpose.msra.mxu1 %v1363_v34  ;;  %v8104_v6 = vmul.f32 0.25, %v932_v14  ;;  %v10554_v34 = vld [vmem:[#allocation45_spill] sm:$0xff] }
 0x278   : > { %986 = vmax.xlane.f32.xlu2 %v8104_v6 }
 0x27a   : > { %v2123_v2 = vpop.permute.xlu0 %2122  ;;  %976 = vmax.xlane.f32.xlu0 %v8106_v54  ;;  %982 = vmax.xlane.f32.xlu1 %v8109_v26  ;;  %v1682_v41 = vpop.permute.xlu1 %1681 }
 0x27b   : > { %v935_v42 = vpop.f32.mrf.mxu3  ;;  %1691 = vmatpush.bf16.msra.mxu2 %v1682_v41  ;;  %2135 = vmatpush.bf16.msra.mxu0 %v2123_v2  ;;  %v10555_v2 = vld [vmem:[#allocation30_spill] sm:$0xff] }
 0x27c   : > { %1382 = vmatpush.bf16.xpose.msra.mxu1 %v1360_v15  ;;  %1825 = vmatpush.bf16.xpose.msrb.mxu3 %v1803_v46  ;;  %v10556_v41 = vld [vmem:[#allocation34_spill] sm:$0xff] }
 0x27d   : > { %v2683_v30 = vsel %vm862_vm0, %v10556_v41, 0 }
 0x27f   : > { %1692 = vmatpush.bf16.msra.mxu2 %v1680_v58  ;;  %2136 = vmatpush.bf16.msra.mxu0 %v8058_v37  ;;  %v8132_v37 = vmul.f32 0.25, %v935_v42  ;;  %v3147_v42 = vsel %vm862_vm0, %v8098_v13, 0 }
 0x282   : > { %978 = vmax.xlane.f32.xlu0 %v8118_v40 }
 0x283   : > { %v937_v14 = vpop.f32.mrf.mxu3  ;;  %1693 = vmatpush.bf16.msra.mxu2 %v8042_v10  ;;  %2137 = vmatpush.bf16.msra.mxu0 %v7972_v50  ;;  %v1354_v10 = vsel %vm862_vm0, %v7667_v56, 0  ;;  %v2701_v56 = vsel %vm862_vm0, %v8046_v8, 0 }
 0x284   : > { %1383 = vmatpush.bf16.xpose.msra.mxu1 %v1357_v60  ;;  %1826 = vmatpush.bf16.xpose.msrb.mxu3 %v1800_v20  ;;  %v8127_v58 = vmul.f32 0.25, %v937_v14  ;;  %v10557_v60 = vld [vmem:[#allocation60_spill] sm:$0xff] }
 0x285   : > { %v3144_v20 = vsel %vm862_vm0, %v10557_v60, 0 }
 0x286   : > { %990 = vmax.xlane.f32.xlu1 %v8127_v58 }
 0x287   : > { %1694 = vmatpush.bf16.msra.mxu2 %v7986_v53  ;;  %2138 = vmatpush.bf16.msra.mxu0 %v7988_v44  ;;  %v2261_v44 = vsel %vm862_vm0, %v8070_v62, 0 }
 0x28a   : > { %988 = vmax.xlane.f32.xlu0 %v8132_v37 }
 0x28b   : > { %v940_v59 = vpop.f32.mrf.mxu3  ;;  %1695 = vmatpush.bf16.msra.mxu2 %v7976_v35  ;;  %2139 = vmatpush.bf16.msra.mxu0 %v7922_v39  ;;  %v2566_v35 = vpop.permute.xlu0 %2565 }
 0x28c   : > { %v8145_v53 = vmul.f32 0.25, %v940_v59  ;;  %1384 = vmatpush.bf16.xpose.msra.mxu1 %v1354_v10  ;;  %1827 = vmatpush.bf16.xpose.msrb.mxu3 %v1797_v63  ;;  %v10558_v63 = vld [vmem:[#allocation49_spill] sm:$0xff] }
 0x28e   : > { %992 = vmax.xlane.f32.xlu2 %v8145_v53 }
 0x28f   : > { %1696 = vmatpush.bf16.msra.mxu2 %v7894_v19  ;;  %2140 = vmatpush.bf16.msra.mxu0 %v7898_v49 }
 0x293   : > { %v942_v39 = vpop.f32.mrf.mxu3  ;;  %5525 = vmatmul.msk.bf16.vlgmr.msra.gmra.mxu1 %vm862_vm0, %v7653_v45  ;;  %1697 = vmatpush.bf16.msra.mxu2 %v7886_v21  ;;  %v2568_v45 = vpop.permute.xlu1 %2567  ;;  %v2695_v21 = vsel %vm862_vm0, %v7934_v24, 0 }
 0x294   : > { %2263 = vmatpush.bf16.xpose.msrb.mxu1 %v2261_v44  ;;  %2706 = vmatpush.bf16.xpose.msra.mxu3 %v2704_v16  ;;  %v8160_v23 = vmul.f32 0.25, %v942_v39  ;;  %v10559_v16 = vld [vmem:[#allocation50_spill] sm:$0xff] }
 0x295   : > { %5549 = vmatmul.msk.bf16.vlgmr.msrb.gmra.mxu3 %vm862_vm0, %v7681_v0  ;;  %2141 = vmatpush.bf16.msra.mxu0 %v7792_v33  ;;  %v2698_v33 = vsel %vm862_vm0, %v8044_v29, 0  ;;  %v10560_v44 = vld [vmem:[#allocation62_spill] sm:$0xff] }
 0x296   : > { %994 = vmax.xlane.f32.xlu0 %v8160_v23  ;;  %v3141_v39 = vsel %vm862_vm0, %v10560_v44, 0 }
 0x297   : > { %1698 = vmatpush.bf16.msra.mxu2 %v7809_v51  ;;  %v8174_v51 = vpop.permute.xlu0 %3073 }
 0x29b   : > { %2577 = vmatpush.bf16.msrb.mxu2 %v2568_v45  ;;  %v945_v0 = vpop.f32.mrf.mxu3 }
 0x29c   : > { %2264 = vmatpush.bf16.xpose.msrb.mxu1 %v2258_v52  ;;  %2707 = vmatpush.bf16.xpose.msra.mxu3 %v2701_v56  ;;  %v8164_v62 = vmul.f32 0.25, %v945_v0 }
 0x29e   : > { %996 = vmax.xlane.f32.xlu1 %v8164_v62 }
 0x29f   : > { %2578 = vmatpush.bf16.msrb.mxu2 %v2566_v35  ;;  %v8194_v24 = vpop.permute.xlu0 %3075  ;;  %v3138_v35 = vsel %vm862_vm0, %v8074_v31, 0 }
 0x2a3   : > { %2579 = vmatpush.bf16.msrb.mxu2 %v8054_v57  ;;  %v947_v50 = vpop.f32.mrf.mxu3  ;;  %5526 = vmatmul.msk.bf16.gmra.mxu1 %vm862_vm0, %v7750_v4 }
 0x2a4   : > { %2265 = vmatpush.bf16.xpose.msrb.mxu1 %v2255_v18  ;;  %2708 = vmatpush.bf16.xpose.msra.mxu3 %v2698_v33  ;;  %v8183_v19 = vmul.f32 0.25, %v947_v50  ;;  %v10561_v50 = vld [vmem:[#allocation51_spill] sm:$0xff] }
 0x2a5   : > { %5550 = vmatmul.msk.bf16.gmra.mxu3 %vm862_vm0, %v7778_v32  ;;  %v2692_v32 = vsel %vm862_vm0, %v7910_v3, 0 }
 0x2a6   : > { %998 = vmax.xlane.f32.xlu2 %v8183_v19 }
 0x2a7   : > { %2580 = vmatpush.bf16.msrb.mxu2 %v7998_v11  ;;  %v2249_v11 = vsel %vm862_vm0, %v7868_v7, 0  ;;  %v2246_v7 = vsel %vm862_vm0, %v7860_v43, 0  ;;  %v8214_v3 = vpop.permute.xlu0 %3985  ;;  %v2243_v43 = vsel %vm862_vm0, %v7794_v25, 0  ;;  %v2240_v25 = vsel %vm862_vm0, %v10555_v2, 0 }
 0x2a8   : > { %v4033_v41 = vsel %vm862_vm0, %v8214_v3, 0 }
 0x2ab   : > { %2581 = vmatpush.bf16.msrb.mxu2 %v8000_v17  ;;  %v950_v4 = vpop.f32.mrf.mxu3 }
 0x2ac   : > { %2266 = vmatpush.bf16.xpose.msrb.mxu1 %v2252_v47  ;;  %2709 = vmatpush.bf16.xpose.msra.mxu3 %v2695_v21  ;;  %v8187_v57 = vmul.f32 0.25, %v950_v4  ;;  %v10562_v47 = vld [vmem:[#allocation54_spill] sm:$0xff]  ;;  %v3135_v21 = vsel %vm862_vm0, %v8078_v28, 0  ;;  %v10565_v28 = vld [vmem:[#allocation67_spill] sm:$0xff] }
 0x2ae   : > { %1000 = vmax.xlane.f32.xlu0 %v8187_v57 }
 0x2af   : > { %2582 = vmatpush.bf16.msrb.mxu2 %v7908_v55  ;;  %v8209_v55 = vpop.permute.xlu1 %3069  ;;  %v3541_v8 = vpop.permute.xlu0 %3540 }
 0x2b0   : > { %v3587_v59 = vsel %vm862_vm0, %v3541_v8, 0  ;;  %v10567_v8 = vld [vmem:[#allocation64_spill] sm:$0xff] }
 0x2b3   : > { %2583 = vmatpush.bf16.msrb.mxu2 %v7912_v12  ;;  %v952_v17 = vpop.f32.mrf.mxu3  ;;  %5527 = vmatmul.msk.bf16.gmra.mxu1 %vm862_vm0, %v7844_v61  ;;  %v8212_v61 = vpop.permute.xlu2 %3085 }
 0x2b4   : > { %2267 = vmatpush.bf16.xpose.msrb.mxu1 %v2249_v11  ;;  %2710 = vmatpush.bf16.xpose.msra.mxu3 %v2692_v32  ;;  %v8207_v49 = vmul.f32 0.25, %v952_v17  ;;  %v3132_v32 = vsel %vm862_vm0, %v8082_v22, 0  ;;  %v3126_v22 = vsel %vm862_vm0, %v8212_v61, 0  ;;  %v10569_v61 = vld [vmem:[#allocation32_spill] sm:$0xff] }
 0x2b5   : > { %5551 = vmatmul.msk.bf16.gmra.mxu3 %vm862_vm0, %v7858_v27 }
 0x2b6   : > { %1002 = vmax.xlane.f32.xlu1 %v8207_v49 }
 0x2b7   : > { %2584 = vmatpush.bf16.msrb.mxu2 %v7828_v9  ;;  %v8223_v12 = vpop.permute.xlu1 %3071  ;;  %v3984_v14 = vpop.permute.xlu0 %3983 }
 0x2b8   : > { %v4030_v3 = vsel %vm862_vm0, %v3984_v14, 0 }
 0x2bb   : > { %v955_v27 = vpop.f32.mrf.mxu3  ;;  %v3543_v29 = vpop.permute.xlu2 %3542 }
 0x2bc   : > { %2268 = vmatpush.bf16.xpose.msrb.mxu1 %v2246_v7  ;;  %2711 = vmatpush.bf16.xpose.msra.mxu3 %v2689_v48  ;;  %v8216_v9 = vmul.f32 0.25, %v955_v27  ;;  %v3590_v15 = vsel %vm862_vm0, %v3543_v29, 0  ;;  %v10563_v48 = vld [vmem:[#allocation58_spill] sm:$0xff]  ;;  %v10564_v27 = vld [vmem:[#allocation57_spill] sm:$0xff]  ;;  %v10566_v29 = vld [vmem:[#allocation63_spill] sm:$0xff] }
 0x2be   : > { %1004 = vmax.xlane.f32.xlu2 %v8216_v9 }
 0x2bf   : > { %v8236_v46 = vpop.permute.xlu1 %3077  ;;  %v8250_v56 = vpop.permute.xlu0 %3981 }
 0x2c0   : > { %v4027_v14 = vsel %vm862_vm0, %v8250_v56, 0 }
 0x2c3   : > { %5528 = vmatmul.msk.bf16.gmra.mxu1 %vm862_vm0, %v10553_v1  ;;  %v3539_v10 = vpop.permute.xlu2 %3538 }
 0x2c4   : > { %2269 = vmatpush.bf16.xpose.msrb.mxu1 %v2243_v43  ;;  %2712 = vmatpush.bf16.xpose.msra.mxu3 %v2686_v38  ;;  %v3584_v52 = vsel %vm862_vm0, %v3539_v10, 0  ;;  %v3129_v43 = vsel %vm862_vm0, %v10565_v28, 0 }
 0x2c5   : > { %5552 = vmatmul.msk.bf16.gmra.mxu3 %vm862_vm0, %v10554_v34  ;;  %v957_v34 = vpop.f32.mrf.mxu3 }
 0x2c6   : > { %v8294_v10 = vmul.f32 0.25, %v957_v34 }
 0x2c7   : > { %v8243_v13 = vpop.permute.xlu1 %3079  ;;  %v3535_v33 = vpop.permute.xlu0 %3534 }
 0x2c8   : > { %v3578_v4 = vsel %vm862_vm0, %v3535_v33, 0  ;;  %v10570_v33 = vld [vmem:[#allocation40_spill] sm:$0xff] }
 0x2cb   : > { %v3537_v45 = vpop.permute.xlu2 %3536 }
 0x2cc   : > { %2270 = vmatpush.bf16.xpose.msrb.mxu1 %v2240_v25  ;;  %2713 = vmatpush.bf16.xpose.msra.mxu3 %v2683_v30  ;;  %v3581_v0 = vsel %vm862_vm0, %v3537_v45, 0 }
 0x2cf   : > { %v8255_v18 = vpop.permute.xlu1 %3979  ;;  %v3533_v11 = vpop.permute.xlu0 %3532 }
 0x2d0   : > { %v3575_v17 = vsel %vm862_vm0, %v3533_v11, 0 }
 0x2d3   : > { %5529 = vmatmul.msk.bf16.gmra.mxu1 %vm862_vm0, %v10558_v63  ;;  %v8300_v44 = vpop.permute.xlu2 %3081 }
 0x2d4   : > { %3149 = vmatpush.bf16.xpose.msra.mxu1 %v3147_v42  ;;  %3592 = vmatpush.bf16.xpose.msrb.mxu3 %v3590_v15  ;;  %v10568_v42 = vld [vmem:[#allocation31_spill] sm:$0xff] }
 0x2d5   : > { %5553 = vmatmul.msk.bf16.gmra.mxu3 %vm862_vm0, %v10559_v16 }
 0x2d7   : > { %v8264_v31 = vpop.permute.xlu1 %3977 }
 0x2db   : > { %v3976_v11 = vpop.permute.xlu2 %3975 }
 0x2dc   : > { %3150 = vmatpush.bf16.xpose.msra.mxu1 %v3144_v20  ;;  %3593 = vmatpush.bf16.xpose.msrb.mxu3 %v3587_v59 }
 0x2df   : > { %v3531_v7 = vpop.permute.xlu1 %3530 }
 0x2e0   : > { %v3572_v38 = vsel %vm862_vm0, %v3531_v7, 0  ;;  %v4024_v7 = vsel %vm862_vm0, %v8255_v18, 0 }
 0x2e3   : > { %5530 = vmatmul.msk.bf16.gmra.mxu1 %vm862_vm0, %v10561_v50  ;;  %v10571_v50 = vld [vmem:[#allocation42_spill] sm:$0xff] }
 0x2e4   : > { %3151 = vmatpush.bf16.xpose.msra.mxu1 %v3141_v39  ;;  %3594 = vmatpush.bf16.xpose.msrb.mxu3 %v3584_v52 }
 0x2e5   : > { %5554 = vmatmul.msk.bf16.gmra.mxu3 %vm862_vm0, %v10562_v47 }
 0x2ec   : > { %3152 = vmatpush.bf16.xpose.msra.mxu1 %v3138_v35  ;;  %3595 = vmatpush.bf16.xpose.msrb.mxu3 %v3581_v0  ;;  %v981_v35 = vpop.xlane.xlu1 %980 }
 0x2ed   : > { %v977_v1 = vpop.xlane.xlu0 %976  ;;  %v1010_v47 = vsub.f32 %v8094_v36, %v981_v35  ;;  %v985_v36 = vpop.xlane.xlu2 %984  ;;  %v10575_v35 = vld [vmem:[#allocation47_spill] sm:$0xff] }
 0x2ee   : > { %v1008_v16 = vsub.f32 %v8106_v54, %v977_v1  ;;  %v10573_v1 = vld [vmem:[#allocation46_spill] sm:$0xff] }
 0x2f0   : > { %v1024_v39 = vmul.f32 1.442695, %v1008_v16 }
 0x2f3   : > { %5531 = vmatmul.msk.bf16.gmra.mxu1 %vm862_vm0, %v10563_v48 }
 0x2f4   : > { %3153 = vmatpush.bf16.xpose.msra.mxu1 %v3135_v21  ;;  %3596 = vmatpush.bf16.xpose.msrb.mxu3 %v3578_v4 }
 0x2f5   : > { %5555 = vmatmul.msk.bf16.gmra.mxu3 %vm862_vm0, %v10564_v27  ;;  %v979_v30 = vpop.xlane.xlu0 %978 }
 0x2f6   : > { %v1009_v15 = vsub.f32 %v8118_v40, %v979_v30 }
 0x2f8   : > { %v1026_v63 = vmul.f32 1.442695, %v1009_v15  ;;  %v987_v15 = vpop.xlane.xlu2 %986 }
 0x2fa   : > { %6538 = vpow2.f32 %v1026_v63 }
 0x2fb   : > { %6540 = vpow2.f32 %v1024_v39  ;;  %v10574_v39 = vld [vmem:[#allocation48_spill] sm:$0xff] }
 0x2fc   : > { %3154 = vmatpush.bf16.xpose.msra.mxu1 %v3132_v32  ;;  %3597 = vmatpush.bf16.xpose.msrb.mxu3 %v3575_v17  ;;  %v1028_v17 = vmul.f32 1.442695, %v1010_v47 }
 0x2fd   : > { %v989_v47 = vpop.xlane.xlu0 %988 }
 0x2fe   : > { %6542 = vpow2.f32 %v1028_v17  ;;  %v1014_v17 = vsub.f32 %v8132_v37, %v989_v47 }
 0x300   : > { %v8311_v54 = vpop.eup %6538 }
 0x301   : > { %v8320_v56 = vpop.eup %6540 }
 0x303   : > { %5532 = vmatmul.msk.bf16.gmra.mxu1 %vm862_vm0, %v10566_v29 }
 0x304   : > { %3155 = vmatpush.bf16.xpose.msra.mxu1 %v3129_v43  ;;  %3598 = vmatpush.bf16.xpose.msrb.mxu3 %v3572_v38  ;;  %v983_v43 = vpop.xlane.xlu1 %982  ;;  %v10572_v38 = vld [vmem:[#allocation41_spill] sm:$0xff]  ;;  %v8335_v29 = vpop.eup %6542 }
 0x305   : > { %5556 = vmatmul.msk.bf16.gmra.mxu3 %vm862_vm0, %v10567_v8  ;;  %v1012_v8 = vsub.f32 %v8092_v5, %v985_v36  ;;  %v1011_v34 = vsub.f32 %v8109_v26, %v983_v43  ;;  %v4018_v5 = vsel %vm862_vm0, %v3976_v11, 0  ;;  %v1013_v26 = vsub.f32 %v8104_v6, %v987_v15 }
 0x30c   : > { %3156 = vmatpush.bf16.xpose.msra.mxu1 %v3126_v22  ;;  %v4021_v22 = vsel %vm862_vm0, %v8264_v31, 0  ;;  %v1032_v31 = vmul.f32 1.442695, %v1012_v8 }
 0x30e   : > { %6544 = vpow2.f32 %v1032_v31 }
 0x310   : > { %v1386_v2 = vpop.f32.mrf.mxu1 }
 0x311   : > { %v8282_v25 = vmul.f32 0.25, %v1386_v2 }
 0x313   : > { %5573 = vmatmul.msk.bf16.vlgmr.msrb.gmra.mxu1 %vm862_vm0, %v10568_v42  ;;  %1442 = vmax.xlane.f32.xlu0 %v8282_v25 }
 0x314   : > { %4035 = vmatpush.bf16.xpose.msrb.mxu1 %v4033_v41  ;;  %v8356_v16 = vpop.eup %6544 }
 0x315   : > { %5597 = vmatmul.msk.bf16.vlgmr.msra.gmra.mxu3 %vm862_vm0, %v10569_v61  ;;  %v1030_v61 = vmul.f32 1.442695, %v1011_v34 }
 0x317   : > { %6546 = vpow2.f32 %v1030_v61 }
 0x318   : > { %v1829_v60 = vpop.f32.mrf.mxu3  ;;  %v1388_v20 = vpop.f32.mrf.mxu1 }
 0x319   : > { %v8292_v59 = vmul.f32 0.25, %v1388_v20  ;;  %v8304_v0 = vmul.f32 0.25, %v1829_v60 }
 0x31b   : > { %1444 = vmax.xlane.f32.xlu2 %v8292_v59  ;;  %1006 = vmax.xlane.f32.xlu0 %v8294_v10 }
 0x31c   : > { %4036 = vmatpush.bf16.xpose.msrb.mxu1 %v4030_v3 }
 0x320   : > { %v1831_v40 = vpop.f32.mrf.mxu3  ;;  %v1391_v52 = vpop.f32.mrf.mxu1 }
 0x321   : > { %v8302_v45 = vmul.f32 0.25, %v1391_v52  ;;  %v8333_v18 = vmul.f32 0.25, %v1831_v40  ;;  %v1034_v40 = vmul.f32 1.442695, %v1013_v26  ;;  %v8361_v52 = vpop.eup %6546 }
 0x323   : > { %5574 = vmatmul.msk.bf16.gmra.mxu1 %vm862_vm0, %v10570_v33  ;;  %1446 = vmax.xlane.f32.xlu1 %v8302_v45  ;;  %6548 = vpow2.f32 %v1034_v40 }
 0x324   : > { %4037 = vmatpush.bf16.xpose.msrb.mxu1 %v4027_v14  ;;  %1058 = vadd.xlane.f32.xlu2 %v8311_v54  ;;  %v991_v14 = vpop.xlane.xlu1 %990 }
 0x325   : > { %5598 = vmatmul.msk.bf16.gmra.mxu3 %vm862_vm0, %v10571_v50  ;;  %1885 = vmax.xlane.f32.xlu0 %v8304_v0  ;;  %v1015_v11 = vsub.f32 %v8127_v58, %v991_v14  ;;  %v10577_v58 = vld [vmem:[#allocation55_spill] sm:$0xff] }
 0x328   : > { %v1834_v21 = vpop.f32.mrf.mxu3  ;;  %v1393_v4 = vpop.f32.mrf.mxu1 }
 0x329   : > { %v8318_v32 = vmul.f32 0.25, %v1393_v4  ;;  %v8343_v30 = vmul.f32 0.25, %v1834_v21  ;;  %v8372_v4 = vpop.eup %6548 }
 0x32b   : > { %1056 = vadd.xlane.f32.xlu1 %v8320_v56 }
 0x32c   : > { %4038 = vmatpush.bf16.xpose.msrb.mxu1 %v4024_v7  ;;  %v997_v26 = vpop.xlane.xlu1 %996 }
 0x32d   : > { %1448 = vmax.xlane.f32.xlu0 %v8318_v32 }
 0x330   : > { %v1836_v48 = vpop.f32.mrf.mxu3  ;;  %v1396_v27 = vpop.f32.mrf.mxu1 }
 0x331   : > { %v8326_v28 = vmul.f32 0.25, %v1396_v27  ;;  %v8349_v60 = vmul.f32 0.25, %v1836_v48  ;;  %v1038_v48 = vmul.f32 1.442695, %v1015_v11 }
 0x333   : > { %5575 = vmatmul.msk.bf16.gmra.mxu1 %vm862_vm0, %v10572_v38  ;;  %1450 = vmax.xlane.f32.xlu2 %v8326_v28  ;;  %v1036_v38 = vmul.f32 1.442695, %v1014_v17  ;;  %6550 = vpow2.f32 %v1038_v48 }
 0x334   : > { %4039 = vmatpush.bf16.xpose.msrb.mxu1 %v4021_v22  ;;  %1887 = vmax.xlane.f32.xlu1 %v8333_v18  ;;  %v993_v22 = vpop.xlane.xlu2 %992 }
 0x335   : > { %5599 = vmatmul.msk.bf16.gmra.mxu3 %vm862_vm0, %v10573_v1  ;;  %1060 = vadd.xlane.f32.xlu0 %v8335_v29  ;;  %v10576_v1 = vld [vmem:[#allocation52_spill] sm:$0xff]  ;;  %6552 = vpow2.f32 %v1036_v38  ;;  %v1016_v37 = vsub.f32 %v8145_v53, %v993_v22 }
 0x337   : > { %v1040_v61 = vmul.f32 1.442695, %v1016_v37 }
 0x338   : > { %v1839_v2 = vpop.f32.mrf.mxu3  ;;  %v1398_v41 = vpop.f32.mrf.mxu1 }
 0x339   : > { %v8345_v42 = vmul.f32 0.25, %v1398_v41  ;;  %v8369_v21 = vmul.f32 0.25, %v1839_v2  ;;  %v8394_v41 = vpop.eup %6550  ;;  %6554 = vpow2.f32 %v1040_v61  ;;  %v10581_v61 = vld [vmem:[#allocation59_spill] sm:$0xff] }
 0x33b   : > { %1889 = vmax.xlane.f32.xlu2 %v8343_v30  ;;  %v8397_v15 = vpop.eup %6552 }
 0x33c   : > { %4040 = vmatpush.bf16.xpose.msrb.mxu1 %v4018_v5  ;;  %1452 = vmax.xlane.f32.xlu1 %v8345_v42 }
 0x33d   : > { %1891 = vmax.xlane.f32.xlu0 %v8349_v60 }
 0x340   : > { %v1841_v20 = vpop.f32.mrf.mxu3  ;;  %v1401_v63 = vpop.f32.mrf.mxu1 }
 0x341   : > { %v8354_v3 = vmul.f32 0.25, %v1401_v63  ;;  %v8378_v36 = vmul.f32 0.25, %v1841_v20  ;;  %v995_v63 = vpop.xlane.xlu0 %994 }
 0x342   : > { %v1017_v14 = vsub.f32 %v8160_v23, %v995_v63 }
 0x343   : > { %5576 = vmatmul.msk.bf16.gmra.mxu1 %vm862_vm0, %v10574_v39  ;;  %1064 = vadd.xlane.f32.xlu2 %v8356_v16  ;;  %v10578_v39 = vld [vmem:[#allocation53_spill] sm:$0xff] }
 0x344   : > { %1062 = vadd.xlane.f32.xlu1 %v8361_v52  ;;  %v1042_v48 = vmul.f32 1.442695, %v1017_v14 }
 0x345   : > { %5600 = vmatmul.msk.bf16.gmra.mxu3 %vm862_vm0, %v10575_v35  ;;  %1454 = vmax.xlane.f32.xlu0 %v8354_v3  ;;  %v8408_v35 = vpop.eup %6554 }
 0x348   : > { %v1844_v6 = vpop.f32.mrf.mxu3  ;;  %v1403_v33 = vpop.f32.mrf.mxu1 }
 0x349   : > { %v8367_v50 = vmul.f32 0.25, %v1403_v33  ;;  %v8382_v8 = vmul.f32 0.25, %v1844_v6  ;;  %v1018_v6 = vsub.f32 %v8164_v62, %v997_v26  ;;  %v10579_v33 = vld [vmem:[#allocation56_spill] sm:$0xff]  ;;  %v1003_v26 = vpop.xlane.xlu1 %1002  ;;  %v1001_v63 = vpop.xlane.xlu0 %1000 }
 0x34a   : > { %v1020_v14 = vsub.f32 %v8187_v57, %v1001_v63 }
 0x34b   : > { %1456 = vmax.xlane.f32.xlu2 %v8367_v50  ;;  %v1044_v47 = vmul.f32 1.442695, %v1018_v6 }
 0x34c   : > { %1893 = vmax.xlane.f32.xlu1 %v8369_v21 }
 0x34d   : > { %1066 = vadd.xlane.f32.xlu0 %v8372_v4  ;;  %6556 = vpow2.f32 %v1044_v47 }
 0x34e   : > { %6558 = vpow2.f32 %v1042_v48 }
 0x350   : > { %v1846_v7 = vpop.f32.mrf.mxu3  ;;  %v1406_v27 = vpop.f32.mrf.mxu1 }
 0x351   : > { %v8380_v43 = vmul.f32 0.25, %v1406_v27  ;;  %v8403_v40 = vmul.f32 0.25, %v1846_v7  ;;  %v999_v27 = vpop.xlane.xlu2 %998 }
 0x352   : > { %v1019_v23 = vsub.f32 %v8183_v19, %v999_v27 }
 0x353   : > { %5577 = vmatmul.msk.bf16.gmra.mxu1 %vm862_vm0, %v10576_v1  ;;  %1895 = vmax.xlane.f32.xlu2 %v8378_v36 }
 0x354   : > { %1458 = vmax.xlane.f32.xlu1 %v8380_v43  ;;  %v1046_v37 = vmul.f32 1.442695, %v1019_v23 }
 0x355   : > { %5601 = vmatmul.msk.bf16.gmra.mxu3 %vm862_vm0, %v10577_v58  ;;  %1897 = vmax.xlane.f32.xlu0 %v8382_v8  ;;  %v8428_v58 = vpop.eup %6556 }
 0x356   : > { %6560 = vpow2.f32 %v1046_v37  ;;  %v10584_v37 = vld [vmem:[#allocation65_spill] sm:$0xff] }
 0x358   : > { %v1849_v34 = vpop.f32.mrf.mxu3  ;;  %v1408_v2 = vpop.f32.mrf.mxu1 }
 0x359   : > { %v8392_v31 = vmul.f32 0.25, %v1408_v2  ;;  %v8416_v17 = vmul.f32 0.25, %v1849_v34  ;;  %v10580_v34 = vld [vmem:[#allocation61_spill] sm:$0xff]  ;;  %v8433_v2 = vpop.eup %6558  ;;  %v1005_v57 = vpop.xlane.xlu2 %1004 }
 0x35b   : > { %1070 = vadd.xlane.f32.xlu2 %v8394_v41 }
 0x35c   : > { %1068 = vadd.xlane.f32.xlu1 %v8397_v15  ;;  %v8444_v6 = vpop.eup %6560 }
 0x35d   : > { %1460 = vmax.xlane.f32.xlu0 %v8392_v31 }
 0x360   : > { %v1411_v5 = vpop.f32.mrf.mxu1  ;;  %v1851_v53 = vpop.f32.mrf.mxu3 }
 0x361   : > { %v8401_v20 = vmul.f32 0.25, %v1411_v5  ;;  %v8420_v38 = vmul.f32 0.25, %v1851_v53 }
 0x363   : > { %5578 = vmatmul.msk.bf16.gmra.mxu1 %vm862_vm0, %v10578_v39  ;;  %1462 = vmax.xlane.f32.xlu2 %v8401_v20 }
 0x364   : > { %1899 = vmax.xlane.f32.xlu1 %v8403_v40 }
 0x365   : > { %5602 = vmatmul.msk.bf16.gmra.mxu3 %vm862_vm0, %v10579_v33  ;;  %1072 = vadd.xlane.f32.xlu0 %v8408_v35  ;;  %v1021_v33 = vsub.f32 %v8207_v49, %v1003_v26  ;;  %v10585_v49 = vld [vmem:[#allocation66_spill] sm:$0xff] }
 0x367   : > { %v1050_v47 = vmul.f32 1.442695, %v1021_v33 }
 0x368   : > { %v1413_v11 = vpop.f32.mrf.mxu1  ;;  %v1854_v62 = vpop.f32.mrf.mxu3 }
 0x369   : > { %v8418_v7 = vmul.f32 0.25, %v1413_v11  ;;  %v8441_v39 = vmul.f32 0.25, %v1854_v62  ;;  %v1048_v62 = vmul.f32 1.442695, %v1020_v14  ;;  %6562 = vpow2.f32 %v1050_v47 }
 0x36a   : > { %v1022_v47 = vsub.f32 %v8216_v9, %v1005_v57 }
 0x36b   : > { %1901 = vmax.xlane.f32.xlu2 %v8416_v17  ;;  %6564 = vpow2.f32 %v1048_v62 }
 0x36c   : > { %1464 = vmax.xlane.f32.xlu1 %v8418_v7 }
 0x36d   : > { %1903 = vmax.xlane.f32.xlu0 %v8420_v38 }
 0x36f   : > { %v8466_v63 = vpop.eup %6562 }
 0x370   : > { %v1416_v22 = vpop.f32.mrf.mxu1  ;;  %v1856_v19 = vpop.f32.mrf.mxu3 }
 0x371   : > { %v8426_v1 = vmul.f32 0.25, %v1416_v22  ;;  %v8450_v27 = vmul.f32 0.25, %v1856_v19  ;;  %v8469_v33 = vpop.eup %6564 }
 0x373   : > { %5579 = vmatmul.msk.bf16.gmra.mxu1 %vm862_vm0, %v10580_v34  ;;  %1076 = vadd.xlane.f32.xlu2 %v8428_v58 }
 0x374   : > { %1074 = vadd.xlane.f32.xlu1 %v8433_v2 }
 0x375   : > { %5603 = vmatmul.msk.bf16.gmra.mxu3 %vm862_vm0, %v10581_v61  ;;  %1466 = vmax.xlane.f32.xlu0 %v8426_v1 }
 0x378   : > { %v1418_v5 = vpop.f32.mrf.mxu1  ;;  %v1859_v11 = vpop.f32.mrf.mxu3 }
 0x379   : > { %v8439_v53 = vmul.f32 0.25, %v1418_v5  ;;  %v8454_v22 = vmul.f32 0.25, %v1859_v11 }
 0x37b   : > { %1468 = vmax.xlane.f32.xlu2 %v8439_v53  ;;  %10583 = vst [vmem:[#allocation45_spill] sm:$0xff] %v8454_v22 }
 0x37c   : > { %1905 = vmax.xlane.f32.xlu1 %v8441_v39 }
 0x37d   : > { %1078 = vadd.xlane.f32.xlu0 %v8444_v6 }
 0x380   : > { %v1421_v48 = vpop.f32.mrf.mxu1  ;;  %v1861_v14 = vpop.f32.mrf.mxu3 }
 0x381   : > { %v8452_v23 = vmul.f32 0.25, %v1421_v48 }
 0x383   : > { %10582 = vst [vmem:[#allocation44_spill] sm:$0xff] %v8452_v23  ;;  %5580 = vmatmul.msk.bf16.gmra.mxu1 %vm862_vm0, %v10584_v37  ;;  %1907 = vmax.xlane.f32.xlu2 %v8450_v27 }
 0x384   : > { %1470 = vmax.xlane.f32.xlu1 %v8452_v23 }
 0x385   : > { %5604 = vmatmul.msk.bf16.gmra.mxu3 %vm862_vm0, %v10585_v49  ;;  %1909 = vmax.xlane.f32.xlu0 %v8454_v22 }
 0x386   : > { %v1443_v34 = vpop.xlane.xlu0 %1442 }
 0x387   : > { %v1474_v61 = vsub.f32 %v8282_v25, %v1443_v34 }
 0x388   : > { %v1423_v19 = vpop.f32.mrf.mxu1  ;;  %v1864_v9 = vpop.f32.mrf.mxu3 }
 0x389   : > { %v1490_v5 = vmul.f32 1.442695, %v1474_v61  ;;  %v8464_v26 = vmul.f32 0.25, %v1423_v19  ;;  %v1052_v61 = vmul.f32 1.442695, %v1022_v47  ;;  %v8479_v19 = vmul.f32 0.25, %v1861_v14 }
 0x38a   : > { %v8487_v47 = vmul.f32 0.25, %v1864_v9 }
 0x38b   : > { %6566 = vpow2.f32 %v1490_v5  ;;  %1082 = vadd.xlane.f32.xlu2 %v8466_v63  ;;  %10587 = vst [vmem:[#allocation34_spill] sm:$0xff] %v8479_v19 }
 0x38c   : > { %1080 = vadd.xlane.f32.xlu1 %v8469_v33  ;;  %10588 = vst [vmem:[#allocation60_spill] sm:$0xff] %v8487_v47 }
 0x38d   : > { %1472 = vmax.xlane.f32.xlu0 %v8464_v26 }
 0x38e   : > { %v1445_v11 = vpop.xlane.xlu2 %1444  ;;  %v1007_v25 = vpop.xlane.xlu0 %1006 }
 0x38f   : > { %v1475_v48 = vsub.f32 %v8292_v59, %v1445_v11  ;;  %v1023_v59 = vsub.f32 %v8294_v10, %v1007_v25 }
 0x390   : > { %v2272_v62 = vpop.f32.mrf.mxu1 }
 0x391   : > { %v8475_v37 = vpop.eup %6566  ;;  %v1492_v49 = vmul.f32 1.442695, %v1475_v48  ;;  %v8477_v34 = vmul.f32 0.25, %v2272_v62 }
 0x393   : > { %10586 = vst [vmem:[#allocation30_spill] sm:$0xff] %v8477_v34  ;;  %5621 = vmatmul.msk.bf16.vlgmr.msra.gmra.mxu1 %vm862_vm0, %v8209_v55  ;;  %1522 = vadd.xlane.f32.xlu2 %v8475_v37  ;;  %6568 = vpow2.f32 %v1492_v49  ;;  %v1054_v55 = vmul.f32 1.442695, %v1023_v59 }
 0x394   : > { %1911 = vmax.xlane.f32.xlu1 %v8479_v19  ;;  %6570 = vpow2.f32 %v1052_v61  ;;  %v1866_v61 = vpop.f32.mrf.mxu3 }
 0x395   : > { %2328 = vmax.xlane.f32.xlu0 %v8477_v34  ;;  %v8501_v22 = vmul.f32 0.25, %v1866_v61 }
 0x396   : > { %v1447_v57 = vpop.xlane.xlu1 %1446 }
 0x397   : > { %v1059_v5 = vpop.xlane.xlu2 %1058  ;;  %v1476_v10 = vsub.f32 %v8302_v45, %v1447_v57  ;;  %10590 = vst [vmem:[#allocation50_spill] sm:$0xff] %v8501_v22 }
 0x398   : > { %v1886_v11 = vpop.xlane.xlu0 %1885  ;;  %6572 = vrcp.f32 %v1059_v5  ;;  %v2274_v14 = vpop.f32.mrf.mxu1 }
 0x399   : > { %v8489_v48 = vpop.eup %6568  ;;  %6574 = vpow2.f32 %v1054_v55  ;;  %v8497_v5 = vmul.f32 0.25, %v2274_v14 }
 0x39a   : > { %v8492_v62 = vpop.eup %6570 }
 0x39b   : > { %1913 = vmax.xlane.f32.xlu2 %v8487_v47  ;;  %10589 = vst [vmem:[#allocation49_spill] sm:$0xff] %v8497_v5  ;;  %v1494_v47 = vmul.f32 1.442695, %v1476_v10 }
 0x39c   : > { %1524 = vadd.xlane.f32.xlu1 %v8489_v48 }
 0x39d   : > { %1084 = vadd.xlane.f32.xlu0 %v8492_v62 }
 0x39e   : > { %v1057_v25 = vpop.xlane.xlu1 %1056  ;;  %v6573_v49 = vpop.eup %6572 }
 0x39f   : > { %6576 = vrcp.f32 %v1057_v25  ;;  %v1105_v34 = vmul.f32 %v6573_v49, %v8311_v54  ;;  %v8506_v45 = vpop.eup %6574  ;;  %v1917_v54 = vsub.f32 %v8304_v0, %v1886_v11  ;;  %v2715_v0 = vpop.f32.mrf.mxu3 }
 0x3a0   : > { %v1449_v9 = vpop.xlane.xlu0 %1448  ;;  %v2277_v23 = vpop.f32.mrf.mxu1 }
 0x3a1   : > { %v1477_v59 = vsub.f32 %v8318_v32, %v1449_v9  ;;  %v1121_v55 = vpack.c.bf16 %v1105_v34, %v1105_v34  ;;  %v1933_v9 = vmul.f32 1.442695, %v1917_v54  ;;  %v8519_v11 = vmul.f32 0.25, %v2277_v23 }
 0x3a3   : > { %v1496_v19 = vmul.f32 1.442695, %v1477_v59  ;;  %5622 = vmatmul.msk.bf16.gmra.mxu1 %vm862_vm0, %v8223_v12  ;;  %2330 = vmax.xlane.f32.xlu2 %v8497_v5  ;;  %v1169_v59 = vunpack.c.l.b16 %v1121_v55  ;;  %10591 = vst [vmem:[#allocation62_spill] sm:$0xff] %v8519_v11 }
 0x3a4   : > { %1086 = vadd.xlane.f32.xlu1 %v8506_v45 }
 0x3a5   : > { %v6577_v57 = vpop.eup %6576  ;;  %6578 = vpow2.f32 %v1496_v19  ;;  %1915 = vmax.xlane.f32.xlu0 %v8501_v22 }
 0x3a6   : > { %6580 = vpow2.f32 %v1494_v47  ;;  %v1451_v32 = vpop.xlane.xlu2 %1450  ;;  %v1104_v14 = vmul.f32 %v6577_v57, %v8320_v56 }
 0x3a7   : > { %v1888_v10 = vpop.xlane.xlu1 %1887 }
 0x3a8   : > { %v1061_v12 = vpop.xlane.xlu0 %1060  ;;  %v1120_v25 = vpack.c.bf16 %v1104_v14, %v1104_v14  ;;  %v5799_v49 = vpack.c.bf16 %v1105_v34, %v1104_v14  ;;  %v1918_v61 = vsub.f32 %v8333_v18, %v1888_v10  ;;  %v2279_v18 = vpop.f32.mrf.mxu1  ;;  %v8530_v10 = vmul.f32 0.25, %v2715_v0 }
 0x3a9   : > { %v8545_v5 = vmul.f32 0.25, %v2279_v18 }
 0x3aa   : > { %5800 = vst [vmem:[%s8514_s21] sm:$0xff] %v5799_v49   ;;  %v1168_v19 = vunpack.c.l.b16 %v1120_v25  ;;  %v1935_v56 = vmul.f32 1.442695, %v1918_v61  ;;  %v2717_v49 = vpop.f32.mrf.mxu3  ;;  %v1478_v61 = vsub.f32 %v8326_v28, %v1451_v32 }
 0x3ab   : > { %v8517_v47 = vpop.eup %6578  ;;  %v8543_v22 = vmul.f32 0.25, %v2717_v49 }
 0x3ac   : > { %v8521_v57 = vpop.eup %6580  ;;  %1528 = vadd.xlane.f32.xlu2 %v8517_v47  ;;  %v1184_v34 = vpack.c.b16 %v1169_v59, %v1168_v19  ;;  %6582 = vpow2.f32 %v1935_v56  ;;  %2332 = vmax.xlane.f32.xlu1 %v8519_v11 }
 0x3ad   : > { %1526 = vadd.xlane.f32.xlu0 %v8521_v57  ;;  %6584 = vpow2.f32 %v1933_v9 }
 0x3ae   : > { %1256 = vmatmul.bf16.vlgmr.msrb.gmra.mxu0 %v1184_v34  ;;  %v1890_v54 = vpop.xlane.xlu2 %1889  ;;  %6586 = vrcp.f32 %v1061_v12  ;;  %v1498_v34 = vmul.f32 1.442695, %v1478_v61 }
 0x3af   : > { %v1453_v14 = vpop.xlane.xlu1 %1452  ;;  %v1919_v9 = vsub.f32 %v8343_v30, %v1890_v54 }
 0x3b0   : > { %v8526_v55 = vpop.xlane.xlu0 %1891  ;;  %v2282_v59 = vpop.f32.mrf.mxu1  ;;  %v1479_v32 = vsub.f32 %v8345_v42, %v1453_v14 }
 0x3b1   : > { %v8541_v11 = vmul.f32 0.25, %v2282_v59 }
 0x3b2   : > { %v8528_v23 = vpop.eup %6582  ;;  %v2720_v61 = vpop.f32.mrf.mxu3 }
 0x3b3   : > { %5623 = vmatmul.msk.bf16.gmra.mxu1 %vm862_vm0, %v8174_v51  ;;  %v8534_v25 = vpop.eup %6584  ;;  %v1937_v51 = vmul.f32 1.442695, %v1919_v9 }
 0x3b4   : > { %1967 = vadd.xlane.f32.xlu2 %v8528_v23  ;;  %1965 = vadd.xlane.f32.xlu1 %v8534_v25  ;;  %v6587_v56 = vpop.eup %6586 }
 0x3b5   : > { %2771 = vmax.xlane.f32.xlu0 %v8530_v10  ;;  %v1106_v28 = vmul.f32 %v6587_v56, %v8335_v29 }
 0x3b6   : > { %v1065_v19 = vpop.xlane.xlu2 %1064 }
 0x3b7   : > { %v1063_v0 = vpop.xlane.xlu1 %1062  ;;  %v1122_v59 = vpack.c.bf16 %v1106_v28, %v1106_v28 }
 0x3b8   : > { %v1455_v12 = vpop.xlane.xlu0 %1454  ;;  %6588 = vrcp.f32 %v1063_v0  ;;  %v2284_v14 = vpop.f32.mrf.mxu1 }
 0x3b9   : > { %6590 = vpow2.f32 %v1498_v34  ;;  %v1480_v30 = vsub.f32 %v8354_v3, %v1455_v12  ;;  %v8556_v3 = vmul.f32 0.25, %v2720_v61  ;;  %v1500_v12 = vmul.f32 1.442695, %v1479_v32 }
 0x3ba   : > { %6592 = vpow2.f32 %v1937_v51 }
 0x3bb   : > { %6594 = vrcp.f32 %v1065_v19  ;;  %v1502_v0 = vmul.f32 1.442695, %v1480_v30 }
 0x3bc   : > { %2336 = vmax.xlane.f32.xlu2 %v8541_v11  ;;  %2773 = vmax.xlane.f32.xlu1 %v8543_v22 }
 0x3bd   : > { %2334 = vmax.xlane.f32.xlu0 %v8545_v5 }
 0x3be   : > { %v8553_v54 = vpop.xlane.xlu2 %1456  ;;  %v6589_v49 = vpop.eup %6588 }
 0x3bf   : > { %v1894_v18 = vpop.xlane.xlu1 %1893  ;;  %v1107_v29 = vmul.f32 %v6589_v49, %v8361_v52  ;;  %v8558_v42 = vpop.eup %6590  ;;  %v1170_v52 = vunpack.c.l.b16 %v1122_v59 }
 0x3c0   : > { %v1067_v9 = vpop.xlane.xlu0 %1066  ;;  %v8562_v19 = vpop.eup %6592  ;;  %v1921_v49 = vsub.f32 %v8369_v21, %v1894_v18 }
 0x3c1   : > { %6596 = vrcp.f32 %v1067_v9  ;;  %v1123_v56 = vpack.c.bf16 %v1107_v29, %v1107_v29  ;;  %v5804_v34 = vpack.c.bf16 %v1107_v29, %v1106_v28  ;;  %v6595_v30 = vpop.eup %6594  ;;  %v1920_v28 = vsub.f32 %v8349_v60, %v8526_v55 }
 0x3c2   : > { %6598 = vpow2.f32 %v1502_v0  ;;  %v1108_v59 = vmul.f32 %v6595_v30, %v8356_v16  ;;  %v1941_v18 = vmul.f32 1.442695, %v1921_v49  ;;  %v8579_v60 = vmul.f32 0.25, %v2284_v14 }
 0x3c3   : > { %5624 = vmatmul.msk.bf16.gmra.mxu1 %vm862_vm0, %v8194_v24  ;;  %6116 = vst [vmem:[%s8514_s21 + $0x8] sm:$0xff] %v5804_v34   ;;  %v1171_v51 = vunpack.c.l.b16 %v1123_v56  ;;  %6600 = vpow2.f32 %v1500_v12  ;;  %v1939_v0 = vmul.f32 1.442695, %v1920_v28  ;;  %v2722_v34 = vpop.f32.mrf.mxu3 }
 0x3c4   : > { %2775 = vmax.xlane.f32.xlu2 %v8556_v3  ;;  %1530 = vadd.xlane.f32.xlu1 %v8558_v42  ;;  %10593 = vst [vmem:[#allocation54_spill] sm:$0xff] %v8579_v60  ;;  %6602 = vpow2.f32 %v1941_v18  ;;  %v1124_v49 = vpack.c.bf16 %v1108_v59, %v1108_v59 }
 0x3c5   : > { %1969 = vadd.xlane.f32.xlu0 %v8562_v19  ;;  %v1185_v32 = vpack.c.b16 %v1171_v51, %v1170_v52  ;;  %v2287_v52 = vpop.f32.mrf.mxu1  ;;  %6604 = vpow2.f32 %v1939_v0 }
 0x3c6   : > { %v1896_v24 = vpop.xlane.xlu2 %1895  ;;  %v1172_v18 = vunpack.c.l.b16 %v1124_v49 }
 0x3c7   : > { %v6597_v61 = vpop.eup %6596  ;;  %v8571_v9 = vpop.xlane.xlu1 %1458  ;;  %1261 = vmatmul.bf16.gmra.mxu0 %v1185_v32  ;;  %v8589_v32 = vmul.f32 0.25, %v2722_v34 }
 0x3c8   : > { %v8573_v29 = vpop.xlane.xlu0 %1897  ;;  %v1109_v21 = vmul.f32 %v6597_v61, %v8372_v4  ;;  %v8577_v12 = vpop.eup %6598 }
 0x3c9   : > { %10592 = vst [vmem:[#allocation51_spill] sm:$0xff] %v8577_v12  ;;  %v8581_v55 = vpop.eup %6600 }
 0x3ca   : > { %v5809_v56 = vpack.c.bf16 %v1109_v21, %v1108_v59  ;;  %v1125_v4 = vpack.c.bf16 %v1109_v21, %v1109_v21  ;;  %v8587_v28 = vpop.eup %6602  ;;  %10595 = vst [vmem:[#allocation57_spill] sm:$0xff] %v8589_v32  ;;  %v1922_v59 = vsub.f32 %v8378_v36, %v1896_v24  ;;  %v8609_v36 = vmul.f32 0.25, %v2287_v52 }
 0x3cb   : > { %10594 = vst [vmem:[#allocation58_spill] sm:$0xff] %v8587_v28  ;;  %v8593_v61 = vpop.eup %6604  ;;  %v2725_v21 = vpop.f32.mrf.mxu3 }
 0x3cc   : > { %1534 = vadd.xlane.f32.xlu2 %v8577_v12  ;;  %6117 = vst [vmem:[%s8514_s21 + $0x10] sm:$0xff] %v5809_v56   ;;  %2338 = vmax.xlane.f32.xlu1 %v8579_v60  ;;  %v1173_v14 = vunpack.c.l.b16 %v1125_v4  ;;  %v1481_v56 = vsub.f32 %v8367_v50, %v8553_v54  ;;  %v1943_v54 = vmul.f32 1.442695, %v1922_v59 }
 0x3cd   : > { %1532 = vadd.xlane.f32.xlu0 %v8581_v55  ;;  %10596 = vst [vmem:[#allocation67_spill] sm:$0xff] %v8593_v61 }
 0x3ce   : > { %v1071_v16 = vpop.xlane.xlu2 %1070  ;;  %v1504_v50 = vmul.f32 1.442695, %v1481_v56 }
 0x3cf   : > { %6606 = vrcp.f32 %v1071_v16  ;;  %v1069_v51 = vpop.xlane.xlu1 %1068 }
 0x3d0   : > { %v1461_v30 = vpop.xlane.xlu0 %1460  ;;  %6608 = vrcp.f32 %v1069_v51  ;;  %v2289_v51 = vpop.f32.mrf.mxu1 }
 0x3d1   : > { %6610 = vpow2.f32 %v1504_v50 }
 0x3d2   : > { %6612 = vpow2.f32 %v1943_v54 }
 0x3d3   : > { %5625 = vmatmul.msk.bf16.gmra.mxu1 %vm862_vm0, %v8236_v46  ;;  %v1186_v46 = vpack.c.b16 %v1173_v14, %v1172_v18  ;;  %v2727_v52 = vpop.f32.mrf.mxu3 }
 0x3d4   : > { %1973 = vadd.xlane.f32.xlu2 %v8587_v28  ;;  %1971 = vadd.xlane.f32.xlu1 %v8593_v61  ;;  %v8607_v61 = vmul.f32 0.25, %v2725_v21  ;;  %v8624_v56 = vmul.f32 0.25, %v2727_v52 }
 0x3d5   : > { %v6607_v0 = vpop.eup %6606  ;;  %2777 = vmax.xlane.f32.xlu0 %v8589_v32  ;;  %v8605_v32 = vmul.f32 0.25, %v2289_v51 }
 0x3d6   : > { %v8601_v34 = vpop.xlane.xlu2 %1462  ;;  %v1111_v16 = vmul.f32 %v6607_v0, %v8394_v41  ;;  %v6609_v4 = vpop.eup %6608  ;;  %v1483_v41 = vsub.f32 %v8392_v31, %v1461_v30 }
 0x3d7   : > { %v1900_v49 = vpop.xlane.xlu1 %1899  ;;  %1266 = vmatmul.bf16.gmra.mxu0 %v1186_v46  ;;  %v1110_v12 = vmul.f32 %v6609_v4, %v8397_v15  ;;  %v1482_v15 = vsub.f32 %v8380_v43, %v8571_v9  ;;  %v8626_v46 = vpop.eup %6610 }
 0x3d8   : > { %v1073_v28 = vpop.xlane.xlu0 %1072  ;;  %v1127_v18 = vpack.c.bf16 %v1111_v16, %v1111_v16  ;;  %v2292_v4 = vpop.f32.mrf.mxu1  ;;  %v1924_v9 = vsub.f32 %v8403_v40, %v1900_v49 }
 0x3d9   : > { %v5814_v60 = vpack.c.bf16 %v1111_v16, %v1110_v12  ;;  %v1126_v14 = vpack.c.bf16 %v1110_v12, %v1110_v12  ;;  %v1506_v31 = vmul.f32 1.442695, %v1482_v15  ;;  %6614 = vrcp.f32 %v1073_v28  ;;  %v8630_v43 = vpop.eup %6612 }
 0x3da   : > { %v1175_v59 = vunpack.c.l.b16 %v1127_v18  ;;  %v1923_v12 = vsub.f32 %v8382_v8, %v8573_v29  ;;  %v1947_v54 = vmul.f32 1.442695, %v1924_v9  ;;  %v8642_v49 = vmul.f32 0.25, %v2292_v4 }
 0x3db   : > { %6118 = vst [vmem:[%s8514_s21 + $0x18] sm:$0xff] %v5814_v60   ;;  %v1508_v60 = vmul.f32 1.442695, %v1483_v41  ;;  %v1174_v30 = vunpack.c.l.b16 %v1126_v14  ;;  %v2730_v40 = vpop.f32.mrf.mxu3 }
 0x3dc   : > { %2342 = vmax.xlane.f32.xlu2 %v8605_v32  ;;  %2779 = vmax.xlane.f32.xlu1 %v8607_v61  ;;  %v1945_v41 = vmul.f32 1.442695, %v1923_v12  ;;  %v8657_v12 = vmul.f32 0.25, %v2730_v40 }
 0x3dd   : > { %2340 = vmax.xlane.f32.xlu0 %v8609_v36  ;;  %6616 = vpow2.f32 %v1508_v60  ;;  %v1187_v28 = vpack.c.b16 %v1175_v59, %v1174_v30 }
 0x3de   : > { %v8618_v24 = vpop.xlane.xlu2 %1901  ;;  %6618 = vpow2.f32 %v1506_v31 }
 0x3df   : > { %v8620_v0 = vpop.xlane.xlu1 %1464  ;;  %v6615_v50 = vpop.eup %6614 }
 0x3e0   : > { %v8622_v21 = vpop.xlane.xlu0 %1903  ;;  %v1112_v8 = vmul.f32 %v6615_v50, %v8408_v35  ;;  %v2294_v29 = vpop.f32.mrf.mxu1 }
 0x3e2   : > { %v1128_v59 = vpack.c.bf16 %v1112_v8, %v1112_v8 }
 0x3e3   : > { %5626 = vmatmul.msk.bf16.gmra.mxu1 %vm862_vm0, %v8243_v13  ;;  %v8640_v15 = vpop.eup %6616 }
 0x3e4   : > { %2781 = vmax.xlane.f32.xlu2 %v8624_v56  ;;  %1536 = vadd.xlane.f32.xlu1 %v8626_v46  ;;  %v8644_v14 = vpop.eup %6618 }
 0x3e5   : > { %1975 = vadd.xlane.f32.xlu0 %v8630_v43 }
 0x3e6   : > { %v1077_v16 = vpop.xlane.xlu2 %1076 }
 0x3e7   : > { %v1075_v51 = vpop.xlane.xlu1 %1074  ;;  %1271 = vmatmul.bf16.gmra.mxu0 %v1187_v28 }
 0x3e8   : > { %v8638_v13 = vpop.xlane.xlu0 %1466  ;;  %6620 = vrcp.f32 %v1075_v51 }
 0x3e9   : > { %6622 = vpow2.f32 %v1947_v54  ;;  %v1484_v54 = vsub.f32 %v8401_v20, %v8601_v34 }
 0x3ea   : > { %6624 = vpow2.f32 %v1945_v41  ;;  %v1925_v41 = vsub.f32 %v8416_v17, %v8618_v24 }
 0x3eb   : > { %6626 = vrcp.f32 %v1077_v16  ;;  %v1176_v16 = vunpack.c.l.b16 %v1128_v59  ;;  %v1510_v59 = vmul.f32 1.442695, %v1484_v54 }
 0x3ec   : > { %1540 = vadd.xlane.f32.xlu2 %v8640_v15  ;;  %2344 = vmax.xlane.f32.xlu1 %v8642_v49 }
 0x3ed   : > { %1538 = vadd.xlane.f32.xlu0 %v8644_v14 }
 0x3ee   : > { %v8650_v18 = vpop.xlane.xlu2 %1468  ;;  %v6621_v52 = vpop.eup %6620 }
 0x3ef   : > { %v8652_v60 = vpop.xlane.xlu1 %1905  ;;  %v1113_v30 = vmul.f32 %v6621_v52, %v8433_v2  ;;  %v8655_v9 = vpop.eup %6622 }
 0x3f0   : > { %v1079_v31 = vpop.xlane.xlu0 %1078  ;;  %v8661_v28 = vpop.eup %6624 }
 0x3f1   : > { %6628 = vrcp.f32 %v1079_v31  ;;  %v1129_v35 = vpack.c.bf16 %v1113_v30, %v1113_v30  ;;  %v5819_v4 = vpack.c.bf16 %v1113_v30, %v1112_v8  ;;  %10597 = vst [vmem:[#allocation63_spill] sm:$0xff] %v8661_v28  ;;  %v6627_v50 = vpop.eup %6626  ;;  %v2732_v2 = vpop.f32.mrf.mxu3 }
 0x3f2   : > { %v2297_v52 = vpop.f32.mrf.mxu1  ;;  %v1114_v20 = vmul.f32 %v6627_v50, %v8428_v58  ;;  %v8681_v24 = vmul.f32 0.25, %v2732_v2  ;;  %6630 = vpow2.f32 %v1510_v59  ;;  %v1485_v58 = vsub.f32 %v8418_v7, %v8620_v0 }
 0x3f3   : > { %5627 = vmatmul.msk.bf16.gmra.mxu1 %vm862_vm0, %v8300_v44  ;;  %6119 = vst [vmem:[%s8514_s21 + $0x20] sm:$0xff] %v5819_v4   ;;  %v1177_v51 = vunpack.c.l.b16 %v1129_v35  ;;  %v1949_v35 = vmul.f32 1.442695, %v1925_v41  ;;  %v8679_v4 = vmul.f32 0.25, %v2297_v52 }
 0x3f4   : > { %1979 = vadd.xlane.f32.xlu2 %v8655_v9  ;;  %1977 = vadd.xlane.f32.xlu1 %v8661_v28  ;;  %v8683_v28 = vmul.f32 0.25, %v2294_v29  ;;  %v1130_v54 = vpack.c.bf16 %v1114_v20, %v1114_v20 }
 0x3f5   : > { %2783 = vmax.xlane.f32.xlu0 %v8657_v12  ;;  %v1188_v40 = vpack.c.b16 %v1177_v51, %v1176_v16  ;;  %v1486_v16 = vsub.f32 %v8426_v1, %v8638_v13  ;;  %6632 = vpow2.f32 %v1949_v35  ;;  %v1512_v1 = vmul.f32 1.442695, %v1485_v58 }
 0x3f6   : > { %v8671_v44 = vpop.xlane.xlu2 %1907  ;;  %v1178_v7 = vunpack.c.l.b16 %v1130_v54 }
 0x3f7   : > { %v6629_v8 = vpop.eup %6628  ;;  %v8673_v31 = vpop.xlane.xlu1 %1470  ;;  %1276 = vmatmul.bf16.gmra.mxu0 %v1188_v40  ;;  %v1514_v41 = vmul.f32 1.442695, %v1486_v16 }
 0x3f8   : > { %v8675_v30 = vpop.xlane.xlu0 %1909  ;;  %v1115_v34 = vmul.f32 %v6629_v8, %v8444_v6  ;;  %v8697_v8 = vpop.eup %6630 }
 0x3f9   : > { %v2735_v50 = vpop.f32.mrf.mxu3 }
 0x3fa   : > { %v5824_v17 = vpack.c.bf16 %v1115_v34, %v1114_v20  ;;  %v1131_v51 = vpack.c.bf16 %v1115_v34, %v1115_v34  ;;  %v8695_v40 = vmul.f32 0.25, %v2735_v50  ;;  %v2299_v52 = vpop.f32.mrf.mxu1  ;;  %v1927_v34 = vsub.f32 %v8441_v39, %v8652_v60 }
 0x3fb   : > { %v8699_v59 = vpop.eup %6632  ;;  %v1926_v20 = vsub.f32 %v8420_v38, %v8622_v21  ;;  %v8716_v38 = vmul.f32 0.25, %v2299_v52 }
 0x3fc   : > { %2348 = vmax.xlane.f32.xlu2 %v8679_v4  ;;  %6120 = vst [vmem:[%s8514_s21 + $0x28] sm:$0xff] %v5824_v17   ;;  %2785 = vmax.xlane.f32.xlu1 %v8681_v24  ;;  %v1179_v13 = vunpack.c.l.b16 %v1131_v51  ;;  %v1953_v60 = vmul.f32 1.442695, %v1927_v34 }
 0x3fd   : > { %2346 = vmax.xlane.f32.xlu0 %v8683_v28  ;;  %10598 = vst [vmem:[#allocation64_spill] sm:$0xff] %v8695_v40  ;;  %v1951_v50 = vmul.f32 1.442695, %v1926_v20 }
 0x3fe   : > { %v1083_v6 = vpop.xlane.xlu2 %1082  ;;  %v1189_v17 = vpack.c.b16 %v1179_v13, %v1178_v7  ;;  %10599 = vst [vmem:[#allocation31_spill] sm:$0xff] %v8716_v38 }
 0x3ff   : > { %6634 = vrcp.f32 %v1083_v6  ;;  %v1081_v29 = vpop.xlane.xlu1 %1080 }
 0x400   : > { %v8693_v2 = vpop.xlane.xlu0 %1472  ;;  %6636 = vrcp.f32 %v1081_v29 }
 0x401   : > { %6638 = vpow2.f32 %v1514_v41  ;;  %v2737_v41 = vpop.f32.mrf.mxu3 }
 0x402   : > { %6640 = vpow2.f32 %v1512_v1 }
 0x404   : > { %2787 = vmax.xlane.f32.xlu2 %v8695_v40  ;;  %1542 = vadd.xlane.f32.xlu1 %v8697_v8 }
 0x405   : > { %v6635_v0 = vpop.eup %6634  ;;  %1981 = vadd.xlane.f32.xlu0 %v8699_v59 }
 0x406   : > { %v1523_v35 = vpop.xlane.xlu2 %1522  ;;  %v1117_v16 = vmul.f32 %v6635_v0, %v8466_v63  ;;  %v6637_v58 = vpop.eup %6636 }
 0x407   : > { %v8709_v6 = vpop.xlane.xlu1 %1911  ;;  %1281 = vmatmul.bf16.gmra.mxu0 %v1189_v17  ;;  %v1116_v39 = vmul.f32 %v6637_v58, %v8469_v33  ;;  %v8714_v54 = vpop.eup %6638  ;;  %6642 = vrcp.f32 %v1523_v35  ;;  %v8728_v17 = vmul.f32 0.25, %v2737_v41 }
 0x408   : > { %v8711_v51 = vpop.xlane.xlu0 %2328  ;;  %v8718_v21 = vpop.eup %6640  ;;  %6644 = vpow2.f32 %v1953_v60  ;;  %v1133_v13 = vpack.c.bf16 %v1117_v16, %v1117_v16 }
 0x409   : > { %v5829_v29 = vpack.c.bf16 %v1117_v16, %v1116_v39  ;;  %v2302_v63 = vpop.f32.mrf.mxu1  ;;  %6646 = vpow2.f32 %v1951_v50  ;;  %v1132_v1 = vpack.c.bf16 %v1116_v39, %v1116_v39  ;;  %10600 = vst [vmem:[#allocation32_spill] sm:$0xff] %v8728_v17  ;;  %v2740_v50 = vpop.f32.mrf.mxu3  ;;  %v1487_v16 = vsub.f32 %v8439_v53, %v8650_v18 }
 0x40a   : > { %v1181_v20 = vunpack.c.l.b16 %v1133_v13  ;;  %v1928_v39 = vsub.f32 %v8450_v27, %v8671_v44 }
 0x40b   : > { %6121 = vst [vmem:[%s8514_s21 + $0x30] sm:$0xff] %v5829_v29   ;;  %v1180_v34 = vunpack.c.l.b16 %v1132_v1 }
 0x40c   : > { %1546 = vadd.xlane.f32.xlu2 %v8714_v54  ;;  %2350 = vmax.xlane.f32.xlu1 %v8716_v38  ;;  %v8747_v38 = vmul.f32 0.25, %v2740_v50 }
 0x40d   : > { %1544 = vadd.xlane.f32.xlu0 %v8718_v21  ;;  %v6643_v0 = vpop.eup %6642  ;;  %v1190_v41 = vpack.c.b16 %v1181_v20, %v1180_v34  ;;  %v8749_v34 = vmul.f32 0.25, %v2302_v63 }
 0x40e   : > { %v8724_v33 = vpop.xlane.xlu2 %1913  ;;  %v8726_v35 = vpop.eup %6644  ;;  %v1570_v60 = vmul.f32 %v6643_v0, %v8475_v37  ;;  %v1516_v0 = vmul.f32 1.442695, %v1487_v16  ;;  %v1489_v16 = vsub.f32 %v8464_v26, %v8693_v2 }
 0x40f   : > { %v1525_v7 = vpop.xlane.xlu1 %1524  ;;  %v8730_v58 = vpop.eup %6646 }
 0x410   : > { %v1085_v52 = vpop.xlane.xlu0 %1084  ;;  %6648 = vrcp.f32 %v1525_v7  ;;  %v1586_v53 = vpack.c.bf16 %v1570_v60, %v1570_v60 }
 0x411   : > { %6650 = vrcp.f32 %v1085_v52  ;;  %v2304_v13 = vpop.f32.mrf.mxu1 }
 0x412   : > { %v8745_v40 = vmul.f32 0.25, %v2304_v13 }
 0x414   : > { %1985 = vadd.xlane.f32.xlu2 %v8726_v35  ;;  %1983 = vadd.xlane.f32.xlu1 %v8730_v58 }
 0x415   : > { %2789 = vmax.xlane.f32.xlu0 %v8728_v17  ;;  %v1955_v17 = vmul.f32 1.442695, %v1928_v39 }
 0x416   : > { %v8740_v29 = vpop.xlane.xlu2 %2330  ;;  %v6649_v1 = vpop.eup %6648 }
 0x417   : > { %v1571_v37 = vmul.f32 %v6649_v1, %v8489_v48  ;;  %v1087_v7 = vpop.xlane.xlu1 %1086  ;;  %1286 = vmatmul.bf16.gmra.mxu0 %v1190_v41  ;;  %v6651_v18 = vpop.eup %6650  ;;  %v1635_v48 = vunpack.c.l.b16 %v1586_v53 }
 0x418   : > { %v8743_v52 = vpop.xlane.xlu0 %1915  ;;  %6652 = vrcp.f32 %v1087_v7  ;;  %v1118_v41 = vmul.f32 %v6651_v18, %v8492_v62  ;;  %v2742_v1 = vpop.f32.mrf.mxu3  ;;  %v1520_v7 = vmul.f32 1.442695, %v1489_v16 }
 0x419   : > { %v5839_v27 = vpack.c.bf16 %v1571_v37, %v1570_v60  ;;  %v1587_v44 = vpack.c.bf16 %v1571_v37, %v1571_v37  ;;  %6654 = vpow2.f32 %v1516_v0  ;;  %v10601_v60 = vld [vmem:[#allocation44_spill] sm:$0xff]  ;;  %v8763_v53 = vmul.f32 0.25, %v2742_v1 }
 0x41a   : > { %v1488_v50 = vsub.f32 %v10601_v60, %v8673_v31  ;;  %6656 = vpow2.f32 %v1955_v17  ;;  %v1134_v2 = vpack.c.bf16 %v1118_v41, %v1118_v41 }
 0x41b   : > { %6123 = vst [vmem:[%s8514_s21 + $0x40] sm:$0xff] %v5839_v27   ;;  %v1636_v20 = vunpack.c.l.b16 %v1587_v44 }
 0x41c   : > { %2354 = vmax.xlane.f32.xlu2 %v8745_v40  ;;  %2791 = vmax.xlane.f32.xlu1 %v8747_v38  ;;  %v1518_v18 = vmul.f32 1.442695, %v1488_v50  ;;  %v1182_v44 = vunpack.c.l.b16 %v1134_v2 }
 0x41d   : > { %2352 = vmax.xlane.f32.xlu0 %v8749_v34  ;;  %v1651_v63 = vpack.c.b16 %v1636_v20, %v1635_v48 }
 0x41e   : > { %v6653_v39 = vpop.eup %6652 }
 0x41f   : > { %v1529_v13 = vpop.xlane.xlu2 %1528  ;;  %1699 = vmatmul.bf16.vlgmr.msra.gmra.mxu2 %v1651_v63  ;;  %v8760_v37 = vpop.xlane.xlu1 %2332  ;;  %v1119_v26 = vmul.f32 %v6653_v39, %v8506_v45  ;;  %v10602_v45 = vld [vmem:[#allocation34_spill] sm:$0xff] }
 0x420   : > { %6658 = vrcp.f32 %v1529_v13  ;;  %v1527_v62 = vpop.xlane.xlu0 %1526  ;;  %v8765_v0 = vpop.eup %6654  ;;  %v1930_v20 = vsub.f32 %v10602_v45, %v8709_v6 }
 0x421   : > { %6660 = vrcp.f32 %v1527_v62  ;;  %v1135_v31 = vpack.c.bf16 %v1119_v26, %v1119_v26  ;;  %v5834_v17 = vpack.c.bf16 %v1119_v26, %v1118_v41  ;;  %v8767_v27 = vpop.eup %6656  ;;  %v10603_v41 = vld [vmem:[#allocation45_spill] sm:$0xff]  ;;  %v2307_v39 = vpop.f32.mrf.mxu1 }
 0x422   : > { %6662 = vpow2.f32 %v1520_v7  ;;  %v1929_v60 = vsub.f32 %v10603_v41, %v8675_v30  ;;  %v2745_v2 = vpop.f32.mrf.mxu3  ;;  %v1959_v7 = vmul.f32 1.442695, %v1930_v20 }
 0x423   : > { %6122 = vst [vmem:[%s8514_s21 + $0x38] sm:$0xff] %v5834_v17   ;;  %v1183_v48 = vunpack.c.l.b16 %v1135_v31  ;;  %6664 = vpow2.f32 %v1518_v18 }
 0x424   : > { %2793 = vmax.xlane.f32.xlu2 %v8763_v53  ;;  %1548 = vadd.xlane.f32.xlu1 %v8765_v0  ;;  %v1957_v31 = vmul.f32 1.442695, %v1929_v60 }
 0x425   : > { %1987 = vadd.xlane.f32.xlu0 %v8767_v27  ;;  %v1191_v50 = vpack.c.b16 %v1183_v48, %v1182_v44  ;;  %v8783_v48 = vmul.f32 0.25, %v2307_v39 }
 0x426   : > { %v6659_v16 = vpop.eup %6658 }
 0x427   : > { %v6661_v63 = vpop.eup %6660  ;;  %v1968_v1 = vpop.xlane.xlu2 %1967  ;;  %v1573_v13 = vmul.f32 %v6659_v16, %v8517_v47  ;;  %1291 = vmatmul.bf16.gmra.mxu0 %v1191_v50 }
 0x428   : > { %v1966_v62 = vpop.xlane.xlu1 %1965  ;;  %6666 = vrcp.f32 %v1968_v1  ;;  %v8778_v6 = vpop.xlane.xlu0 %2771  ;;  %v1572_v26 = vmul.f32 %v6661_v63, %v8521_v57  ;;  %v10604_v57 = vld [vmem:[#allocation30_spill] sm:$0xff] }
 0x429   : > { %6668 = vrcp.f32 %v1966_v62  ;;  %v1589_v18 = vpack.c.bf16 %v1573_v13, %v1573_v13  ;;  %v8781_v44 = vpop.eup %6662  ;;  %v2360_v20 = vsub.f32 %v10604_v57, %v8711_v51 }
 0x42a   : > { %v1588_v30 = vpack.c.bf16 %v1572_v26, %v1572_v26  ;;  %v5844_v17 = vpack.c.bf16 %v1573_v13, %v1572_v26  ;;  %v8785_v45 = vpop.eup %6664  ;;  %6670 = vpow2.f32 %v1959_v7 }
 0x42b   : > { %v1638_v47 = vunpack.c.l.b16 %v1589_v18  ;;  %6672 = vpow2.f32 %v1957_v31  ;;  %v2376_v51 = vmul.f32 1.442695, %v2360_v20  ;;  %v8801_v31 = vmul.f32 0.25, %v2745_v2  ;;  %v10607_v20 = vld [vmem:[#allocation49_spill] sm:$0xff] }
 0x42c   : > { %1552 = vadd.xlane.f32.xlu2 %v8781_v44  ;;  %6124 = vst [vmem:[%s8514_s21 + $0x48] sm:$0xff] %v5844_v17   ;;  %v1637_v16 = vunpack.c.l.b16 %v1588_v30  ;;  %2356 = vmax.xlane.f32.xlu1 %v8783_v48  ;;  %v2747_v17 = vpop.f32.mrf.mxu3  ;;  %v2361_v2 = vsub.f32 %v10607_v20, %v8740_v29 }
 0x42d   : > { %1550 = vadd.xlane.f32.xlu0 %v8785_v45  ;;  %10605 = vst [vmem:[#allocation40_spill] sm:$0xff] %v8801_v31  ;;  %6674 = vpow2.f32 %v2376_v51 }
 0x42e   : > { %v6667_v41 = vpop.eup %6666  ;;  %v1652_v60 = vpack.c.b16 %v1638_v47, %v1637_v16 }
 0x42f   : > { %v6669_v50 = vpop.eup %6668  ;;  %v2014_v63 = vmul.f32 %v6667_v41, %v8528_v23  ;;  %v8794_v39 = vpop.xlane.xlu2 %2336 }
 0x430   : > { %v2013_v1 = vmul.f32 %v6669_v50, %v8534_v25  ;;  %v8797_v13 = vpop.xlane.xlu1 %2773  ;;  %1704 = vmatmul.bf16.gmra.mxu2 %v1652_v60  ;;  %v2335_v62 = vpop.xlane.xlu0 %2334  ;;  %v10606_v25 = vld [vmem:[#allocation60_spill] sm:$0xff] }
 0x431   : > { %v2030_v26 = vpack.c.bf16 %v2014_v63, %v2014_v63  ;;  %v8799_v30 = vpop.eup %6670  ;;  %v1931_v57 = vsub.f32 %v10606_v25, %v8724_v33  ;;  %v2309_v60 = vpop.f32.mrf.mxu1  ;;  %v2363_v29 = vsub.f32 %v8545_v5, %v2335_v62 }
 0x432   : > { %v5879_v7 = vpack.c.bf16 %v2014_v63, %v2013_v1  ;;  %v2029_v18 = vpack.c.bf16 %v2013_v1, %v2013_v1  ;;  %v8803_v16 = vpop.eup %6672  ;;  %v8819_v33 = vmul.f32 0.25, %v2309_v60 }
 0x433   : > { %v2079_v47 = vunpack.c.l.b16 %v2030_v26  ;;  %v1961_v26 = vmul.f32 1.442695, %v1931_v57  ;;  %v8815_v51 = vpop.eup %6674 }
 0x434   : > { %6131 = vst [vmem:[%s8514_s21 + $0x80] sm:$0xff] %v5879_v7   ;;  %1991 = vadd.xlane.f32.xlu2 %v8799_v30  ;;  %v2078_v23 = vunpack.c.l.b16 %v2029_v18  ;;  %1989 = vadd.xlane.f32.xlu1 %v8803_v16  ;;  %v2378_v7 = vmul.f32 1.442695, %v2361_v2  ;;  %v8817_v18 = vmul.f32 0.25, %v2747_v17  ;;  %v2750_v25 = vpop.f32.mrf.mxu3 }
 0x435   : > { %2795 = vmax.xlane.f32.xlu0 %v8801_v31  ;;  %v8831_v60 = vmul.f32 0.25, %v2750_v25 }
 0x436   : > { %v2094_v41 = vpack.c.b16 %v2079_v47, %v2078_v23  ;;  %v10608_v47 = vld [vmem:[#allocation50_spill] sm:$0xff] }
 0x437   : > { %v8813_v50 = vpop.xlane.xlu2 %2775  ;;  %v1932_v23 = vsub.f32 %v10608_v47, %v8743_v52  ;;  %10609 = vst [vmem:[#allocation42_spill] sm:$0xff] %v8831_v60  ;;  %v2804_v47 = vsub.f32 %v8543_v22, %v8797_v13 }
 0x438   : > { %v1531_v63 = vpop.xlane.xlu1 %1530  ;;  %2142 = vmatmul.bf16.vlgmr.msra.gmra.mxu0 %v2094_v41  ;;  %v1970_v1 = vpop.xlane.xlu0 %1969  ;;  %v2382_v41 = vmul.f32 1.442695, %v2363_v29 }
 0x439   : > { %6676 = vrcp.f32 %v1531_v63  ;;  %v1963_v63 = vmul.f32 1.442695, %v1932_v23 }
 0x43a   : > { %6678 = vpow2.f32 %v1961_v26  ;;  %v10610_v26 = vld [vmem:[#allocation62_spill] sm:$0xff] }
 0x43b   : > { %6680 = vpow2.f32 %v2378_v7  ;;  %v2362_v7 = vsub.f32 %v10610_v26, %v8760_v37 }
 0x43c   : > { %2408 = vadd.xlane.f32.xlu2 %v8815_v51  ;;  %2797 = vmax.xlane.f32.xlu1 %v8817_v18  ;;  %v2752_v29 = vpop.f32.mrf.mxu3 }
 0x43d   : > { %2358 = vmax.xlane.f32.xlu0 %v8819_v33  ;;  %v2380_v37 = vmul.f32 1.442695, %v2362_v7 }
 0x43f   : > { %v8827_v57 = vpop.xlane.xlu2 %1534  ;;  %v6677_v2 = vpop.eup %6676 }
 0x440   : > { %v8829_v17 = vpop.xlane.xlu1 %2338  ;;  %v1533_v20 = vpop.xlane.xlu0 %1532  ;;  %v1574_v52 = vmul.f32 %v6677_v2, %v8558_v42  ;;  %v2821_v2 = vmul.f32 1.442695, %v2804_v47 }
 0x441   : > { %6682 = vrcp.f32 %v1533_v20  ;;  %v8833_v5 = vpop.eup %6678 }
 0x442   : > { %6684 = vrcp.f32 %v1970_v1  ;;  %v8835_v62 = vpop.eup %6680  ;;  %v2803_v1 = vsub.f32 %v8530_v10, %v8778_v6  ;;  %v1590_v22 = vpack.c.bf16 %v1574_v52, %v1574_v52 }
 0x443   : > { %6686 = vpow2.f32 %v2382_v41 }
 0x444   : > { %2799 = vmax.xlane.f32.xlu2 %v8831_v60  ;;  %2410 = vadd.xlane.f32.xlu1 %v8835_v62  ;;  %6688 = vpow2.f32 %v1963_v63  ;;  %v2819_v41 = vmul.f32 1.442695, %v2803_v1  ;;  %v2364_v63 = vsub.f32 %v8541_v11, %v8794_v39  ;;  %v8854_v60 = vmul.f32 0.25, %v2752_v29 }
 0x445   : > { %1993 = vadd.xlane.f32.xlu0 %v8833_v5  ;;  %v2805_v11 = vsub.f32 %v8556_v3, %v8813_v50 }
 0x446   : > { %v2384_v39 = vmul.f32 1.442695, %v2364_v63 }
 0x447   : > { %v6683_v25 = vpop.eup %6682  ;;  %v1974_v23 = vpop.xlane.xlu2 %1973 }
 0x448   : > { %v1972_v20 = vpop.xlane.xlu1 %1971  ;;  %v8847_v26 = vpop.xlane.xlu0 %2777  ;;  %v1575_v42 = vmul.f32 %v6683_v25, %v8581_v55  ;;  %v1639_v55 = vunpack.c.l.b16 %v1590_v22  ;;  %v2823_v22 = vmul.f32 1.442695, %v2805_v11 }
 0x449   : > { %v6685_v13 = vpop.eup %6684  ;;  %6690 = vrcp.f32 %v1972_v20 }
 0x44a   : > { %v1591_v31 = vpack.c.bf16 %v1575_v42, %v1575_v42  ;;  %v5849_v10 = vpack.c.bf16 %v1575_v42, %v1574_v52  ;;  %v8852_v6 = vpop.eup %6686  ;;  %6692 = vpow2.f32 %v2380_v37  ;;  %v2015_v47 = vmul.f32 %v6685_v13, %v8562_v19 }
 0x44b   : > { %v8856_v7 = vpop.eup %6688  ;;  %6694 = vpow2.f32 %v2821_v2 }
 0x44c   : > { %2414 = vadd.xlane.f32.xlu2 %v8852_v6  ;;  %6125 = vst [vmem:[%s8514_s21 + $0x50] sm:$0xff] %v5849_v10   ;;  %v1640_v25 = vunpack.c.l.b16 %v1591_v31  ;;  %1995 = vadd.xlane.f32.xlu1 %v8856_v7  ;;  %6696 = vpow2.f32 %v2819_v41  ;;  %v10611_v31 = vld [vmem:[#allocation67_spill] sm:$0xff]  ;;  %v2031_v42 = vpack.c.bf16 %v2015_v47, %v2015_v47 }
 0x44d   : > { %2801 = vmax.xlane.f32.xlu0 %v8854_v60  ;;  %6698 = vpow2.f32 %v2384_v39 }
 0x44e   : > { %v1653_v52 = vpack.c.b16 %v1640_v25, %v1639_v55  ;;  %6700 = vrcp.f32 %v8827_v57  ;;  %v10612_v55 = vld [vmem:[#allocation54_spill] sm:$0xff] }
 0x44f   : > { %v6691_v1 = vpop.eup %6690  ;;  %v2343_v29 = vpop.xlane.xlu2 %2342  ;;  %v2365_v25 = vsub.f32 %v10612_v55, %v8829_v17  ;;  %6702 = vrcp.f32 %v1974_v23 }
 0x450   : > { %v8865_v37 = vpop.xlane.xlu1 %2779  ;;  %1709 = vmatmul.bf16.gmra.mxu2 %v1653_v52  ;;  %v2341_v20 = vpop.xlane.xlu0 %2340  ;;  %v2016_v19 = vmul.f32 %v6691_v1, %v10611_v31  ;;  %6704 = vpow2.f32 %v2823_v22 }
 0x451   : > { %v2366_v3 = vsub.f32 %v8609_v36, %v2341_v20  ;;  %v8869_v50 = vpop.eup %6692  ;;  %v2080_v36 = vunpack.c.l.b16 %v2031_v42  ;;  %v2386_v1 = vmul.f32 1.442695, %v2365_v25 }
 0x452   : > { %v2032_v13 = vpack.c.bf16 %v2016_v19, %v2016_v19  ;;  %v5884_v2 = vpack.c.bf16 %v2016_v19, %v2015_v47  ;;  %v8871_v41 = vpop.eup %6694  ;;  %v2367_v47 = vsub.f32 %v8605_v32, %v2343_v29  ;;  %v10613_v29 = vld [vmem:[#allocation51_spill] sm:$0xff] }
 0x453   : > { %v2388_v63 = vmul.f32 1.442695, %v2366_v3  ;;  %v8874_v10 = vpop.eup %6696 }
 0x454   : > { %2853 = vadd.xlane.f32.xlu2 %v8871_v41  ;;  %6132 = vst [vmem:[%s8514_s21 + $0x88] sm:$0xff] %v5884_v2   ;;  %v2081_v11 = vunpack.c.l.b16 %v2032_v13  ;;  %2851 = vadd.xlane.f32.xlu1 %v8874_v10  ;;  %v8883_v52 = vpop.eup %6698  ;;  %v2390_v42 = vmul.f32 1.442695, %v2367_v47 }
 0x455   : > { %2412 = vadd.xlane.f32.xlu0 %v8869_v50  ;;  %6706 = vpow2.f32 %v2388_v63  ;;  %v6701_v31 = vpop.eup %6700  ;;  %v10615_v63 = vld [vmem:[#allocation57_spill] sm:$0xff] }
 0x456   : > { %v2095_v57 = vpack.c.b16 %v2081_v11, %v2080_v36  ;;  %v6703_v19 = vpop.eup %6702  ;;  %v1576_v13 = vmul.f32 %v6701_v31, %v10613_v29  ;;  %v2806_v55 = vsub.f32 %v10615_v63, %v8847_v26 }
 0x457   : > { %v2782_v39 = vpop.xlane.xlu2 %2781  ;;  %v8886_v3 = vpop.eup %6704 }
 0x458   : > { %v1537_v17 = vpop.xlane.xlu1 %1536  ;;  %v2808_v23 = vsub.f32 %v8624_v56, %v2782_v39  ;;  %2147 = vmatmul.bf16.gmra.mxu0 %v2095_v57  ;;  %v1976_v20 = vpop.xlane.xlu0 %1975  ;;  %v10614_v56 = vld [vmem:[#allocation58_spill] sm:$0xff]  ;;  %v2825_v26 = vmul.f32 1.442695, %v2806_v55 }
 0x459   : > { %6708 = vrcp.f32 %v1537_v17  ;;  %v2017_v2 = vmul.f32 %v6703_v19, %v10614_v56 }
 0x45a   : > { %v2829_v22 = vmul.f32 1.442695, %v2808_v23  ;;  %6710 = vrcp.f32 %v1976_v20 }
 0x45b   : > { %v8888_v32 = vpop.eup %6706  ;;  %6712 = vpow2.f32 %v2386_v1  ;;  %v1592_v1 = vpack.c.bf16 %v1576_v13, %v1576_v13  ;;  %v2033_v23 = vpack.c.bf16 %v2017_v2, %v2017_v2 }
 0x45c   : > { %6714 = vpow2.f32 %v2829_v22  ;;  %2416 = vadd.xlane.f32.xlu1 %v8883_v52  ;;  %2420 = vadd.xlane.f32.xlu2 %v8888_v32 }
 0x45d   : > { %2855 = vadd.xlane.f32.xlu0 %v8886_v3  ;;  %6716 = vpow2.f32 %v2390_v42  ;;  %v1641_v63 = vunpack.c.l.b16 %v1592_v1 }
 0x45f   : > { %v6709_v25 = vpop.eup %6708  ;;  %v1541_v36 = vpop.xlane.xlu2 %1540 }
 0x460   : > { %v6711_v11 = vpop.eup %6710  ;;  %v2345_v47 = vpop.xlane.xlu1 %2344  ;;  %6718 = vrcp.f32 %v1541_v36  ;;  %v1577_v39 = vmul.f32 %v6709_v25, %v8626_v46 }
 0x461   : > { %v1539_v57 = vpop.xlane.xlu0 %1538  ;;  %v2018_v17 = vmul.f32 %v6711_v11, %v8630_v43  ;;  %v8899_v20 = vpop.eup %6712  ;;  %v2082_v43 = vunpack.c.l.b16 %v2033_v23 }
 0x462   : > { %6720 = vrcp.f32 %v1539_v57  ;;  %v1593_v31 = vpack.c.bf16 %v1577_v39, %v1577_v39  ;;  %v5854_v19 = vpack.c.bf16 %v1577_v39, %v1576_v13  ;;  %v8901_v42 = vpop.eup %6714  ;;  %v2807_v13 = vsub.f32 %v8607_v61, %v8865_v37 }
 0x463   : > { %v2034_v22 = vpack.c.bf16 %v2018_v17, %v2018_v17  ;;  %v5889_v29 = vpack.c.bf16 %v2018_v17, %v2017_v2  ;;  %v8903_v56 = vpop.eup %6716  ;;  %6722 = vpow2.f32 %v2825_v26 }
 0x464   : > { %6126 = vst [vmem:[%s8514_s21 + $0x58] sm:$0xff] %v5854_v19   ;;  %v1642_v46 = vunpack.c.l.b16 %v1593_v31  ;;  %2422 = vadd.xlane.f32.xlu1 %v8903_v56  ;;  %2861 = vadd.xlane.f32.xlu2 %v8901_v42  ;;  %v2827_v61 = vmul.f32 1.442695, %v2807_v13  ;;  %v10616_v13 = vld [vmem:[#allocation63_spill] sm:$0xff] }
 0x465   : > { %2418 = vadd.xlane.f32.xlu0 %v8899_v20  ;;  %6133 = vst [vmem:[%s8514_s21 + $0x90] sm:$0xff] %v5889_v29   ;;  %v2083_v25 = vunpack.c.l.b16 %v2034_v22  ;;  %v2368_v22 = vsub.f32 %v8642_v49, %v2345_v47 }
 0x466   : > { %v6719_v36 = vpop.eup %6718  ;;  %v1654_v2 = vpack.c.b16 %v1642_v46, %v1641_v63 }
 0x467   : > { %v1980_v11 = vpop.xlane.xlu2 %1979  ;;  %v2096_v57 = vpack.c.b16 %v2083_v25, %v2082_v43  ;;  %v1579_v39 = vmul.f32 %v6719_v36, %v8640_v15  ;;  %v2392_v47 = vmul.f32 1.442695, %v2368_v22 }
 0x468   : > { %v6721_v55 = vpop.eup %6720  ;;  %v1978_v1 = vpop.xlane.xlu1 %1977  ;;  %6724 = vrcp.f32 %v1980_v11  ;;  %1714 = vmatmul.bf16.gmra.mxu2 %v1654_v2 }
 0x469   : > { %v2784_v17 = vpop.xlane.xlu0 %2783  ;;  %v1578_v23 = vmul.f32 %v6721_v55, %v8644_v14  ;;  %6726 = vrcp.f32 %v1978_v1  ;;  %2152 = vmatmul.bf16.gmra.mxu0 %v2096_v57  ;;  %v8915_v19 = vpop.eup %6722  ;;  %v1595_v15 = vpack.c.bf16 %v1579_v39, %v1579_v39 }
 0x46a   : > { %v2809_v26 = vsub.f32 %v8657_v12, %v2784_v17 }
 0x46b   : > { %v5859_v37 = vpack.c.bf16 %v1579_v39, %v1578_v23  ;;  %v1594_v63 = vpack.c.bf16 %v1578_v23, %v1578_v23  ;;  %v1644_v2 = vunpack.c.l.b16 %v1595_v15 }
 0x46c   : > { %v2831_v31 = vmul.f32 1.442695, %v2809_v26 }
 0x46d   : > { %6127 = vst [vmem:[%s8514_s21 + $0x60] sm:$0xff] %v5859_v37   ;;  %2857 = vadd.xlane.f32.xlu0 %v8915_v19  ;;  %v1643_v57 = vunpack.c.l.b16 %v1594_v63  ;;  %v10617_v63 = vld [vmem:[#allocation22_spill] sm:$0xff] }
 0x46e   : > { %6728 = vpow2.f32 %v2831_v31  ;;  %v6725_v29 = vpop.eup %6724 }
 0x46f   : > { %6730 = vpow2.f32 %v2827_v61  ;;  %v6727_v14 = vpop.eup %6726  ;;  %v2349_v46 = vpop.xlane.xlu2 %2348  ;;  %v2020_v43 = vmul.f32 %v6725_v29, %v8655_v9  ;;  %v1655_v26 = vpack.c.b16 %v1644_v2, %v1643_v57 }
 0x470   : > { %v8921_v12 = vpop.xlane.xlu1 %2785  ;;  %v2370_v25 = vsub.f32 %v8679_v4, %v2349_v46  ;;  %v2019_v49 = vmul.f32 %v6727_v14, %v10616_v13 }
 0x471   : > { %v8924_v36 = vpop.xlane.xlu0 %2346  ;;  %v2036_v55 = vpack.c.bf16 %v2020_v43, %v2020_v43 }
 0x472   : > { %v2396_v11 = vmul.f32 1.442695, %v2370_v25  ;;  %v2035_v39 = vpack.c.bf16 %v2019_v49, %v2019_v49  ;;  %v5894_v1 = vpack.c.bf16 %v2020_v43, %v2019_v49 }
 0x473   : > { %v2085_v23 = vunpack.c.l.b16 %v2036_v55 }
 0x474   : > { %v8927_v17 = vpop.eup %6728  ;;  %6732 = vpow2.f32 %v2396_v11  ;;  %6134 = vst [vmem:[%s8514_s21 + $0x98] sm:$0xff] %v5894_v1   ;;  %v2084_v4 = vunpack.c.l.b16 %v2035_v39  ;;  %v8950_v1 = vpop.f32.mrf.mxu0 }
 0x475   : > { %v8929_v9 = vpop.eup %6730  ;;  %2863 = vadd.xlane.f32.xlu1 %v8927_v17  ;;  %6734 = vpow2.f32 %v2392_v47  ;;  %10618 = vst [vmem:[#allocation41_spill] sm:$0xff] %v8950_v1 }
 0x476   : > { %2859 = vadd.xlane.f32.xlu0 %v8929_v9  ;;  %v2097_v61 = vpack.c.b16 %v2085_v23, %v2084_v4 }
 0x477   : > { %v8934_v37 = vpop.xlane.xlu2 %2787 }
 0x478   : > { %v1543_v31 = vpop.xlane.xlu1 %1542  ;;  %1719 = vmatmul.bf16.gmra.mxu2 %v1655_v26 }
 0x479   : > { %v1982_v22 = vpop.xlane.xlu0 %1981  ;;  %2157 = vmatmul.bf16.gmra.mxu0 %v2097_v61  ;;  %6736 = vrcp.f32 %v1543_v31 }
 0x47a   : > { %v8936_v15 = vpop.eup %6732 }
 0x47b   : > { %v8938_v29 = vpop.eup %6734 }
 0x47c   : > { %3973 = vrot.lane.b32.xlu2 %v10617_v63, %s7319_s20 }
 0x47d   : > { %2428 = vadd.xlane.f32.xlu1 %v8936_v15 }
 0x47e   : > { %2424 = vadd.xlane.f32.xlu0 %v8938_v29 }
 0x47f   : > { %v1547_v14 = vpop.xlane.xlu2 %1546  ;;  %v6737_v25 = vpop.eup %6736 }
 0x480   : > { %v8944_v46 = vpop.xlane.xlu1 %2350  ;;  %v1580_v13 = vmul.f32 %v6737_v25, %v8697_v8 }
 0x481   : > { %v1545_v43 = vpop.xlane.xlu0 %1544 }
 0x482   : > { %6738 = vrcp.f32 %v1545_v43  ;;  %v1596_v57 = vpack.c.bf16 %v1580_v13, %v1580_v13 }
 0x483   : > { %6740 = vrcp.f32 %v1982_v22 }
 0x484   : > { %v1645_v26 = vunpack.c.l.b16 %v1596_v57  ;;  %v8963_v57 = vpop.f32.mrf.mxu0 }
 0x485   : > { %10620 = vst [vmem:[#allocation46_spill] sm:$0xff] %v8963_v57 }
 0x487   : > { %v1986_v47 = vpop.xlane.xlu2 %1985 }
 0x488   : > { %v6739_v49 = vpop.eup %6738  ;;  %v1984_v2 = vpop.xlane.xlu1 %1983 }
 0x489   : > { %v8947_v55 = vpop.xlane.xlu0 %2789  ;;  %v1581_v11 = vmul.f32 %v6739_v49, %v8718_v21  ;;  %v6741_v39 = vpop.eup %6740  ;;  %6742 = vrcp.f32 %v1984_v2 }
 0x48a   : > { %v2021_v8 = vmul.f32 %v6741_v39, %v8699_v59  ;;  %6744 = vrcp.f32 %v1547_v14 }
 0x48b   : > { %v1597_v23 = vpack.c.bf16 %v1581_v11, %v1581_v11  ;;  %v5864_v4 = vpack.c.bf16 %v1581_v11, %v1580_v13  ;;  %v10619_v13 = vld [vmem:[#allocation29_spill] sm:$0xff]  ;;  %6746 = vrcp.f32 %v1986_v47 }
 0x48c   : > { %v2037_v49 = vpack.c.bf16 %v2021_v8, %v2021_v8  ;;  %v8974_v47 = vpop.f32.mrf.mxu0 }
 0x48d   : > { %6128 = vst [vmem:[%s8514_s21 + $0x68] sm:$0xff] %v5864_v4   ;;  %v1646_v61 = vunpack.c.l.b16 %v1597_v23  ;;  %v10621_v23 = vld [vmem:[#allocation20_spill] sm:$0xff] }
 0x48e   : > { %v2086_v59 = vunpack.c.l.b16 %v2037_v49  ;;  %10622 = vst [vmem:[#allocation48_spill] sm:$0xff] %v8974_v47  ;;  %v10623_v49 = vld [vmem:[#allocation19_spill] sm:$0xff] }
 0x48f   : > { %v1656_v31 = vpack.c.b16 %v1646_v61, %v1645_v26  ;;  %v6743_v22 = vpop.eup %6742  ;;  %v8954_v63 = vpop.xlane.xlu2 %2354 }
 0x490   : > { %v8956_v43 = vpop.xlane.xlu1 %2791  ;;  %v2022_v25 = vmul.f32 %v6743_v22, %v8730_v58  ;;  %v2369_v58 = vsub.f32 %v8683_v28, %v8924_v36 }
 0x491   : > { %1724 = vmatmul.bf16.gmra.mxu2 %v1656_v31  ;;  %v8958_v21 = vpop.xlane.xlu0 %2352 }
 0x492   : > { %3083 = vrot.lane.b32.xlu0 %v10619_v13, %s7317_s14  ;;  %v2038_v2 = vpack.c.bf16 %v2022_v25, %v2022_v25  ;;  %v5899_v11 = vpack.c.bf16 %v2022_v25, %v2021_v8  ;;  %v6745_v8 = vpop.eup %6744  ;;  %v2394_v22 = vmul.f32 1.442695, %v2369_v58 }
 0x493   : > { %v6747_v14 = vpop.eup %6746  ;;  %v1582_v25 = vmul.f32 %v6745_v8, %v8714_v54 }
 0x494   : > { %6135 = vst [vmem:[%s8514_s21 + $0xa0] sm:$0xff] %v5899_v11   ;;  %v2087_v39 = vunpack.c.l.b16 %v2038_v2  ;;  %v2023_v28 = vmul.f32 %v6747_v14, %v8726_v35  ;;  %v2810_v2 = vsub.f32 %v8681_v24, %v8921_v12 }
 0x496   : > { %3528 = vrot.lane.b32.xlu1 %v10621_v23, %s7318_s22  ;;  %v2098_v4 = vpack.c.b16 %v2087_v39, %v2086_v59  ;;  %v2039_v35 = vpack.c.bf16 %v2023_v28, %v2023_v28  ;;  %v2833_v8 = vmul.f32 1.442695, %v2810_v2 }
 0x497   : > { %v8970_v26 = vpop.xlane.xlu2 %2793 }
 0x498   : > { %v1549_v61 = vpop.xlane.xlu1 %1548  ;;  %2162 = vmatmul.bf16.gmra.mxu0 %v2098_v4  ;;  %v1598_v4 = vpack.c.bf16 %v1582_v25, %v1582_v25  ;;  %v2088_v1 = vunpack.c.l.b16 %v2039_v35 }
 0x499   : > { %v1988_v31 = vpop.xlane.xlu0 %1987  ;;  %6748 = vrcp.f32 %v1549_v61 }
 0x49a   : > { %3971 = vrot.lane.b32.xlu0 %v10621_v23, %s7319_s20  ;;  %6750 = vrcp.f32 %v1988_v31  ;;  %v1647_v14 = vunpack.c.l.b16 %v1598_v4 }
 0x49b   : > { %6752 = vpow2.f32 %v2394_v22 }
 0x49e   : > { %3955 = vrot.lane.b32.xlu1 %v10623_v49, %s7319_s20 }
 0x49f   : > { %v6749_v36 = vpop.eup %6748  ;;  %v1553_v11 = vpop.xlane.xlu2 %1552 }
 0x4a0   : > { %v6751_v59 = vpop.eup %6750  ;;  %v8982_v39 = vpop.xlane.xlu1 %2356  ;;  %6754 = vrcp.f32 %v1553_v11  ;;  %v1583_v54 = vmul.f32 %v6749_v36, %v8765_v0 }
 0x4a1   : > { %v1551_v23 = vpop.xlane.xlu0 %1550  ;;  %v2024_v58 = vmul.f32 %v6751_v59, %v8767_v27  ;;  %v8987_v47 = vpop.eup %6752 }
 0x4a2   : > { %6756 = vrcp.f32 %v1551_v23  ;;  %v1599_v61 = vpack.c.bf16 %v1583_v54, %v1583_v54  ;;  %v5869_v31 = vpack.c.bf16 %v1583_v54, %v1582_v25  ;;  %v8989_v11 = vpop.f32.mrf.mxu0 }
 0x4a3   : > { %v2040_v24 = vpack.c.bf16 %v2024_v58, %v2024_v58  ;;  %v5904_v12 = vpack.c.bf16 %v2024_v58, %v2023_v28  ;;  %10624 = vst [vmem:[#allocation47_spill] sm:$0xff] %v8989_v11  ;;  %6758 = vpow2.f32 %v2833_v8 }
 0x4a4   : > { %6129 = vst [vmem:[%s8514_s21 + $0x70] sm:$0xff] %v5869_v31   ;;  %v1648_v22 = vunpack.c.l.b16 %v1599_v61 }
 0x4a5   : > { %6136 = vst [vmem:[%s8514_s21 + $0xa8] sm:$0xff] %v5904_v12   ;;  %v2089_v0 = vunpack.c.l.b16 %v2040_v24  ;;  %2426 = vadd.xlane.f32.xlu2 %v8987_v47 }
 0x4a6   : > { %v6755_v36 = vpop.eup %6754  ;;  %v1657_v23 = vpack.c.b16 %v1648_v22, %v1647_v14 }
 0x4a7   : > { %v1992_v25 = vpop.xlane.xlu2 %1991  ;;  %v2099_v2 = vpack.c.b16 %v2089_v0, %v2088_v1  ;;  %v1585_v28 = vmul.f32 %v6755_v36, %v8781_v44 }
 0x4a8   : > { %v6757_v27 = vpop.eup %6756  ;;  %v1990_v59 = vpop.xlane.xlu1 %1989  ;;  %6760 = vrcp.f32 %v1992_v25  ;;  %1729 = vmatmul.bf16.gmra.mxu2 %v1657_v23 }
 0x4a9   : > { %v8994_v54 = vpop.xlane.xlu0 %2795  ;;  %v1584_v4 = vmul.f32 %v6757_v27, %v8785_v45  ;;  %6762 = vrcp.f32 %v1990_v59  ;;  %2167 = vmatmul.bf16.gmra.mxu0 %v2099_v2  ;;  %v8998_v35 = vpop.eup %6758  ;;  %v1601_v8 = vpack.c.bf16 %v1585_v28, %v1585_v28 }
 0x4aa   : > { %v9000_v1 = vpop.f32.mrf.mxu0 }
 0x4ab   : > { %v5874_v58 = vpack.c.bf16 %v1585_v28, %v1584_v4  ;;  %v1600_v31 = vpack.c.bf16 %v1584_v4, %v1584_v4  ;;  %10625 = vst [vmem:[#allocation52_spill] sm:$0xff] %v9000_v1  ;;  %v1650_v23 = vunpack.c.l.b16 %v1601_v8  ;;  %v10626_v28 = vld [vmem:[#allocation31_spill] sm:$0xff] }
 0x4ac   : > { %v2371_v59 = vsub.f32 %v10626_v28, %v8944_v46  ;;  %v2374_v46 = vsub.f32 %v8783_v48, %v8982_v39 }
 0x4ad   : > { %6130 = vst [vmem:[%s8514_s21 + $0x78] sm:$0xff] %v5874_v58   ;;  %2865 = vadd.xlane.f32.xlu2 %v8998_v35  ;;  %v1649_v36 = vunpack.c.l.b16 %v1600_v31 }
 0x4ae   : > { %v6761_v61 = vpop.eup %6760  ;;  %v2398_v1 = vmul.f32 1.442695, %v2371_v59 }
 0x4af   : > { %v6763_v24 = vpop.eup %6762  ;;  %v2409_v44 = vpop.xlane.xlu2 %2408  ;;  %v2026_v12 = vmul.f32 %v6761_v61, %v8799_v30  ;;  %v1658_v58 = vpack.c.b16 %v1650_v23, %v1649_v36  ;;  %v2404_v36 = vmul.f32 1.442695, %v2374_v46 }
 0x4b0   : > { %v9004_v14 = vpop.xlane.xlu1 %2797  ;;  %v2025_v22 = vmul.f32 %v6763_v24, %v8803_v16  ;;  %6764 = vrcp.f32 %v2409_v44  ;;  %v2373_v16 = vsub.f32 %v8745_v40, %v8954_v63 }
 0x4b1   : > { %v9006_v45 = vpop.xlane.xlu0 %2358  ;;  %v2042_v0 = vpack.c.bf16 %v2026_v12, %v2026_v12 }
 0x4b2   : > { %v2041_v27 = vpack.c.bf16 %v2025_v22, %v2025_v22  ;;  %v5909_v25 = vpack.c.bf16 %v2026_v12, %v2025_v22  ;;  %v9016_v12 = vpop.f32.mrf.mxu0  ;;  %v2402_v44 = vmul.f32 1.442695, %v2373_v16 }
 0x4b3   : > { %v2091_v2 = vunpack.c.l.b16 %v2042_v0  ;;  %10627 = vst [vmem:[#allocation55_spill] sm:$0xff] %v9016_v12 }
 0x4b4   : > { %6137 = vst [vmem:[%s8514_s21 + $0xb0] sm:$0xff] %v5909_v25   ;;  %v2090_v4 = vunpack.c.l.b16 %v2041_v27 }
 0x4b6   : > { %v2100_v30 = vpack.c.b16 %v2091_v2, %v2090_v4  ;;  %v6765_v8 = vpop.eup %6764 }
 0x4b7   : > { %v9012_v61 = vpop.xlane.xlu2 %2799  ;;  %v2456_v22 = vmul.f32 %v6765_v8, %v8815_v51 }
 0x4b8   : > { %v2411_v24 = vpop.xlane.xlu1 %2410  ;;  %1734 = vmatmul.bf16.gmra.mxu2 %v1658_v58 }
 0x4b9   : > { %v1994_v31 = vpop.xlane.xlu0 %1993  ;;  %6766 = vrcp.f32 %v2411_v24  ;;  %2172 = vmatmul.bf16.gmra.mxu0 %v2100_v30  ;;  %v2472_v63 = vpack.c.bf16 %v2456_v22, %v2456_v22 }
 0x4ba   : > { %6768 = vrcp.f32 %v1994_v31  ;;  %v9031_v58 = vpop.f32.mrf.mxu0 }
 0x4bb   : > { %6770 = vpow2.f32 %v2398_v1  ;;  %v10628_v1 = vld [vmem:[#allocation64_spill] sm:$0xff]  ;;  %v2521_v59 = vunpack.c.l.b16 %v2472_v63  ;;  %10629 = vst [vmem:[#allocation53_spill] sm:$0xff] %v9031_v58 }
 0x4bc   : > { %6772 = vpow2.f32 %v2402_v44  ;;  %v2811_v51 = vsub.f32 %v10628_v1, %v8934_v37 }
 0x4be   : > { %v2835_v31 = vmul.f32 1.442695, %v2811_v51 }
 0x4bf   : > { %v6767_v0 = vpop.eup %6766  ;;  %v2415_v40 = vpop.xlane.xlu2 %2414 }
 0x4c0   : > { %v2457_v23 = vmul.f32 %v6767_v0, %v8835_v62  ;;  %v1996_v27 = vpop.xlane.xlu1 %1995  ;;  %v6769_v2 = vpop.eup %6768 }
 0x4c1   : > { %v9022_v25 = vpop.xlane.xlu0 %2801  ;;  %6774 = vrcp.f32 %v1996_v27  ;;  %v9024_v28 = vpop.eup %6770  ;;  %v2027_v62 = vmul.f32 %v6769_v2, %v8833_v5 }
 0x4c2   : > { %v2473_v48 = vpack.c.bf16 %v2457_v23, %v2457_v23  ;;  %v5919_v39 = vpack.c.bf16 %v2457_v23, %v2456_v22  ;;  %6776 = vpow2.f32 %v2404_v36  ;;  %v9033_v30 = vpop.eup %6772 }
 0x4c3   : > { %6778 = vrcp.f32 %v2415_v40  ;;  %v2043_v44 = vpack.c.bf16 %v2027_v62, %v2027_v62 }
 0x4c4   : > { %2430 = vadd.xlane.f32.xlu0 %v9024_v28  ;;  %6139 = vst [vmem:[%s8514_s21 + $0xc0] sm:$0xff] %v5919_v39   ;;  %v2522_v4 = vunpack.c.l.b16 %v2473_v48  ;;  %v9046_v39 = vpop.f32.mrf.mxu0 }
 0x4c5   : > { %3512 = vrot.lane.b32.xlu2 %v10623_v49, %s7318_s22  ;;  %v9042_v49 = vpop.f32.mrf.mxu1  ;;  %v2092_v63 = vunpack.c.l.b16 %v2043_v44  ;;  %10630 = vst [vmem:[#allocation56_spill] sm:$0xff] %v9046_v39 }
 0x4c6   : > { %v2537_v16 = vpack.c.b16 %v2522_v4, %v2521_v59 }
 0x4c7   : > { %v6775_v24 = vpop.eup %6774  ;;  %v2854_v37 = vpop.xlane.xlu2 %2853 }
 0x4c8   : > { %2434 = vadd.xlane.f32.xlu1 %v9033_v30  ;;  %v2852_v8 = vpop.xlane.xlu1 %2851  ;;  %6780 = vrcp.f32 %v2854_v37  ;;  %2585 = vmatmul.bf16.vlgmr.msrb.gmra.mxu2 %v2537_v16  ;;  %v2028_v5 = vmul.f32 %v6775_v24, %v8856_v7  ;;  %v9039_v22 = vpop.eup %6776 }
 0x4c9   : > { %v2413_v46 = vpop.xlane.xlu0 %2412  ;;  %6782 = vrcp.f32 %v2852_v8  ;;  %v6779_v0 = vpop.eup %6778 }
 0x4ca   : > { %6784 = vrcp.f32 %v2413_v46  ;;  %v2044_v36 = vpack.c.bf16 %v2028_v5, %v2028_v5  ;;  %v5914_v40 = vpack.c.bf16 %v2028_v5, %v2027_v62  ;;  %v2459_v27 = vmul.f32 %v6779_v0, %v8852_v6 }
 0x4cb   : > { %6786 = vpow2.f32 %v2835_v31 }
 0x4cc   : > { %2436 = vadd.xlane.f32.xlu0 %v9039_v22  ;;  %6138 = vst [vmem:[%s8514_s21 + $0xb8] sm:$0xff] %v5914_v40   ;;  %v2093_v23 = vunpack.c.l.b16 %v2044_v36  ;;  %v2475_v6 = vpack.c.bf16 %v2459_v27, %v2459_v27 }
 0x4cd   : > { %v3160_v40 = vpop.f32.mrf.mxu1 }
 0x4ce   : > { %v6781_v2 = vpop.eup %6780  ;;  %v2101_v7 = vpack.c.b16 %v2093_v23, %v2092_v63  ;;  %v2524_v36 = vunpack.c.l.b16 %v2475_v6 }
 0x4cf   : > { %v6783_v48 = vpop.eup %6782  ;;  %v2900_v1 = vmul.f32 %v6781_v2, %v8871_v41  ;;  %v2421_v24 = vpop.xlane.xlu2 %2420 }
 0x4d0   : > { %v6785_v51 = vpop.eup %6784  ;;  %v2899_v59 = vmul.f32 %v6783_v48, %v8874_v10  ;;  %v2417_v4 = vpop.xlane.xlu1 %2416  ;;  %2177 = vmatmul.bf16.gmra.mxu0 %v2101_v7  ;;  %v9062_v7 = vmul.f32 0.25, %v3160_v40 }
 0x4d1   : > { %v2856_v62 = vpop.xlane.xlu0 %2855  ;;  %v2916_v16 = vpack.c.bf16 %v2900_v1, %v2900_v1  ;;  %v2458_v37 = vmul.f32 %v6785_v51, %v8869_v50  ;;  %v9051_v31 = vpop.eup %6786  ;;  %6788 = vrcp.f32 %v2417_v4 }
 0x4d2   : > { %v2915_v8 = vpack.c.bf16 %v2899_v59, %v2899_v59  ;;  %v5959_v46 = vpack.c.bf16 %v2900_v1, %v2899_v59  ;;  %6790 = vrcp.f32 %v2421_v24  ;;  %v10631_v24 = vld [vmem:[#allocation21_spill] sm:$0xff] }
 0x4d3   : > { %v9053_v5 = vunpack.c.l.b16 %v2916_v16  ;;  %v2474_v41 = vpack.c.bf16 %v2458_v37, %v2458_v37  ;;  %v5924_v10 = vpack.c.bf16 %v2459_v27, %v2458_v37  ;;  %v2372_v16 = vsub.f32 %v8749_v34, %v8958_v21 }
 0x4d4   : > { %2867 = vadd.xlane.f32.xlu0 %v9051_v31  ;;  %v9056_v44 = vunpack.c.l.b16 %v2915_v8  ;;  %6147 = vst [vmem:[%s8514_s21 + $0x100] sm:$0xff] %v5959_v46  }
 0x4d5   : > { %6140 = vst [vmem:[%s8514_s21 + $0xc8] sm:$0xff] %v5924_v10   ;;  %v2523_v0 = vunpack.c.l.b16 %v2474_v41  ;;  %v2400_v34 = vmul.f32 1.442695, %v2372_v16 }
 0x4d7   : > { %v2538_v63 = vpack.c.b16 %v2524_v36, %v2523_v0  ;;  %v2862_v48 = vpop.xlane.xlu2 %2861  ;;  %v6789_v27 = vpop.eup %6788 }
 0x4d8   : > { %v2423_v23 = vpop.xlane.xlu1 %2422  ;;  %v6791_v1 = vpop.eup %6790  ;;  %v2460_v51 = vmul.f32 %v6789_v27, %v8883_v52 }
 0x4d9   : > { %v2419_v2 = vpop.xlane.xlu0 %2418  ;;  %6792 = vrcp.f32 %v2423_v23  ;;  %2590 = vmatmul.bf16.gmra.mxu2 %v2538_v63  ;;  %v2462_v6 = vmul.f32 %v6791_v1, %v8888_v32  ;;  %v10632_v23 = vld [vmem:[#allocation24_spill] sm:$0xff] }
 0x4da   : > { %6794 = vrcp.f32 %v2856_v62  ;;  %v2476_v10 = vpack.c.bf16 %v2460_v51, %v2460_v51 }
 0x4db   : > { %6796 = vrcp.f32 %v2419_v2 }
 0x4dc   : > { %3216 = vmax.xlane.f32.xlu0 %v9062_v7 }
 0x4df   : > { %v6793_v59 = vpop.eup %6792  ;;  %v3974_v46 = vpop.permute.xlu2 %3973 }
 0x4e0   : > { %v6795_v4 = vpop.eup %6794  ;;  %v2463_v62 = vmul.f32 %v6793_v59, %v8903_v56  ;;  %v4015_v52 = vsel %vm862_vm0, %v3974_v46, 0  ;;  %v2525_v56 = vunpack.c.l.b16 %v2476_v10  ;;  %v10633_v46 = vld [vmem:[#allocation25_spill] sm:$0xff] }
 0x4e1   : > { %3957 = vrot.lane.b32.xlu1 %v10631_v24, %s7319_s20  ;;  %v2858_v37 = vpop.xlane.xlu0 %2857  ;;  %v6797_v8 = vpop.eup %6796  ;;  %4041 = vmatpush.bf16.xpose.msrb.mxu1 %v4015_v52  ;;  %v2901_v32 = vmul.f32 %v6795_v4, %v8886_v3 }
 0x4e2   : > { %6798 = vrcp.f32 %v2858_v37  ;;  %v2461_v41 = vmul.f32 %v6797_v8, %v8899_v20  ;;  %v5934_v0 = vpack.c.bf16 %v2463_v62, %v2462_v6  ;;  %v2479_v52 = vpack.c.bf16 %v2463_v62, %v2463_v62 }
 0x4e3   : > { %6800 = vrcp.f32 %v2862_v48  ;;  %v2917_v27 = vpack.c.bf16 %v2901_v32, %v2901_v32 }
 0x4e4   : > { %v2477_v21 = vpack.c.bf16 %v2461_v41, %v2461_v41  ;;  %v5929_v36 = vpack.c.bf16 %v2461_v41, %v2460_v51  ;;  %6142 = vst [vmem:[%s8514_s21 + $0xd8] sm:$0xff] %v5934_v0   ;;  %6802 = vpow2.f32 %v2400_v34  ;;  %v2478_v0 = vpack.c.bf16 %v2462_v6, %v2462_v6 }
 0x4e5   : > { %v9081_v3 = vunpack.c.l.b16 %v2917_v27 }
 0x4e6   : > { %6141 = vst [vmem:[%s8514_s21 + $0xd0] sm:$0xff] %v5929_v36   ;;  %v2526_v40 = vunpack.c.l.b16 %v2477_v21  ;;  %v2528_v21 = vunpack.c.l.b16 %v2479_v52 }
 0x4e8   : > { %v6799_v63 = vpop.eup %6798  ;;  %v2539_v20 = vpack.c.b16 %v2526_v40, %v2525_v56  ;;  %v2864_v56 = vpop.xlane.xlu1 %2863  ;;  %v2527_v40 = vunpack.c.l.b16 %v2478_v0 }
 0x4e9   : > { %3516 = vrot.lane.b32.xlu1 %v10632_v23, %s7318_s22  ;;  %v2860_v2 = vpop.xlane.xlu0 %2859  ;;  %v2902_v48 = vmul.f32 %v6799_v63, %v8915_v19  ;;  %v6801_v1 = vpop.eup %6800 }
 0x4ea   : > { %6804 = vrcp.f32 %v2860_v2  ;;  %2595 = vmatmul.bf16.gmra.mxu2 %v2539_v20  ;;  %v2904_v16 = vmul.f32 %v6801_v1, %v8901_v42  ;;  %v9086_v37 = vpop.eup %6802  ;;  %v2540_v20 = vpack.c.b16 %v2528_v21, %v2527_v40  ;;  %v3163_v1 = vpop.f32.mrf.mxu1 }
 0x4eb   : > { %v2918_v51 = vpack.c.bf16 %v2902_v48, %v2902_v48  ;;  %v5964_v59 = vpack.c.bf16 %v2902_v48, %v2901_v32  ;;  %v9119_v0 = vpop.f32.mrf.mxu2 }
 0x4ec   : > { %v2920_v10 = vpack.c.bf16 %v2904_v16, %v2904_v16 }
 0x4ed   : > { %6148 = vst [vmem:[%s8514_s21 + $0x108] sm:$0xff] %v5964_v59   ;;  %v9083_v4 = vunpack.c.l.b16 %v2918_v51  ;;  %v9109_v59 = vmul.f32 0.25, %v3163_v1 }
 0x4ee   : > { %2432 = vadd.xlane.f32.xlu2 %v9086_v37  ;;  %v9099_v32 = vunpack.c.l.b16 %v2920_v10 }
 0x4f0   : > { %v6805_v19 = vpop.eup %6804  ;;  %3518 = vrot.lane.b32.xlu0 %v10633_v46, %s7318_s22 }
 0x4f1   : > { %3959 = vrot.lane.b32.xlu1 %v10632_v23, %s7319_s20  ;;  %v2903_v41 = vmul.f32 %v6805_v19, %v8929_v9  ;;  %v2425_v62 = vpop.xlane.xlu0 %2424  ;;  %v2429_v23 = vpop.xlane.xlu1 %2428 }
 0x4f2   : > { %6806 = vrcp.f32 %v2425_v62  ;;  %v3165_v52 = vpop.f32.mrf.mxu1 }
 0x4f3   : > { %v2919_v42 = vpack.c.bf16 %v2903_v41, %v2903_v41  ;;  %v5969_v34 = vpack.c.bf16 %v2904_v16, %v2903_v41  ;;  %v9112_v16 = vmul.f32 0.25, %v9042_v49  ;;  %v9117_v10 = vmul.f32 0.25, %v3165_v52  ;;  %v9129_v1 = vpop.f32.mrf.mxu2 }
 0x4f4   : > { %v2375_v49 = vsub.f32 %v8819_v33, %v9006_v45  ;;  %v10634_v33 = vld [vmem:[#allocation32_spill] sm:$0xff] }
 0x4f5   : > { %6149 = vst [vmem:[%s8514_s21 + $0x110] sm:$0xff] %v5969_v34   ;;  %v9097_v36 = vunpack.c.l.b16 %v2919_v42  ;;  %v2812_v45 = vsub.f32 %v10634_v33, %v8947_v55 }
 0x4f8   : > { %v6807_v19 = vpop.eup %6806 }
 0x4f9   : > { %v2464_v41 = vmul.f32 %v6807_v19, %v8938_v29 }
 0x4fa   : > { %2600 = vmatmul.bf16.gmra.mxu2 %v2540_v20 }
 0x4fb   : > { %v2480_v40 = vpack.c.bf16 %v2464_v41, %v2464_v41 }
 0x4fd   : > { %v2529_v29 = vunpack.c.l.b16 %v2480_v40 }
 0x504   : > { %v3084_v9 = vpop.permute.xlu0 %3083 }
 0x505   : > { %5628 = vmatmul.msk.bf16.gmra.mxu1 %vm862_vm0, %v3084_v9  ;;  %v2406_v9 = vmul.f32 1.442695, %v2375_v49 }
 0x506   : > { %3514 = vrot.lane.b32.xlu2 %v10631_v24, %s7318_s22 }
 0x508   : > { %v3529_v6 = vpop.permute.xlu1 %3528 }
 0x509   : > { %v3569_v2 = vsel %vm862_vm0, %v3529_v6, 0 }
 0x50a   : > { %3599 = vmatpush.bf16.xpose.msrb.mxu3 %v3569_v2 }
 0x50c   : > { %v3972_v48 = vpop.permute.xlu0 %3971 }
 0x50d   : > { %v4012_v27 = vsel %vm862_vm0, %v3972_v48, 0 }
 0x50e   : > { %4042 = vmatpush.bf16.xpose.msrb.mxu1 %v4012_v27 }
 0x510   : > { %v3956_v51 = vpop.permute.xlu1 %3955 }
 0x515   : > { %5669 = vmatmul.msk.bf16.vlgmr.msrb.gmra.mxu1 %vm862_vm0, %v3956_v51 }
 0x518   : > { %v2427_v24 = vpop.xlane.xlu2 %2426 }
 0x519   : > { %6808 = vrcp.f32 %v2427_v24 }
 0x51a   : > { %3218 = vmax.xlane.f32.xlu0 %v9109_v59  ;;  %6810 = vrcp.f32 %v2864_v56 }
 0x51b   : > { %3214 = vmax.xlane.f32.xlu1 %v9112_v16 }
 0x51f   : > { %v6809_v42 = vpop.eup %6808 }
 0x520   : > { %v2866_v34 = vpop.xlane.xlu2 %2865  ;;  %v2465_v21 = vmul.f32 %v6809_v42, %v8987_v47  ;;  %v6811_v20 = vpop.eup %6810 }
 0x521   : > { %6812 = vrcp.f32 %v2866_v34  ;;  %v2905_v2 = vmul.f32 %v6811_v20, %v8927_v17  ;;  %v2837_v17 = vmul.f32 1.442695, %v2812_v45 }
 0x522   : > { %v2481_v62 = vpack.c.bf16 %v2465_v21, %v2465_v21  ;;  %v5939_v56 = vpack.c.bf16 %v2465_v21, %v2464_v41  ;;  %6814 = vpow2.f32 %v2406_v9  ;;  %v10635_v41 = vld [vmem:[#allocation33_spill] sm:$0xff] }
 0x523   : > { %3220 = vmax.xlane.f32.xlu1 %v9117_v10  ;;  %v2921_v24 = vpack.c.bf16 %v2905_v2, %v2905_v2  ;;  %6816 = vrcp.f32 %v2429_v23  ;;  %v9153_v23 = vpop.f32.mrf.mxu2 }
 0x524   : > { %6143 = vst [vmem:[%s8514_s21 + $0xe0] sm:$0xff] %v5939_v56   ;;  %v2530_v6 = vunpack.c.l.b16 %v2481_v62  ;;  %6818 = vpow2.f32 %v2837_v17  ;;  %v10637_v56 = vld [vmem:[#allocation28_spill] sm:$0xff] }
 0x525   : > { %v9136_v42 = vunpack.c.l.b16 %v2921_v24 }
 0x526   : > { %v2541_v48 = vpack.c.b16 %v2530_v6, %v2529_v29  ;;  %v10638_v29 = vld [vmem:[#allocation36_spill] sm:$0xff] }
 0x527   : > { %v6813_v27 = vpop.eup %6812 }
 0x528   : > { %v3513_v47 = vpop.permute.xlu2 %3512  ;;  %2605 = vmatmul.bf16.gmra.mxu2 %v2541_v48  ;;  %v2906_v51 = vmul.f32 %v6813_v27, %v8998_v35  ;;  %v9140_v49 = vpop.eup %6814  ;;  %v10636_v35 = vld [vmem:[#allocation35_spill] sm:$0xff] }
 0x529   : > { %5645 = vmatmul.msk.bf16.vlgmr.msrb.gmra.mxu3 %vm862_vm0, %v3513_v47  ;;  %v6817_v40 = vpop.eup %6816 }
 0x52a   : > { %v2922_v19 = vpack.c.bf16 %v2906_v51, %v2906_v51  ;;  %v5974_v52 = vpack.c.bf16 %v2906_v51, %v2905_v2  ;;  %v9147_v20 = vpop.eup %6818  ;;  %v2466_v62 = vmul.f32 %v6817_v40, %v8936_v15  ;;  %v10639_v15 = vld [vmem:[#allocation38_spill] sm:$0xff] }
 0x52b   : > { %v9161_v51 = vpop.f32.mrf.mxu2 }
 0x52c   : > { %6150 = vst [vmem:[%s8514_s21 + $0x118] sm:$0xff] %v5974_v52   ;;  %v9138_v55 = vunpack.c.l.b16 %v2922_v19  ;;  %v2482_v2 = vpack.c.bf16 %v2466_v62, %v2466_v62 }
 0x52e   : > { %3522 = vrot.lane.b32.xlu0 %v10635_v41, %s7318_s22  ;;  %v2531_v33 = vunpack.c.l.b16 %v2482_v2 }
 0x52f   : > { %2438 = vadd.xlane.f32.xlu2 %v9140_v49 }
 0x536   : > { %3453 = vrot.lane.b32.xlu0 %v10636_v35, %s7317_s14 }
 0x537   : > { %v2431_v21 = vpop.xlane.xlu0 %2430  ;;  %2869 = vadd.xlane.f32.xlu2 %v9147_v20 }
 0x538   : > { %6820 = vrcp.f32 %v2431_v21 }
 0x53b   : > { %v2435_v24 = vpop.xlane.xlu1 %2434 }
 0x53c   : > { %3963 = vrot.lane.b32.xlu1 %v10637_v56, %s7319_s20  ;;  %6822 = vrcp.f32 %v2435_v24 }
 0x53e   : > { %v6821_v9 = vpop.eup %6820  ;;  %3451 = vrot.lane.b32.xlu0 %v10638_v29, %s7317_s14 }
 0x53f   : > { %v2467_v6 = vmul.f32 %v6821_v9, %v9024_v28  ;;  %v3168_v28 = vpop.f32.mrf.mxu1 }
 0x541   : > { %v2483_v48 = vpack.c.bf16 %v2467_v6, %v2467_v6  ;;  %v5944_v27 = vpack.c.bf16 %v2467_v6, %v2466_v62  ;;  %v9173_v6 = vpop.f32.mrf.mxu2 }
 0x542   : > { %v6823_v9 = vpop.eup %6822  ;;  %10640 = vst [vmem:[#allocation61_spill] sm:$0xff] %v9173_v6 }
 0x543   : > { %6144 = vst [vmem:[%s8514_s21 + $0xe8] sm:$0xff] %v5944_v27   ;;  %v2532_v45 = vunpack.c.l.b16 %v2483_v48 }
 0x545   : > { %v2542_v47 = vpack.c.b16 %v2532_v45, %v2531_v33 }
 0x546   : > { %3449 = vrot.lane.b32.xlu0 %v10639_v15, %s7317_s14 }
 0x547   : > { %2610 = vmatmul.bf16.gmra.mxu2 %v2542_v47  ;;  %v3170_v17 = vpop.f32.mrf.mxu1 }
 0x548   : > { %v9168_v40 = vmul.f32 0.25, %v3170_v17 }
 0x54f   : > { %3961 = vrot.lane.b32.xlu2 %v10633_v46, %s7319_s20  ;;  %v2469_v46 = vmul.f32 %v6823_v9, %v9033_v30 }
 0x551   : > { %v2485_v33 = vpack.c.bf16 %v2469_v46, %v2469_v46 }
 0x553   : > { %v3958_v19 = vpop.permute.xlu1 %3957  ;;  %v2534_v30 = vunpack.c.l.b16 %v2485_v33 }
 0x554   : > { %5670 = vmatmul.msk.bf16.gmra.mxu1 %vm862_vm0, %v3958_v19  ;;  %v2437_v19 = vpop.xlane.xlu0 %2436 }
 0x557   : > { %3520 = vrot.lane.b32.xlu2 %v10637_v56, %s7318_s22  ;;  %v3173_v56 = vpop.f32.mrf.mxu1 }
 0x558   : > { %v9177_v45 = vmul.f32 0.25, %v3173_v56 }
 0x55b   : > { %v3517_v52 = vpop.permute.xlu1 %3516 }
 0x55c   : > { %v2868_v9 = vpop.xlane.xlu0 %2867 }
 0x561   : > { %v2433_v62 = vpop.xlane.xlu2 %2432 }
 0x562   : > { %6824 = vrcp.f32 %v2433_v62  ;;  %v9181_v62 = vpop.f32.mrf.mxu2 }
 0x563   : > { %v3960_v21 = vpop.permute.xlu1 %3959  ;;  %10641 = vst [vmem:[#allocation59_spill] sm:$0xff] %v9181_v62 }
 0x564   : > { %5671 = vmatmul.msk.bf16.gmra.mxu1 %vm862_vm0, %v3960_v21 }
 0x566   : > { %3224 = vmax.xlane.f32.xlu1 %v9168_v40 }
 0x568   : > { %v6825_v2 = vpop.eup %6824 }
 0x569   : > { %v3515_v48 = vpop.permute.xlu2 %3514  ;;  %v2468_v27 = vmul.f32 %v6825_v2, %v9086_v37  ;;  %v9186_v37 = vmul.f32 0.25, %v3168_v28  ;;  %v10642_v2 = vld [vmem:[#allocation39_spill] sm:$0xff] }
 0x56a   : > { %5646 = vmatmul.msk.bf16.gmra.mxu3 %vm862_vm0, %v3515_v48 }
 0x56b   : > { %v2484_v47 = vpack.c.bf16 %v2468_v27, %v2468_v27  ;;  %v5949_v24 = vpack.c.bf16 %v2469_v46, %v2468_v27  ;;  %v9189_v46 = vpop.xlane.xlu0 %3216 }
 0x56d   : > { %6145 = vst [vmem:[%s8514_s21 + $0xf0] sm:$0xff] %v5949_v24   ;;  %v2533_v17 = vunpack.c.l.b16 %v2484_v47 }
 0x56f   : > { %v2543_v21 = vpack.c.b16 %v2534_v30, %v2533_v17  ;;  %v10644_v30 = vld [vmem:[#allocation37_spill] sm:$0xff] }
 0x570   : > { %3226 = vmax.xlane.f32.xlu0 %v9177_v45 }
 0x571   : > { %2615 = vmatmul.bf16.gmra.mxu2 %v2543_v21 }
 0x573   : > { %v3519_v56 = vpop.permute.xlu0 %3518 }
 0x57a   : > { %5647 = vmatmul.msk.bf16.gmra.mxu3 %vm862_vm0, %v3517_v52  ;;  %v10643_v52 = vld [vmem:[#allocation43_spill] sm:$0xff] }
 0x57f   : > { %3010 = vrot.lane.b32.xlu1 %v10636_v35, %s10486_s13 }
 0x580   : > { %3222 = vmax.xlane.f32.xlu2 %v9186_v37 }
 0x587   : > { %3447 = vrot.lane.b32.xlu1 %v10642_v2, %s7317_s14 }
 0x58a   : > { %5648 = vmatmul.msk.bf16.gmra.mxu3 %vm862_vm0, %v3519_v56 }
 0x58d   : > { %v9199_v28 = vpop.xlane.xlu0 %3218 }
 0x58e   : > { %v3215_v48 = vpop.xlane.xlu1 %3214 }
 0x58f   : > { %v3246_v27 = vsub.f32 %v9112_v16, %v3215_v48  ;;  %3524 = vrot.lane.b32.xlu1 %v10643_v52, %s7318_s22 }
 0x591   : > { %v3262_v33 = vmul.f32 1.442695, %v3246_v27 }
 0x593   : > { %6826 = vpow2.f32 %v3262_v33 }
 0x594   : > { %6828 = vrcp.f32 %v2437_v19 }
 0x597   : > { %3006 = vrot.lane.b32.xlu1 %v10639_v15, %s10486_s13 }
 0x598   : > { %3965 = vrot.lane.b32.xlu2 %v10635_v41, %s7319_s20  ;;  %v9213_v41 = vpop.f32.mrf.mxu2 }
 0x599   : > { %v9201_v47 = vpop.eup %6826  ;;  %10645 = vst [vmem:[#allocation65_spill] sm:$0xff] %v9213_v41 }
 0x59a   : > { %3294 = vadd.xlane.f32.xlu0 %v9201_v47  ;;  %v6829_v17 = vpop.eup %6828 }
 0x59b   : > { %v2470_v56 = vmul.f32 %v6829_v17, %v9039_v22 }
 0x59f   : > { %3967 = vrot.lane.b32.xlu1 %v10643_v52, %s7319_s20  ;;  %v2486_v52 = vpack.c.bf16 %v2470_v56, %v2470_v56 }
 0x5a0   : > { %v3523_v16 = vpop.permute.xlu0 %3522  ;;  %3008 = vrot.lane.b32.xlu2 %v10638_v29, %s10486_s13 }
 0x5a1   : > { %v2535_v22 = vunpack.c.l.b16 %v2486_v52 }
 0x5a2   : > { %v2439_v24 = vpop.xlane.xlu2 %2438 }
 0x5a3   : > { %6830 = vrcp.f32 %v2439_v24 }
 0x5a4   : > { %6832 = vrcp.f32 %v2868_v9 }
 0x5a7   : > { %3445 = vrot.lane.b32.xlu1 %v10644_v30, %s7317_s14 }
 0x5a8   : > { %v3454_v21 = vpop.permute.xlu0 %3453 }
 0x5a9   : > { %3463 = vmatpush.bf16.msra.mxu2 %v3454_v21  ;;  %v6831_v48 = vpop.eup %6830 }
 0x5aa   : > { %v2870_v19 = vpop.xlane.xlu2 %2869  ;;  %v2471_v27 = vmul.f32 %v6831_v48, %v9140_v49  ;;  %v6833_v9 = vpop.eup %6832 }
 0x5ab   : > { %6834 = vrcp.f32 %v2870_v19  ;;  %v9221_v49 = vpop.f32.mrf.mxu2  ;;  %v9224_v19 = vmul.f32 %v6833_v9, %v9051_v31 }
 0x5ac   : > { %v2487_v33 = vpack.c.bf16 %v2471_v27, %v2471_v27  ;;  %v5954_v24 = vpack.c.bf16 %v2471_v27, %v2470_v56  ;;  %10646 = vst [vmem:[#allocation66_spill] sm:$0xff] %v9221_v49  ;;  %v10647_v56 = vld [vmem:[#allocation27_spill] sm:$0xff]  ;;  %v10648_v27 = vld [vmem:[#allocation26_spill] sm:$0xff] }
 0x5ae   : > { %3004 = vrot.lane.b32.xlu0 %v10642_v2, %s10486_s13  ;;  %6146 = vst [vmem:[%s8514_s21 + $0xf8] sm:$0xff] %v5954_v24   ;;  %v2536_v17 = vunpack.c.l.b16 %v2487_v33 }
 0x5af   : > { %3002 = vrot.lane.b32.xlu1 %v10644_v30, %s10486_s13 }
 0x5b0   : > { %v3452_v21 = vpop.permute.xlu0 %3451  ;;  %v2544_v34 = vpack.c.b16 %v2536_v17, %v2535_v22 }
 0x5b1   : > { %3464 = vmatpush.bf16.msra.mxu2 %v3452_v21  ;;  %v6835_v63 = vpop.eup %6834  ;;  %v3175_v21 = vpop.f32.mrf.mxu1 }
 0x5b2   : > { %v3962_v48 = vpop.permute.xlu2 %3961  ;;  %2620 = vmatmul.bf16.gmra.mxu2 %v2544_v34  ;;  %v9227_v8 = vmul.f32 %v6835_v63, %v9147_v20  ;;  %v3221_v34 = vpop.xlane.xlu1 %3220  ;;  %v10649_v63 = vld [vmem:[#allocation23_spill] sm:$0xff]  ;;  %v3247_v20 = vsub.f32 %v9062_v7, %v9189_v46  ;;  %v9245_v17 = vmul.f32 0.25, %v3175_v21 }
 0x5b3   : > { %5672 = vmatmul.msk.bf16.gmra.mxu1 %vm862_vm0, %v3962_v48  ;;  %v3249_v46 = vsub.f32 %v9117_v10, %v3221_v34  ;;  %v3248_v34 = vsub.f32 %v9109_v59, %v9199_v28 }
 0x5b4   : > { %v5979_v52 = vpack.c.bf16 %v9227_v8, %v9224_v19  ;;  %v3264_v22 = vmul.f32 1.442695, %v3247_v20 }
 0x5b5   : > { %v3266_v21 = vmul.f32 1.442695, %v3248_v34 }
 0x5b6   : > { %3000 = vrot.lane.b32.xlu0 %v10647_v56, %s10486_s13  ;;  %6151 = vst [vmem:[%s8514_s21 + $0x120] sm:$0xff] %v5979_v52   ;;  %6836 = vpow2.f32 %v3264_v22  ;;  %v3268_v52 = vmul.f32 1.442695, %v3249_v46 }
 0x5b7   : > { %3441 = vrot.lane.b32.xlu1 %v10648_v27, %s7317_s14 }
 0x5b8   : > { %v3450_v33 = vpop.permute.xlu0 %3449  ;;  %6838 = vpow2.f32 %v3268_v52 }
 0x5b9   : > { %3465 = vmatpush.bf16.msra.mxu2 %v3450_v33  ;;  %v3178_v9 = vpop.f32.mrf.mxu1  ;;  %6840 = vpow2.f32 %v3266_v21 }
 0x5ba   : > { %v3521_v31 = vpop.permute.xlu2 %3520  ;;  %v3964_v24 = vpop.permute.xlu1 %3963  ;;  %v9257_v33 = vmul.f32 0.25, %v3178_v9 }
 0x5bb   : > { %5649 = vmatmul.msk.bf16.gmra.mxu3 %vm862_vm0, %v3521_v31 }
 0x5bc   : > { %v9251_v7 = vpop.eup %6836 }
 0x5be   : > { %3439 = vrot.lane.b32.xlu0 %v10649_v63, %s7317_s14  ;;  %v9260_v31 = vpop.eup %6838 }
 0x5bf   : > { %v9276_v59 = vpop.eup %6840 }
 0x5c1   : > { %v3180_v48 = vpop.f32.mrf.mxu1 }
 0x5c3   : > { %5673 = vmatmul.msk.bf16.gmra.mxu1 %vm862_vm0, %v3964_v24 }
 0x5c6   : > { %3526 = vrot.lane.b32.xlu0 %v10619_v13, %s7318_s22 }
 0x5c9   : > { %3228 = vmax.xlane.f32.xlu2 %v9245_v17 }
 0x5cb   : > { %5650 = vmatmul.msk.bf16.gmra.mxu3 %vm862_vm0, %v3523_v16  ;;  %v3183_v16 = vpop.f32.mrf.mxu1 }
 0x5ce   : > { %2998 = vrot.lane.b32.xlu0 %v10648_v27, %s10486_s13 }
 0x5d1   : > { %3296 = vadd.xlane.f32.xlu2 %v9251_v7 }
 0x5d3   : > { %v3185_v10 = vpop.f32.mrf.mxu1 }
 0x5d4   : > { %v9272_v9 = vmul.f32 0.25, %v3185_v10 }
 0x5d6   : > { %3969 = vrot.lane.b32.xlu0 %v10619_v13, %s7319_s20  ;;  %v9267_v13 = vmul.f32 0.25, %v3183_v16 }
 0x5d9   : > { %v9262_v20 = vpop.xlane.xlu1 %3224 }
 0x5db   : > { %v3188_v52 = vpop.f32.mrf.mxu1 }
 0x5e1   : > { %3230 = vmax.xlane.f32.xlu1 %v9257_v33 }
 0x5e3   : > { %v3227_v28 = vpop.xlane.xlu0 %3226 }
 0x5e9   : > { %3300 = vadd.xlane.f32.xlu1 %v9260_v31  ;;  %3443 = vrot.lane.b32.xlu2 %v10647_v56, %s7317_s14 }
 0x5f1   : > { %3234 = vmax.xlane.f32.xlu1 %v9267_v13  ;;  %v3011_v24 = vpop.permute.xlu1 %3010 }
 0x5f2   : > { %3020 = vmatpush.bf16.msrb.mxu0 %v3011_v24  ;;  %v3252_v24 = vsub.f32 %v9177_v45, %v3227_v28  ;;  %v9295_v45 = vmul.f32 0.25, %v3180_v48 }
 0x5f3   : > { %v3223_v22 = vpop.xlane.xlu2 %3222 }
 0x5f4   : > { %v3250_v46 = vsub.f32 %v9186_v37, %v3223_v22  ;;  %v3190_v37 = vpop.f32.mrf.mxu1  ;;  %v3274_v22 = vmul.f32 1.442695, %v3252_v24 }
 0x5f5   : > { %v9285_v21 = vmul.f32 0.25, %v3190_v37 }
 0x5f6   : > { %v3270_v50 = vmul.f32 1.442695, %v3250_v46  ;;  %v9287_v46 = vmul.f32 0.25, %v3188_v52 }
 0x5f8   : > { %6842 = vpow2.f32 %v3270_v50 }
 0x5f9   : > { %3236 = vmax.xlane.f32.xlu1 %v9272_v9  ;;  %v3448_v16 = vpop.permute.xlu1 %3447  ;;  %6844 = vpow2.f32 %v3274_v22 }
 0x5fa   : > { %3466 = vmatpush.bf16.msra.mxu2 %v3448_v16 }
 0x5fb   : > { %v3966_v58 = vpop.permute.xlu2 %3965 }
 0x5fc   : > { %5674 = vmatmul.msk.bf16.gmra.mxu1 %vm862_vm0, %v3966_v58  ;;  %v3193_v28 = vpop.f32.mrf.mxu1 }
 0x5fd   : > { %v9298_v52 = vmul.f32 0.25, %v3193_v28 }
 0x5fe   : > { %v9280_v10 = vpop.eup %6842 }
 0x5ff   : > { %v9291_v16 = vpop.eup %6844 }
 0x600   : > { %3298 = vadd.xlane.f32.xlu0 %v9276_v59 }
 0x601   : > { %v3525_v34 = vpop.permute.xlu1 %3524  ;;  %3302 = vadd.xlane.f32.xlu1 %v9280_v10 }
 0x602   : > { %5651 = vmatmul.msk.bf16.gmra.mxu3 %vm862_vm0, %v3525_v34 }
 0x603   : > { %v3009_v50 = vpop.permute.xlu2 %3008 }
 0x604   : > { %3021 = vmatpush.bf16.msrb.mxu0 %v3009_v50 }
 0x608   : > { %3240 = vmax.xlane.f32.xlu0 %v9285_v21 }
 0x609   : > { %v3007_v58 = vpop.permute.xlu1 %3006  ;;  %3238 = vmax.xlane.f32.xlu1 %v9287_v46 }
 0x60a   : > { %3022 = vmatpush.bf16.msrb.mxu0 %v3007_v58 }
 0x60d   : > { %v3295_v37 = vpop.xlane.xlu0 %3294 }
 0x611   : > { %v3968_v34 = vpop.permute.xlu1 %3967  ;;  %3306 = vadd.xlane.f32.xlu1 %v9291_v16 }
 0x612   : > { %5675 = vmatmul.msk.bf16.gmra.mxu1 %vm862_vm0, %v3968_v34  ;;  %3232 = vmax.xlane.f32.xlu2 %v9295_v45 }
 0x619   : > { %v3446_v24 = vpop.permute.xlu1 %3445  ;;  %3242 = vmax.xlane.f32.xlu1 %v9298_v52 }
 0x61a   : > { %3467 = vmatpush.bf16.msra.mxu2 %v3446_v24  ;;  %v3195_v24 = vpop.f32.mrf.mxu1 }
 0x620   : > { %v3005_v50 = vpop.permute.xlu0 %3004 }
 0x621   : > { %3023 = vmatpush.bf16.msrb.mxu0 %v3005_v50  ;;  %v3003_v22 = vpop.permute.xlu1 %3002  ;;  %v3251_v50 = vsub.f32 %v9168_v40, %v9262_v20 }
 0x625   : > { %3024 = vmatpush.bf16.msrb.mxu0 %v3003_v22 }
 0x628   : > { %v3001_v58 = vpop.permute.xlu0 %3000 }
 0x629   : > { %3025 = vmatpush.bf16.msrb.mxu0 %v3001_v58 }
 0x62a   : > { %2996 = vrot.lane.b32.xlu2 %v10649_v63, %s10486_s13 }
 0x630   : > { %v3440_v48 = vpop.permute.xlu0 %3439 }
 0x638   : > { %v3527_v34 = vpop.permute.xlu0 %3526 }
 0x639   : > { %5652 = vmatmul.msk.bf16.gmra.mxu3 %vm862_vm0, %v3527_v34  ;;  %v3272_v34 = vmul.f32 1.442695, %v3251_v50 }
 0x63c   : > { %v3229_v28 = vpop.xlane.xlu2 %3228 }
 0x63d   : > { %v3253_v39 = vsub.f32 %v9245_v17, %v3229_v28  ;;  %v9313_v28 = vpop.f32.mrf.mxu2 }
 0x63e   : > { %10650 = vst [vmem:[#allocation44_spill] sm:$0xff] %v9313_v28 }
 0x63f   : > { %v3276_v11 = vmul.f32 1.442695, %v3253_v39 }
 0x640   : > { %v2999_v12 = vpop.permute.xlu0 %2998 }
 0x641   : > { %3026 = vmatpush.bf16.msrb.mxu0 %v2999_v12  ;;  %6846 = vpow2.f32 %v3276_v11  ;;  %v3442_v12 = vpop.permute.xlu1 %3441  ;;  %v4044_v11 = vpop.f32.mrf.mxu1 }
 0x642   : > { %6848 = vrcp.f32 %v3295_v37 }
 0x644   : > { %v3297_v22 = vpop.xlane.xlu2 %3296 }
 0x645   : > { %6850 = vrcp.f32 %v3297_v22  ;;  %v9315_v22 = vmul.f32 0.25, %v3195_v24 }
 0x646   : > { %6852 = vpow2.f32 %v3272_v34 }
 0x647   : > { %v9308_v57 = vpop.eup %6846 }
 0x648   : > { %v3970_v58 = vpop.permute.xlu0 %3969  ;;  %3308 = vadd.xlane.f32.xlu0 %v9308_v57  ;;  %v6849_v17 = vpop.eup %6848 }
 0x649   : > { %5676 = vmatmul.msk.bf16.gmra.mxu1 %vm862_vm0, %v3970_v58  ;;  %v3342_v37 = vmul.f32 %v6849_v17, %v9201_v47  ;;  %v4046_v24 = vpop.f32.mrf.mxu1 }
 0x64b   : > { %v6851_v39 = vpop.eup %6850  ;;  %v3358_v49 = vpack.c.bf16 %v3342_v37, %v3342_v37 }
 0x64c   : > { %v3343_v40 = vmul.f32 %v6851_v39, %v9251_v7  ;;  %v3444_v20 = vpop.permute.xlu2 %3443  ;;  %v9319_v62 = vpop.eup %6852 }
 0x64d   : > { %3468 = vmatpush.bf16.msra.mxu2 %v3444_v20  ;;  %v3407_v7 = vunpack.c.l.b16 %v3358_v49  ;;  %v3601_v49 = vpop.f32.mrf.mxu3 }
 0x64e   : > { %v3359_v58 = vpack.c.bf16 %v3343_v40, %v3343_v40  ;;  %v5999_v50 = vpack.c.bf16 %v3343_v40, %v3342_v37  ;;  %v9323_v40 = vpop.f32.mrf.mxu2  ;;  %v9325_v37 = vmul.f32 0.25, %v4046_v24 }
 0x64f   : > { %10651 = vst [vmem:[#allocation34_spill] sm:$0xff] %v9323_v40 }
 0x650   : > { %6155 = vst [vmem:[%s8514_s21 + $0x140] sm:$0xff] %v5999_v50   ;;  %3244 = vmax.xlane.f32.xlu0 %v9315_v22  ;;  %v3408_v34 = vunpack.c.l.b16 %v3359_v58  ;;  %v9337_v50 = vmul.f32 0.25, %v4044_v11 }
 0x651   : > { %3469 = vmatpush.bf16.msra.mxu2 %v3442_v12 }
 0x652   : > { %v3423_v39 = vpack.c.b16 %v3408_v34, %v3407_v7  ;;  %v2813_v7 = vsub.f32 %v8747_v38, %v8956_v43  ;;  %v9357_v43 = vpop.f32.mrf.mxu0 }
 0x653   : > { %3304 = vadd.xlane.f32.xlu2 %v9319_v62  ;;  %10653 = vst [vmem:[#allocation30_spill] sm:$0xff] %v9357_v43 }
 0x654   : > { %v3231_v41 = vpop.xlane.xlu1 %3230  ;;  %v2839_v24 = vmul.f32 1.442695, %v2813_v7 }
 0x655   : > { %v3254_v47 = vsub.f32 %v9257_v33, %v3231_v41  ;;  %3470 = vmatpush.bf16.msra.mxu2 %v3440_v48  ;;  %v2814_v41 = vsub.f32 %v8763_v53, %v8970_v26  ;;  %v9333_v48 = vmul.f32 0.25, %v3601_v49 }
 0x657   : > { %v3278_v17 = vmul.f32 1.442695, %v3254_v47  ;;  %v2841_v33 = vmul.f32 1.442695, %v2814_v41 }
 0x658   : > { %3471 = vmatmul.bf16.vlgmr.msra.gmra.mxu2 %v3423_v39 }
 0x659   : > { %6854 = vpow2.f32 %v3278_v17 }
 0x65a   : > { %6856 = vpow2.f32 %v2841_v33  ;;  %v9359_v33 = vpop.f32.mrf.mxu3 }
 0x65b   : > { %4102 = vmax.xlane.f32.xlu2 %v9325_v37 }
 0x65c   : > { %v3301_v12 = vpop.xlane.xlu1 %3300 }
 0x65d   : > { %6858 = vrcp.f32 %v3301_v12  ;;  %v9355_v12 = vpop.f32.mrf.mxu1 }
 0x65f   : > { %v9328_v20 = vpop.eup %6854 }
 0x660   : > { %3310 = vadd.xlane.f32.xlu1 %v9328_v20  ;;  %v9341_v47 = vpop.eup %6856 }
 0x662   : > { %v3606_v43 = vpop.f32.mrf.mxu3 }
 0x663   : > { %3657 = vmax.xlane.f32.xlu2 %v9333_v48  ;;  %v6859_v17 = vpop.eup %6858 }
 0x664   : > { %v9335_v58 = vpop.xlane.xlu1 %3234  ;;  %v3345_v49 = vmul.f32 %v6859_v17, %v9260_v31 }
 0x668   : > { %4100 = vmax.xlane.f32.xlu1 %v9337_v50 }
 0x66b   : > { %2873 = vadd.xlane.f32.xlu2 %v9341_v47 }
 0x66c   : > { %v3237_v34 = vpop.xlane.xlu1 %3236 }
 0x66d   : > { %v3257_v53 = vsub.f32 %v9272_v9, %v3237_v34  ;;  %v9353_v9 = vpop.f32.mrf.mxu2 }
 0x66e   : > { %10652 = vst [vmem:[#allocation45_spill] sm:$0xff] %v9353_v9 }
 0x66f   : > { %v3284_v26 = vmul.f32 1.442695, %v3257_v53  ;;  %v3361_v53 = vpack.c.bf16 %v3345_v49, %v3345_v49 }
 0x671   : > { %6860 = vpow2.f32 %v3284_v26  ;;  %v3410_v9 = vunpack.c.l.b16 %v3361_v53 }
 0x673   : > { %v3299_v11 = vpop.xlane.xlu0 %3298 }
 0x674   : > { %6862 = vrcp.f32 %v3299_v11  ;;  %v9347_v39 = vpop.xlane.xlu1 %3302 }
 0x675   : > { %6864 = vpow2.f32 %v2839_v24  ;;  %v9367_v6 = vpop.f32.mrf.mxu2 }
 0x676   : > { %10654 = vst [vmem:[#allocation60_spill] sm:$0xff] %v9367_v6 }
 0x677   : > { %v9349_v41 = vpop.eup %6860 }
 0x678   : > { %3316 = vadd.xlane.f32.xlu1 %v9349_v41 }
 0x67a   : > { %v6863_v38 = vpop.eup %6862 }
 0x67b   : > { %v3344_v34 = vmul.f32 %v6863_v38, %v9276_v59  ;;  %v9363_v17 = vpop.eup %6864  ;;  %v4051_v59 = vpop.f32.mrf.mxu1 }
 0x67c   : > { %v3239_v26 = vpop.xlane.xlu1 %3238  ;;  %v9369_v38 = vpop.f32.mrf.mxu0 }
 0x67d   : > { %v3360_v7 = vpack.c.bf16 %v3344_v34, %v3344_v34  ;;  %v6004_v11 = vpack.c.bf16 %v3345_v49, %v3344_v34  ;;  %v3258_v31 = vsub.f32 %v9287_v46, %v3239_v26  ;;  %10655 = vst [vmem:[#allocation49_spill] sm:$0xff] %v9369_v38  ;;  %v9373_v46 = vmul.f32 0.25, %v4051_v59 }
 0x67f   : > { %6156 = vst [vmem:[%s8514_s21 + $0x148] sm:$0xff] %v6004_v11   ;;  %v3409_v24 = vunpack.c.l.b16 %v3360_v7  ;;  %v3286_v40 = vmul.f32 1.442695, %v3258_v31  ;;  %v3256_v11 = vsub.f32 %v9267_v13, %v9335_v58  ;;  %v9395_v13 = vpop.f32.mrf.mxu2 }
 0x680   : > { %2871 = vadd.xlane.f32.xlu1 %v9363_v17  ;;  %10657 = vst [vmem:[#allocation62_spill] sm:$0xff] %v9395_v13 }
 0x681   : > { %v3424_v28 = vpack.c.b16 %v3410_v9, %v3409_v24  ;;  %6866 = vpow2.f32 %v3286_v40  ;;  %v2816_v9 = vsub.f32 %v8817_v18, %v9004_v14  ;;  %v9386_v24 = vmul.f32 0.25, %v3606_v43 }
 0x682   : > { %v3282_v18 = vmul.f32 1.442695, %v3256_v11  ;;  %v10658_v43 = vpack.c.b16 %v9053_v5, %v9056_v44  ;;  %v10661_v44 = vld [vmem:[#allocation42_spill] sm:$0xff]  ;;  %v9422_v11 = vmul.f32 0.25, %v9359_v33  ;;  %v9435_v33 = vmul.f32 0.25, %v9355_v12 }
 0x683   : > { %3476 = vmatmul.bf16.gmra.mxu2 %v3424_v28  ;;  %v3608_v28 = vpop.f32.mrf.mxu3  ;;  %v2845_v7 = vmul.f32 1.442695, %v2816_v9  ;;  %v4054_v58 = vpop.f32.mrf.mxu1  ;;  %v10668_v12 = vpack.c.b16 %v9099_v32, %v9097_v36 }
 0x684   : > { %v9371_v49 = vpop.xlane.xlu1 %3306  ;;  %v9384_v31 = vpop.f32.mrf.mxu0  ;;  %v9388_v38 = vmul.f32 0.25, %v3608_v28  ;;  %v2817_v28 = vsub.f32 %v10661_v44, %v9012_v61 }
 0x685   : > { %v3233_v26 = vpop.xlane.xlu2 %3232  ;;  %10656 = vst [vmem:[#allocation50_spill] sm:$0xff] %v9384_v31 }
 0x686   : > { %v3255_v40 = vsub.f32 %v9295_v45, %v3233_v26 }
 0x687   : > { %v9375_v34 = vpop.eup %6866 }
 0x688   : > { %4106 = vmax.xlane.f32.xlu1 %v9373_v46  ;;  %3318 = vadd.xlane.f32.xlu2 %v9375_v34  ;;  %v3280_v53 = vmul.f32 1.442695, %v3255_v40  ;;  %v9403_v40 = vmul.f32 0.25, %v4054_v58  ;;  %v2847_v58 = vmul.f32 1.442695, %v2817_v28 }
 0x68a   : > { %6868 = vpow2.f32 %v3280_v53  ;;  %v9412_v53 = vpop.f32.mrf.mxu2 }
 0x68b   : > { %6870 = vpow2.f32 %v2845_v7  ;;  %10660 = vst [vmem:[#allocation54_spill] sm:$0xff] %v9412_v53 }
 0x68c   : > { %v3243_v59 = vpop.xlane.xlu1 %3242  ;;  %6872 = vpow2.f32 %v3282_v18  ;;  %v3611_v18 = vpop.f32.mrf.mxu3 }
 0x68d   : > { %v2997_v6 = vpop.permute.xlu2 %2996  ;;  %v3260_v14 = vsub.f32 %v9298_v52, %v3243_v59  ;;  %v9405_v52 = vpop.f32.mrf.mxu0 }
 0x68e   : > { %3027 = vmatpush.bf16.msrb.mxu0 %v2997_v6  ;;  %10659 = vst [vmem:[#allocation67_spill] sm:$0xff] %v9405_v52  ;;  %v3241_v59 = vpop.xlane.xlu0 %3240 }
 0x68f   : > { %v3290_v26 = vmul.f32 1.442695, %v3260_v14  ;;  %v10663_v14 = vpack.c.b16 %v9083_v4, %v9081_v3  ;;  %v10666_v3 = vld [vmem:[#allocation40_spill] sm:$0xff] }
 0x690   : > { %3661 = vmax.xlane.f32.xlu1 %v9386_v24  ;;  %3663 = vmax.xlane.f32.xlu2 %v9388_v38  ;;  %v9393_v45 = vpop.eup %6868  ;;  %v2815_v4 = vsub.f32 %v10666_v3, %v8994_v54 }
 0x691   : > { %3312 = vadd.xlane.f32.xlu0 %v9393_v45  ;;  %3028 = vmatmul.bf16.vlgmr.msrb.gmra.mxu0 %v10658_v43  ;;  %v9401_v9 = vpop.eup %6870  ;;  %6874 = vpow2.f32 %v3290_v26  ;;  %v3259_v43 = vsub.f32 %v9285_v21, %v3241_v59  ;;  %v9429_v26 = vmul.f32 0.25, %v3611_v18 }
 0x692   : > { %v9409_v6 = vpop.eup %6872  ;;  %v9431_v31 = vpop.f32.mrf.mxu2  ;;  %6876 = vpow2.f32 %v2847_v58  ;;  %v2843_v28 = vmul.f32 1.442695, %v2815_v4  ;;  %v10671_v4 = vpack.c.b16 %v9138_v55, %v9136_v42 }
 0x693   : > { %10664 = vst [vmem:[#allocation58_spill] sm:$0xff] %v9431_v31  ;;  %v3288_v61 = vmul.f32 1.442695, %v3259_v43 }
 0x695   : > { %v9419_v7 = vpop.f32.mrf.mxu0  ;;  %6878 = vpow2.f32 %v3288_v61  ;;  %v4056_v61 = vpop.f32.mrf.mxu1 }
 0x696   : > { %10662 = vst [vmem:[#allocation51_spill] sm:$0xff] %v9419_v7  ;;  %6880 = vpow2.f32 %v2843_v28  ;;  %v9463_v36 = vmul.f32 0.25, %v4056_v61 }
 0x697   : > { %v9414_v5 = vpop.eup %6874  ;;  %6882 = vrcp.f32 %v9371_v49 }
 0x698   : > { %2877 = vadd.xlane.f32.xlu1 %v9401_v9  ;;  %4108 = vmax.xlane.f32.xlu2 %v9403_v40  ;;  %v9442_v21 = vpop.eup %6876 }
 0x699   : > { %3314 = vadd.xlane.f32.xlu0 %v9409_v6 }
 0x69a   : > { %v9445_v59 = vpop.f32.mrf.mxu2 }
 0x69b   : > { %10667 = vst [vmem:[#allocation63_spill] sm:$0xff] %v9445_v59  ;;  %v9447_v18 = vpop.eup %6878 }
 0x69c   : > { %v9455_v54 = vpop.eup %6880 }
 0x69d   : > { %v9437_v44 = vpop.f32.mrf.mxu0  ;;  %v6883_v32 = vpop.eup %6882 }
 0x69e   : > { %10665 = vst [vmem:[#allocation57_spill] sm:$0xff] %v9437_v44 }
 0x6a0   : > { %3322 = vadd.xlane.f32.xlu1 %v9414_v5 }
 0x6a1   : > { %3659 = vmax.xlane.f32.xlu0 %v9422_v11  ;;  %3033 = vmatmul.bf16.gmra.mxu0 %v10663_v14 }
 0x6a2   : > { %v9457_v58 = vpop.f32.mrf.mxu2 }
 0x6a5   : > { %v9453_v14 = vpop.f32.mrf.mxu0 }
 0x6a6   : > { %10669 = vst [vmem:[#allocation22_spill] sm:$0xff] %v9453_v14 }
 0x6a8   : > { %3665 = vmax.xlane.f32.xlu1 %v9429_v26 }
 0x6a9   : > { %4104 = vmax.xlane.f32.xlu0 %v9435_v33 }
 0x6ad   : > { %v9461_v3 = vpop.f32.mrf.mxu0 }
 0x6ae   : > { %10670 = vst [vmem:[#allocation29_spill] sm:$0xff] %v9461_v3 }
 0x6b0   : > { %2879 = vadd.xlane.f32.xlu1 %v9442_v21 }
 0x6b1   : > { %3038 = vmatmul.bf16.gmra.mxu0 %v10668_v12  ;;  %3320 = vadd.xlane.f32.xlu0 %v9447_v18  ;;  %v9470_v12 = vpop.f32.mrf.mxu2 }
 0x6b5   : > { %v9477_v55 = vpop.f32.mrf.mxu0 }
 0x6b9   : > { %2875 = vadd.xlane.f32.xlu0 %v9455_v54 }
 0x6bb   : > { %v3309_v43 = vpop.xlane.xlu0 %3308 }
 0x6bc   : > { %6884 = vrcp.f32 %v3309_v43  ;;  %v3348_v43 = vmul.f32 %v6883_v32, %v9291_v16 }
 0x6bd   : > { %6886 = vrcp.f32 %v9347_v39 }
 0x6c1   : > { %3043 = vmatmul.bf16.gmra.mxu0 %v10671_v4  ;;  %4110 = vmax.xlane.f32.xlu0 %v9463_v36  ;;  %v2924_v4 = vpack.c.bf16 %v9227_v8, %v9227_v8 }
 0x6c2   : > { %v6885_v28 = vpop.eup %6884 }
 0x6c3   : > { %v3245_v49 = vpop.xlane.xlu0 %3244  ;;  %v3349_v14 = vmul.f32 %v6885_v28, %v9308_v57  ;;  %v6887_v42 = vpop.eup %6886  ;;  %v2923_v57 = vpack.c.bf16 %v9224_v19, %v9224_v19 }
 0x6c4   : > { %v3261_v61 = vsub.f32 %v9315_v22, %v3245_v49  ;;  %v3346_v16 = vmul.f32 %v6887_v42, %v9280_v10  ;;  %v2973_v22 = vunpack.c.l.b16 %v2924_v4  ;;  %v9485_v28 = vpop.f32.mrf.mxu2  ;;  %v9493_v10 = vpop.f32.mrf.mxu0 }
 0x6c5   : > { %v6014_v3 = vpack.c.bf16 %v3349_v14, %v3348_v43  ;;  %v2972_v49 = vunpack.c.l.b16 %v2923_v57  ;;  %v3613_v42 = vpop.f32.mrf.mxu3 }
 0x6c6   : > { %v3292_v7 = vmul.f32 1.442695, %v3261_v61  ;;  %v3305_v39 = vpop.xlane.xlu2 %3304  ;;  %v3362_v44 = vpack.c.bf16 %v3346_v16, %v3346_v16 }
 0x6c7   : > { %6888 = vrcp.f32 %v3305_v39  ;;  %6158 = vst [vmem:[%s8514_s21 + $0x158] sm:$0xff] %v6014_v3   ;;  %v2984_v8 = vpack.c.b16 %v2973_v22, %v2972_v49 }
 0x6c8   : > { %6890 = vpow2.f32 %v3292_v7  ;;  %v2818_v7 = vsub.f32 %v8854_v60, %v9022_v25  ;;  %v3411_v4 = vunpack.c.l.b16 %v3362_v44  ;;  %v3365_v25 = vpack.c.bf16 %v3349_v14, %v3349_v14 }
 0x6c9   : > { %4337 = vrot.lane.b32.xlu1 %v10638_v29, %s7319_s20 }
 0x6ca   : > { %v2849_v52 = vmul.f32 1.442695, %v2818_v7 }
 0x6cc   : > { %v9500_v60 = vpop.f32.mrf.mxu2  ;;  %6892 = vpow2.f32 %v2849_v52 }
 0x6cd   : > { %v6889_v32 = vpop.eup %6888 }
 0x6ce   : > { %v9487_v61 = vpop.eup %6890  ;;  %v3347_v39 = vmul.f32 %v6889_v32, %v9319_v62  ;;  %v4103_v59 = vpop.xlane.xlu2 %4102  ;;  %v9496_v62 = vmul.f32 0.25, %v3613_v42  ;;  %v3364_v32 = vpack.c.bf16 %v3348_v43, %v3348_v43 }
 0x6cf   : > { %3324 = vadd.xlane.f32.xlu2 %v9487_v61 }
 0x6d0   : > { %v3363_v19 = vpack.c.bf16 %v3347_v39, %v3347_v39  ;;  %v6009_v3 = vpack.c.bf16 %v3347_v39, %v3346_v16  ;;  %v3414_v39 = vunpack.c.l.b16 %v3365_v25  ;;  %v3413_v7 = vunpack.c.l.b16 %v3364_v32 }
 0x6d1   : > { %3048 = vmatmul.bf16.gmra.mxu0 %v2984_v8  ;;  %v4059_v8 = vpop.f32.mrf.mxu1 }
 0x6d2   : > { %6157 = vst [vmem:[%s8514_s21 + $0x150] sm:$0xff] %v6009_v3   ;;  %v3412_v57 = vunpack.c.l.b16 %v3363_v19  ;;  %v9505_v44 = vpop.eup %6892  ;;  %v3426_v19 = vpack.c.b16 %v3414_v39, %v3413_v7 }
 0x6d3   : > { %v3311_v22 = vpop.xlane.xlu1 %3310 }
 0x6d4   : > { %v3425_v31 = vpack.c.b16 %v3412_v57, %v3411_v4 }
 0x6d5   : > { %4339 = vrot.lane.b32.xlu0 %v10636_v35, %s7319_s20 }
 0x6d6   : > { %3481 = vmatmul.bf16.gmra.mxu2 %v3425_v31  ;;  %v9507_v16 = vpop.xlane.xlu2 %3657  ;;  %v9512_v31 = vpop.f32.mrf.mxu2 }
 0x6d7   : > { %3667 = vmax.xlane.f32.xlu2 %v9496_v62 }
 0x6d9   : > { %v4061_v3 = vpop.f32.mrf.mxu1 }
 0x6da   : > { %v9518_v43 = vmul.f32 0.25, %v4061_v3 }
 0x6db   : > { %v9510_v49 = vpop.xlane.xlu1 %4100 }
 0x6dd   : > { %3896 = vrot.lane.b32.xlu0 %v10636_v35, %s7318_s22 }
 0x6de   : > { %v2874_v35 = vpop.xlane.xlu2 %2873  ;;  %v9516_v14 = vpop.f32.mrf.mxu2 }
 0x6df   : > { %2881 = vadd.xlane.f32.xlu2 %v9505_v44  ;;  %10672 = vst [vmem:[#allocation20_spill] sm:$0xff] %v9516_v14  ;;  %6894 = vrcp.f32 %v2874_v35 }
 0x6e5   : > { %3894 = vrot.lane.b32.xlu0 %v10638_v29, %s7318_s22  ;;  %v6895_v4 = vpop.eup %6894  ;;  %v9524_v29 = vpop.f32.mrf.mxu0 }
 0x6e6   : > { %3486 = vmatmul.bf16.gmra.mxu2 %v3426_v19  ;;  %v2910_v57 = vmul.f32 %v6895_v4, %v9341_v47  ;;  %v9522_v25 = vpop.f32.mrf.mxu2 }
 0x6e7   : > { %10673 = vst [vmem:[#allocation19_spill] sm:$0xff] %v9522_v25 }
 0x6e8   : > { %v2926_v7 = vpack.c.bf16 %v2910_v57, %v2910_v57 }
 0x6ea   : > { %v2975_v53 = vunpack.c.l.b16 %v2926_v7 }
 0x6eb   : > { %v3317_v52 = vpop.xlane.xlu1 %3316 }
 0x6ed   : > { %v9534_v47 = vpop.f32.mrf.mxu0 }
 0x6f3   : > { %4114 = vmax.xlane.f32.xlu1 %v9518_v43  ;;  %v2872_v42 = vpop.xlane.xlu1 %2871 }
 0x6f4   : > { %6896 = vrcp.f32 %v2872_v42  ;;  %v9530_v42 = vpop.f32.mrf.mxu2 }
 0x6f5   : > { %10674 = vst [vmem:[#allocation31_spill] sm:$0xff] %v9530_v42  ;;  %6898 = vrcp.f32 %v3311_v22 }
 0x6f7   : > { %4335 = vrot.lane.b32.xlu2 %v10639_v15, %s7319_s20 }
 0x6fa   : > { %v6897_v32 = vpop.eup %6896 }
 0x6fb   : > { %v2909_v39 = vmul.f32 %v6897_v32, %v9363_v17  ;;  %v6899_v25 = vpop.eup %6898  ;;  %v4133_v17 = vsub.f32 %v9325_v37, %v4103_v59  ;;  %v9544_v32 = vmul.f32 0.25, %v4059_v8 }
 0x6fc   : > { %v9536_v14 = vpop.f32.mrf.mxu2 }
 0x6fd   : > { %v5984_v19 = vpack.c.bf16 %v2910_v57, %v2909_v39  ;;  %v2925_v35 = vpack.c.bf16 %v2909_v39, %v2909_v39  ;;  %10675 = vst [vmem:[#allocation64_spill] sm:$0xff] %v9536_v14  ;;  %v4150_v57 = vmul.f32 1.442695, %v4133_v17 }
 0x6ff   : > { %6152 = vst [vmem:[%s8514_s21 + $0x128] sm:$0xff] %v5984_v19   ;;  %v2974_v3 = vunpack.c.l.b16 %v2925_v35  ;;  %4333 = vrot.lane.b32.xlu2 %v10642_v2, %s7319_s20 }
 0x701   : > { %v2985_v13 = vpack.c.b16 %v2975_v53, %v2974_v3  ;;  %v3350_v53 = vmul.f32 %v6899_v25, %v9328_v20 }
 0x703   : > { %3053 = vmatmul.bf16.gmra.mxu0 %v2985_v13  ;;  %v3366_v7 = vpack.c.bf16 %v3350_v53, %v3350_v53 }
 0x704   : > { %v3313_v4 = vpop.xlane.xlu0 %3312  ;;  %v9550_v20 = vpop.f32.mrf.mxu2 }
 0x705   : > { %6900 = vrcp.f32 %v3313_v4  ;;  %10676 = vst [vmem:[#allocation21_spill] sm:$0xff] %v9550_v20  ;;  %v3415_v8 = vunpack.c.l.b16 %v3366_v7 }
 0x706   : > { %6902 = vrcp.f32 %v3317_v52 }
 0x707   : > { %3892 = vrot.lane.b32.xlu2 %v10639_v15, %s7318_s22  ;;  %v9548_v15 = vpop.xlane.xlu1 %4106 }
 0x70b   : > { %v6901_v22 = vpop.eup %6900 }
 0x70c   : > { %4331 = vrot.lane.b32.xlu1 %v10644_v30, %s7319_s20  ;;  %v3315_v13 = vpop.xlane.xlu0 %3314  ;;  %v3351_v39 = vmul.f32 %v6901_v22, %v9393_v45  ;;  %v6903_v19 = vpop.eup %6902 }
 0x70d   : > { %6904 = vrcp.f32 %v3315_v13  ;;  %v3353_v45 = vmul.f32 %v6903_v19, %v9349_v41  ;;  %v9561_v13 = vpop.f32.mrf.mxu2  ;;  %v3319_v41 = vpop.xlane.xlu2 %3318 }
 0x70e   : > { %6906 = vpow2.f32 %v4150_v57  ;;  %v3367_v37 = vpack.c.bf16 %v3351_v39, %v3351_v39  ;;  %v6019_v59 = vpack.c.bf16 %v3351_v39, %v3350_v53  ;;  %v3616_v57 = vpop.f32.mrf.mxu3  ;;  %10677 = vst [vmem:[#allocation24_spill] sm:$0xff] %v9561_v13 }
 0x70f   : > { %4112 = vmax.xlane.f32.xlu0 %v9544_v32  ;;  %v9565_v22 = vpop.xlane.xlu1 %3661  ;;  %v9569_v7 = vmul.f32 0.25, %v3616_v57  ;;  %6908 = vrcp.f32 %v3319_v41 }
 0x710   : > { %6159 = vst [vmem:[%s8514_s21 + $0x160] sm:$0xff] %v6019_v59   ;;  %v3416_v52 = vunpack.c.l.b16 %v3367_v37  ;;  %v3369_v37 = vpack.c.bf16 %v3353_v45, %v3353_v45  ;;  %v3689_v59 = vsub.f32 %v9333_v48, %v9507_v16 }
 0x712   : > { %v3427_v3 = vpack.c.b16 %v3416_v52, %v3415_v8  ;;  %v4132_v8 = vsub.f32 %v9337_v50, %v9510_v49 }
 0x713   : > { %v6905_v25 = vpop.eup %6904 }
 0x714   : > { %4329 = vrot.lane.b32.xlu1 %v10647_v56, %s7319_s20  ;;  %v3352_v35 = vmul.f32 %v6905_v25, %v9409_v6  ;;  %v3660_v4 = vpop.xlane.xlu0 %3659  ;;  %v9557_v17 = vpop.eup %6906  ;;  %3491 = vmatmul.bf16.gmra.mxu2 %v3427_v3  ;;  %v3418_v25 = vunpack.c.l.b16 %v3369_v37  ;;  %v4148_v41 = vmul.f32 1.442695, %v4132_v8 }
 0x715   : > { %v9576_v3 = vpop.f32.mrf.mxu2  ;;  %v6909_v20 = vpop.eup %6908  ;;  %v3690_v50 = vsub.f32 %v9422_v11, %v3660_v4 }
 0x716   : > { %v6024_v53 = vpack.c.bf16 %v3353_v45, %v3352_v35  ;;  %v3368_v6 = vpack.c.bf16 %v3352_v35, %v3352_v35  ;;  %v3618_v52 = vpop.f32.mrf.mxu3  ;;  %10678 = vst [vmem:[#allocation25_spill] sm:$0xff] %v9576_v3  ;;  %v3354_v48 = vmul.f32 %v6909_v20, %v9375_v34  ;;  %v9591_v11 = vpop.xlane.xlu2 %3663 }
 0x717   : > { %4182 = vadd.xlane.f32.xlu0 %v9557_v17  ;;  %v2878_v13 = vpop.xlane.xlu1 %2877  ;;  %v9578_v45 = vmul.f32 0.25, %v3618_v52 }
 0x718   : > { %6160 = vst [vmem:[%s8514_s21 + $0x168] sm:$0xff] %v6024_v53   ;;  %v3417_v19 = vunpack.c.l.b16 %v3368_v6  ;;  %v3705_v53 = vmul.f32 1.442695, %v3689_v59  ;;  %v3707_v6 = vmul.f32 1.442695, %v3690_v50 }
 0x71a   : > { %v3428_v35 = vpack.c.b16 %v3418_v25, %v3417_v19  ;;  %v3370_v19 = vpack.c.bf16 %v3354_v48, %v3354_v48 }
 0x71c   : > { %4327 = vrot.lane.b32.xlu1 %v10648_v27, %s7319_s20  ;;  %v9567_v39 = vpop.xlane.xlu0 %4104 }
 0x71d   : > { %v9583_v49 = vpop.f32.mrf.mxu2 }
 0x71e   : > { %10679 = vst [vmem:[#allocation32_spill] sm:$0xff] %v9583_v49 }
 0x71f   : > { %3669 = vmax.xlane.f32.xlu0 %v9569_v7  ;;  %v3323_v34 = vpop.xlane.xlu1 %3322 }
 0x724   : > { %v3321_v57 = vpop.xlane.xlu0 %3320  ;;  %3496 = vmatmul.bf16.gmra.mxu2 %v3428_v35  ;;  %v9596_v35 = vpop.f32.mrf.mxu0 }
 0x725   : > { %6910 = vrcp.f32 %v3321_v57  ;;  %10680 = vst [vmem:[#allocation33_spill] sm:$0xff] %v9596_v35 }
 0x726   : > { %6912 = vrcp.f32 %v2878_v13 }
 0x727   : > { %3671 = vmax.xlane.f32.xlu0 %v9578_v45  ;;  %6914 = vpow2.f32 %v3705_v53 }
 0x728   : > { %6916 = vpow2.f32 %v4148_v41 }
 0x72b   : > { %v6911_v16 = vpop.eup %6910 }
 0x72c   : > { %v3355_v37 = vmul.f32 %v6911_v16, %v9447_v18  ;;  %v2876_v59 = vpop.xlane.xlu0 %2875  ;;  %v6913_v8 = vpop.eup %6912  ;;  %v3419_v18 = vunpack.c.l.b16 %v3370_v19 }
 0x72d   : > { %6918 = vrcp.f32 %v2876_v59  ;;  %v9586_v13 = vpop.eup %6914  ;;  %v2912_v20 = vmul.f32 %v6913_v8, %v9401_v9  ;;  %v9599_v16 = vpop.f32.mrf.mxu2 }
 0x72e   : > { %v6029_v52 = vpack.c.bf16 %v3355_v37, %v3354_v48  ;;  %v3371_v25 = vpack.c.bf16 %v3355_v37, %v3355_v37  ;;  %v9588_v53 = vpop.eup %6916  ;;  %6920 = vpow2.f32 %v3707_v6  ;;  %10681 = vst [vmem:[#allocation35_spill] sm:$0xff] %v9599_v16  ;;  %v9605_v8 = vpop.xlane.xlu1 %3665 }
 0x72f   : > { %3737 = vadd.xlane.f32.xlu0 %v9586_v13  ;;  %v2928_v50 = vpack.c.bf16 %v2912_v20, %v2912_v20  ;;  %6922 = vrcp.f32 %v3323_v34 }
 0x730   : > { %6161 = vst [vmem:[%s8514_s21 + $0x170] sm:$0xff] %v6029_v52   ;;  %4180 = vadd.xlane.f32.xlu2 %v9588_v53  ;;  %v3420_v4 = vunpack.c.l.b16 %v3371_v25  ;;  %v9607_v52 = vpop.xlane.xlu2 %4108 }
 0x731   : > { %v2977_v19 = vunpack.c.l.b16 %v2928_v50 }
 0x732   : > { %v3429_v57 = vpack.c.b16 %v3420_v4, %v3419_v18  ;;  %v9609_v18 = vpop.f32.mrf.mxu0 }
 0x733   : > { %v6919_v41 = vpop.eup %6918  ;;  %10682 = vst [vmem:[#allocation28_spill] sm:$0xff] %v9609_v18 }
 0x734   : > { %v2911_v48 = vmul.f32 %v6919_v41, %v9455_v54  ;;  %v9601_v37 = vpop.eup %6920  ;;  %3501 = vmatmul.bf16.gmra.mxu2 %v3429_v57  ;;  %v4135_v54 = vsub.f32 %v9373_v46, %v9548_v15  ;;  %v9615_v57 = vpop.xlane.xlu0 %4110 }
 0x735   : > { %v9613_v4 = vpop.f32.mrf.mxu2 }
 0x736   : > { %v5989_v59 = vpack.c.bf16 %v2912_v20, %v2911_v48  ;;  %v2927_v9 = vpack.c.bf16 %v2911_v48, %v2911_v48  ;;  %10683 = vst [vmem:[#allocation36_spill] sm:$0xff] %v9613_v4  ;;  %v4064_v20 = vpop.f32.mrf.mxu1  ;;  %v4154_v41 = vmul.f32 1.442695, %v4135_v54 }
 0x737   : > { %3739 = vadd.xlane.f32.xlu0 %v9601_v37  ;;  %v9617_v48 = vmul.f32 0.25, %v4064_v20 }
 0x738   : > { %6153 = vst [vmem:[%s8514_s21 + $0x130] sm:$0xff] %v5989_v59   ;;  %v2976_v6 = vunpack.c.l.b16 %v2927_v9  ;;  %v6923_v59 = vpop.eup %6922  ;;  %v2880_v9 = vpop.xlane.xlu1 %2879 }
 0x739   : > { %v3356_v46 = vmul.f32 %v6923_v59, %v9414_v5 }
 0x73a   : > { %v2986_v25 = vpack.c.b16 %v2977_v19, %v2976_v6  ;;  %v9620_v6 = vpop.f32.mrf.mxu3 }
 0x73c   : > { %3058 = vmatmul.bf16.gmra.mxu0 %v2986_v25 }
 0x73d   : > { %v9623_v15 = vpop.f32.mrf.mxu2 }
 0x73e   : > { %10684 = vst [vmem:[#allocation38_spill] sm:$0xff] %v9623_v15 }
 0x740   : > { %v4338_v4 = vpop.permute.xlu1 %4337 }
 0x742   : > { %v3325_v50 = vpop.xlane.xlu2 %3324  ;;  %v3623_v59 = vpop.f32.mrf.mxu3 }
 0x743   : > { %6924 = vrcp.f32 %v3325_v50  ;;  %v3372_v50 = vpack.c.bf16 %v3356_v46, %v3356_v46  ;;  %v9642_v16 = vmul.f32 0.25, %v3623_v59 }
 0x744   : > { %6926 = vpow2.f32 %v4154_v41 }
 0x745   : > { %6928 = vrcp.f32 %v2880_v9 }
 0x746   : > { %4116 = vmax.xlane.f32.xlu1 %v9617_v48 }
 0x747   : > { %v4340_v34 = vpop.permute.xlu0 %4339 }
 0x748   : > { %3890 = vrot.lane.b32.xlu2 %v10642_v2, %s7318_s22  ;;  %4349 = vmatpush.bf16.msrb.mxu2 %v4340_v34  ;;  %v3691_v2 = vsub.f32 %v9386_v24, %v9565_v22  ;;  %v3421_v34 = vunpack.c.l.b16 %v3372_v50  ;;  %v4066_v24 = vpop.f32.mrf.mxu1  ;;  %v3692_v22 = vsub.f32 %v9388_v38, %v9591_v11 }
 0x749   : > { %v6925_v19 = vpop.eup %6924 }
 0x74a   : > { %v9627_v25 = vpop.eup %6926  ;;  %v3357_v54 = vmul.f32 %v6925_v19, %v9487_v61  ;;  %v9630_v20 = vpop.xlane.xlu2 %3667 }
 0x74b   : > { %3888 = vrot.lane.b32.xlu0 %v10644_v30, %s7318_s22  ;;  %v9638_v19 = vpop.f32.mrf.mxu2 }
 0x74c   : > { %v6034_v5 = vpack.c.bf16 %v3357_v54, %v3356_v46  ;;  %4350 = vmatpush.bf16.msrb.mxu2 %v4338_v4  ;;  %v3373_v41 = vpack.c.bf16 %v3357_v54, %v3357_v54  ;;  %v3709_v4 = vmul.f32 1.442695, %v3691_v2  ;;  %v6929_v54 = vpop.eup %6928 }
 0x74e   : > { %4186 = vadd.xlane.f32.xlu1 %v9627_v25  ;;  %6162 = vst [vmem:[%s8514_s21 + $0x178] sm:$0xff] %v6034_v5   ;;  %v3422_v61 = vunpack.c.l.b16 %v3373_v41  ;;  %v3711_v41 = vmul.f32 1.442695, %v3692_v22 }
 0x74f   : > { %v3897_v15 = vpop.permute.xlu0 %3896 }
 0x750   : > { %3886 = vrot.lane.b32.xlu2 %v10647_v56, %s7318_s22  ;;  %3906 = vmatpush.bf16.msra.mxu0 %v3897_v15  ;;  %v3430_v30 = vpack.c.b16 %v3422_v61, %v3421_v34  ;;  %v2913_v56 = vmul.f32 %v6929_v54, %v9442_v21  ;;  %v9650_v15 = vpop.f32.mrf.mxu0  ;;  %v4069_v11 = vpop.f32.mrf.mxu1 }
 0x751   : > { %10685 = vst [vmem:[#allocation39_spill] sm:$0xff] %v9650_v15  ;;  %v9707_v3 = vmul.f32 0.25, %v4069_v11  ;;  %v3694_v11 = vsub.f32 %v9496_v62, %v9630_v20 }
 0x752   : > { %v2882_v46 = vpop.xlane.xlu2 %2881  ;;  %3506 = vmatmul.bf16.gmra.mxu2 %v3430_v30  ;;  %v2929_v34 = vpack.c.bf16 %v2913_v56, %v2913_v56 }
 0x753   : > { %6930 = vrcp.f32 %v2882_v46  ;;  %4325 = vrot.lane.b32.xlu0 %v10649_v63, %s7319_s20  ;;  %v9652_v5 = vpop.f32.mrf.mxu2 }
 0x754   : > { %6932 = vpow2.f32 %v3709_v4  ;;  %v2978_v30 = vunpack.c.l.b16 %v2929_v34 }
 0x755   : > { %6934 = vpow2.f32 %v3711_v41 }
 0x756   : > { %3675 = vmax.xlane.f32.xlu1 %v9642_v16 }
 0x757   : > { %v3895_v9 = vpop.permute.xlu0 %3894 }
 0x758   : > { %3907 = vmatpush.bf16.msra.mxu0 %v3895_v9 }
 0x759   : > { %v6931_v50 = vpop.eup %6930 }
 0x75a   : > { %v2914_v2 = vmul.f32 %v6931_v50, %v9505_v44  ;;  %v4336_v59 = vpop.permute.xlu2 %4335  ;;  %v9655_v61 = vpop.eup %6932 }
 0x75b   : > { %3884 = vrot.lane.b32.xlu0 %v10648_v27, %s7318_s22  ;;  %4351 = vmatpush.bf16.msrb.mxu2 %v4336_v59  ;;  %v9661_v54 = vpop.f32.mrf.mxu2  ;;  %v9663_v44 = vpop.f32.mrf.mxu0 }
 0x75c   : > { %v5994_v38 = vpack.c.bf16 %v2914_v2, %v2913_v56  ;;  %v2930_v21 = vpack.c.bf16 %v2914_v2, %v2914_v2  ;;  %10686 = vst [vmem:[#allocation43_spill] sm:$0xff] %v9663_v44  ;;  %v9665_v9 = vpop.eup %6934  ;;  %v4071_v27 = vpop.f32.mrf.mxu1  ;;  %v3693_v2 = vsub.f32 %v9429_v26, %v9605_v8 }
 0x75d   : > { %v9668_v56 = vmul.f32 0.25, %v4071_v27  ;;  %v3626_v59 = vpop.f32.mrf.mxu3 }
 0x75e   : > { %3741 = vadd.xlane.f32.xlu1 %v9655_v61  ;;  %6154 = vst [vmem:[%s8514_s21 + $0x138] sm:$0xff] %v5994_v38   ;;  %v2979_v4 = vunpack.c.l.b16 %v2930_v21  ;;  %v3713_v34 = vmul.f32 1.442695, %v3693_v2  ;;  %v9675_v38 = vmul.f32 0.25, %v3626_v59 }
 0x760   : > { %v2987_v46 = vpack.c.b16 %v2979_v4, %v2978_v30  ;;  %6936 = vpow2.f32 %v3713_v34  ;;  %v4134_v4 = vsub.f32 %v9435_v33, %v9567_v39 }
 0x762   : > { %v4334_v22 = vpop.permute.xlu2 %4333  ;;  %3063 = vmatmul.bf16.gmra.mxu0 %v2987_v46  ;;  %v9684_v46 = vmul.f32 0.25, %v4066_v24 }
 0x763   : > { %4352 = vmatpush.bf16.msrb.mxu2 %v4334_v22  ;;  %v9670_v41 = vpop.f32.mrf.mxu2  ;;  %v4152_v22 = vmul.f32 1.442695, %v4134_v4 }
 0x764   : > { %v4074_v2 = vpop.f32.mrf.mxu1 }
 0x765   : > { %6938 = vpow2.f32 %v4152_v22  ;;  %v9696_v33 = vmul.f32 0.25, %v4074_v2 }
 0x766   : > { %3743 = vadd.xlane.f32.xlu1 %v9665_v9  ;;  %v9679_v30 = vpop.xlane.xlu1 %4114  ;;  %v9687_v26 = vpop.eup %6936 }
 0x76a   : > { %v3893_v50 = vpop.permute.xlu2 %3892 }
 0x76b   : > { %3908 = vmatpush.bf16.msra.mxu0 %v3893_v50  ;;  %v9677_v21 = vpop.f32.mrf.mxu2  ;;  %v9693_v50 = vmul.f32 0.25, %v9620_v6  ;;  %v9699_v34 = vpop.eup %6938  ;;  %v4136_v6 = vsub.f32 %v9403_v40, %v9607_v52 }
 0x76d   : > { %v4156_v2 = vmul.f32 1.442695, %v4136_v6  ;;  %v9725_v6 = vpop.f32.mrf.mxu0 }
 0x76e   : > { %4122 = vmax.xlane.f32.xlu1 %v9668_v56  ;;  %10689 = vst [vmem:[#allocation26_spill] sm:$0xff] %v9725_v6 }
 0x773   : > { %v9690_v27 = vpop.f32.mrf.mxu2 }
 0x775   : > { %v9737_v20 = vpop.f32.mrf.mxu0 }
 0x776   : > { %3677 = vmax.xlane.f32.xlu1 %v9675_v38  ;;  %10692 = vst [vmem:[#allocation40_spill] sm:$0xff] %v9737_v20 }
 0x779   : > { %4118 = vmax.xlane.f32.xlu2 %v9684_v46 }
 0x77b   : > { %v9705_v22 = vpop.f32.mrf.mxu2 }
 0x77c   : > { %10687 = vst [vmem:[#allocation37_spill] sm:$0xff] %v9705_v22 }
 0x77e   : > { %v4332_v8 = vpop.permute.xlu1 %4331  ;;  %3745 = vadd.xlane.f32.xlu1 %v9687_v26 }
 0x77f   : > { %4353 = vmatpush.bf16.msrb.mxu2 %v4332_v8  ;;  %v3628_v8 = vpop.f32.mrf.mxu3 }
 0x780   : > { %v9731_v42 = vmul.f32 0.25, %v3628_v8 }
 0x781   : > { %3673 = vmax.xlane.f32.xlu2 %v9693_v50 }
 0x782   : > { %v4113_v39 = vpop.xlane.xlu0 %4112 }
 0x783   : > { %v4138_v24 = vsub.f32 %v9544_v32, %v4113_v39 }
 0x785   : > { %v4160_v4 = vmul.f32 1.442695, %v4138_v24  ;;  %4184 = vadd.xlane.f32.xlu0 %v9699_v34 }
 0x786   : > { %v4330_v59 = vpop.permute.xlu1 %4329  ;;  %4124 = vmax.xlane.f32.xlu1 %v9696_v33 }
 0x787   : > { %4354 = vmatpush.bf16.msrb.mxu2 %v4330_v59  ;;  %6940 = vpow2.f32 %v4160_v4  ;;  %v3631_v24 = vpop.f32.mrf.mxu3  ;;  %v9713_v59 = vpop.f32.mrf.mxu2 }
 0x788   : > { %6942 = vpow2.f32 %v4156_v2  ;;  %10688 = vst [vmem:[#allocation27_spill] sm:$0xff] %v9713_v59  ;;  %v9719_v4 = vmul.f32 0.25, %v3631_v24 }
 0x78a   : > { %v4183_v49 = vpop.xlane.xlu0 %4182 }
 0x78d   : > { %v9709_v39 = vpop.eup %6940  ;;  %4120 = vmax.xlane.f32.xlu0 %v9707_v3 }
 0x78e   : > { %v4328_v32 = vpop.permute.xlu1 %4327  ;;  %4192 = vadd.xlane.f32.xlu1 %v9709_v39  ;;  %v9717_v52 = vpop.eup %6942 }
 0x78f   : > { %4355 = vmatpush.bf16.msrb.mxu2 %v4328_v32  ;;  %v3715_v32 = vmul.f32 1.442695, %v3694_v11 }
 0x791   : > { %6944 = vpow2.f32 %v3715_v32 }
 0x792   : > { %v9715_v40 = vpop.xlane.xlu0 %3669 }
 0x795   : > { %4188 = vadd.xlane.f32.xlu0 %v9717_v52 }
 0x796   : > { %3681 = vmax.xlane.f32.xlu1 %v9719_v4 }
 0x797   : > { %v9727_v2 = vpop.f32.mrf.mxu2  ;;  %v9741_v15 = vpop.eup %6944 }
 0x798   : > { %10690 = vst [vmem:[#allocation23_spill] sm:$0xff] %v9727_v2 }
 0x799   : > { %3882 = vrot.lane.b32.xlu2 %v10649_v63, %s7318_s22 }
 0x79a   : > { %v3672_v14 = vpop.xlane.xlu0 %3671 }
 0x79b   : > { %v3696_v24 = vsub.f32 %v9578_v45, %v3672_v14  ;;  %v4139_v14 = vsub.f32 %v9518_v43, %v9679_v30  ;;  %v9755_v43 = vpop.f32.mrf.mxu0 }
 0x79c   : > { %10694 = vst [vmem:[#allocation69_spill] sm:$0xff] %v9755_v43 }
 0x79d   : > { %v3719_v44 = vmul.f32 1.442695, %v3696_v24  ;;  %3679 = vmax.xlane.f32.xlu0 %v9731_v42  ;;  %v4162_v24 = vmul.f32 1.442695, %v4139_v14 }
 0x79f   : > { %6946 = vpow2.f32 %v3719_v44  ;;  %v9735_v62 = vpop.f32.mrf.mxu2 }
 0x7a0   : > { %10691 = vst [vmem:[#allocation42_spill] sm:$0xff] %v9735_v62  ;;  %6948 = vrcp.f32 %v4183_v49  ;;  %v4076_v49 = vpop.f32.mrf.mxu1 }
 0x7a2   : > { %v3738_v63 = vpop.xlane.xlu0 %3737 }
 0x7a3   : > { %v4181_v11 = vpop.xlane.xlu2 %4180 }
 0x7a4   : > { %6950 = vrcp.f32 %v4181_v11  ;;  %v9751_v11 = vmul.f32 0.25, %v4076_v49 }
 0x7a5   : > { %v9743_v8 = vpop.eup %6946  ;;  %6952 = vrcp.f32 %v3738_v63  ;;  %3747 = vadd.xlane.f32.xlu0 %v9741_v15 }
 0x7a6   : > { %3751 = vadd.xlane.f32.xlu1 %v9743_v8  ;;  %v6949_v45 = vpop.eup %6948 }
 0x7a7   : > { %v9749_v44 = vpop.f32.mrf.mxu2  ;;  %v4229_v63 = vmul.f32 %v6949_v45, %v9557_v17  ;;  %v4137_v17 = vsub.f32 %v9463_v36, %v9615_v57 }
 0x7a8   : > { %10693 = vst [vmem:[#allocation68_spill] sm:$0xff] %v9749_v44 }
 0x7aa   : > { %v6951_v32 = vpop.eup %6950  ;;  %v3740_v6 = vpop.xlane.xlu0 %3739 }
 0x7ab   : > { %v6953_v20 = vpop.eup %6952  ;;  %v4228_v2 = vmul.f32 %v6951_v32, %v9588_v53  ;;  %6954 = vrcp.f32 %v3740_v6  ;;  %v3891_v62 = vpop.permute.xlu2 %3890 }
 0x7ac   : > { %3909 = vmatpush.bf16.msra.mxu0 %v3891_v62  ;;  %6956 = vpow2.f32 %v4162_v24  ;;  %v3785_v59 = vmul.f32 %v6953_v20, %v9586_v13  ;;  %v3633_v32 = vpop.f32.mrf.mxu3  ;;  %v9770_v13 = vpop.f32.mrf.mxu0  ;;  %v4158_v20 = vmul.f32 1.442695, %v4137_v17  ;;  %v3695_v17 = vsub.f32 %v9569_v7, %v9715_v40 }
 0x7ad   : > { %v6079_v30 = vpack.c.bf16 %v4229_v63, %v4228_v2  ;;  %4126 = vmax.xlane.f32.xlu0 %v9751_v11  ;;  %10696 = vst [vmem:[#allocation71_spill] sm:$0xff] %v9770_v13 }
 0x7ae   : > { %v3801_v53 = vpack.c.bf16 %v3785_v59, %v3785_v59  ;;  %6958 = vpow2.f32 %v4158_v20  ;;  %v4079_v20 = vpop.f32.mrf.mxu1 }
 0x7af   : > { %6171 = vst [vmem:[%s8514_s21 + $0x1c0] sm:$0xff] %v6079_v30   ;;  %v9760_v49 = vpop.f32.mrf.mxu2 }
 0x7b0   : > { %10695 = vst [vmem:[#allocation70_spill] sm:$0xff] %v9760_v49  ;;  %v9772_v30 = vunpack.c.l.b16 %v3801_v53 }
 0x7b1   : > { %v6955_v14 = vpop.eup %6954 }
 0x7b2   : > { %v3786_v6 = vmul.f32 %v6955_v14, %v9601_v37  ;;  %v9767_v45 = vpop.eup %6956  ;;  %v4245_v14 = vpack.c.bf16 %v4229_v63, %v4229_v63 }
 0x7b3   : > { %v3887_v13 = vpop.permute.xlu2 %3886 }
 0x7b4   : > { %v3802_v24 = vpack.c.bf16 %v3786_v6, %v3786_v6  ;;  %v6039_v43 = vpack.c.bf16 %v3786_v6, %v3785_v59  ;;  %v9782_v59 = vmul.f32 0.25, %v3633_v32  ;;  %v3636_v53 = vpop.f32.mrf.mxu3 }
 0x7b5   : > { %4194 = vadd.xlane.f32.xlu0 %v9767_v45 }
 0x7b6   : > { %6163 = vst [vmem:[%s8514_s21 + $0x180] sm:$0xff] %v6039_v43   ;;  %v9775_v36 = vunpack.c.l.b16 %v3802_v24  ;;  %v4244_v24 = vpack.c.bf16 %v4228_v2, %v4228_v2 }
 0x7b7   : > { %v9780_v44 = vpop.f32.mrf.mxu2 }
 0x7b8   : > { %10697 = vst [vmem:[#allocation72_spill] sm:$0xff] %v9780_v44  ;;  %v4293_v2 = vunpack.c.l.b16 %v4244_v24 }
 0x7b9   : > { %v4117_v57 = vpop.xlane.xlu1 %4116 }
 0x7ba   : > { %v4140_v37 = vsub.f32 %v9617_v48, %v4117_v57  ;;  %v3717_v48 = vmul.f32 1.442695, %v3695_v17  ;;  %v9789_v57 = vpop.eup %6958  ;;  %v4294_v17 = vunpack.c.l.b16 %v4245_v14 }
 0x7bc   : > { %v4164_v62 = vmul.f32 1.442695, %v4140_v37  ;;  %v9791_v37 = vpop.f32.mrf.mxu0  ;;  %v3638_v63 = vpop.f32.mrf.mxu3  ;;  %v4309_v49 = vpack.c.b16 %v4294_v17, %v4293_v2 }
 0x7bd   : > { %3683 = vmax.xlane.f32.xlu0 %v9782_v59  ;;  %v3889_v43 = vpop.permute.xlu0 %3888  ;;  %10698 = vst [vmem:[#allocation73_spill] sm:$0xff] %v9791_v37  ;;  %v9806_v40 = vmul.f32 0.25, %v3638_v63  ;;  %v9818_v63 = vmul.f32 0.25, %v3636_v53 }
 0x7be   : > { %6960 = vpow2.f32 %v4164_v62  ;;  %3910 = vmatpush.bf16.msra.mxu0 %v3889_v43  ;;  %v9800_v62 = vmul.f32 0.25, %v4079_v20 }
 0x7bf   : > { %v9795_v7 = vpop.f32.mrf.mxu2  ;;  %6962 = vpow2.f32 %v3717_v48  ;;  %v4081_v48 = vpop.f32.mrf.mxu1 }
 0x7c0   : > { %10699 = vst [vmem:[#allocation74_spill] sm:$0xff] %v9795_v7  ;;  %v9812_v20 = vmul.f32 0.25, %v4081_v48 }
 0x7c1   : > { %v9787_v6 = vpop.xlane.xlu1 %4186 }
 0x7c2   : > { %4190 = vadd.xlane.f32.xlu2 %v9789_v57  ;;  %3911 = vmatpush.bf16.msra.mxu0 %v3887_v13 }
 0x7c4   : > { %v9793_v32 = vpop.eup %6960  ;;  %v9808_v13 = vpop.f32.mrf.mxu0 }
 0x7c5   : > { %4196 = vadd.xlane.f32.xlu1 %v9793_v32  ;;  %4128 = vmax.xlane.f32.xlu0 %v9800_v62  ;;  %v4326_v43 = vpop.permute.xlu0 %4325  ;;  %v9804_v22 = vpop.eup %6962  ;;  %10700 = vst [vmem:[#allocation75_spill] sm:$0xff] %v9808_v13 }
 0x7c6   : > { %4356 = vmatpush.bf16.msrb.mxu2 %v4326_v43 }
 0x7c9   : > { %v3676_v37 = vpop.xlane.xlu1 %3675  ;;  %4357 = vmatmul.bf16.vlgmr.msrb.gmra.mxu2 %v4309_v49 }
 0x7ca   : > { %3749 = vadd.xlane.f32.xlu2 %v9804_v22  ;;  %v3698_v2 = vsub.f32 %v9642_v16, %v3676_v37 }
 0x7cc   : > { %v9814_v43 = vpop.f32.mrf.mxu0  ;;  %v3723_v49 = vmul.f32 1.442695, %v3698_v2 }
 0x7cd   : > { %3687 = vmax.xlane.f32.xlu1 %v9806_v40  ;;  %v3885_v14 = vpop.permute.xlu0 %3884  ;;  %10701 = vst [vmem:[#allocation76_spill] sm:$0xff] %v9814_v43 }
 0x7ce   : > { %3912 = vmatpush.bf16.msra.mxu0 %v3885_v14 }
 0x7d1   : > { %v3742_v24 = vpop.xlane.xlu1 %3741 }
 0x7d2   : > { %4130 = vmax.xlane.f32.xlu2 %v9812_v20  ;;  %6964 = vrcp.f32 %v3742_v24 }
 0x7d4   : > { %v9821_v13 = vpop.f32.mrf.mxu0 }
 0x7d5   : > { %10702 = vst [vmem:[#allocation77_spill] sm:$0xff] %v9821_v13 }
 0x7d8   : > { %v6965_v14 = vpop.eup %6964 }
 0x7d9   : > { %v3744_v17 = vpop.xlane.xlu1 %3743  ;;  %v9824_v43 = vmul.f32 %v6965_v14, %v9655_v61 }
 0x7da   : > { %6966 = vrcp.f32 %v3744_v17  ;;  %3685 = vmax.xlane.f32.xlu2 %v9818_v63 }
 0x7db   : > { %6968 = vpow2.f32 %v3723_v49 }
 0x7dc   : > { %v9835_v24 = vpop.f32.mrf.mxu0 }
 0x7dd   : > { %10703 = vst [vmem:[#allocation78_spill] sm:$0xff] %v9835_v24 }
 0x7e0   : > { %v6967_v48 = vpop.eup %6966 }
 0x7e1   : > { %v9827_v44 = vmul.f32 %v6967_v48, %v9665_v9  ;;  %v4123_v16 = vpop.xlane.xlu1 %4122  ;;  %v9829_v37 = vpop.eup %6968 }
 0x7e2   : > { %3755 = vadd.xlane.f32.xlu2 %v9829_v37 }
 0x7e3   : > { %v6044_v53 = vpack.c.bf16 %v9827_v44, %v9824_v43 }
 0x7e4   : > { %v9839_v14 = vpop.f32.mrf.mxu0 }
 0x7e5   : > { %6164 = vst [vmem:[%s8514_s21 + $0x188] sm:$0xff] %v6044_v53  }
 0x7e6   : > { %10704 = vst [vmem:[#allocation79_spill] sm:$0xff] %v9839_v14 }
 0x7e9   : > { %v3678_v2 = vpop.xlane.xlu1 %3677 }
 0x7ea   : > { %v3699_v49 = vsub.f32 %v9675_v38, %v3678_v2 }
 0x7ec   : > { %v3725_v17 = vmul.f32 1.442695, %v3699_v49  ;;  %v4119_v61 = vpop.xlane.xlu2 %4118  ;;  %v9848_v49 = vpop.f32.mrf.mxu0 }
 0x7ed   : > { %v4141_v9 = vsub.f32 %v9684_v46, %v4119_v61  ;;  %10705 = vst [vmem:[#allocation80_spill] sm:$0xff] %v9848_v49  ;;  %v4143_v61 = vsub.f32 %v9668_v56, %v4123_v16 }
 0x7ee   : > { %6970 = vpow2.f32 %v3725_v17 }
 0x7ef   : > { %v4166_v48 = vmul.f32 1.442695, %v4141_v9 }
 0x7f1   : > { %6972 = vpow2.f32 %v4166_v48  ;;  %v3746_v53 = vpop.xlane.xlu1 %3745  ;;  %v4170_v48 = vmul.f32 1.442695, %v4143_v61 }
 0x7f2   : > { %6974 = vrcp.f32 %v9787_v6 }
 0x7f4   : > { %v9841_v13 = vpop.eup %6970  ;;  %v3674_v24 = vpop.xlane.xlu2 %3673 }
 0x7f5   : > { %3757 = vadd.xlane.f32.xlu2 %v9841_v13  ;;  %v3697_v7 = vsub.f32 %v9693_v50, %v3674_v24  ;;  %v10706_v24 = vpack.c.b16 %v9775_v36, %v9772_v30  ;;  %v3804_v36 = vpack.c.bf16 %v9827_v44, %v9827_v44 }
 0x7f7   : > { %v9846_v38 = vpop.eup %6972  ;;  %v3721_v2 = vmul.f32 1.442695, %v3697_v7 }
 0x7f8   : > { %4198 = vadd.xlane.f32.xlu0 %v9846_v38  ;;  %v4185_v46 = vpop.xlane.xlu0 %4184  ;;  %v6975_v17 = vpop.eup %6974 }
 0x7f9   : > { %6976 = vpow2.f32 %v3721_v2  ;;  %v4231_v6 = vmul.f32 %v6975_v17, %v9627_v25  ;;  %v4125_v14 = vpop.xlane.xlu1 %4124 }
 0x7fa   : > { %6978 = vrcp.f32 %v4185_v46  ;;  %v4144_v16 = vsub.f32 %v9696_v33, %v4125_v14  ;;  %v9862_v46 = vpop.f32.mrf.mxu0 }
 0x7fb   : > { %v4247_v56 = vpack.c.bf16 %v4231_v6, %v4231_v6  ;;  %6980 = vpow2.f32 %v4170_v48 }
 0x7fc   : > { %v3883_v9 = vpop.permute.xlu2 %3882  ;;  %v4172_v18 = vmul.f32 1.442695, %v4144_v16 }
 0x7fd   : > { %3913 = vmatpush.bf16.msra.mxu0 %v3883_v9  ;;  %v4296_v30 = vunpack.c.l.b16 %v4247_v56 }
 0x7ff   : > { %v9853_v50 = vpop.eup %6976 }
 0x800   : > { %v6979_v7 = vpop.eup %6978  ;;  %3753 = vadd.xlane.f32.xlu0 %v9853_v50  ;;  %3914 = vmatmul.bf16.vlgmr.msra.gmra.mxu0 %v10706_v24  ;;  %v4121_v49 = vpop.xlane.xlu0 %4120 }
 0x801   : > { %v4230_v25 = vmul.f32 %v6979_v7, %v9699_v34  ;;  %v4142_v2 = vsub.f32 %v9707_v3, %v4121_v49  ;;  %v9867_v48 = vpop.eup %6980  ;;  %v4193_v14 = vpop.xlane.xlu1 %4192  ;;  %v3803_v34 = vpack.c.bf16 %v9824_v43, %v9824_v43  ;;  %v3853_v49 = vunpack.c.l.b16 %v3804_v36 }
 0x802   : > { %v9874_v7 = vpop.f32.mrf.mxu0 }
 0x803   : > { %v6084_v17 = vpack.c.bf16 %v4231_v6, %v4230_v25  ;;  %v4168_v61 = vmul.f32 1.442695, %v4142_v2  ;;  %v4246_v9 = vpack.c.bf16 %v4230_v25, %v4230_v25  ;;  %v3852_v44 = vunpack.c.l.b16 %v3803_v34 }
 0x805   : > { %6172 = vst [vmem:[%s8514_s21 + $0x1c8] sm:$0xff] %v6084_v17   ;;  %6982 = vpow2.f32 %v4168_v61  ;;  %v4295_v35 = vunpack.c.l.b16 %v4246_v9  ;;  %v3867_v24 = vpack.c.b16 %v3853_v49, %v3852_v44 }
 0x806   : > { %6984 = vpow2.f32 %v4172_v18 }
 0x807   : > { %v4310_v33 = vpack.c.b16 %v4296_v30, %v4295_v35  ;;  %6986 = vrcp.f32 %v3746_v53 }
 0x808   : > { %4202 = vadd.xlane.f32.xlu0 %v9867_v48  ;;  %v4189_v3 = vpop.xlane.xlu0 %4188 }
 0x809   : > { %4362 = vmatmul.bf16.gmra.mxu2 %v4310_v33  ;;  %v3682_v43 = vpop.xlane.xlu1 %3681 }
 0x80a   : > { %v3701_v25 = vsub.f32 %v9719_v4, %v3682_v43  ;;  %v9882_v2 = vpop.f32.mrf.mxu0 }
 0x80b   : > { %v9872_v6 = vpop.eup %6982 }
 0x80c   : > { %4200 = vadd.xlane.f32.xlu1 %v9872_v6  ;;  %v9877_v56 = vpop.eup %6984  ;;  %v3729_v9 = vmul.f32 1.442695, %v3701_v25 }
 0x80d   : > { %v6987_v61 = vpop.eup %6986 }
 0x80e   : > { %v3789_v36 = vmul.f32 %v6987_v61, %v9687_v26 }
 0x810   : > { %4204 = vadd.xlane.f32.xlu0 %v9877_v56  ;;  %3919 = vmatmul.bf16.gmra.mxu0 %v3867_v24  ;;  %v3680_v35 = vpop.xlane.xlu0 %3679  ;;  %v3805_v34 = vpack.c.bf16 %v3789_v36, %v3789_v36 }
 0x811   : > { %v3700_v16 = vsub.f32 %v9731_v42, %v3680_v35 }
 0x812   : > { %v9888_v53 = vpop.f32.mrf.mxu0  ;;  %v3854_v26 = vunpack.c.l.b16 %v3805_v34 }
 0x813   : > { %v3727_v18 = vmul.f32 1.442695, %v3700_v16 }
 0x815   : > { %6988 = vpow2.f32 %v3727_v18 }
 0x818   : > { %v3748_v17 = vpop.xlane.xlu0 %3747 }
 0x819   : > { %6990 = vrcp.f32 %v3748_v17  ;;  %v3752_v61 = vpop.xlane.xlu1 %3751 }
 0x81a   : > { %6992 = vpow2.f32 %v3729_v9 }
 0x81b   : > { %v9884_v30 = vpop.eup %6988 }
 0x81c   : > { %3759 = vadd.xlane.f32.xlu1 %v9884_v30 }
 0x81f   : > { %v6991_v42 = vpop.eup %6990 }
 0x820   : > { %v3790_v4 = vmul.f32 %v6991_v42, %v9741_v15  ;;  %v4127_v33 = vpop.xlane.xlu0 %4126  ;;  %v9892_v35 = vpop.eup %6992 }
 0x821   : > { %v4145_v49 = vsub.f32 %v9751_v11, %v4127_v33  ;;  %v9896_v15 = vpop.f32.mrf.mxu0 }
 0x822   : > { %v6049_v44 = vpack.c.bf16 %v3790_v4, %v3789_v36  ;;  %v3806_v24 = vpack.c.bf16 %v3790_v4, %v3790_v4 }
 0x823   : > { %v4174_v16 = vmul.f32 1.442695, %v4145_v49 }
 0x824   : > { %6165 = vst [vmem:[%s8514_s21 + $0x190] sm:$0xff] %v6049_v44   ;;  %3761 = vadd.xlane.f32.xlu1 %v9892_v35  ;;  %v3855_v43 = vunpack.c.l.b16 %v3806_v24 }
 0x825   : > { %6994 = vpow2.f32 %v4174_v16 }
 0x826   : > { %v3868_v18 = vpack.c.b16 %v3855_v43, %v3854_v26  ;;  %6996 = vrcp.f32 %v4193_v14 }
 0x828   : > { %3924 = vmatmul.bf16.gmra.mxu0 %v3868_v18  ;;  %v4195_v25 = vpop.xlane.xlu0 %4194 }
 0x829   : > { %6998 = vrcp.f32 %v4195_v25  ;;  %v9910_v49 = vpop.f32.mrf.mxu0 }
 0x82a   : > { %7000 = vrcp.f32 %v4189_v3 }
 0x82b   : > { %v9898_v11 = vpop.eup %6994 }
 0x82c   : > { %4206 = vadd.xlane.f32.xlu2 %v9898_v11  ;;  %v6997_v17 = vpop.eup %6996 }
 0x82d   : > { %v9902_v36 = vmul.f32 %v6997_v17, %v9709_v39 }
 0x82f   : > { %v6999_v9 = vpop.eup %6998 }
 0x830   : > { %v9905_v42 = vmul.f32 %v6999_v9, %v9767_v45  ;;  %v3684_v14 = vpop.xlane.xlu0 %3683  ;;  %v7001_v24 = vpop.eup %7000 }
 0x831   : > { %v3702_v4 = vsub.f32 %v9782_v59, %v3684_v14  ;;  %v4232_v45 = vmul.f32 %v7001_v24, %v9717_v52  ;;  %v9921_v14 = vpop.f32.mrf.mxu0 }
 0x832   : > { %v6094_v33 = vpack.c.bf16 %v9905_v42, %v9902_v36 }
 0x833   : > { %v3731_v34 = vmul.f32 1.442695, %v3702_v4  ;;  %v4248_v17 = vpack.c.bf16 %v4232_v45, %v4232_v45 }
 0x834   : > { %6174 = vst [vmem:[%s8514_s21 + $0x1d8] sm:$0xff] %v6094_v33  }
 0x835   : > { %7002 = vpow2.f32 %v3731_v34  ;;  %v4191_v44 = vpop.xlane.xlu2 %4190 }
 0x836   : > { %7004 = vrcp.f32 %v4191_v44  ;;  %v4297_v44 = vunpack.c.l.b16 %v4248_v17 }
 0x837   : > { %7006 = vrcp.f32 %v3752_v61 }
 0x838   : > { %v9913_v39 = vpop.xlane.xlu1 %4196  ;;  %v4129_v3 = vpop.xlane.xlu0 %4128 }
 0x839   : > { %v4146_v16 = vsub.f32 %v9800_v62, %v4129_v3 }
 0x83b   : > { %v9917_v59 = vpop.eup %7002  ;;  %v4176_v26 = vmul.f32 1.442695, %v4146_v16 }
 0x83c   : > { %v7005_v43 = vpop.eup %7004  ;;  %3763 = vadd.xlane.f32.xlu0 %v9917_v59 }
 0x83d   : > { %v4233_v18 = vmul.f32 %v7005_v43, %v9789_v57  ;;  %7008 = vpow2.f32 %v4176_v26  ;;  %v3750_v25 = vpop.xlane.xlu2 %3749  ;;  %v7007_v9 = vpop.eup %7006 }
 0x83e   : > { %7010 = vrcp.f32 %v3750_v25  ;;  %v3792_v33 = vmul.f32 %v7007_v9, %v9743_v8  ;;  %v9930_v43 = vpop.f32.mrf.mxu0 }
 0x83f   : > { %v6089_v52 = vpack.c.bf16 %v4233_v18, %v4232_v45  ;;  %v4249_v4 = vpack.c.bf16 %v4233_v18, %v4233_v18 }
 0x840   : > { %v3688_v61 = vpop.xlane.xlu1 %3687 }
 0x841   : > { %v3704_v62 = vsub.f32 %v9806_v40, %v3688_v61  ;;  %6173 = vst [vmem:[%s8514_s21 + $0x1d0] sm:$0xff] %v6089_v52   ;;  %v4298_v24 = vunpack.c.l.b16 %v4249_v4  ;;  %v3808_v40 = vpack.c.bf16 %v3792_v33, %v3792_v33  ;;  %v4251_v4 = vpack.c.bf16 %v9905_v42, %v9905_v42 }
 0x843   : > { %v3735_v34 = vmul.f32 1.442695, %v3704_v62  ;;  %v9926_v57 = vpop.eup %7008  ;;  %v4311_v3 = vpack.c.b16 %v4298_v24, %v4297_v44  ;;  %v3857_v61 = vunpack.c.l.b16 %v3808_v40  ;;  %v9936_v62 = vpop.f32.mrf.mxu2  ;;  %v4300_v44 = vunpack.c.l.b16 %v4251_v4 }
 0x844   : > { %v7011_v16 = vpop.eup %7010  ;;  %4208 = vadd.xlane.f32.xlu2 %v9926_v57 }
 0x845   : > { %v3791_v26 = vmul.f32 %v7011_v16, %v9804_v22  ;;  %7012 = vpow2.f32 %v3735_v34  ;;  %v4131_v45 = vpop.xlane.xlu2 %4130  ;;  %4367 = vmatmul.bf16.gmra.mxu2 %v4311_v3 }
 0x846   : > { %v4147_v8 = vsub.f32 %v9812_v20, %v4131_v45  ;;  %v4250_v20 = vpack.c.bf16 %v9902_v36, %v9902_v36  ;;  %v9946_v3 = vpop.f32.mrf.mxu0  ;;  %v6306_v36 = vpack.i.bf16 %v9470_v12, %v9457_v58 }
 0x847   : > { %v6054_v18 = vpack.c.bf16 %v3792_v33, %v3791_v26  ;;  %v3807_v25 = vpack.c.bf16 %v3791_v26, %v3791_v26 }
 0x848   : > { %v4178_v17 = vmul.f32 1.442695, %v4147_v8  ;;  %v4299_v26 = vunpack.c.l.b16 %v4250_v20 }
 0x849   : > { %6166 = vst [vmem:[%s8514_s21 + $0x198] sm:$0xff] %v6054_v18   ;;  %v3856_v9 = vunpack.c.l.b16 %v3807_v25 }
 0x84a   : > { %7014 = vpow2.f32 %v4178_v17  ;;  %v4312_v42 = vpack.c.b16 %v4300_v44, %v4299_v26  ;;  %v6296_v17 = vpack.i.bf16 %v9129_v1, %v9119_v0 }
 0x84b   : > { %v9934_v52 = vpop.eup %7012  ;;  %v3869_v22 = vpack.c.b16 %v3857_v61, %v3856_v9  ;;  %v9949_v45 = vpop.f32.mrf.mxu2 }
 0x84c   : > { %3767 = vadd.xlane.f32.xlu2 %v9934_v52 }
 0x84d   : > { %v3686_v34 = vpop.xlane.xlu2 %3685  ;;  %3929 = vmatmul.bf16.gmra.mxu0 %v3869_v22  ;;  %v6301_v22 = vpack.i.bf16 %v9493_v10, %v9477_v55 }
 0x84e   : > { %v3703_v33 = vsub.f32 %v9818_v63, %v3686_v34  ;;  %v9953_v8 = vpop.f32.mrf.mxu0  ;;  %v6311_v34 = vpack.i.bf16 %v9652_v5, %v9638_v19 }
 0x850   : > { %v9944_v24 = vpop.eup %7014  ;;  %v3733_v16 = vmul.f32 1.442695, %v3703_v33 }
 0x851   : > { %4210 = vadd.xlane.f32.xlu1 %v9944_v24 }
 0x852   : > { %7016 = vpow2.f32 %v3733_v16 }
 0x853   : > { %v4358_v63 = vpop.f32.mrf.mxu2  ;;  %7018 = vrcp.f32 %v9913_v39  ;;  %v6336_v39 = vpack.i.bf16 %v9500_v60, %v9485_v28 }
 0x855   : > { %4372 = vmatmul.bf16.gmra.mxu2 %v4312_v42  ;;  %v3756_v4 = vpop.xlane.xlu2 %3755 }
 0x856   : > { %v9958_v18 = vpop.f32.mrf.mxu0 }
 0x858   : > { %v9951_v40 = vpop.eup %7016 }
 0x859   : > { %3765 = vadd.xlane.f32.xlu0 %v9951_v40  ;;  %v7019_v12 = vpop.eup %7018 }
 0x85a   : > { %v4236_v0 = vmul.f32 %v7019_v12, %v9793_v32 }
 0x85b   : > { %v4360_v25 = vpop.f32.mrf.mxu2 }
 0x85c   : > { %v6321_v61 = vpack.i.bf16 %v4360_v25, %v4358_v63  ;;  %v4252_v20 = vpack.c.bf16 %v4236_v0, %v4236_v0 }
 0x85e   : > { %v9964_v9 = vpop.f32.mrf.mxu0  ;;  %v4301_v28 = vunpack.c.l.b16 %v4252_v20 }
 0x864   : > { %6307 = vrot.lane.b32.xlu2 %v6306_v36, %s7317_s14 }
 0x866   : > { %v9978_v44 = vpop.f32.mrf.mxu0 }
 0x86a   : > { %6297 = vrot.lane.b32.xlu1 %v6296_v17, %s7319_s20 }
 0x86b   : > { %v4199_v58 = vpop.xlane.xlu0 %4198 }
 0x86c   : > { %7020 = vrcp.f32 %v4199_v58  ;;  %6322 = vrot.lane.b32.xlu2 %v6321_v61, %s7317_s14 }
 0x86d   : > { %6302 = vrot.lane.b32.xlu0 %v6301_v22, %s7318_s22  ;;  %7022 = vrcp.f32 %v3756_v4 }
 0x872   : > { %v7021_v1 = vpop.eup %7020 }
 0x873   : > { %v4237_v55 = vmul.f32 %v7021_v1, %v9846_v38  ;;  %v3754_v10 = vpop.xlane.xlu0 %3753  ;;  %v7023_v33 = vpop.eup %7022  ;;  %v6326_v38 = vpack.i.bf16 %v9161_v51, %v9153_v23  ;;  %v6341_v23 = vpack.i.bf16 %v9670_v41, %v9661_v54 }
 0x874   : > { %7024 = vrcp.f32 %v3754_v10  ;;  %6337 = vrot.lane.b32.xlu2 %v6336_v39, %s7317_s14  ;;  %v3794_v26 = vmul.f32 %v7023_v33, %v9829_v37  ;;  %v3758_v39 = vpop.xlane.xlu2 %3757  ;;  %v10707_v33 = vld [vmem:[#allocation61_spill] sm:$0xff] }
 0x875   : > { %v6099_v16 = vpack.c.bf16 %v4237_v55, %v4236_v0  ;;  %6312 = vrot.lane.b32.xlu0 %v6311_v34, %s7319_s20  ;;  %v4253_v32 = vpack.c.bf16 %v4237_v55, %v4237_v55 }
 0x876   : > { %v3810_v36 = vpack.c.bf16 %v3794_v26, %v3794_v26 }
 0x877   : > { %6175 = vst [vmem:[%s8514_s21 + $0x1e0] sm:$0xff] %v6099_v16   ;;  %v4302_v60 = vunpack.c.l.b16 %v4253_v32  ;;  %v10708_v16 = vld [vmem:[#allocation59_spill] sm:$0xff] }
 0x878   : > { %v3859_v4 = vunpack.c.l.b16 %v3810_v36  ;;  %v6356_v54 = vpack.i.bf16 %v10708_v16, %v10707_v33 }
 0x879   : > { %v4313_v19 = vpack.c.b16 %v4302_v60, %v4301_v28 }
 0x87a   : > { %v7025_v5 = vpop.eup %7024 }
 0x87b   : > { %v3793_v42 = vmul.f32 %v7025_v5, %v9853_v50  ;;  %4377 = vmatmul.bf16.gmra.mxu2 %v4313_v19  ;;  %v4203_v63 = vpop.xlane.xlu0 %4202  ;;  %v6371_v5 = vpack.i.bf16 %v9690_v27, %v9677_v21  ;;  %v10709_v27 = vld [vmem:[#allocation65_spill] sm:$0xff] }
 0x87c   : > { %7026 = vrcp.f32 %v4203_v63 }
 0x87d   : > { %v6059_v25 = vpack.c.bf16 %v3794_v26, %v3793_v42  ;;  %v3915_v17 = vpop.f32.mrf.mxu0  ;;  %6327 = vrot.lane.b32.xlu0 %v6326_v38, %s7319_s20  ;;  %v3809_v37 = vpack.c.bf16 %v3793_v42, %v3793_v42 }
 0x87f   : > { %6167 = vst [vmem:[%s8514_s21 + $0x1a0] sm:$0xff] %v6059_v25   ;;  %v4201_v61 = vpop.xlane.xlu1 %4200  ;;  %v3858_v22 = vunpack.c.l.b16 %v3809_v37 }
 0x880   : > { %7028 = vrcp.f32 %v4201_v61 }
 0x881   : > { %v3870_v58 = vpack.c.b16 %v3859_v4, %v3858_v22  ;;  %7030 = vrcp.f32 %v3758_v39 }
 0x882   : > { %v7027_v12 = vpop.eup %7026 }
 0x883   : > { %v4239_v51 = vmul.f32 %v7027_v12, %v9867_v48  ;;  %3934 = vmatmul.bf16.gmra.mxu0 %v3870_v58  ;;  %v10711_v12 = vld [vmem:[#allocation20_spill] sm:$0xff] }
 0x885   : > { %v3917_v50 = vpop.f32.mrf.mxu0  ;;  %6342 = vrot.lane.b32.xlu0 %v6341_v23, %s7319_s20  ;;  %v4255_v55 = vpack.c.bf16 %v4239_v51, %v4239_v51  ;;  %v6366_v23 = vpack.i.bf16 %v10711_v12, %v9512_v31  ;;  %v10723_v12 = vld [vmem:[#allocation45_spill] sm:$0xff] }
 0x886   : > { %v7029_v0 = vpop.eup %7028  ;;  %v6316_v1 = vpack.i.bf16 %v3917_v50, %v3915_v17  ;;  %v10713_v50 = vld [vmem:[#allocation28_spill] sm:$0xff] }
 0x887   : > { %v4238_v34 = vmul.f32 %v7029_v0, %v9872_v6  ;;  %v4304_v48 = vunpack.c.l.b16 %v4255_v55  ;;  %v6331_v6 = vpack.i.bf16 %v9534_v47, %v9524_v29  ;;  %v7031_v19 = vpop.eup %7030  ;;  %v4205_v29 = vpop.xlane.xlu0 %4204  ;;  %v10715_v55 = vld [vmem:[#allocation27_spill] sm:$0xff] }
 0x888   : > { %6317 = vrot.lane.b32.xlu1 %v6316_v1, %s7318_s22  ;;  %v3795_v38 = vmul.f32 %v7031_v19, %v9841_v13  ;;  %v10710_v13 = vld [vmem:[#allocation66_spill] sm:$0xff] }
 0x889   : > { %v6104_v10 = vpack.c.bf16 %v4239_v51, %v4238_v34  ;;  %v4254_v20 = vpack.c.bf16 %v4238_v34, %v4238_v34  ;;  %v6386_v22 = vpack.i.bf16 %v10710_v13, %v10709_v27  ;;  %v10712_v51 = vld [vmem:[#allocation33_spill] sm:$0xff]  ;;  %v5788_v13 = vld [vmem:[#allocation7 + $0x18] sm:$0xff] }
 0x88a   : > { %v3811_v37 = vpack.c.bf16 %v3795_v38, %v3795_v38  ;;  %v6361_v0 = vpack.i.bf16 %v10713_v50, %v10712_v51  ;;  %v10714_v34 = vld [vmem:[#allocation37_spill] sm:$0xff]  ;;  %4961 = vmatpush.bf16.msra.mxu3 %v5788_v13 }
 0x88b   : > { %6176 = vst [vmem:[%s8514_s21 + $0x1e8] sm:$0xff] %v6104_v10   ;;  %v4303_v41 = vunpack.c.l.b16 %v4254_v20  ;;  %v6401_v10 = vpack.i.bf16 %v10715_v55, %v10714_v34 }
 0x88c   : > { %v4363_v32 = vpop.f32.mrf.mxu2  ;;  %v3860_v4 = vunpack.c.l.b16 %v3811_v37  ;;  %v10722_v37 = vld [vmem:[#allocation43_spill] sm:$0xff] }
 0x88d   : > { %v3920_v26 = vpop.f32.mrf.mxu0  ;;  %6357 = vrot.lane.b32.xlu0 %v6356_v54, %s7319_s20  ;;  %v4314_v28 = vpack.c.b16 %v4304_v48, %v4303_v41 }
 0x88f   : > { %v3760_v60 = vpop.xlane.xlu1 %3759  ;;  %4382 = vmatmul.bf16.gmra.mxu2 %v4314_v28  ;;  %v10717_v28 = vld [vmem:[#allocation34_spill] sm:$0xff] }
 0x890   : > { %7032 = vrcp.f32 %v3760_v60  ;;  %6332 = vrot.lane.b32.xlu1 %v6331_v6, %s7318_s22 }
 0x891   : > { %7034 = vrcp.f32 %v4205_v29 }
 0x894   : > { %v4365_v42 = vpop.f32.mrf.mxu2 }
 0x895   : > { %v6351_v63 = vpack.i.bf16 %v4365_v42, %v4363_v32  ;;  %v3922_v36 = vpop.f32.mrf.mxu0  ;;  %6372 = vrot.lane.b32.xlu0 %v6371_v5, %s7319_s20 }
 0x896   : > { %v7033_v25 = vpop.eup %7032  ;;  %v6346_v17 = vpack.i.bf16 %v3922_v36, %v3920_v26  ;;  %v10716_v26 = vld [vmem:[#allocation44_spill] sm:$0xff]  ;;  %v10718_v36 = vld [vmem:[#allocation42_spill] sm:$0xff] }
 0x897   : > { %v3796_v47 = vmul.f32 %v7033_v25, %v9884_v30  ;;  %6352 = vrot.lane.b32.xlu2 %v6351_v63, %s7317_s14  ;;  %v7035_v39 = vpop.eup %7034  ;;  %v3762_v16 = vpop.xlane.xlu1 %3761  ;;  %v6416_v6 = vpack.i.bf16 %v10717_v28, %v10716_v26  ;;  %v10719_v25 = vld [vmem:[#allocation23_spill] sm:$0xff] }
 0x898   : > { %6347 = vrot.lane.b32.xlu1 %v6346_v17, %s7318_s22  ;;  %v4240_v31 = vmul.f32 %v7035_v39, %v9877_v56  ;;  %v10720_v17 = vpack.i.bf16 %v10718_v36, %v10719_v25 }
 0x899   : > { %v6064_v61 = vpack.c.bf16 %v3796_v47, %v3795_v38  ;;  %v3812_v21 = vpack.c.bf16 %v3796_v47, %v3796_v47  ;;  %v10721_v47 = vld [vmem:[#allocation39_spill] sm:$0xff] }
 0x89a   : > { %v4256_v41 = vpack.c.bf16 %v4240_v31, %v4240_v31 }
 0x89b   : > { %6168 = vst [vmem:[%s8514_s21 + $0x1a8] sm:$0xff] %v6064_v61   ;;  %v3861_v58 = vunpack.c.l.b16 %v3812_v21  ;;  %v6391_v61 = vpack.i.bf16 %v10722_v37, %v10721_v47 }
 0x89c   : > { %v4305_v60 = vunpack.c.l.b16 %v4256_v41 }
 0x89d   : > { %6387 = vrot.lane.b32.xlu0 %v6386_v22, %s7319_s20  ;;  %v3871_v30 = vpack.c.b16 %v3861_v58, %v3860_v4  ;;  %v5787_v58 = vld [vmem:[#allocation7 + $0x10] sm:$0xff] }
 0x89e   : > { %4962 = vmatpush.bf16.msra.mxu3 %v5787_v58 }
 0x89f   : > { %6367 = vrot.lane.b32.xlu2 %v6366_v23, %s7317_s14  ;;  %v4207_v1 = vpop.xlane.xlu2 %4206  ;;  %3939 = vmatmul.bf16.gmra.mxu0 %v3871_v30  ;;  %v10724_v23 = vld [vmem:[#allocation60_spill] sm:$0xff] }
 0x8a0   : > { %7036 = vrcp.f32 %v4207_v1  ;;  %6362 = vrot.lane.b32.xlu1 %v6361_v0, %s7318_s22  ;;  %v6446_v30 = vpack.i.bf16 %v10724_v23, %v10723_v12  ;;  %v5785_v1 = vld [vmem:[#allocation7] sm:$0xff] }
 0x8a1   : > { %7038 = vrcp.f32 %v3762_v16  ;;  %v10733_v12 = vld [vmem:[#allocation19_spill] sm:$0xff] }
 0x8a5   : > { %v3925_v20 = vpop.f32.mrf.mxu0  ;;  %6402 = vrot.lane.b32.xlu0 %v6401_v10, %s7319_s20  ;;  %v10725_v10 = vld [vmem:[#allocation70_spill] sm:$0xff] }
 0x8a6   : > { %v7037_v33 = vpop.eup %7036 }
 0x8a7   : > { %v4241_v54 = vmul.f32 %v7037_v33, %v9898_v11  ;;  %v7039_v63 = vpop.eup %7038 }
 0x8a8   : > { %v3797_v11 = vmul.f32 %v7039_v63, %v9892_v35 }
 0x8a9   : > { %v6109_v48 = vpack.c.bf16 %v4241_v54, %v4240_v31  ;;  %v4257_v32 = vpack.c.bf16 %v4241_v54, %v4241_v54  ;;  %v10726_v31 = vld [vmem:[#allocation68_spill] sm:$0xff] }
 0x8aa   : > { %v3813_v27 = vpack.c.bf16 %v3797_v11, %v3797_v11 }
 0x8ab   : > { %6177 = vst [vmem:[%s8514_s21 + $0x1f0] sm:$0xff] %v6109_v48   ;;  %v4306_v19 = vunpack.c.l.b16 %v4257_v32  ;;  %v10728_v48 = vld [vmem:[#allocation62_spill] sm:$0xff] }
 0x8ac   : > { %v3862_v51 = vunpack.c.l.b16 %v3813_v27  ;;  %v10729_v32 = vld [vmem:[#allocation54_spill] sm:$0xff] }
 0x8ad   : > { %v3927_v5 = vpop.f32.mrf.mxu0  ;;  %6417 = vrot.lane.b32.xlu0 %v6416_v6, %s7319_s20  ;;  %v4315_v56 = vpack.c.b16 %v4306_v19, %v4305_v60  ;;  %v6476_v26 = vpack.i.bf16 %v10729_v32, %v10728_v48 }
 0x8ae   : > { %v6376_v38 = vpack.i.bf16 %v3927_v5, %v3925_v20  ;;  %v10727_v20 = vpack.i.bf16 %v10725_v10, %v10726_v31 }
 0x8af   : > { %4387 = vmatmul.bf16.gmra.mxu2 %v4315_v56  ;;  %v3764_v42 = vpop.xlane.xlu0 %3763 }
 0x8b0   : > { %7040 = vrcp.f32 %v3764_v42  ;;  %6377 = vrot.lane.b32.xlu1 %v6376_v38, %s7318_s22 }
 0x8b5   : > { %6432 = vrot.lane.b32.xlu0 %v10720_v17, %s7319_s20  ;;  %v5792_v17 = vld [vmem:[#allocation8 + $0x18] sm:$0xff] }
 0x8b6   : > { %v7041_v29 = vpop.eup %7040  ;;  %5086 = vmatpush.bf16.msrb.mxu0 %v5792_v17 }
 0x8b7   : > { %v3798_v21 = vmul.f32 %v7041_v29, %v9917_v59  ;;  %v4209_v35 = vpop.xlane.xlu2 %4208  ;;  %v5786_v59 = vld [vmem:[#allocation7 + $0x8] sm:$0xff] }
 0x8b8   : > { %6392 = vrot.lane.b32.xlu1 %v6391_v61, %s7318_s22  ;;  %7042 = vrcp.f32 %v4209_v35  ;;  %4963 = vmatpush.bf16.msra.mxu3 %v5786_v59  ;;  %v5791_v61 = vld [vmem:[#allocation8 + $0x10] sm:$0xff] }
 0x8b9   : > { %v6069_v22 = vpack.c.bf16 %v3798_v21, %v3797_v11  ;;  %v3814_v4 = vpack.c.bf16 %v3798_v21, %v3798_v21  ;;  %v10731_v21 = vld [vmem:[#allocation72_spill] sm:$0xff] }
 0x8ba   : > { %5087 = vmatpush.bf16.msrb.mxu0 %v5791_v61 }
 0x8bb   : > { %6169 = vst [vmem:[%s8514_s21 + $0x1b0] sm:$0xff] %v6069_v22   ;;  %v3863_v50 = vunpack.c.l.b16 %v3814_v4 }
 0x8bc   : > { %4964 = vmatpush.bf16.msra.mxu3 %v5785_v1  ;;  %v10737_v1 = vld [vmem:[#allocation58_spill] sm:$0xff] }
 0x8bd   : > { %6447 = vrot.lane.b32.xlu0 %v6446_v30, %s7319_s20  ;;  %v3872_v0 = vpack.c.b16 %v3863_v50, %v3862_v51  ;;  %v5790_v51 = vld [vmem:[#allocation8 + $0x8] sm:$0xff]  ;;  %v10735_v50 = vld [vmem:[#allocation26_spill] sm:$0xff] }
 0x8be   : > { %v7043_v55 = vpop.eup %7042  ;;  %5088 = vmatpush.bf16.msrb.mxu0 %v5790_v51 }
 0x8bf   : > { %3944 = vmatmul.bf16.gmra.mxu0 %v3872_v0  ;;  %v3768_v39 = vpop.xlane.xlu2 %3767  ;;  %v4242_v33 = vmul.f32 %v7043_v55, %v9926_v57  ;;  %v10736_v0 = vld [vmem:[#allocation40_spill] sm:$0xff] }
 0x8c0   : > { %v6421_v59 = vpack.i.bf16 %v10736_v0, %v10735_v50 }
 0x8c1   : > { %v4258_v60 = vpack.c.bf16 %v4242_v33, %v4242_v33 }
 0x8c3   : > { %v4307_v42 = vunpack.c.l.b16 %v4258_v60  ;;  %v10740_v60 = vld [vmem:[#allocation41_spill] sm:$0xff] }
 0x8c4   : > { %v4211_v34 = vpop.xlane.xlu1 %4210 }
 0x8c5   : > { %7044 = vrcp.f32 %v4211_v34  ;;  %6462 = vrot.lane.b32.xlu0 %v10727_v20, %s7319_s20 }
 0x8c6   : > { %7046 = vrcp.f32 %v3768_v39  ;;  %v10738_v39 = vld [vmem:[#allocation63_spill] sm:$0xff] }
 0x8c7   : > { %v6506_v34 = vpack.i.bf16 %v10738_v39, %v10737_v1  ;;  %v6308_v10 = vpop.permute.xlu2 %6307 }
 0x8c8   : > { %v4368_v16 = vpop.f32.mrf.mxu2 }
 0x8ca   : > { %v3930_v54 = vpop.f32.mrf.mxu0 }
 0x8cb   : > { %v7045_v41 = vpop.eup %7044 }
 0x8cc   : > { %v4243_v28 = vmul.f32 %v7045_v41, %v9944_v24  ;;  %v3766_v6 = vpop.xlane.xlu0 %3765  ;;  %v7047_v19 = vpop.eup %7046 }
 0x8cd   : > { %7048 = vrcp.f32 %v3766_v6  ;;  %6477 = vrot.lane.b32.xlu0 %v6476_v26, %s7319_s20  ;;  %v3800_v38 = vmul.f32 %v7047_v19, %v9934_v52  ;;  %v10730_v52 = vld [vmem:[#allocation74_spill] sm:$0xff]  ;;  %v6309_v26 = vunpack.i.l.bf16 %v6308_v10 }
 0x8ce   : > { %v6114_v5 = vpack.c.bf16 %v4243_v28, %v4242_v33  ;;  %v4259_v56 = vpack.c.bf16 %v4243_v28, %v4243_v28  ;;  %v10732_v27 = vpack.i.bf16 %v10730_v52, %v10731_v21  ;;  %v5789_v33 = vld [vmem:[#allocation8] sm:$0xff]  ;;  %v10739_v28 = vld [vmem:[#allocation46_spill] sm:$0xff] }
 0x8cf   : > { %v3816_v37 = vpack.c.bf16 %v3800_v38, %v3800_v38  ;;  %5089 = vmatpush.bf16.msrb.mxu0 %v5789_v33  ;;  %v10745_v33 = vld [vmem:[#allocation47_spill] sm:$0xff] }
 0x8d0   : > { %6178 = vst [vmem:[%s8514_s21 + $0x1f8] sm:$0xff] %v6114_v5   ;;  %v4370_v57 = vpop.f32.mrf.mxu2  ;;  %v4308_v63 = vunpack.c.l.b16 %v4259_v56 }
 0x8d1   : > { %v6381_v11 = vpack.i.bf16 %v4370_v57, %v4368_v16  ;;  %v3865_v35 = vunpack.c.l.b16 %v3816_v37  ;;  %v6521_v57 = vpack.i.bf16 %v9949_v45, %v9936_v62 }
 0x8d2   : > { %v3932_v36 = vpop.f32.mrf.mxu0  ;;  %v4316_v25 = vpack.c.b16 %v4308_v63, %v4307_v42 }
 0x8d3   : > { %v7049_v24 = vpop.eup %7048  ;;  %v6406_v29 = vpack.i.bf16 %v3932_v36, %v3930_v54  ;;  %6382 = vrot.lane.b32.xlu2 %v6381_v11, %s7317_s14  ;;  %v6310_v54 = vunpack.i.h.bf16 %v6308_v10  ;;  %v10741_v36 = vld [vmem:[#allocation64_spill] sm:$0xff] }
 0x8d4   : > { %v3799_v47 = vmul.f32 %v7049_v24, %v9951_v40  ;;  %4392 = vmatmul.bf16.gmra.mxu2 %v4316_v25  ;;  %v10734_v40 = vld [vmem:[#allocation31_spill] sm:$0xff]  ;;  %v10742_v25 = vld [vmem:[#allocation21_spill] sm:$0xff] }
 0x8d5   : > { %6407 = vrot.lane.b32.xlu1 %v6406_v29, %s7318_s22  ;;  %6492 = vrot.lane.b32.xlu0 %v10732_v27, %s7319_s20  ;;  %v6396_v23 = vpack.i.bf16 %v10734_v40, %v10733_v12  ;;  %v6426_v17 = vpack.i.bf16 %v10742_v25, %v10741_v36  ;;  %v6323_v29 = vpop.permute.xlu2 %6322 }
 0x8d6   : > { %v6074_v13 = vpack.c.bf16 %v3800_v38, %v3799_v47  ;;  %v3815_v22 = vpack.c.bf16 %v3799_v47, %v3799_v47  ;;  %v6325_v21 = vunpack.i.h.bf16 %v6323_v29  ;;  %v6324_v27 = vunpack.i.l.bf16 %v6323_v29  ;;  %v10747_v29 = vld [vmem:[#allocation80_spill] sm:$0xff] }
 0x8d8   : > { %6170 = vst [vmem:[%s8514_s21 + $0x1b8] sm:$0xff] %v6074_v13   ;;  %v4373_v4 = vpop.f32.mrf.mxu2  ;;  %v3864_v58 = vunpack.c.l.b16 %v3815_v22  ;;  %v10743_v13 = vld [vmem:[#allocation79_spill] sm:$0xff] }
 0x8da   : > { %v3873_v30 = vpack.c.b16 %v3865_v35, %v3864_v58 }
 0x8db   : > { %6397 = vrot.lane.b32.xlu2 %v6396_v23, %s7317_s14 }
 0x8dc   : > { %v6298_v55 = vpop.permute.xlu1 %6297  ;;  %3949 = vmatmul.bf16.gmra.mxu0 %v3873_v30 }
 0x8dd   : > { %v6300_v31 = vunpack.i.h.bf16 %v6298_v55  ;;  %v6299_v20 = vunpack.i.l.bf16 %v6298_v55  ;;  %6422 = vrot.lane.b32.xlu1 %v6421_v59, %s7318_s22  ;;  %6507 = vrot.lane.b32.xlu0 %v6506_v34, %s7319_s20  ;;  %v6338_v51 = vpop.permute.xlu2 %6337 }
 0x8df   : > { %v6303_v16 = vpop.permute.xlu0 %6302  ;;  %v4591_v6 = vsel %vm862_vm0, %v10739_v28, %v6300_v31  ;;  %v4590_v19 = vsel %vm862_vm0, %v10740_v60, %v6299_v20  ;;  %v6340_v31 = vunpack.i.h.bf16 %v6338_v51  ;;  %v6339_v20 = vunpack.i.l.bf16 %v6338_v51 }
 0x8e0   : > { %v6305_v41 = vunpack.i.h.bf16 %v6303_v16  ;;  %v6304_v48 = vunpack.i.l.bf16 %v6303_v16  ;;  %v4375_v32 = vpop.f32.mrf.mxu2 }
 0x8e1   : > { %v6411_v5 = vpack.i.bf16 %v4375_v32, %v4373_v4  ;;  %v10744_v4 = vld [vmem:[#allocation78_spill] sm:$0xff] }
 0x8e2   : > { %v4608_v56 = vsel %vm4606_vm1, %v4591_v6, %v6305_v41  ;;  %v4607_v38 = vsel %vm4606_vm1, %v4590_v19, %v6304_v48 }
 0x8e3   : > { %v4625_v42 = vsel %vm4623_vm2, %v4608_v56, %v6310_v54  ;;  %v4624_v63 = vsel %vm4623_vm2, %v4607_v38, %v6309_v26  ;;  %6412 = vrot.lane.b32.xlu2 %v6411_v5, %s7317_s14  ;;  %v10746_v54 = vld [vmem:[#allocation48_spill] sm:$0xff] }
 0x8e4   : > { %v4640_v11 = vpack.c.bf16 %v4625_v42, %v4624_v63 }
 0x8e5   : > { %6522 = vrot.lane.b32.xlu0 %v6521_v57, %s7319_s20  ;;  %s5169_s20 = scalar_lea.hbm %s10420_s6, %s5793_s16 }
 0x8e6   : > { %5709 = vmatmul.msk.bf16.vlgmr.msra.gmra.mxu3 %vm4932_vm3, %v4640_v11  ;;  %s5172_s19 = sshll.u32 %s5169_s20, 4  ;;  %s5173_s19 = int_to_ptr.hbm [resolvable:$true] %s5172_s19 }
 0x8e7   : > { %v6313_v24 = vpop.permute.xlu0 %6312  ;;  %s7184_s1 = sshra.s32 %s5173_s19, 4  ;;  %s7185_s1 = int_to_ptr.hbm [resolvable:$true] %s7184_s1 }
 0x8e8   : > { %v6315_v62 = vunpack.i.h.bf16 %v6313_v24  ;;  %v6314_v45 = vunpack.i.l.bf16 %v6313_v24  ;;  %s7186_s15 = scalar_lea.hbm %s7185_s1, 128  ;;  %p7191_p11 = scmp.lt.s32.totalorder %s7185_s1, %s10420_s6 }
 0x8e9   : > { %p7187_p1 = scmp.ne.s32.totalorder %s7185_s1, %s7186_s15 }
 0x8ea   : > { %v4841_v22 = vsel %vm862_vm0, %v10743_v13, %v6315_v62  ;;  %v4840_v58 = vsel %vm862_vm0, %v10744_v4, %v6314_v45 }
 0x8eb   : > { %6427 = vrot.lane.b32.xlu2 %v6426_v17, %s7317_s14  ;;  %p7188_p4 = pnand %p7187_p1, %p7458_p3 }
 0x8ed   : > { %p7189_p8 = pneg %p7188_p4 }
 0x8ef   : > { %v6328_v47 = vpop.permute.xlu0 %6327 }
 0x8f0   : > { %v6330_v0 = vunpack.i.h.bf16 %v6328_v47  ;;  %v6329_v59 = vunpack.i.l.bf16 %v6328_v47 }
 0x8f1   : > { %v6353_v60 = vpop.permute.xlu2 %6352 }
 0x8f2   : > { %v4593_v16 = vsel %vm862_vm0, %v10745_v33, %v6330_v0  ;;  %v4592_v41 = vsel %vm862_vm0, %v10746_v54, %v6329_v59  ;;  %v6355_v25 = vunpack.i.h.bf16 %v6353_v60  ;;  %v6354_v17 = vunpack.i.l.bf16 %v6353_v60 }
 0x8f7   : > { %v6343_v34 = vpop.permute.xlu0 %6342 }
 0x8f8   : > { %v6345_v56 = vunpack.i.h.bf16 %v6343_v34  ;;  %v6344_v38 = vunpack.i.l.bf16 %v6343_v34  ;;  %v10753_v34 = vld [vmem:[#allocation52_spill] sm:$0xff] }
 0x8fa   : > { %v6318_v37 = vpop.permute.xlu1 %6317  ;;  %v4843_v24 = vsel %vm862_vm0, %v9862_v46, %v6345_v56  ;;  %v4842_v62 = vsel %vm862_vm0, %v10747_v29, %v6344_v38  ;;  %v10751_v46 = vld [vmem:[#allocation71_spill] sm:$0xff] }
 0x8fb   : > { %v6320_v61 = vunpack.i.h.bf16 %v6318_v37  ;;  %v6319_v52 = vunpack.i.l.bf16 %v6318_v37 }
 0x8fd   : > { %v4856_v35 = vsel %vm4606_vm1, %v4840_v58, %v6319_v52  ;;  %v4857_v12 = vsel %vm4606_vm1, %v4841_v22, %v6320_v61 }
 0x8fe   : > { %v4872_v40 = vsel %vm4623_vm2, %v4856_v35, %v6324_v27  ;;  %v4873_v23 = vsel %vm4623_vm2, %v4857_v12, %v6325_v21  ;;  %v4378_v30 = vpop.f32.mrf.mxu2  ;;  %v10748_v21 = vld [vmem:[#allocation24_spill] sm:$0xff]  ;;  %v10749_v27 = vld [vmem:[#allocation25_spill] sm:$0xff] }
 0x8ff   : > { %v4888_v50 = vpack.c.bf16 %v4873_v23, %v4872_v40  ;;  %v6358_v45 = vpop.permute.xlu0 %6357  ;;  %v6456_v13 = vpack.i.bf16 %v10749_v27, %v10748_v21  ;;  %v10750_v35 = vld [vmem:[#allocation69_spill] sm:$0xff]  ;;  %v6368_v40 = vpop.permute.xlu2 %6367 }
 0x900   : > { %v3935_v1 = vpop.f32.mrf.mxu0  ;;  %v6360_v4 = vunpack.i.h.bf16 %v6358_v45  ;;  %v6359_v58 = vunpack.i.l.bf16 %v6358_v45  ;;  %v6451_v12 = vpack.i.bf16 %v10751_v46, %v10750_v35  ;;  %v6370_v0 = vunpack.i.h.bf16 %v6368_v40  ;;  %v10758_v35 = vld [vmem:[#allocation56_spill] sm:$0xff] }
 0x901   : > { %5733 = vmatmul.msk.bf16.vlgmr.msrb.gmra.mxu0 %vm4932_vm3, %v4888_v50  ;;  %v6369_v59 = vunpack.i.l.bf16 %v6368_v40 }
 0x902   : > { %v6333_v39 = vpop.permute.xlu1 %6332 }
 0x903   : > { %v6335_v55 = vunpack.i.h.bf16 %v6333_v39  ;;  %v6334_v10 = vunpack.i.l.bf16 %v6333_v39 }
 0x905   : > { %v4609_v48 = vsel %vm4606_vm1, %v4592_v41, %v6334_v10  ;;  %v4610_v32 = vsel %vm4606_vm1, %v4593_v16, %v6335_v55  ;;  %v4594_v55 = vsel %vm862_vm0, %v10753_v34, %v6359_v58 }
 0x906   : > { %v4380_v26 = vpop.f32.mrf.mxu2  ;;  %v4626_v28 = vsel %vm4623_vm2, %v4609_v48, %v6339_v20  ;;  %v4627_v6 = vsel %vm4623_vm2, %v4610_v32, %v6340_v31  ;;  %v10754_v32 = vld [vmem:[#allocation32_spill] sm:$0xff] }
 0x907   : > { %v6441_v19 = vpack.i.bf16 %v4380_v26, %v4378_v30  ;;  %v4641_v5 = vpack.c.bf16 %v4627_v6, %v4626_v28  ;;  %v10755_v26 = vld [vmem:[#allocation35_spill] sm:$0xff]  ;;  %v6373_v60 = vpop.permute.xlu0 %6372 }
 0x908   : > { %v3937_v57 = vpop.f32.mrf.mxu0  ;;  %v6486_v28 = vpack.i.bf16 %v10755_v26, %v10754_v32  ;;  %v6375_v56 = vunpack.i.h.bf16 %v6373_v60  ;;  %v6374_v38 = vunpack.i.l.bf16 %v6373_v60 }
 0x909   : > { %v6436_v42 = vpack.i.bf16 %v3937_v57, %v3935_v1  ;;  %6442 = vrot.lane.b32.xlu2 %v6441_v19, %s7317_s14  ;;  %5710 = vmatmul.msk.bf16.gmra.mxu3 %vm4932_vm3, %v4641_v5  ;;  %v10752_v1 = vld [vmem:[#allocation55_spill] sm:$0xff] }
 0x90a   : > { %v6348_v63 = vpop.permute.xlu1 %6347  ;;  %v4595_v39 = vsel %vm862_vm0, %v10752_v1, %v6360_v4 }
 0x90b   : > { %v6350_v11 = vunpack.i.h.bf16 %v6348_v63  ;;  %v6349_v36 = vunpack.i.l.bf16 %v6348_v63  ;;  %6437 = vrot.lane.b32.xlu1 %v6436_v42, %s7318_s22  ;;  %v10756_v63 = vld [vmem:[#allocation73_spill] sm:$0xff] }
 0x90d   : > { %v4858_v47 = vsel %vm4606_vm1, %v4842_v62, %v6349_v36  ;;  %v4859_v37 = vsel %vm4606_vm1, %v4843_v24, %v6350_v11  ;;  %v10757_v11 = vld [vmem:[#allocation75_spill] sm:$0xff]  ;;  %v4844_v24 = vsel %vm862_vm0, %v9874_v7, %v6374_v38 }
 0x90e   : > { %v4874_v61 = vsel %vm4623_vm2, %v4858_v47, %v6354_v17  ;;  %v4875_v52 = vsel %vm4623_vm2, %v4859_v37, %v6355_v25  ;;  %v6481_v36 = vpack.i.bf16 %v10757_v11, %v10756_v63  ;;  %v4845_v17 = vsel %vm862_vm0, %v9882_v2, %v6375_v56 }
 0x90f   : > { %v4889_v22 = vpack.c.bf16 %v4875_v52, %v4874_v61  ;;  %v6388_v45 = vpop.permute.xlu0 %6387 }
 0x910   : > { %v6389_v2 = vunpack.i.l.bf16 %v6388_v45 }
 0x911   : > { %6457 = vrot.lane.b32.xlu2 %v6456_v13, %s7317_s14  ;;  %5734 = vmatmul.msk.bf16.gmra.mxu0 %vm4932_vm3, %v4889_v22  ;;  %v6390_v13 = vunpack.i.h.bf16 %v6388_v45 }
 0x912   : > { %v6363_v23 = vpop.permute.xlu1 %6362  ;;  %v4383_v30 = vpop.f32.mrf.mxu2 }
 0x913   : > { %v6365_v51 = vunpack.i.h.bf16 %v6363_v23  ;;  %v6364_v50 = vunpack.i.l.bf16 %v6363_v23  ;;  %6452 = vrot.lane.b32.xlu1 %v6451_v12, %s7318_s22  ;;  %v4597_v46 = vsel %vm862_vm0, %v10758_v35, %v6390_v13  ;;  %v10759_v12 = vld [vmem:[#allocation53_spill] sm:$0xff] }
 0x914   : > { %v4596_v40 = vsel %vm862_vm0, %v10759_v12, %v6389_v2 }
 0x915   : > { %v4611_v10 = vsel %vm4606_vm1, %v4594_v55, %v6364_v50  ;;  %v4612_v31 = vsel %vm4606_vm1, %v4595_v39, %v6365_v51 }
 0x916   : > { %v4628_v20 = vsel %vm4623_vm2, %v4611_v10, %v6369_v59  ;;  %v4629_v33 = vsel %vm4623_vm2, %v4612_v31, %v6370_v0  ;;  %v10760_v31 = vld [vmem:[#allocation36_spill] sm:$0xff] }
 0x917   : > { %v4642_v16 = vpack.c.bf16 %v4629_v33, %v4628_v20  ;;  %v6403_v10 = vpop.permute.xlu0 %6402  ;;  %v10761_v20 = vld [vmem:[#allocation38_spill] sm:$0xff] }
 0x918   : > { %v6516_v33 = vpack.i.bf16 %v10761_v20, %v10760_v31  ;;  %v10198_v31 = vld [vmem:[%s10419_s5] ss:$0 sm:$0xff] }
 0x919   : > { %5711 = vmatmul.msk.bf16.gmra.mxu3 %vm4932_vm3, %v4642_v16 }
 0x91a   : > { %v4385_v54 = vpop.f32.mrf.mxu2 }
 0x91b   : > { %v6471_v41 = vpack.i.bf16 %v4385_v54, %v4383_v30 }
 0x91c   : > { %v3940_v48 = vpop.f32.mrf.mxu0 }
 0x91d   : > { %6472 = vrot.lane.b32.xlu2 %v6471_v41, %s7317_s14  ;;  %v6405_v41 = vunpack.i.h.bf16 %v6403_v10 }
 0x91f   : > { %v4847_v60 = vsel %vm862_vm0, %v9896_v15, %v6405_v41  ;;  %v6418_v38 = vpop.permute.xlu0 %6417 }
 0x920   : > { %v6419_v15 = vunpack.i.l.bf16 %v6418_v38 }
 0x922   : > { %v6378_v5 = vpop.permute.xlu1 %6377 }
 0x923   : > { %v6380_v57 = vunpack.i.h.bf16 %v6378_v5  ;;  %v6379_v42 = vunpack.i.l.bf16 %v6378_v5 }
 0x924   : > { %v3942_v6 = vpop.f32.mrf.mxu0 }
 0x925   : > { %v6466_v19 = vpack.i.bf16 %v3942_v6, %v3940_v48  ;;  %6487 = vrot.lane.b32.xlu2 %v6486_v28, %s7317_s14  ;;  %v4860_v47 = vsel %vm4606_vm1, %v4844_v24, %v6379_v42  ;;  %v4861_v37 = vsel %vm4606_vm1, %v4845_v17, %v6380_v57  ;;  %v6404_v48 = vunpack.i.l.bf16 %v6403_v10  ;;  %v10763_v17 = vld [vmem:[#allocation77_spill] sm:$0xff] }
 0x927   : > { %6467 = vrot.lane.b32.xlu1 %v6466_v19, %s7318_s22  ;;  %v4846_v19 = vsel %vm862_vm0, %v9888_v53, %v6404_v48 }
 0x92a   : > { %v6393_v61 = vpop.permute.xlu1 %6392 }
 0x92b   : > { %v6395_v4 = vunpack.i.h.bf16 %v6393_v61  ;;  %v6394_v7 = vunpack.i.l.bf16 %v6393_v61 }
 0x92d   : > { %v6383_v25 = vpop.permute.xlu2 %6382  ;;  %v4613_v51 = vsel %vm4606_vm1, %v4596_v40, %v6394_v7  ;;  %v4614_v50 = vsel %vm4606_vm1, %v4597_v46, %v6395_v4 }
 0x92e   : > { %v6385_v29 = vunpack.i.h.bf16 %v6383_v25  ;;  %v6384_v62 = vunpack.i.l.bf16 %v6383_v25  ;;  %v10762_v25 = vld [vmem:[#allocation76_spill] sm:$0xff] }
 0x92f   : > { %6482 = vrot.lane.b32.xlu1 %v6481_v36, %s7318_s22  ;;  %v6511_v24 = vpack.i.bf16 %v10763_v17, %v10762_v25 }
 0x930   : > { %v4876_v52 = vsel %vm4623_vm2, %v4860_v47, %v6384_v62  ;;  %v4877_v21 = vsel %vm4623_vm2, %v4861_v37, %v6385_v29  ;;  %v6420_v29 = vunpack.i.h.bf16 %v6418_v38  ;;  %v10764_v37 = vld [vmem:[#allocation49_spill] sm:$0xff] }
 0x931   : > { %v4890_v27 = vpack.c.bf16 %v4877_v21, %v4876_v52  ;;  %v10765_v52 = vld [vmem:[#allocation30_spill] sm:$0xff] }
 0x932   : > { %v4388_v22 = vpop.f32.mrf.mxu2  ;;  %v4599_v61 = vsel %vm862_vm0, %v10764_v37, %v6420_v29  ;;  %v4598_v21 = vsel %vm862_vm0, %v10765_v52, %v6419_v15 }
 0x933   : > { %5735 = vmatmul.msk.bf16.gmra.mxu0 %vm4932_vm3, %v4890_v27 }
 0x935   : > { %v6398_v58 = vpop.permute.xlu2 %6397 }
 0x936   : > { %v6400_v23 = vunpack.i.h.bf16 %v6398_v58  ;;  %v6399_v30 = vunpack.i.l.bf16 %v6398_v58 }
 0x938   : > { %v4630_v0 = vsel %vm4623_vm2, %v4613_v51, %v6399_v30  ;;  %v4631_v59 = vsel %vm4623_vm2, %v4614_v50, %v6400_v23  ;;  %v10187_v51 = vld [vmem:[%s10766_s4] ss:$0 sm:$0xff] }
 0x939   : > { %v4643_v1 = vpack.c.bf16 %v4631_v59, %v4630_v0 }
 0x93a   : > { %v4390_v39 = vpop.f32.mrf.mxu2 }
 0x93b   : > { %v6501_v34 = vpack.i.bf16 %v4390_v39, %v4388_v22  ;;  %5712 = vmatmul.msk.bf16.gmra.mxu3 %vm4932_vm3, %v4643_v1  ;;  %v6433_v39 = vpop.permute.xlu0 %6432 }
 0x93c   : > { %v3945_v55 = vpop.f32.mrf.mxu0  ;;  %v6434_v10 = vunpack.i.l.bf16 %v6433_v39 }
 0x93d   : > { %6502 = vrot.lane.b32.xlu2 %v6501_v34, %s7317_s14  ;;  %v6413_v16 = vpop.permute.xlu2 %6412  ;;  %v6435_v34 = vunpack.i.h.bf16 %v6433_v39 }
 0x93e   : > { %v6415_v5 = vunpack.i.h.bf16 %v6413_v16  ;;  %v6414_v56 = vunpack.i.l.bf16 %v6413_v16  ;;  %v4848_v48 = vsel %vm862_vm0, %v9910_v49, %v6434_v10 }
 0x944   : > { %v3947_v54 = vpop.f32.mrf.mxu0 }
 0x945   : > { %v6496_v32 = vpack.i.bf16 %v3947_v54, %v3945_v55  ;;  %6517 = vrot.lane.b32.xlu2 %v6516_v33, %s7317_s14  ;;  %v6428_v62 = vpop.permute.xlu2 %6427  ;;  %v4849_v33 = vsel %vm862_vm0, %v9921_v14, %v6435_v34 }
 0x946   : > { %v6430_v27 = vunpack.i.h.bf16 %v6428_v62  ;;  %v6429_v13 = vunpack.i.l.bf16 %v6428_v62 }
 0x947   : > { %v6408_v26 = vpop.permute.xlu1 %6407  ;;  %6497 = vrot.lane.b32.xlu1 %v6496_v32, %s7318_s22  ;;  %v6448_v32 = vpop.permute.xlu0 %6447 }
 0x948   : > { %v6410_v28 = vunpack.i.h.bf16 %v6408_v26  ;;  %v6409_v6 = vunpack.i.l.bf16 %v6408_v26  ;;  %v6449_v38 = vunpack.i.l.bf16 %v6448_v32 }
 0x94a   : > { %v4862_v57 = vsel %vm4606_vm1, %v4846_v19, %v6409_v6  ;;  %v4863_v42 = vsel %vm4606_vm1, %v4847_v60, %v6410_v28 }
 0x94b   : > { %v4878_v63 = vsel %vm4623_vm2, %v4862_v57, %v6414_v56  ;;  %v4879_v11 = vsel %vm4623_vm2, %v4863_v42, %v6415_v5  ;;  %v6450_v56 = vunpack.i.h.bf16 %v6448_v32 }
 0x94c   : > { %v4891_v36 = vpack.c.bf16 %v4879_v11, %v4878_v63  ;;  %v10767_v63 = vld [vmem:[#allocation67_spill] sm:$0xff] }
 0x94d   : > { %v4601_v11 = vsel %vm862_vm0, %v10767_v63, %v6450_v56 }
 0x94e   : > { %5736 = vmatmul.msk.bf16.gmra.mxu0 %vm4932_vm3, %v4891_v36 }
 0x94f   : > { %v6423_v53 = vpop.permute.xlu1 %6422  ;;  %6512 = vrot.lane.b32.xlu1 %v6511_v24, %s7318_s22  ;;  %v10768_v24 = vld [vmem:[#allocation50_spill] sm:$0xff] }
 0x950   : > { %v6425_v45 = vunpack.i.h.bf16 %v6423_v53  ;;  %v6424_v47 = vunpack.i.l.bf16 %v6423_v53  ;;  %v4600_v29 = vsel %vm862_vm0, %v10768_v24, %v6449_v38 }
 0x952   : > { %v4615_v2 = vsel %vm4606_vm1, %v4598_v21, %v6424_v47  ;;  %v4616_v22 = vsel %vm4606_vm1, %v4599_v61, %v6425_v45 }
 0x953   : > { %v4632_v4 = vsel %vm4623_vm2, %v4615_v2, %v6429_v13  ;;  %v4633_v7 = vsel %vm4623_vm2, %v4616_v22, %v6430_v27  ;;  %v6463_v22 = vpop.permute.xlu0 %6462 }
 0x954   : > { %v4644_v58 = vpack.c.bf16 %v4633_v7, %v4632_v4 }
 0x956   : > { %5713 = vmatmul.msk.bf16.gmra.mxu3 %vm4932_vm3, %v4644_v58 }
 0x957   : > { %v4393_v35 = vpop.f32.mrf.mxu2 }
 0x959   : > { %v3950_v46 = vpop.f32.mrf.mxu0 }
 0x95b   : > { %v6478_v34 = vpop.permute.xlu0 %6477 }
 0x95f   : > { %v4395_v12 = vpop.f32.mrf.mxu2 }
 0x960   : > { %v6531_v40 = vpack.i.bf16 %v4395_v12, %v4393_v35  ;;  %v6464_v12 = vunpack.i.l.bf16 %v6463_v22 }
 0x961   : > { %v3952_v23 = vpop.f32.mrf.mxu0 }
 0x962   : > { %v6526_v30 = vpack.i.bf16 %v3952_v23, %v3950_v46  ;;  %6532 = vrot.lane.b32.xlu2 %v6531_v40, %s7317_s14  ;;  %v6465_v46 = vunpack.i.h.bf16 %v6463_v22  ;;  %s7190_s14 = scalar_lea.hbm %s10420_s6, 256 }
 0x963   : > { %v6443_v55 = vpop.permute.xlu2 %6442  ;;  %v6493_v24 = vpop.permute.xlu0 %6492  ;;  %p7192_p9 = scmp.lt.s32.totalorder %s7190_s14, %s7186_s15 }
 0x964   : > { %6527 = vrot.lane.b32.xlu1 %v6526_v30, %s7318_s22  ;;  %v6445_v26 = vunpack.i.h.bf16 %v6443_v55  ;;  %v6444_v28 = vunpack.i.l.bf16 %v6443_v55 }
 0x965   : > { %p7193_p2 = por %p7192_p9, %p7191_p11 }
 0x967   : > { %p7194_p10 = pnand %p7193_p2, %p7189_p8 }
 0x969   : > { %v4966_v50 = vpop.f32.mrf.mxu3 }
 0x96a   : > { %v4967_v0 = vadd.f32 %v10187_v51, %v4966_v50 }
 0x96b   : > { %v6458_v57 = vpop.permute.xlu2 %6457 }
 0x96c   : > { %5006 = vst [vmem:[%s10190_s2] sm:$0xff] %v4967_v0  ;;  %v6460_v15 = vunpack.i.h.bf16 %v6458_v57  ;;  %v6459_v62 = vunpack.i.l.bf16 %v6458_v57  ;;  %v4851_v0 = vsel %vm862_vm0, %v9946_v3, %v6465_v46  ;;  %v6479_v3 = vunpack.i.l.bf16 %v6478_v34 }
 0x971   : > { %v4968_v59 = vpop.f32.mrf.mxu3 }
 0x972   : > { %v4969_v1 = vadd.f32 %v10187_v51, %v4968_v59  ;;  %v4850_v59 = vsel %vm862_vm0, %v9930_v43, %v6464_v12 }
 0x974   : > { %5007 = vst [vmem:[%s10190_s2 + $0x8] sm:$0xff] %v4969_v1 }
 0x977   : > { %v6473_v58 = vpop.permute.xlu2 %6472 }
 0x978   : > { %v6475_v1 = vunpack.i.h.bf16 %v6473_v58  ;;  %v6474_v39 = vunpack.i.l.bf16 %v6473_v58 }
 0x97d   : > { %v6438_v20 = vpop.permute.xlu1 %6437 }
 0x97e   : > { %v6440_v16 = vunpack.i.h.bf16 %v6438_v20  ;;  %v6439_v54 = vunpack.i.l.bf16 %v6438_v20  ;;  %v5091_v41 = vpop.f32.mrf.mxu0 }
 0x97f   : > { %v5092_v6 = vadd.f32 %v10198_v31, %v5091_v41  ;;  %v6488_v32 = vpop.permute.xlu2 %6487 }
 0x980   : > { %v4864_v60 = vsel %vm4606_vm1, %v4848_v48, %v6439_v54  ;;  %v4865_v19 = vsel %vm4606_vm1, %v4849_v33, %v6440_v16  ;;  %v6480_v48 = vunpack.i.h.bf16 %v6478_v34  ;;  %v6489_v56 = vunpack.i.l.bf16 %v6488_v32 }
 0x981   : > { %5131 = vst [vmem:[%s10207_s11] sm:$0xff] %v5092_v6  ;;  %v4880_v14 = vsel %vm4623_vm2, %v4864_v60, %v6444_v28  ;;  %v4881_v5 = vsel %vm4623_vm2, %v4865_v19, %v6445_v26  ;;  %v10769_v6 = vld [vmem:[#allocation57_spill] sm:$0xff]  ;;  %v10770_v19 = vld [vmem:[#allocation51_spill] sm:$0xff] }
 0x982   : > { %v4892_v49 = vpack.c.bf16 %v4881_v5, %v4880_v14  ;;  %v4603_v60 = vsel %vm862_vm0, %v10769_v6, %v6480_v48  ;;  %v4602_v14 = vsel %vm862_vm0, %v10770_v19, %v6479_v3  ;;  %v6490_v5 = vunpack.i.h.bf16 %v6488_v32 }
 0x984   : > { %5737 = vmatmul.msk.bf16.gmra.mxu0 %vm4932_vm3, %v4892_v49 }
 0x985   : > { %v6453_v42 = vpop.permute.xlu1 %6452 }
 0x986   : > { %v6455_v36 = vunpack.i.h.bf16 %v6453_v42  ;;  %v6454_v25 = vunpack.i.l.bf16 %v6453_v42  ;;  %v5093_v17 = vpop.f32.mrf.mxu0 }
 0x987   : > { %v5094_v53 = vadd.f32 %v10198_v31, %v5093_v17 }
 0x988   : > { %v4617_v45 = vsel %vm4606_vm1, %v4600_v29, %v6454_v25  ;;  %v4618_v47 = vsel %vm4606_vm1, %v4601_v11, %v6455_v36 }
 0x989   : > { %5132 = vst [vmem:[%s10207_s11 + $0x8] sm:$0xff] %v5094_v53  ;;  %v4634_v37 = vsel %vm4623_vm2, %v4617_v45, %v6459_v62  ;;  %v4635_v61 = vsel %vm4623_vm2, %v4618_v47, %v6460_v15  ;;  %v6495_v15 = vunpack.i.h.bf16 %v6493_v24  ;;  %v6494_v62 = vunpack.i.l.bf16 %v6493_v24 }
 0x98a   : > { %v4645_v52 = vpack.c.bf16 %v4635_v61, %v4634_v37 }
 0x98c   : > { %v4971_v21 = vpop.f32.mrf.mxu3  ;;  %5714 = vmatmul.msk.bf16.gmra.mxu3 %vm4932_vm3, %v4645_v52  ;;  %v4853_v52 = vsel %vm862_vm0, %v9958_v18, %v6495_v15 }
 0x98d   : > { %v4972_v27 = vadd.f32 %v10187_v51, %v4971_v21  ;;  %v4852_v21 = vsel %vm862_vm0, %v9953_v8, %v6494_v62 }
 0x98e   : > { %v5096_v13 = vpop.f32.mrf.mxu0 }
 0x98f   : > { %5008 = vst [vmem:[%s10190_s2 + $0x10] sm:$0xff] %v4972_v27  ;;  %v5097_v2 = vadd.f32 %v10198_v31, %v5096_v13 }
 0x991   : > { %5133 = vst [vmem:[%s10207_s11 + $0x10] sm:$0xff] %v5097_v2  ;;  %v6508_v2 = vpop.permute.xlu0 %6507 }
 0x992   : > { %v6510_v12 = vunpack.i.h.bf16 %v6508_v2  ;;  %v6509_v18 = vunpack.i.l.bf16 %v6508_v2 }
 0x994   : > { %v4973_v4 = vpop.f32.mrf.mxu3 }
 0x995   : > { %v4974_v7 = vadd.f32 %v10187_v51, %v4973_v4 }
 0x996   : > { %v5098_v35 = vpop.f32.mrf.mxu0 }
 0x997   : > { %5009 = vst [vmem:[%s10190_s2 + $0x18] sm:$0xff] %v4974_v7  ;;  %v5099_v40 = vadd.f32 %v10198_v31, %v5098_v35  ;;  %v6503_v29 = vpop.permute.xlu2 %6502 }
 0x998   : > { %v6505_v27 = vunpack.i.h.bf16 %v6503_v29  ;;  %v6504_v13 = vunpack.i.l.bf16 %v6503_v29 }
 0x999   : > { %5134 = vst [vmem:[%s10207_s11 + $0x18] sm:$0xff] %v5099_v40  ;;  %v6468_v23 = vpop.permute.xlu1 %6467 }
 0x99a   : > { %v6470_v30 = vunpack.i.h.bf16 %v6468_v23  ;;  %v6469_v50 = vunpack.i.l.bf16 %v6468_v23 }
 0x99c   : > { %v4866_v55 = vsel %vm4606_vm1, %v4850_v59, %v6469_v50  ;;  %v4867_v10 = vsel %vm4606_vm1, %v4851_v0, %v6470_v30  ;;  %v4976_v20 = vpop.f32.mrf.mxu3  ;;  %v10771_v0 = vld [vmem:[#allocation29_spill] sm:$0xff] }
 0x99d   : > { %v4977_v33 = vadd.f32 %v10187_v51, %v4976_v20  ;;  %v4882_v16 = vsel %vm4623_vm2, %v4866_v55, %v6474_v39  ;;  %v4883_v54 = vsel %vm4623_vm2, %v4867_v10, %v6475_v1  ;;  %v4605_v59 = vsel %vm862_vm0, %v10771_v0, %v6510_v12  ;;  %v10772_v1 = vld [vmem:[#allocation22_spill] sm:$0xff] }
 0x99e   : > { %v4893_v41 = vpack.c.bf16 %v4883_v54, %v4882_v16  ;;  %v4604_v39 = vsel %vm862_vm0, %v10772_v1, %v6509_v18 }
 0x99f   : > { %5010 = vst [vmem:[%s10190_s2 + $0x20] sm:$0xff] %v4977_v33  ;;  %v6518_v8 = vpop.permute.xlu2 %6517 }
 0x9a0   : > { %5738 = vmatmul.msk.bf16.gmra.mxu0 %vm4932_vm3, %v4893_v41  ;;  %v6520_v34 = vunpack.i.h.bf16 %v6518_v8  ;;  %v6519_v55 = vunpack.i.l.bf16 %v6518_v8 }
 0x9a1   : > { %v6483_v43 = vpop.permute.xlu1 %6482 }
 0x9a2   : > { %v6485_v26 = vunpack.i.h.bf16 %v6483_v43  ;;  %v6484_v28 = vunpack.i.l.bf16 %v6483_v43  ;;  %v6523_v43 = vpop.permute.xlu0 %6522 }
 0x9a3   : > { %v6524_v6 = vunpack.i.l.bf16 %v6523_v43 }
 0x9a4   : > { %v4619_v49 = vsel %vm4606_vm1, %v4602_v14, %v6484_v28  ;;  %v4620_v38 = vsel %vm4606_vm1, %v4603_v60, %v6485_v26  ;;  %v4978_v57 = vpop.f32.mrf.mxu3  ;;  %v6525_v28 = vunpack.i.h.bf16 %v6523_v43 }
 0x9a5   : > { %v4979_v42 = vadd.f32 %v10187_v51, %v4978_v57  ;;  %v4636_v63 = vsel %vm4623_vm2, %v4619_v49, %v6489_v56  ;;  %v4637_v11 = vsel %vm4623_vm2, %v4620_v38, %v6490_v5  ;;  %v4854_v38 = vsel %vm862_vm0, %v9964_v9, %v6524_v6 }
 0x9a6   : > { %v4646_v36 = vpack.c.bf16 %v4637_v11, %v4636_v63  ;;  %v4855_v49 = vsel %vm862_vm0, %v9978_v44, %v6525_v28 }
 0x9a7   : > { %5011 = vst [vmem:[%s10190_s2 + $0x28] sm:$0xff] %v4979_v42 }
 0x9a8   : > { %5715 = vmatmul.msk.bf16.gmra.mxu3 %vm4932_vm3, %v4646_v36 }
 0x9b0   : > { %v5101_v25 = vpop.f32.mrf.mxu0 }
 0x9b1   : > { %v5102_v17 = vadd.f32 %v10198_v31, %v5101_v25 }
 0x9b3   : > { %5135 = vst [vmem:[%s10207_s11 + $0x20] sm:$0xff] %v5102_v17 }
 0x9b8   : > { %v5103_v53 = vpop.f32.mrf.mxu0 }
 0x9b9   : > { %v5104_v45 = vadd.f32 %v10198_v31, %v5103_v53  ;;  %v6498_v47 = vpop.permute.xlu1 %6497 }
 0x9ba   : > { %v6500_v37 = vunpack.i.h.bf16 %v6498_v47  ;;  %v6499_v61 = vunpack.i.l.bf16 %v6498_v47 }
 0x9bb   : > { %5136 = vst [vmem:[%s10207_s11 + $0x28] sm:$0xff] %v5104_v45 }
 0x9bc   : > { %v4868_v22 = vsel %vm4606_vm1, %v4852_v21, %v6499_v61  ;;  %v4869_v4 = vsel %vm4606_vm1, %v4853_v52, %v6500_v37  ;;  %v6533_v19 = vpop.permute.xlu2 %6532 }
 0x9bd   : > { %v4884_v7 = vsel %vm4623_vm2, %v4868_v22, %v6504_v13  ;;  %v4885_v58 = vsel %vm4623_vm2, %v4869_v4, %v6505_v27  ;;  %v6535_v57 = vunpack.i.h.bf16 %v6533_v19  ;;  %v6534_v42 = vunpack.i.l.bf16 %v6533_v19 }
 0x9be   : > { %v4981_v35 = vpop.f32.mrf.mxu3  ;;  %v4894_v46 = vpack.c.bf16 %v4885_v58, %v4884_v7 }
 0x9bf   : > { %v4982_v40 = vadd.f32 %v10187_v51, %v4981_v35 }
 0x9c0   : > { %5739 = vmatmul.msk.bf16.gmra.mxu0 %vm4932_vm3, %v4894_v46 }
 0x9c1   : > { %5012 = vst [vmem:[%s10190_s2 + $0x30] sm:$0xff] %v4982_v40  ;;  %v6513_v23 = vpop.permute.xlu1 %6512 }
 0x9c2   : > { %v6515_v30 = vunpack.i.h.bf16 %v6513_v23  ;;  %v6514_v50 = vunpack.i.l.bf16 %v6513_v23 }
 0x9c4   : > { %v4621_v10 = vsel %vm4606_vm1, %v4604_v39, %v6514_v50  ;;  %v4622_v20 = vsel %vm4606_vm1, %v4605_v59, %v6515_v30 }
 0x9c5   : > { %v4638_v33 = vsel %vm4623_vm2, %v4621_v10, %v6519_v55  ;;  %v4639_v16 = vsel %vm4623_vm2, %v4622_v20, %v6520_v34 }
 0x9c6   : > { %v4983_v54 = vpop.f32.mrf.mxu3  ;;  %v4647_v41 = vpack.c.bf16 %v4639_v16, %v4638_v33 }
 0x9c7   : > { %v4984_v48 = vadd.f32 %v10187_v51, %v4983_v54 }
 0x9c8   : > { %5716 = vmatmul.msk.bf16.gmra.mxu3 %vm4932_vm3, %v4647_v41 }
 0x9c9   : > { %5013 = vst [vmem:[%s10190_s2 + $0x38] sm:$0xff] %v4984_v48 }
 0x9cb   : > { %v5106_v3 = vpop.f32.mrf.mxu0 }
 0x9cc   : > { %v5107_v32 = vadd.f32 %v10198_v31, %v5106_v3 }
 0x9ce   : > { %5137 = vst [vmem:[%s10207_s11 + $0x30] sm:$0xff] %v5107_v32 }
 0x9d3   : > { %v5108_v26 = vpop.f32.mrf.mxu0 }
 0x9d4   : > { %v5109_v60 = vadd.f32 %v10198_v31, %v5108_v26 }
 0x9d6   : > { %5138 = vst [vmem:[%s10207_s11 + $0x38] sm:$0xff] %v5109_v60  ;;  %v6528_v14 = vpop.permute.xlu1 %6527 }
 0x9d7   : > { %v6530_v5 = vunpack.i.h.bf16 %v6528_v14  ;;  %v6529_v56 = vunpack.i.l.bf16 %v6528_v14 }
 0x9d9   : > { %v4870_v63 = vsel %vm4606_vm1, %v4854_v38, %v6529_v56  ;;  %v4871_v11 = vsel %vm4606_vm1, %v4855_v49, %v6530_v5  ;;  %v4986_v36 = vpop.f32.mrf.mxu3 }
 0x9da   : > { %v4886_v25 = vsel %vm4623_vm2, %v4870_v63, %v6534_v42  ;;  %v4887_v17 = vsel %vm4623_vm2, %v4871_v11, %v6535_v57  ;;  %v4987_v24 = vadd.f32 %v10187_v51, %v4986_v36 }
 0x9db   : > { %v4895_v44 = vpack.c.bf16 %v4887_v17, %v4886_v25 }
 0x9dc   : > { %5014 = vst [vmem:[%s10190_s2 + $0x40] sm:$0xff] %v4987_v24 }
 0x9dd   : > { %5740 = vmatmul.msk.bf16.gmra.mxu0 %vm4932_vm3, %v4895_v44 }
 0x9e1   : > { %v4988_v9 = vpop.f32.mrf.mxu3 }
 0x9e2   : > { %v4989_v29 = vadd.f32 %v10187_v51, %v4988_v9 }
 0x9e4   : > { %5015 = vst [vmem:[%s10190_s2 + $0x48] sm:$0xff] %v4989_v29 }
 0xa01   : > { %v5111_v15 = vpop.f32.mrf.mxu0 }
 0xa02   : > { %v5112_v62 = vadd.f32 %v10198_v31, %v5111_v15 }
 0xa04   : > { %5139 = vst [vmem:[%s10207_s11 + $0x40] sm:$0xff] %v5112_v62 }
 0xa09   : > { %v5113_v53 = vpop.f32.mrf.mxu0 }
 0xa0a   : > { %v5114_v45 = vadd.f32 %v10198_v31, %v5113_v53 }
 0xa0c   : > { %5140 = vst [vmem:[%s10207_s11 + $0x48] sm:$0xff] %v5114_v45 }
 0xa0f   : > { %v4991_v47 = vpop.f32.mrf.mxu3 }
 0xa10   : > { %v4992_v37 = vadd.f32 %v10187_v51, %v4991_v47 }
 0xa12   : > { %5016 = vst [vmem:[%s10190_s2 + $0x50] sm:$0xff] %v4992_v37 }
 0xa17   : > { %v4993_v61 = vpop.f32.mrf.mxu3 }
 0xa18   : > { %v4994_v52 = vadd.f32 %v10187_v51, %v4993_v61 }
 0xa1a   : > { %5017 = vst [vmem:[%s10190_s2 + $0x58] sm:$0xff] %v4994_v52 }
 0xa1d   : > { %v5116_v21 = vpop.f32.mrf.mxu0 }
 0xa1e   : > { %v5117_v27 = vadd.f32 %v10198_v31, %v5116_v21 }
 0xa20   : > { %5141 = vst [vmem:[%s10207_s11 + $0x50] sm:$0xff] %v5117_v27 }
 0xa25   : > { %v5118_v13 = vpop.f32.mrf.mxu0 }
 0xa26   : > { %v5119_v2 = vadd.f32 %v10198_v31, %v5118_v13 }
 0xa28   : > { %5142 = vst [vmem:[%s10207_s11 + $0x58] sm:$0xff] %v5119_v2 }
 0xa2b   : > { %v4996_v22 = vpop.f32.mrf.mxu3 }
 0xa2c   : > { %v4997_v4 = vadd.f32 %v10187_v51, %v4996_v22 }
 0xa2e   : > { %5018 = vst [vmem:[%s10190_s2 + $0x60] sm:$0xff] %v4997_v4 }
 0xa33   : > { %v4998_v7 = vpop.f32.mrf.mxu3 }
 0xa34   : > { %v4999_v58 = vadd.f32 %v10187_v51, %v4998_v7 }
 0xa36   : > { %5019 = vst [vmem:[%s10190_s2 + $0x68] sm:$0xff] %v4999_v58 }
 0xa3d   : > { %v5121_v35 = vpop.f32.mrf.mxu0 }
 0xa3e   : > { %v5122_v46 = vadd.f32 %v10198_v31, %v5121_v35 }
 0xa40   : > { %5143 = vst [vmem:[%s10207_s11 + $0x60] sm:$0xff] %v5122_v46 }
 0xa45   : > { %v5123_v12 = vpop.f32.mrf.mxu0 }
 0xa46   : > { %v5124_v18 = vadd.f32 %v10198_v31, %v5123_v12 }
 0xa48   : > { %5144 = vst [vmem:[%s10207_s11 + $0x68] sm:$0xff] %v5124_v18 }
 0xa4b   : > { %v5001_v40 = vpop.f32.mrf.mxu3 }
 0xa4c   : > { %v5002_v8 = vadd.f32 %v10187_v51, %v5001_v40 }
 0xa4e   : > { %5020 = vst [vmem:[%s10190_s2 + $0x70] sm:$0xff] %v5002_v8 }
 0xa53   : > { %v5003_v23 = vpop.f32.mrf.mxu3 }
 0xa54   : > { %v5004_v30 = vadd.f32 %v10187_v51, %v5003_v23 }
 0xa56   : > { %5021 = vst [vmem:[%s10190_s2 + $0x78] sm:$0xff] %v5004_v30 }
 0xa57   : > { %7197 = shalt.err (!%p7194_p10)
}
 0xa58   : > { %s7320_s17 = smov 128   ;;  %s7321_s2 = smov 8  }
 0xa59   : > { %6209 = dma.vmem_to_hbm [thread:$0]  (%p7458_p3), %s5171_s18, 2048, %s5173_s19, %s5148_s24, %s7320_s17, %s7320_s17, %s7321_s2  }
 0xa5a   : > { %v5126_v51 = vpop.f32.mrf.mxu0  ;;  %s5795_s13 = sshll.u32 %s7389_s9, 9  ;;  %s5186_s10 = scalar_lea.hbm %s10421_s7, %s5793_s16 }
 0xa5b   : > { %v5127_v50 = vadd.f32 %v10198_v31, %v5126_v51  ;;  %s5203_s20 = scalar_lea.hbm %s10422_s8, %s5795_s13  ;;  %s5152_s0 = sand.u32 1, %s7389_s9  }
 0xa5c   : > { %s5187_s3 = sshll.u32 %s10207_s11, 4  ;;  %s5189_s4 = sshll.u32 %s5186_s10, 4  ;;  %s5188_s3 = int_to_ptr.vmem [resolvable:$true] %s5187_s3  ;;  %s5190_s4 = int_to_ptr.hbm [resolvable:$true] %s5189_s4 }
 0xa5d   : > { %5145 = vst [vmem:[%s10207_s11 + $0x70] sm:$0xff] %v5127_v50  ;;  %s5204_s18 = sshll.u32 %s8514_s21, 4  ;;  %s5206_s19 = sshll.u32 %s5203_s20, 4  ;;  %s10357_s18 = int_to_ptr.vmem [resolvable:$true] %s5204_s18  ;;  %s10359_s19 = int_to_ptr.hbm [resolvable:$true] %s5206_s19 }
 0xa5e   : > { %s10362_s16 = scalar_lea.sflag [#allocation12], %s5152_s0  ;;  %s7212_s24 = sshra.s32 %s5190_s4, 4  ;;  %s7213_s24 = int_to_ptr.hbm [resolvable:$true] %s7212_s24 }
 0xa5f   : > { %s7214_s9 = scalar_lea.hbm %s7213_s24, 128  ;;  %s7218_s1 = scalar_lea.hbm %s10421_s7, 256 }
 0xa60   : > { %p7215_p12 = scmp.ne.s32.totalorder %s7213_s24, %s7214_s9  ;;  %p7219_p5 = scmp.lt.s32.totalorder %s7213_s24, %s10421_s7 }
 0xa61   : > { %p7220_p7 = scmp.lt.s32.totalorder %s7218_s1, %s7214_s9 }
 0xa62   : > { %v5128_v0 = vpop.f32.mrf.mxu0  ;;  %p7216_p13 = pnand %p7215_p12, %p7458_p3 }
 0xa63   : > { %v5129_v59 = vadd.f32 %v10198_v31, %v5128_v0  ;;  %p7221_p1 = por %p7220_p7, %p7219_p5 }
 0xa64   : > { %p7217_p0 = pneg %p7216_p13 }
 0xa65   : > { %5146 = vst [vmem:[%s10207_s11 + $0x78] sm:$0xff] %v5129_v59 }
 0xa66   : > { %p7222_p4 = pnand %p7221_p1, %p7217_p0 }
 0xa68   : > { %7225 = shalt.err (!%p7222_p4)
}
 0xa69   : > { %6210 = dma.vmem_to_hbm [thread:$0]  (%p7458_p3), %s5188_s3, 2048, %s5190_s4, %s10362_s16, %s7320_s17, %s7320_s17, %s7321_s2  }
 0xa6a   : > { %s7240_s0 = sshra.s32 %s10359_s19, 4  ;;  %s7246_s20 = scalar_lea.hbm %s10422_s8, 1024  ;;  %s7241_s0 = int_to_ptr.hbm [resolvable:$true] %s7240_s0 }
 0xa6b   : > { %s7242_s11 = scalar_lea.hbm %s7241_s0, 512  ;;  %p7247_p2 = scmp.lt.s32.totalorder %s7241_s0, %s10422_s8 }
 0xa6c   : > { %p7243_p8 = scmp.ne.s32.totalorder %s7241_s0, %s7242_s11  ;;  %p7248_p10 = scmp.lt.s32.totalorder %s7246_s20, %s7242_s11 }
 0xa6e   : > { %p7244_p11 = pnand %p7243_p8, %p7458_p3  ;;  %p7249_p12 = por %p7248_p10, %p7247_p2 }
 0xa70   : > { %p7245_p9 = pneg %p7244_p11 }
 0xa72   : > { %p7250_p13 = pnand %p7249_p12, %p7245_p9 }
 0xa74   : > { %7253 = shalt.err (!%p7250_p13)
}
 0xa75   : > { %s7322_s3 = smov 4   ;;  %s10773_s4 = smov 64  }
 0xa76   : > { %6211 = dma.vmem_to_hbm [thread:$0]  (%p7458_p3), %s10357_s18, 8192, %s10359_s19, %s10362_s16, %s10773_s4, %s10773_s4, %s7322_s3  }
 0xa77 PF: > { %s5221_s17 = sand.u32 1, %s7292_s27   ;;  %p10774_p0 = scmp.ge.s32.totalorder %s7304_s30, 2 }
 0xa78   : > { %s5222_s2 = scalar_lea.sflag [#allocation4], %s5221_s17 }
 0xa79   : > { %p6230_p5 = pnand %p10774_p0, %p7405_p6 }
 0xa7b   : > { %p6231_p7 = pneg %p6230_p5 }
 0xa7d   : > { %7283 = dma.done.wait (%p6231_p7), %s5222_s2, 2048  }
 0xa7e   : > { %7285 = vsyncadd (%p6231_p7), %s5222_s2, 4294965248  ;;  %s10775_s26 = sadd.s32 4294967294, %s7304_s30  }
 0xa7f   : > { %s5231_s21 = sand.u32 1, %s10775_s26  }
 0xa80   : > { %s5232_s13 = scalar_lea.sflag [#allocation12], %s5231_s21 }
 0xa81   : > { %7287 = dma.done.wait (%p6231_p7), %s5232_s13, 10240  }
 0xa82   : > { %7289 = vsyncadd (%p6231_p7), %s5232_s13, 4294957056  ;;  %p27_p3 = scmp.ge.s32.totalorder %s7445_s23, 4   ;;  %s10776_s27 = smov %s7296_s28 }
 0xa83   : > { %s10777_s28 = smov %s7300_s29  ;;  %s10778_s29 = smov %s7454_s25 }
 0xa84   : > { %s10779_s30 = smov %s7445_s23  ;;  %29 = sbr.rel (!%p27_p3) target bundleno = 15 (0xf), region = 140 }
 0xa89   :  { %5248 = vsyncpa [#allocation3], 1 }
 0xa8a   :  { %5250 = vsyncpa [#allocation3 + $0x1], 1 }
 0xa8b   :  { %5251 = vsyncpa [#allocation6], 1 }
 0xa8c   :  { %5252 = vsyncpa [#allocation9], 1 }
 0xa8d   :  { %5253 = vsyncpa [#allocation4], 1 }
 0xa8e   :  { %5255 = vsyncpa [#allocation4 + $0x1], 1 }
 0xa8f   :  { %5256 = vsyncpa [#allocation12], 1 }
 0xa90   :  { %5258 = vsyncpa [#allocation12 + $0x1], 1 }

</bundles_post_ra>
